<compile_context>
chip_gen: v6e
topology: v6e:2x2x1
jax: 0.10.0
libtpu: 0.0.40
codegen_flags: <defaults>
</compile_context>

<pallas_src>
import jax
import jax.numpy as jnp
from jax import lax
from jax.experimental import pallas as pl
from jax.experimental.pallas import tpu as pltpu


# ----------------------------------------------------------------------------
# helpers
# ----------------------------------------------------------------------------
def _round_up(x, m):
    return (x + m - 1) // m * m


def _vmem_capacity_bytes():
    try:
        return int(pltpu.get_tpu_info().vmem_capacity_bytes)
    except Exception:
        return 64 * 1024 * 1024  # v7x-safe fallback (smallest VMEM generation)


def _pick_row_tile(Ho, Wo_p, C_p, per_pixel_elems, reserved_bytes=0):
    """Pick output-row tile height so one grid step stays well inside VMEM."""
    budget = _vmem_capacity_bytes() // 5 - reserved_bytes
    bytes_per_row = per_pixel_elems * C_p * 4 * Wo_p
    th = max(1, budget // max(1, bytes_per_row))
    return int(max(1, min(Ho, th)))


def _vmem_limit_bytes():
    # Raise the scoped-VMEM limit (default ~32 MiB) but stay under 3/4 of the
    # physical capacity of the current generation (48 MiB on v7x, 96 MiB on v5e/v6e).
    return int(min(_vmem_capacity_bytes() * 3 // 4, 96 * 1024 * 1024))


# ----------------------------------------------------------------------------
# kernels
# ----------------------------------------------------------------------------
def _conv_down_kernel(ee_ref, eo_ref, oe_ref, oo_ref, ee_h_ref, eo_h_ref,
                      w_ref, b_ref, o_ref, acc_ref):
    """3x3 / stride-2 conv on phase-split input for one (batch, row-tile) step.

    ee/eo/oe/oo : (1, TH, Wc, C)  even/odd (row, col) phases of the padded input,
                  phase row i == output row i (dy = 0 taps).
    ee_h/eo_h   : (1, 1, Wc, C)   one-row halo (phase row TH of this tile) for the
                  ky=2 (dy = 1) taps.
    w_ref       : (3, 3*C, C)     per-ky weights, kx fused along K.
    b_ref       : (1, C)          bias (f32).
    o_ref       : (1, TH, Wo, C)  output tile.
    acc_ref     : (TH*Wo, C) f32  VMEM scratch accumulator.
    """
    TH, Wo, C = o_ref.shape[1], o_ref.shape[2], o_ref.shape[3]

    # Accumulator initialized with the bias (saves a full VALU pass per step).
    acc_ref[...] = jnp.broadcast_to(b_ref[...], (TH * Wo, C))

    # Per-ky row slabs of shape (TH, Wc, C).
    e0, c0 = ee_ref[0], eo_ref[0]          # ky = 0: even rows, dy = 0
    e1, c1 = oe_ref[0], oo_ref[0]          # ky = 1: odd rows,  dy = 0
    if TH > 1:                             # ky = 2: even rows shifted by one
        e2 = jnp.concatenate([ee_ref[0, 1:], ee_h_ref[0]], axis=0)
        c2 = jnp.concatenate([eo_ref[0, 1:], eo_h_ref[0]], axis=0)
    else:
        e2, c2 = ee_h_ref[0], eo_h_ref[0]

    for ky, (ev, od) in enumerate(((e0, c0), (e1, c1), (e2, c2))):
        # Fuse the three column taps (kx = 0, 1, 2) along the MXU K dimension.
        slab = jnp.concatenate(
            [ev[:, 0:Wo, :], od[:, 0:Wo, :], ev[:, 1:Wo + 1, :]], axis=-1)
        acc_ref[...] += jnp.dot(
            slab.reshape(TH * Wo, 3 * C), w_ref[ky],
            preferred_element_type=jnp.float32,
            precision=lax.Precision.HIGHEST)

    o_ref[0] = acc_ref[...].reshape(TH, Wo, C).astype(o_ref.dtype)


def _avgpool_kernel(ee_ref, eo_ref, oe_ref, oo_ref, o_ref):
    """2x2 / stride-2 average pool: mean of the four spatial phases."""
    s = (ee_ref[...].astype(jnp.float32) + eo_ref[...].astype(jnp.float32) +
         oe_ref[...].astype(jnp.float32) + oo_ref[...].astype(jnp.float32))
    o_ref[...] = (s * jnp.float32(0.25)).astype(o_ref.dtype)


# ----------------------------------------------------------------------------
# wrapper (NCHW <-> NHWC, padding to lane/sublane-dense shapes, pallas_call)
# ----------------------------------------------------------------------------
def downsample(x_nchw, weight_oihw=None, bias=None, *, with_conv=True):
    """Equivalent of Downsample.forward.  x_nchw: (B, C, H, W)."""
    B, C, H, W = x_nchw.shape
    x = jnp.transpose(x_nchw, (0, 2, 3, 1))              # NCHW -> NHWC
    C_p = _round_up(C, 128)                               # lane-dense channels
    vmem_limit = _vmem_limit_bytes()

    if with_conv:
        # torch: F.pad(x, (0,1,0,1)) then conv3x3 stride2 'valid'
        Ho = (H - 2) // 2 + 1
        Wo = (W - 2) // 2 + 1
        Wo_p = _round_up(Wo, 8)                           # sublane-dense width
        Wc = Wo_p + 1                                     # +1 col for the dx=1 taps
        w_resident = 2 * 9 * C_p * C_p * 4                # double-buffered weights
        TH = _pick_row_tile(Ho, Wo_p, C_p, per_pixel_elems=20,
                            reserved_bytes=w_resident)
        Ho_p = _round_up(Ho, TH)
        nR = Ho_p // TH

        def phase(r0, c0):
            # phase[i, j] == padded_input[2*i + r0, 2*j + c0]; extra rows/cols
            # and channels are zero-padded (only feed sliced-off outputs).
            p = x[:, r0::2, c0::2, :]
            return jnp.pad(p, ((0, 0),
                               (0, Ho_p + 1 - p.shape[1]),
                               (0, Wc - p.shape[2]),
                               (0, C_p - C)))

        ee = phase(0, 0)
        eo = phase(0, 1)
        oe = phase(1, 0)
        oo = phase(1, 1)

        # Weights: OIHW -> HWIO, pad channels, fuse kx into the K dimension.
        w = jnp.transpose(weight_oihw, (2, 3, 1, 0))      # (3, 3, Cin, Cout)
        w = jnp.pad(w, ((0, 0), (0, 0), (0, C_p - C), (0, C_p - C)))
        w_fused = w.reshape(3, 3 * C_p, C_p).astype(x.dtype)
        b2d = jnp.pad(bias.astype(jnp.float32), (0, C_p - C)).reshape(1, C_p)

        main_spec = pl.BlockSpec((1, TH, Wc, C_p), lambda b, r: (b, r, 0, 0))
        halo_spec = pl.BlockSpec((1, 1, Wc, C_p),
                                 lambda b, r: (b, (r + 1) * TH, 0, 0))

        out = pl.pallas_call(
            _conv_down_kernel,
            out_shape=jax.ShapeDtypeStruct((B, Ho_p, Wo_p, C_p), x.dtype),
            grid=(B, nR),
            in_specs=[main_spec, main_spec, main_spec, main_spec,
                      halo_spec, halo_spec,
                      pl.BlockSpec((3, 3 * C_p, C_p), lambda b, r: (0, 0, 0)),
                      pl.BlockSpec((1, C_p), lambda b, r: (0, 0))],
            out_specs=pl.BlockSpec((1, TH, Wo_p, C_p), lambda b, r: (b, r, 0, 0)),
            scratch_shapes=[pltpu.VMEM((TH * Wo_p, C_p), jnp.float32)],
            compiler_params=pltpu.CompilerParams(
                dimension_semantics=("parallel", "parallel"),
                vmem_limit_bytes=vmem_limit),
        )(ee, eo, oe, oo, ee, eo, w_fused, b2d)
        out = out[:, :Ho, :Wo, :C]
    else:
        # avg_pool2d(kernel=2, stride=2): floor division of spatial dims
        Ho, Wo = H // 2, W // 2
        Wo_p = _round_up(Wo, 8)
        TH = _pick_row_tile(Ho, Wo_p, C_p, per_pixel_elems=12)
        Ho_p = _round_up(Ho, TH)
        nR = Ho_p // TH

        def pphase(r0, c0):
            p = x[:, r0:2 * Ho:2, c0:2 * Wo:2, :]
            return jnp.pad(p, ((0, 0), (0, Ho_p - Ho), (0, Wo_p - Wo),
                               (0, C_p - C)))

        ee, eo = pphase(0, 0), pphase(0, 1)
        oe, oo = pphase(1, 0), pphase(1, 1)

        spec = pl.BlockSpec((1, TH, Wo_p, C_p), lambda b, r: (b, r, 0, 0))
        out = pl.pallas_call(
            _avgpool_kernel,
            out_shape=jax.ShapeDtypeStruct((B, Ho_p, Wo_p, C_p), x.dtype),
            grid=(B, nR),
            in_specs=[spec, spec, spec, spec],
            out_specs=spec,
            compiler_params=pltpu.CompilerParams(
                dimension_semantics=("parallel", "parallel"),
                vmem_limit_bytes=vmem_limit),
        )(ee, eo, oe, oo)
        out = out[:, :Ho, :Wo, :C]

    return jnp.transpose(out, (0, 3, 1, 2))               # NHWC -> NCHW


# ----------------------------------------------------------------------------
# Reference (plain JAX) for verification
# ----------------------------------------------------------------------------
def downsample_ref(x_nchw, weight_oihw=None, bias=None, *, with_conv=True):
    if with_conv:
        xp = jnp.pad(x_nchw, ((0, 0), (0, 0), (0, 1), (0, 1)))   # pad = (0,1,0,1)
        y = lax.conv_general_dilated(
            xp, weight_oihw, window_strides=(2, 2), padding="VALID",
            dimension_numbers=("NCHW", "OIHW", "NCHW"),
            precision=lax.Precision.HIGHEST)
        return y + bias.reshape(1, -1, 1, 1)
    B, C, H, W = x_nchw.shape
    Ho, Wo = H // 2, W // 2
    return x_nchw[:, :, :2 * Ho, :2 * Wo].reshape(
        B, C, Ho, 2, Wo, 2).mean(axis=(3, 5))


if __name__ == "__main__":
    key = jax.random.PRNGKey(0)

    def make_inputs(B, C, H, W):
        kx_, kw_, kb_ = jax.random.split(jax.random.fold_in(key, H * 131 + W), 3)
        x = jax.random.normal(kx_, (B, C, H, W), dtype=jnp.float32)
        fan_in = C * 3 * 3
        bound = 1.0 / (fan_in ** 0.5)
        weight = jax.random.uniform(kw_, (C, C, 3, 3), jnp.float32, -bound, bound)
        b = jax.random.uniform(kb_, (C,), jnp.float32, -bound, bound)
        return x, weight, b

    for (B, C, H, W) in [(2, 4, 16, 16), (1, 3, 17, 13)]:
        x, weight, bias = make_inputs(B, C, H, W)

        # with_conv=True path
        y = jax.block_until_ready(downsample(x, weight, bias, with_conv=True))
        y_ref = downsample_ref(x, weight, bias, with_conv=True)
        assert y.shape == y_ref.shape, (y.shape, y_ref.shape)
        assert jnp.allclose(y, y_ref, atol=1e-3, rtol=1e-3), (
            "conv path mismatch", float(jnp.max(jnp.abs(y - y_ref))))

        # with_conv=False path (avg_pool2d)
        y2 = jax.block_until_ready(downsample(x, with_conv=False))
        y2_ref = downsample_ref(x, with_conv=False)
        assert y2.shape == y2_ref.shape, (y2.shape, y2_ref.shape)
        assert jnp.allclose(y2, y2_ref, atol=1e-5, rtol=1e-5), (
            "avgpool path mismatch", float(jnp.max(jnp.abs(y2 - y2_ref))))

    print("KERNEL_OK")
</pallas_src>

<mosaic_0001>
module attributes {stable_mosaic.version = 11 : i64} {
  func.func @_conv_down_kernel(%arg0: i32, %arg1: i32, %arg2: memref<1x8x9x128xf32, #tpu.memory_space<vmem>>, %arg3: memref<1x8x9x128xf32, #tpu.memory_space<vmem>>, %arg4: memref<1x8x9x128xf32, #tpu.memory_space<vmem>>, %arg5: memref<1x8x9x128xf32, #tpu.memory_space<vmem>>, %arg6: memref<1x1x9x128xf32, #tpu.memory_space<vmem>>, %arg7: memref<1x1x9x128xf32, #tpu.memory_space<vmem>>, %arg8: memref<3x384x128xf32, #tpu.memory_space<vmem>>, %arg9: memref<1x128xf32, #tpu.memory_space<vmem>>, %arg10: memref<1x8x8x128xf32, #tpu.memory_space<vmem>>, %arg11: memref<64x128xf32, #tpu.memory_space<vmem>>) attributes {dimension_semantics = [#tpu.dimension_semantics<parallel>, #tpu.dimension_semantics<parallel>], iteration_bounds = array<i64: 2, 1>, scalar_prefetch = 0 : i64, scratch_operands = 1 : i64, tpu.core_type = #tpu.core_type<tc>, window_params = [{transform_indices = @transform_0, window_bounds = array<i64: 1, 8, 9, 128>}, {transform_indices = @transform_1, window_bounds = array<i64: 1, 8, 9, 128>}, {transform_indices = @transform_2, window_bounds = array<i64: 1, 8, 9, 128>}, {transform_indices = @transform_3, window_bounds = array<i64: 1, 8, 9, 128>}, {transform_indices = @transform_4, window_bounds = array<i64: 1, 1, 9, 128>}, {transform_indices = @transform_5, window_bounds = array<i64: 1, 1, 9, 128>}, {pipeline_mode = #tpu.pipeline_mode<synchronous>, transform_indices = @transform_6, window_bounds = array<i64: 3, 384, 128>}, {pipeline_mode = #tpu.pipeline_mode<synchronous>, transform_indices = @transform_7, window_bounds = array<i64: 1, 128>}, {transform_indices = @transform_8, window_bounds = array<i64: 1, 8, 8, 128>}]} {
    %c0 = arith.constant 0 : index
    %c0_0 = arith.constant 0 : index
    %0 = vector.load %arg9[%c0, %c0_0] : memref<1x128xf32, #tpu.memory_space<vmem>>, vector<1x128xf32>
    %1 = vector.shape_cast %0 : vector<1x128xf32> to vector<1x128xf32>
    %2 = vector.broadcast %1 : vector<1x128xf32> to vector<64x128xf32>
    %c0_1 = arith.constant 0 : index
    %c0_2 = arith.constant 0 : index
    %3 = vector.load %arg11[%c0_1, %c0_2] : memref<64x128xf32, #tpu.memory_space<vmem>>, vector<64x128xf32>
    tpu.vector_store %arg11[%c0_1, %c0_2], %2 {strides = array<i32>} : memref<64x128xf32, #tpu.memory_space<vmem>>, vector<64x128xf32>,
    %c0_3 = arith.constant 0 : index
    %c0_4 = arith.constant 0 : index
    %c0_5 = arith.constant 0 : index
    %c0_6 = arith.constant 0 : index
    %4 = vector.load %arg2[%c0_3, %c0_4, %c0_5, %c0_6] : memref<1x8x9x128xf32, #tpu.memory_space<vmem>>, vector<1x8x9x128xf32>
    %5 = vector.shape_cast %4 : vector<1x8x9x128xf32> to vector<8x9x128xf32>
    %c0_7 = arith.constant 0 : index
    %c0_8 = arith.constant 0 : index
    %c0_9 = arith.constant 0 : index
    %c0_10 = arith.constant 0 : index
    %6 = vector.load %arg3[%c0_7, %c0_8, %c0_9, %c0_10] : memref<1x8x9x128xf32, #tpu.memory_space<vmem>>, vector<1x8x9x128xf32>
    %7 = vector.shape_cast %6 : vector<1x8x9x128xf32> to vector<8x9x128xf32>
    %c0_11 = arith.constant 0 : index
    %c0_12 = arith.constant 0 : index
    %c0_13 = arith.constant 0 : index
    %c0_14 = arith.constant 0 : index
    %8 = vector.load %arg4[%c0_11, %c0_12, %c0_13, %c0_14] : memref<1x8x9x128xf32, #tpu.memory_space<vmem>>, vector<1x8x9x128xf32>
    %9 = vector.shape_cast %8 : vector<1x8x9x128xf32> to vector<8x9x128xf32>
    %c0_15 = arith.constant 0 : index
    %c0_16 = arith.constant 0 : index
    %c0_17 = arith.constant 0 : index
    %c0_18 = arith.constant 0 : index
    %10 = vector.load %arg5[%c0_15, %c0_16, %c0_17, %c0_18] : memref<1x8x9x128xf32, #tpu.memory_space<vmem>>, vector<1x8x9x128xf32>
    %11 = vector.shape_cast %10 : vector<1x8x9x128xf32> to vector<8x9x128xf32>
    %c0_19 = arith.constant 0 : index
    %c1 = arith.constant 1 : index
    %c0_20 = arith.constant 0 : index
    %c0_21 = arith.constant 0 : index
    %12 = vector.load %arg2[%c0_19, %c1, %c0_20, %c0_21] : memref<1x8x9x128xf32, #tpu.memory_space<vmem>>, vector<1x7x9x128xf32>
    %13 = vector.shape_cast %12 : vector<1x7x9x128xf32> to vector<7x9x128xf32>
    %c0_22 = arith.constant 0 : index
    %c0_23 = arith.constant 0 : index
    %c0_24 = arith.constant 0 : index
    %c0_25 = arith.constant 0 : index
    %14 = vector.load %arg6[%c0_22, %c0_23, %c0_24, %c0_25] : memref<1x1x9x128xf32, #tpu.memory_space<vmem>>, vector<1x1x9x128xf32>
    %15 = vector.shape_cast %14 : vector<1x1x9x128xf32> to vector<1x9x128xf32>
    %16 = tpu.concatenate %13, %15 in 0 : vector<7x9x128xf32>, vector<1x9x128xf32> -> vector<8x9x128xf32>
    %c0_26 = arith.constant 0 : index
    %c1_27 = arith.constant 1 : index
    %c0_28 = arith.constant 0 : index
    %c0_29 = arith.constant 0 : index
    %17 = vector.load %arg3[%c0_26, %c1_27, %c0_28, %c0_29] : memref<1x8x9x128xf32, #tpu.memory_space<vmem>>, vector<1x7x9x128xf32>
    %18 = vector.shape_cast %17 : vector<1x7x9x128xf32> to vector<7x9x128xf32>
    %c0_30 = arith.constant 0 : index
    %c0_31 = arith.constant 0 : index
    %c0_32 = arith.constant 0 : index
    %c0_33 = arith.constant 0 : index
    %19 = vector.load %arg7[%c0_30, %c0_31, %c0_32, %c0_33] : memref<1x1x9x128xf32, #tpu.memory_space<vmem>>, vector<1x1x9x128xf32>
    %20 = vector.shape_cast %19 : vector<1x1x9x128xf32> to vector<1x9x128xf32>
    %21 = tpu.concatenate %18, %20 in 0 : vector<7x9x128xf32>, vector<1x9x128xf32> -> vector<8x9x128xf32>
    %22 = vector.extract_strided_slice %5 {offsets = [0, 0, 0], sizes = [8, 8, 128], strides = [1, 1, 1]} : vector<8x9x128xf32> to vector<8x8x128xf32>
    %23 = vector.extract_strided_slice %7 {offsets = [0, 0, 0], sizes = [8, 8, 128], strides = [1, 1, 1]} : vector<8x9x128xf32> to vector<8x8x128xf32>
    %24 = vector.extract_strided_slice %5 {offsets = [0, 1, 0], sizes = [8, 8, 128], strides = [1, 1, 1]} : vector<8x9x128xf32> to vector<8x8x128xf32>
    %25 = tpu.concatenate %22, %23, %24 in 2 : vector<8x8x128xf32>, vector<8x8x128xf32>, vector<8x8x128xf32> -> vector<8x8x384xf32>
    %c0_34 = arith.constant 0 : index
    %c0_35 = arith.constant 0 : index
    %26 = vector.load %arg11[%c0_34, %c0_35] : memref<64x128xf32, #tpu.memory_space<vmem>>, vector<64x128xf32>
    %27 = vector.shape_cast %25 : vector<8x8x384xf32> to vector<64x384xf32>
    %c0_36 = arith.constant 0 : index
    %c0_37 = arith.constant 0 : index
    %c0_38 = arith.constant 0 : index
    %28 = vector.load %arg8[%c0_36, %c0_37, %c0_38] : memref<3x384x128xf32, #tpu.memory_space<vmem>>, vector<1x384x128xf32>
    %29 = vector.shape_cast %28 : vector<1x384x128xf32> to vector<384x128xf32>
    %cst = arith.constant dense<0.000000e+00> : vector<64x128xf32>
    %30 = tpu.matmul %27, %29, %cst {dimension_numbers = #tpu.dot_dimension_numbers<[1], [0], [0], [1], [0, 0, 1, 1], [], []>, precision = #tpu.contract_precision<fp32>} : vector<64x384xf32>, vector<384x128xf32>, vector<64x128xf32> -> vector<64x128xf32>
    %31 = arith.addf %26, %30 : vector<64x128xf32>
    %c0_39 = arith.constant 0 : index
    %c0_40 = arith.constant 0 : index
    %32 = vector.load %arg11[%c0_39, %c0_40] : memref<64x128xf32, #tpu.memory_space<vmem>>, vector<64x128xf32>
    tpu.vector_store %arg11[%c0_39, %c0_40], %31 {strides = array<i32>} : memref<64x128xf32, #tpu.memory_space<vmem>>, vector<64x128xf32>,
    %33 = vector.extract_strided_slice %9 {offsets = [0, 0, 0], sizes = [8, 8, 128], strides = [1, 1, 1]} : vector<8x9x128xf32> to vector<8x8x128xf32>
    %34 = vector.extract_strided_slice %11 {offsets = [0, 0, 0], sizes = [8, 8, 128], strides = [1, 1, 1]} : vector<8x9x128xf32> to vector<8x8x128xf32>
    %35 = vector.extract_strided_slice %9 {offsets = [0, 1, 0], sizes = [8, 8, 128], strides = [1, 1, 1]} : vector<8x9x128xf32> to vector<8x8x128xf32>
    %36 = tpu.concatenate %33, %34, %35 in 2 : vector<8x8x128xf32>, vector<8x8x128xf32>, vector<8x8x128xf32> -> vector<8x8x384xf32>
    %c0_41 = arith.constant 0 : index
    %c0_42 = arith.constant 0 : index
    %37 = vector.load %arg11[%c0_41, %c0_42] : memref<64x128xf32, #tpu.memory_space<vmem>>, vector<64x128xf32>
    %38 = vector.shape_cast %36 : vector<8x8x384xf32> to vector<64x384xf32>
    %c1_43 = arith.constant 1 : index
    %c0_44 = arith.constant 0 : index
    %c0_45 = arith.constant 0 : index
    %39 = vector.load %arg8[%c1_43, %c0_44, %c0_45] : memref<3x384x128xf32, #tpu.memory_space<vmem>>, vector<1x384x128xf32>
    %40 = vector.shape_cast %39 : vector<1x384x128xf32> to vector<384x128xf32>
    %cst_46 = arith.constant dense<0.000000e+00> : vector<64x128xf32>
    %41 = tpu.matmul %38, %40, %cst_46 {dimension_numbers = #tpu.dot_dimension_numbers<[1], [0], [0], [1], [0, 0, 1, 1], [], []>, precision = #tpu.contract_precision<fp32>} : vector<64x384xf32>, vector<384x128xf32>, vector<64x128xf32> -> vector<64x128xf32>
    %42 = arith.addf %37, %41 : vector<64x128xf32>
    %c0_47 = arith.constant 0 : index
    %c0_48 = arith.constant 0 : index
    %43 = vector.load %arg11[%c0_47, %c0_48] : memref<64x128xf32, #tpu.memory_space<vmem>>, vector<64x128xf32>
    tpu.vector_store %arg11[%c0_47, %c0_48], %42 {strides = array<i32>} : memref<64x128xf32, #tpu.memory_space<vmem>>, vector<64x128xf32>,
    %44 = vector.extract_strided_slice %16 {offsets = [0, 0, 0], sizes = [8, 8, 128], strides = [1, 1, 1]} : vector<8x9x128xf32> to vector<8x8x128xf32>
    %45 = vector.extract_strided_slice %21 {offsets = [0, 0, 0], sizes = [8, 8, 128], strides = [1, 1, 1]} : vector<8x9x128xf32> to vector<8x8x128xf32>
    %46 = vector.extract_strided_slice %16 {offsets = [0, 1, 0], sizes = [8, 8, 128], strides = [1, 1, 1]} : vector<8x9x128xf32> to vector<8x8x128xf32>
    %47 = tpu.concatenate %44, %45, %46 in 2 : vector<8x8x128xf32>, vector<8x8x128xf32>, vector<8x8x128xf32> -> vector<8x8x384xf32>
    %c0_49 = arith.constant 0 : index
    %c0_50 = arith.constant 0 : index
    %48 = vector.load %arg11[%c0_49, %c0_50] : memref<64x128xf32, #tpu.memory_space<vmem>>, vector<64x128xf32>
    %49 = vector.shape_cast %47 : vector<8x8x384xf32> to vector<64x384xf32>
    %c2 = arith.constant 2 : index
    %c0_51 = arith.constant 0 : index
    %c0_52 = arith.constant 0 : index
    %50 = vector.load %arg8[%c2, %c0_51, %c0_52] : memref<3x384x128xf32, #tpu.memory_space<vmem>>, vector<1x384x128xf32>
    %51 = vector.shape_cast %50 : vector<1x384x128xf32> to vector<384x128xf32>
    %cst_53 = arith.constant dense<0.000000e+00> : vector<64x128xf32>
    %52 = tpu.matmul %49, %51, %cst_53 {dimension_numbers = #tpu.dot_dimension_numbers<[1], [0], [0], [1], [0, 0, 1, 1], [], []>, precision = #tpu.contract_precision<fp32>} : vector<64x384xf32>, vector<384x128xf32>, vector<64x128xf32> -> vector<64x128xf32>
    %53 = arith.addf %48, %52 : vector<64x128xf32>
    %c0_54 = arith.constant 0 : index
    %c0_55 = arith.constant 0 : index
    %54 = vector.load %arg11[%c0_54, %c0_55] : memref<64x128xf32, #tpu.memory_space<vmem>>, vector<64x128xf32>
    tpu.vector_store %arg11[%c0_54, %c0_55], %53 {strides = array<i32>} : memref<64x128xf32, #tpu.memory_space<vmem>>, vector<64x128xf32>,
    %c0_56 = arith.constant 0 : index
    %c0_57 = arith.constant 0 : index
    %55 = vector.load %arg11[%c0_56, %c0_57] : memref<64x128xf32, #tpu.memory_space<vmem>>, vector<64x128xf32>
    %56 = vector.shape_cast %55 : vector<64x128xf32> to vector<8x8x128xf32>
    %c0_58 = arith.constant 0 : index
    %c0_59 = arith.constant 0 : index
    %c0_60 = arith.constant 0 : index
    %c0_61 = arith.constant 0 : index
    %57 = vector.load %arg10[%c0_58, %c0_59, %c0_60, %c0_61] : memref<1x8x8x128xf32, #tpu.memory_space<vmem>>, vector<1x8x8x128xf32>
    %58 = vector.shape_cast %57 : vector<1x8x8x128xf32> to vector<8x8x128xf32>
    %59 = vector.shape_cast %56 : vector<8x8x128xf32> to vector<1x8x8x128xf32>
    tpu.vector_store %arg10[%c0_58, %c0_59, %c0_60, %c0_61], %59 {strides = array<i32>} : memref<1x8x8x128xf32, #tpu.memory_space<vmem>>, vector<1x8x8x128xf32>,
    return
  }
  func.func @transform_0(%arg0: i32, %arg1: i32) -> (i32, i32, i32, i32) {
    %c0_i32 = arith.constant 0 : i32
    %c0_i32_0 = arith.constant 0 : i32
    %c0_i32_1 = arith.constant 0 : i32
    return %arg0, %arg1, %c0_i32, %c0_i32_0 : i32, i32, i32, i32
  }
  func.func @transform_1(%arg0: i32, %arg1: i32) -> (i32, i32, i32, i32) {
    %c0_i32 = arith.constant 0 : i32
    %c0_i32_0 = arith.constant 0 : i32
    %c0_i32_1 = arith.constant 0 : i32
    return %arg0, %arg1, %c0_i32, %c0_i32_0 : i32, i32, i32, i32
  }
  func.func @transform_2(%arg0: i32, %arg1: i32) -> (i32, i32, i32, i32) {
    %c0_i32 = arith.constant 0 : i32
    %c0_i32_0 = arith.constant 0 : i32
    %c0_i32_1 = arith.constant 0 : i32
    return %arg0, %arg1, %c0_i32, %c0_i32_0 : i32, i32, i32, i32
  }
  func.func @transform_3(%arg0: i32, %arg1: i32) -> (i32, i32, i32, i32) {
    %c0_i32 = arith.constant 0 : i32
    %c0_i32_0 = arith.constant 0 : i32
    %c0_i32_1 = arith.constant 0 : i32
    return %arg0, %arg1, %c0_i32, %c0_i32_0 : i32, i32, i32, i32
  }
  func.func @transform_4(%arg0: i32, %arg1: i32) -> (i32, i32, i32, i32) {
    %c1_i32 = arith.constant 1 : i32
    %0 = arith.addi %arg1, %c1_i32 : i32
    %c8_i32 = arith.constant 8 : i32
    %1 = arith.muli %0, %c8_i32 : i32
    %c0_i32 = arith.constant 0 : i32
    %c0_i32_0 = arith.constant 0 : i32
    %c0_i32_1 = arith.constant 0 : i32
    return %arg0, %1, %c0_i32, %c0_i32_0 : i32, i32, i32, i32
  }
  func.func @transform_5(%arg0: i32, %arg1: i32) -> (i32, i32, i32, i32) {
    %c1_i32 = arith.constant 1 : i32
    %0 = arith.addi %arg1, %c1_i32 : i32
    %c8_i32 = arith.constant 8 : i32
    %1 = arith.muli %0, %c8_i32 : i32
    %c0_i32 = arith.constant 0 : i32
    %c0_i32_0 = arith.constant 0 : i32
    %c0_i32_1 = arith.constant 0 : i32
    return %arg0, %1, %c0_i32, %c0_i32_0 : i32, i32, i32, i32
  }
  func.func @transform_6(%arg0: i32, %arg1: i32) -> (i32, i32, i32) {
    %c0_i32 = arith.constant 0 : i32
    %c0_i32_0 = arith.constant 0 : i32
    %c0_i32_1 = arith.constant 0 : i32
    %c0_i32_2 = arith.constant 0 : i32
    return %c0_i32, %c0_i32_0, %c0_i32_1 : i32, i32, i32
  }
  func.func @transform_7(%arg0: i32, %arg1: i32) -> (i32, i32) {
    %c0_i32 = arith.constant 0 : i32
    %c0_i32_0 = arith.constant 0 : i32
    %c0_i32_1 = arith.constant 0 : i32
    return %c0_i32, %c0_i32_0 : i32, i32
  }
  func.func @transform_8(%arg0: i32, %arg1: i32) -> (i32, i32, i32, i32) {
    %c0_i32 = arith.constant 0 : i32
    %c0_i32_0 = arith.constant 0 : i32
    %c0_i32_1 = arith.constant 0 : i32
    return %arg0, %arg1, %c0_i32, %c0_i32_0 : i32, i32, i32, i32
  }
}

</mosaic_0001>

<bundles_post_ra>
// kernel: tpu_custom_call.1
= control target key start
LH: loop header
LB: loop body
LE: loop exit
PB: predicated region body
PF: predicated region fallthrough
CT: control target
= control target key end

     0   :  { %13 = vsyncpa [#allocation4], 0  ;;  %s15753_s0 = inlined_call_operand.vmem [shape: f32[2,9,9,128], index: 0, kind: input, shape index: {}]   ;;  %s15754_s1 = inlined_call_operand.vmem [shape: f32[2,9,9,128], index: 1, kind: input, shape index: {}]   ;;  %s15755_s2 = inlined_call_operand.vmem [shape: f32[2,9,9,128], index: 2, kind: input, shape index: {}]   ;;  %s15756_s3 = inlined_call_operand.vmem [shape: f32[2,9,9,128], index: 3, kind: input, shape index: {}]   ;;  %s15757_s4 = inlined_call_operand.vmem [shape: f32[2,9,9,128], index: 4, kind: input, shape index: {}]   ;;  %s15758_s5 = inlined_call_operand.vmem [shape: f32[2,9,9,128], index: 5, kind: input, shape index: {}]   ;;  %s15759_s6 = inlined_call_operand.vmem [shape: f32[3,384,128], index: 6, kind: input, shape index: {}]   ;;  %s15760_s7 = inlined_call_operand.vmem [shape: f32[1,128], index: 7, kind: input, shape index: {}]   ;;  %s15761_s8 = inlined_call_operand.hbm [shape: f32[2,8,8,128], index: 8, kind: output, shape index: {}]  }
   0x1   :  { %15 = vsyncpa [#allocation4 + $0x1], 0  ;;  %s10480_s27 = smov 0   ;;  %s10482_s28 = smov 0  }
   0x2   :  { %s10484_s29 = smov 0   ;;  %s10486_s30 = smov 0  }
   0x3   :  { %s10488_s9 = smov 0   ;;  %s10490_s10 = smov 0  }
   0x4 LB: > { %s7910_s11 = sadd.s32 4294967295, %s10430_s10   ;;  %s7911_s12 = sadd.s32 4294967294, %s10430_s10   ;;  %s10430_s10 = sphi %s10490_s10, %s21_s10   ;;  %s10426_s9 = sphi %s10488_s9, %s17446_s9   ;;  %s10422_s30 = sphi %s10486_s30, %s17445_s30   ;;  %s10418_s29 = sphi %s10484_s29, %s17444_s29   ;;  %s10414_s28 = sphi %s10482_s28, %s17443_s28   ;;  %s10410_s27 = sphi %s10480_s27, %s17442_s27  }
   0x5   : > { %s33_s13 = sadd.s32 1, %s10426_s9  ;;  %s260_s14 = sadd.s32 1, %s10418_s29 }
   0x6   : > { %p35_p0 = scmp.ge.s32.totalorder %s33_s13, 2  ;;  %p270_p1 = scmp.ne.s32.totalorder %s10418_s29, %s10414_s28 }
   0x7   : > { %p271_p2 = scmp.eq.s32.totalorder %s7910_s11, 1  ;;  %p276_p3 = scmp.ne.s32.totalorder %s10414_s28, %s10410_s27 }
   0x8   : > { %s17448_s13 = smov (%p35_p0, %s33_s13), 0  ;;  %p277_p5 = scmp.eq.s32.totalorder %s7911_s12, 1 }
   0x9   : > { %p10520_p4 = por %p271_p2, %p270_p1  ;;  %s255_s16 = ssub.s32 %s10426_s9, %s17448_s13 }
   0xa   : > { %p7914_p6 = scmp.ge.s32.totalorder %s10430_s10, 1  ;;  %p258_p7 = scmp.eq.s32.totalorder %s255_s16, 0 }
   0xb   : > { %p10527_p8 = por %p277_p5, %p276_p3  ;;  %p429_p9 = scmp.lt.s32.totalorder %s10430_s10, 3 }
   0xc   : > { %s10533_s18 = scalar_select %p258_p7, %s10418_s29, %s260_s14  }
   0xd   : > { %p430_p10 = pnand %p7914_p6, %p429_p9 }
   0xf   : > { %433 = sbr.rel (%p430_p10) target bundleno = 1054 (0x41e), region = 52 }
  0x14   : > { %v828_v0 = vld [vmem:[%s15759_s6 + $0xf8] sm:$0xff]  ;;  %v827_v2 = vld [vmem:[%s15759_s6 + $0xf0] sm:$0xff]  ;;  %p546_p11 = scmp.lt.s32.totalorder %s10422_s30, 1  ;;  %v826_v7 = vld [vmem:[%s15759_s6 + $0xe8] sm:$0xff]  ;;  %vm756_vm0 = vcmask 1046528   ;;  %s10432_s23 = smov [#allocation3]  }
  0x15   : > { %v812_v1 = vld [vmem:[%s15759_s6 + $0x78] sm:$0xff]  ;;  %v10545_v3 = vand.u32 4294901760, %v828_v0  ;;  %v10549_v5 = vand.u32 4294901760, %v827_v2  ;;  %v811_v6 = vld [vmem:[%s15759_s6 + $0x70] sm:$0xff]  ;;  %v810_v8 = vld [vmem:[%s15759_s6 + $0x68] sm:$0xff]  ;;  %v10562_v10 = vand.u32 4294901760, %v826_v7 }
  0x16   : > { %v10547_v4 = vand.u32 4294901760, %v812_v1  ;;  %v10560_v9 = vand.u32 4294901760, %v811_v6  ;;  %v10564_v11 = vand.u32 4294901760, %v810_v8  ;;  %v825_v12 = vld [vmem:[%s15759_s6 + $0xe0] sm:$0xff]  ;;  %v10575_v14 = vld [vmem:[%s15759_s6 + $0xd8] sm:$0xff]  ;;  %v10596_v20 = vld [vmem:[%s15759_s6 + $0xd0] sm:$0xff] }
  0x17   : > { %16376 = vst [vmem:[#allocation6_spill] sm:$0xff] %v10549_v5  ;;  %v809_v13 = vld [vmem:[%s15759_s6 + $0x60] sm:$0xff]  ;;  %8050 = vmatprep.subr.mxu0 %v10545_v3  ;;  %v10578_v15 = vand.u32 4294901760, %v825_v12  ;;  %v10583_v17 = vand.u32 4294901760, %v10575_v14  ;;  %v10586_v18 = vsub.f32 %v828_v0, %v10545_v3  ;;  %v10591_v19 = vld [vmem:[%s15759_s6 + $0x58] sm:$0xff]  ;;  %v10601_v21 = vld [vmem:[%s15759_s6 + $0x50] sm:$0xff]  ;;  %v10614_v25 = vsub.f32 %v827_v2, %v10549_v5 }
  0x18   : > { %v10580_v16 = vand.u32 4294901760, %v809_v13  ;;  %8051 = vmatpush3.msra.mxu0 %v10547_v4  ;;  %v10605_v22 = vand.u32 4294901760, %v10591_v19  ;;  %v10608_v23 = vsub.f32 %v812_v1, %v10547_v4  ;;  %v10611_v24 = vand.u32 4294901760, %v10596_v20  ;;  %v10619_v26 = vld [vmem:[%s15759_s6 + $0xc8] sm:$0xff]  ;;  %v10629_v28 = vld [vmem:[%s15759_s6 + $0xc0] sm:$0xff]  ;;  %s10659_s11 = scalar_select %p546_p11, %s10422_s30, 1 }
  0x19   : > { %16377 = vst [vmem:[#allocation7_spill] sm:$0xff] %v10586_v18  ;;  %v10624_v27 = vld [vmem:[%s15759_s6 + $0x48] sm:$0xff]  ;;  %8052 = vmatprep.subr.mxu0 %v10549_v5  ;;  %v15775_v29 = vand.u32 4294901760, %v10586_v18  ;;  %v10634_v30 = vand.u32 4294901760, %v10601_v21  ;;  %v10637_v31 = vsub.f32 %v811_v6, %v10560_v9  ;;  %v10640_v32 = vand.u32 4294901760, %v10619_v26  ;;  %v10654_v37 = vld [vmem:[%s15759_s6 + $0x40] sm:$0xff] }
  0x1a   : > { %16378 = vst [vmem:[#allocation8_spill] sm:$0xff] %v10611_v24  ;;  %8053 = vmatpush3.msra.mxu0 %v10560_v9  ;;  %v15774_v33 = vand.u32 4294901760, %v10608_v23  ;;  %v15772_v34 = vand.u32 4294901760, %v10614_v25  ;;  %v10646_v35 = vsub.f32 %v826_v7, %v10562_v10  ;;  %v10649_v36 = vand.u32 4294901760, %v10624_v27  ;;  %v10686_v46 = vld [vmem:[%s15759_s6 + $0xb8] sm:$0xff]  ;;  %v10709_v56 = vld [vmem:[%s15759_s6 + $0xb0] sm:$0xff] }
  0x1b   : > { %16379 = vst [vmem:[#allocation9_spill] sm:$0xff] %v10634_v30  ;;  %16380 = vst [vmem:[#allocation10_spill] sm:$0xff] %v10637_v31  ;;  %8054 = vmatprep.subr.mxu0 %v10562_v10  ;;  %v1178_v38 = vsub.f32 %v10586_v18, %v15775_v29  ;;  %v15771_v39 = vand.u32 4294901760, %v10637_v31  ;;  %v10667_v40 = vsub.f32 %v810_v8, %v10564_v11  ;;  %v10670_v41 = vand.u32 4294901760, %v10629_v28  ;;  %v10699_v51 = vld [vmem:[%s15759_s6 + $0x38] sm:$0xff]  ;;  %v10724_v61 = vld [vmem:[%s15759_s6 + $0x30] sm:$0xff] }
  0x1c   : > { %16381 = vst [vmem:[#allocation11_spill] sm:$0xff] %v10640_v32  ;;  %16382 = vst [vmem:[#allocation12_spill] sm:$0xff] %v10646_v35  ;;  %8055 = vmatpush3.msra.mxu0 %v10564_v11  ;;  %v1066_v42 = vsub.f32 %v10608_v23, %v15774_v33  ;;  %v1185_v43 = vsub.f32 %v10614_v25, %v15772_v34  ;;  %v15769_v44 = vand.u32 4294901760, %v10646_v35  ;;  %v10694_v50 = vand.u32 4294901760, %v10654_v37  ;;  %v10740_v2 = vld [vmem:[%s15759_s6 + $0xa8] sm:$0xff]  ;;  %s10852_s12 = smul.u32 144, %s10659_s11 }
  0x1d   : > { %16383 = vst [vmem:[#allocation13_spill] sm:$0xff] %v10649_v36  ;;  %16384 = vst [vmem:[#allocation14_spill] sm:$0xff] %v10670_v41  ;;  %v10681_v45 = vsub.f32 %v825_v12, %v10578_v15  ;;  %8056 = vmatprep.subr.mxu0 %v10578_v15  ;;  %v1179_v47 = vand.u32 4294901760, %v1178_v38  ;;  %v1073_v48 = vsub.f32 %v10637_v31, %v15771_v39  ;;  %v15767_v49 = vand.u32 4294901760, %v10667_v40  ;;  %v10865_v39 = vld [vmem:[%s15759_s6 + $0x10] sm:$0xff]  ;;  %v10879_v33 = vld [vmem:[%s15759_s6 + $0x88] sm:$0xff] }
  0x1e   : > { %16385 = vst [vmem:[#allocation15_spill] sm:$0xff] %v10694_v50  ;;  %8057 = vmatpush3.msra.mxu0 %v10580_v16  ;;  %v1067_v52 = vand.u32 4294901760, %v1066_v42  ;;  %v1186_v53 = vand.u32 4294901760, %v1185_v43  ;;  %v1192_v54 = vsub.f32 %v10646_v35, %v15769_v44  ;;  %v10716_v59 = vsub.f32 %v809_v13, %v10580_v16  ;;  %v10754_v13 = vld [vmem:[%s15759_s6 + $0x28] sm:$0xff]  ;;  %v10849_v44 = vld [vmem:[%s15759_s6 + $0x90] sm:$0xff]  ;;  %s10913_s24 = scalar_lea.vmem %s15754_s1, %s10852_s12  ;;  %s10942_s11 = scalar_lea.vmem %s15753_s0, %s10852_s12 }
  0x1f   : > { %v15766_v55 = vand.u32 4294901760, %v10681_v45  ;;  %8058 = vmatprep.subr.mxu0 %v10583_v17  ;;  %8106 = vmatprep.subr.mxu1 %v1179_v47  ;;  %v1074_v57 = vand.u32 4294901760, %v1073_v48  ;;  %v1080_v58 = vsub.f32 %v10667_v40, %v15767_v49  ;;  %v10719_v60 = vand.u32 4294901760, %v10686_v46  ;;  %v10833_v49 = vld [vmem:[%s15759_s6 + $0x18] sm:$0xff]  ;;  %s12359_s22 = scalar_lea.vmem %s15756_s3, %s10852_s12  ;;  %s12395_s20 = scalar_lea.vmem %s15755_s2, %s10852_s12 }
  0x20   : > { %8059 = vmatpush3.msra.mxu0 %v10605_v22  ;;  %8107 = vmatpush3.msra.mxu1 %v1067_v52  ;;  %v1193_v62 = vand.u32 4294901760, %v1192_v54  ;;  %v10732_v0 = vsub.f32 %v10575_v14, %v10583_v17  ;;  %v10735_v1 = vand.u32 4294901760, %v10699_v51  ;;  %v15764_v7 = vand.u32 4294901760, %v10716_v59 }
  0x21   : > { %16386 = vst [vmem:[#allocation16_spill] sm:$0xff] %v10719_v60  ;;  %v1199_v63 = vsub.f32 %v10681_v45, %v15766_v55  ;;  %8060 = vmatprep.subr.mxu0 %v10611_v24  ;;  %8108 = vmatprep.subr.mxu1 %v1186_v53  ;;  %v1081_v6 = vand.u32 4294901760, %v1080_v58  ;;  %v10746_v8 = vsub.f32 %v10591_v19, %v10605_v22  ;;  %v10749_v12 = vand.u32 4294901760, %v10709_v56 }
  0x22   : > { %16387 = vst [vmem:[#allocation17_spill] sm:$0xff] %v10735_v1  ;;  %8061 = vmatpush3.msra.mxu0 %v10634_v30  ;;  %8109 = vmatpush3.msra.mxu1 %v1074_v57  ;;  %v15762_v38 = vand.u32 4294901760, %v10732_v0  ;;  %v10760_v42 = vsub.f32 %v10596_v20, %v10611_v24  ;;  %v10763_v19 = vand.u32 4294901760, %v10724_v61  ;;  %v1087_v43 = vsub.f32 %v10716_v59, %v15764_v7  ;;  %v10780_v20 = vld [vmem:[%s15759_s6 + $0xa0] sm:$0xff] }
  0x23   : > { %16388 = vst [vmem:[#allocation18_spill] sm:$0xff] %v10746_v8  ;;  %16389 = vst [vmem:[#allocation19_spill] sm:$0xff] %v10749_v12  ;;  %v1200_v14 = vand.u32 4294901760, %v1199_v63  ;;  %8062 = vmatprep.subr.mxu0 %v10640_v32  ;;  %8110 = vmatprep.subr.mxu1 %v1193_v62  ;;  %v15763_v47 = vand.u32 4294901760, %v10746_v8  ;;  %v10772_v48 = vsub.f32 %v10601_v21, %v10634_v30  ;;  %v10775_v52 = vand.u32 4294901760, %v10740_v2  ;;  %v10980_v30 = vld [vmem:[%s10942_s11] sm:$0xff] }
  0x24   : > { %16390 = vst [vmem:[#allocation20_spill] sm:$0xff] %v10763_v19  ;;  %8063 = vmatpush3.msra.mxu0 %v10649_v36  ;;  %8111 = vmatpush3.msra.mxu1 %v1081_v6  ;;  %v1206_v53 = vsub.f32 %v10732_v0, %v15762_v38  ;;  %v15765_v54 = vand.u32 4294901760, %v10760_v42  ;;  %v10789_v21 = vsub.f32 %v10619_v26, %v10640_v32  ;;  %v10792_v57 = vand.u32 4294901760, %v10754_v13  ;;  %v10806_v26 = vld [vmem:[%s15759_s6 + $0x20] sm:$0xff] }
  0x25   : > { %16391 = vst [vmem:[#allocation21_spill] sm:$0xff] %v10775_v52  ;;  %8064 = vmatprep.subr.mxu0 %v10670_v41  ;;  %8112 = vmatprep.subr.mxu1 %v1200_v14  ;;  %v1088_v58 = vand.u32 4294901760, %v1087_v43  ;;  %v1094_v62 = vsub.f32 %v10746_v8, %v15763_v47  ;;  %v15768_v63 = vand.u32 4294901760, %v10772_v48  ;;  %v10801_v6 = vsub.f32 %v10624_v27, %v10649_v36  ;;  %v10819_v27 = vld [vmem:[%s15759_s6 + $0x98] sm:$0xff] }
  0x26   : > { %16392 = vst [vmem:[#allocation22_spill] sm:$0xff] %v10792_v57  ;;  %8065 = vmatpush3.msra.mxu0 %v10694_v50  ;;  %v1207_v38 = vand.u32 4294901760, %v1206_v53  ;;  %v1213_v14 = vsub.f32 %v10760_v42, %v15765_v54  ;;  %v15770_v43 = vand.u32 4294901760, %v10789_v21  ;;  %v10814_v47 = vand.u32 4294901760, %v10780_v20  ;;  %16408 = vst [vmem:[#allocation34_spill] sm:$0xff] %v10980_v30 }
  0x27   : > { %8113 = vmatpush3.msra.mxu1 %v1088_v58  ;;  %8066 = vmatprep.subr.mxu0 %v10719_v60  ;;  %v1095_v7 = vand.u32 4294901760, %v1094_v62  ;;  %v1101_v53 = vsub.f32 %v10772_v48, %v15768_v63  ;;  %v15773_v54 = vand.u32 4294901760, %v10801_v6  ;;  %v10828_v55 = vsub.f32 %v10629_v28, %v10670_v41 }
  0x28   : > { %16393 = vst [vmem:[#allocation23_spill] sm:$0xff] %v10814_v47  ;;  %8114 = vmatprep.subr.mxu1 %v1207_v38  ;;  %8067 = vmatpush3.msra.mxu0 %v10735_v1  ;;  %v1214_v58 = vand.u32 4294901760, %v1213_v14  ;;  %v1220_v62 = vsub.f32 %v10789_v21, %v15770_v43  ;;  %v10840_v63 = vand.u32 4294901760, %v10806_v26  ;;  %v10844_v28 = vsub.f32 %v10654_v37, %v10694_v50 }
  0x29   : > { %8115 = vmatpush3.msra.mxu1 %v1095_v7  ;;  %8068 = vmatprep.subr.mxu0 %v10749_v12  ;;  %v1102_v38 = vand.u32 4294901760, %v1101_v53  ;;  %v1108_v14 = vsub.f32 %v10801_v6, %v15773_v54  ;;  %v15779_v43 = vand.u32 4294901760, %v10828_v55  ;;  %v10860_v37 = vand.u32 4294901760, %v10819_v27 }
  0x2a   : > { %16394 = vst [vmem:[#allocation24_spill] sm:$0xff] %v10840_v63  ;;  %8116 = vmatprep.subr.mxu1 %v1214_v58  ;;  %8069 = vmatpush3.msra.mxu0 %v10763_v19  ;;  %v1221_v7 = vand.u32 4294901760, %v1220_v62  ;;  %v15778_v53 = vand.u32 4294901760, %v10844_v28  ;;  %v10871_v34 = vsub.f32 %v10686_v46, %v10719_v60  ;;  %v10874_v54 = vand.u32 4294901760, %v10833_v49 }
  0x2b   : > { %16395 = vst [vmem:[#allocation25_spill] sm:$0xff] %v10860_v37  ;;  %8117 = vmatpush3.msra.mxu1 %v1102_v38  ;;  %8070 = vmatprep.subr.mxu0 %v10775_v52  ;;  %v1109_v58 = vand.u32 4294901760, %v1108_v14  ;;  %v1227_v62 = vsub.f32 %v10828_v55, %v15779_v43  ;;  %v10887_v46 = vsub.f32 %v10699_v51, %v10735_v1  ;;  %v10890_v29 = vand.u32 4294901760, %v10849_v44 }
  0x2c   : > { %16396 = vst [vmem:[#allocation26_spill] sm:$0xff] %v10874_v54  ;;  %8118 = vmatprep.subr.mxu1 %v1221_v7  ;;  %8071 = vmatpush3.msra.mxu0 %v10792_v57  ;;  %v1115_v38 = vsub.f32 %v10844_v28, %v15778_v53  ;;  %v10899_v60 = vsub.f32 %v10709_v56, %v10749_v12  ;;  %v10902_v51 = vand.u32 4294901760, %v10865_v39  ;;  %v10907_v7 = vld [vmem:[%s15759_s6 + $0x8] sm:$0xff]  ;;  %v10922_v14 = vand.u32 4294901760, %v10879_v33  ;;  %v10927_v12 = vld [vmem:[%s15759_s6 + $0x80] sm:$0xff] }
  0x2d   : > { %16397 = vst [vmem:[#allocation27_spill] sm:$0xff] %v10890_v29  ;;  %8119 = vmatpush3.msra.mxu1 %v1109_v58  ;;  %8072 = vmatprep.subr.mxu0 %v10814_v47  ;;  %v1228_v53 = vand.u32 4294901760, %v1227_v62  ;;  %v10919_v43 = vsub.f32 %v10724_v61, %v10763_v19  ;;  %v16401_v62 = vand.u32 4294901760, %v10871_v34  ;;  %v10936_v61 = vsub.f32 %v10740_v2, %v10775_v52  ;;  %v682_v52 = vld [vmem:[%s10913_s24] sm:$0xff] }
  0x2e   : > { %16398 = vst [vmem:[#allocation28_spill] sm:$0xff] %v10902_v51  ;;  %16400 = vst [vmem:[#allocation30_spill] sm:$0xff] %v10922_v14  ;;  %8073 = vmatpush3.msra.mxu0 %v10840_v63  ;;  %v1116_v58 = vand.u32 4294901760, %v1115_v38  ;;  %v16403_v38 = vand.u32 4294901760, %v10887_v46  ;;  %v10950_v1 = vand.u32 4294901760, %v10907_v7  ;;  %v10954_v2 = vsub.f32 %v10754_v13, %v10792_v57 }
  0x2f   : > { %16399 = vst [vmem:[#allocation29_spill] sm:$0xff] %v10919_v43  ;;  %v1234_v56 = vsub.f32 %v10871_v34, %v16401_v62  ;;  %16402 = vst [vmem:[#allocation31_spill] sm:$0xff] %v10936_v61  ;;  %8120 = vmatprep.subr.mxu1 %v1228_v53  ;;  %8074 = vmatprep.subr.mxu0 %v10860_v37  ;;  %v10959_v53 = vld [vmem:[%s15759_s6] sm:$0xff]  ;;  %v15804_v41 = vand.u32 4294901760, %v10936_v61  ;;  %v10968_v36 = vand.u32 4294901760, %v10927_v12  ;;  %v16407_v57 = vand.u32 4294901760, %v10919_v43 }
  0x30   : > { %v1122_v19 = vsub.f32 %v10887_v46, %v16403_v38  ;;  %16404 = vst [vmem:[#allocation32_spill] sm:$0xff] %v10950_v1  ;;  %8121 = vmatpush3.msra.mxu1 %v1116_v58  ;;  %8075 = vmatpush3.msra.mxu0 %v10874_v54  ;;  %v16405_v38 = vand.u32 4294901760, %v10899_v60  ;;  %v10977_v58 = vsub.f32 %v10780_v20, %v10814_v47  ;;  %v10987_v24 = vand.u32 4294901760, %v10959_v53 }
  0x31   : > { %v1235_v50 = vand.u32 4294901760, %v1234_v56  ;;  %16406 = vst [vmem:[#allocation33_spill] sm:$0xff] %v10968_v36  ;;  %8076 = vmatprep.subr.mxu0 %v10890_v29  ;;  %v1129_v32 = vsub.f32 %v10919_v43, %v16407_v57  ;;  %v10989_v57 = vand.u32 4294901760, %v682_v52  ;;  %v16411_v20 = vand.u32 4294901760, %v10954_v2 }
  0x32   : > { %v1241_v62 = vsub.f32 %v10899_v60, %v16405_v38  ;;  %v1123_v13 = vand.u32 4294901760, %v1122_v19  ;;  %8077 = vmatpush3.msra.mxu0 %v10902_v51  ;;  %v1248_v19 = vsub.f32 %v10936_v61, %v15804_v41  ;;  %16409 = vst [vmem:[#allocation35_spill] sm:$0xff] %v10987_v24  ;;  %v10998_v47 = vsub.f32 %v10806_v26, %v10840_v63 }
  0x33   : > { %8122 = vmatprep.subr.mxu1 %v1235_v50  ;;  %16410 = vst [vmem:[#allocation36_spill] sm:$0xff] %v10989_v57  ;;  %v1130_v56 = vand.u32 4294901760, %v1129_v32  ;;  %8078 = vmatprep.subr.mxu0 %v10922_v14  ;;  %v1136_v50 = vsub.f32 %v10954_v2, %v16411_v20  ;;  %v11002_v61 = vsub.f32 %v682_v52, %v10989_v57  ;;  %v11005_v32 = vand.u32 4294901760, %v10980_v30 }
  0x34   : > { %v1242_v38 = vand.u32 4294901760, %v1241_v62  ;;  %8123 = vmatpush3.msra.mxu1 %v1123_v13  ;;  %v15809_v62 = vand.u32 4294901760, %v10977_v58  ;;  %v1249_v41 = vand.u32 4294901760, %v1248_v19  ;;  %8079 = vmatpush3.msra.mxu0 %v10950_v1  ;;  %v683_v13 = vld [vmem:[%s10913_s24 + $0x10] sm:$0xff]  ;;  %v11015_v19 = vsub.f32 %v10819_v27, %v10860_v37  ;;  %v684_v37 = vld [vmem:[%s10913_s24 + $0x20] sm:$0xff] }
  0x35   : > { %16412 = vst [vmem:[#allocation37_spill] sm:$0xff] %v11005_v32  ;;  %v1137_v43 = vand.u32 4294901760, %v1136_v50  ;;  %8080 = vmatprep.subr.mxu0 %v10968_v36  ;;  %v11025_v20 = vsub.f32 %v10833_v49, %v10874_v54  ;;  %v11029_v50 = vsub.f32 %v10849_v44, %v10890_v29  ;;  %v11036_v52 = vand.u32 4294901760, %v683_v13  ;;  %1287 = vmatprep.mubr.f32.mxu1 %v10989_v57  ;;  %v11056_v44 = vld [vmem:[%s10942_s11 + $0x10] sm:$0xff] }
  0x36   : > { %8124 = vmatprep.subr.mxu1 %v1242_v38  ;;  %v1255_v26 = vsub.f32 %v10977_v58, %v15809_v62  ;;  %v15811_v38 = vand.u32 4294901760, %v10998_v47  ;;  %8081 = vmatpush3.msra.mxu0 %v10987_v24  ;;  %v15818_v62 = vand.u32 4294901760, %v11015_v19  ;;  %v16415_v49 = vand.u32 4294901760, %v11002_v61  ;;  %16417 = vst [vmem:[#allocation41_spill] sm:$0xff] %v11056_v44 }
  0x37   : > { %8125 = vmatpush3.msra.mxu1 %v1130_v56  ;;  %v11021_v56 = vsub.f32 %v10980_v30, %v11005_v32  ;;  %8162 = vmatprep.subr.mxu0 %v10586_v18  ;;  %16414 = vst [vmem:[#allocation39_spill] sm:$0xff] %v11036_v52  ;;  %v11049_v54 = vsub.f32 %v683_v13, %v11036_v52 }
  0x38   : > { %8126 = vmatprep.subr.mxu1 %v1249_v41  ;;  %v1256_v27 = vand.u32 4294901760, %v1255_v26  ;;  %v1143_v41 = vsub.f32 %v10998_v47, %v15811_v38  ;;  %v944_v30 = vsub.f32 %v11002_v61, %v16415_v49  ;;  %v1262_v29 = vsub.f32 %v11015_v19, %v15818_v62 }
  0x39   : > { %16413 = vst [vmem:[#allocation38_spill] sm:$0xff] %v11021_v56  ;;  %8127 = vmatpush3.msra.mxu1 %v1137_v43  ;;  %16416 = vst [vmem:[#allocation40_spill] sm:$0xff] %v11049_v54  ;;  %v11053_v49 = vsub.f32 %v10865_v39, %v10902_v51  ;;  %v16418_v26 = vand.u32 4294901760, %v11021_v56  ;;  %v16420_v62 = vand.u32 4294901760, %v11029_v50  ;;  %v15829_v39 = vand.u32 4294901760, %v11049_v54 }
  0x3a   : > { %8128 = vmatprep.subr.mxu1 %v1256_v27  ;;  %v1144_v38 = vand.u32 4294901760, %v1143_v41  ;;  %v945_v43 = vand.u32 4294901760, %v944_v30  ;;  %v16419_v27 = vand.u32 4294901760, %v11025_v20  ;;  %v1263_v18 = vand.u32 4294901760, %v1262_v29 }
  0x3b   : > { %v950_v57 = vsub.f32 %v11021_v56, %v16418_v26  ;;  %v1269_v13 = vsub.f32 %v11029_v50, %v16420_v62  ;;  %v15828_v51 = vand.u32 4294901760, %v11053_v49  ;;  %v11071_v56 = vand.u32 4294901760, %v11056_v44 }
  0x3c   : > { %v1150_v41 = vsub.f32 %v11025_v20, %v16419_v27  ;;  %8129 = vmatpush3.msra.mxu1 %v1144_v38  ;;  %946 = vmatprep.mubr.f32.mxu0 %v945_v43  ;;  %v959_v62 = vsub.f32 %v11049_v54, %v15829_v39  ;;  %v11081_v38 = vsub.f32 %v10879_v33, %v10922_v14  ;;  %v11095_v27 = vand.u32 4294901760, %v684_v37  ;;  %v11147_v14 = vld [vmem:[%s10942_s11 + $0x40] sm:$0xff] }
  0x3d   : > { %v951_v30 = vand.u32 4294901760, %v950_v57  ;;  %v1270_v26 = vand.u32 4294901760, %v1269_v13  ;;  %16421 = vst [vmem:[#allocation42_spill] sm:$0xff] %v11071_v56  ;;  %8130 = vmatprep.subr.mxu1 %v1263_v18  ;;  %v1157_v29 = vsub.f32 %v11053_v49, %v15828_v51  ;;  %v11085_v57 = vsub.f32 %v10907_v7, %v10950_v1  ;;  %16432 = vst [vmem:[#allocation53_spill] sm:$0xff] %v11147_v14 }
  0x3e   : > { %v1151_v63 = vand.u32 4294901760, %v1150_v41  ;;  %v11089_v18 = vsub.f32 %v11056_v44, %v11071_v56  ;;  %v11093_v43 = vsub.f32 %v10927_v12, %v10968_v36  ;;  %16425 = vst [vmem:[#allocation46_spill] sm:$0xff] %v11095_v27  ;;  %v11099_v33 = vsub.f32 %v10959_v53, %v10987_v24  ;;  %v11102_v41 = vld [vmem:[%s10942_s11 + $0x20] sm:$0xff]  ;;  %v685_v44 = vld [vmem:[%s10913_s24 + $0x30] sm:$0xff] }
  0x3f   : > { %16422 = vst [vmem:[#allocation43_spill] sm:$0xff] %v11085_v57  ;;  %952 = vmatmul.mubr.f32.vlgmr.msra.gmra.mxu0 %v951_v30  ;;  %16427 = vst [vmem:[#allocation48_spill] sm:$0xff] %v11102_v41  ;;  %v1158_v7 = vand.u32 4294901760, %v1157_v29  ;;  %v15832_v13 = vand.u32 4294901760, %v11081_v38  ;;  %v15831_v30 = vand.u32 4294901760, %v11085_v57  ;;  %v11111_v53 = vsub.f32 %v684_v37, %v11095_v27 }
  0x40   : > { %8131 = vmatpush3.msra.mxu1 %v1151_v63  ;;  %16423 = vst [vmem:[#allocation44_spill] sm:$0xff] %v11089_v18  ;;  %16424 = vst [vmem:[#allocation45_spill] sm:$0xff] %v11093_v43  ;;  %8163 = vmatpush3.msra.mxu0 %v10608_v23  ;;  %v960_v63 = vand.u32 4294901760, %v959_v62  ;;  %v15837_v12 = vand.u32 4294901760, %v11089_v18  ;;  %v15840_v51 = vand.u32 4294901760, %v11093_v43  ;;  %v15843_v39 = vand.u32 4294901760, %v11099_v33 }
  0x41   : > { %16426 = vst [vmem:[#allocation47_spill] sm:$0xff] %v11099_v33  ;;  %8132 = vmatprep.subr.mxu1 %v1270_v26  ;;  %8164 = vmatprep.subr.mxu0 %v10614_v25  ;;  %v1276_v26 = vsub.f32 %v11081_v38, %v15832_v13  ;;  %v1164_v62 = vsub.f32 %v11085_v57, %v15831_v30  ;;  %v11122_v29 = vand.u32 4294901760, %v11102_v41  ;;  %v11136_v13 = vld [vmem:[%s10942_s11 + $0x30] sm:$0xff]  ;;  %v11143_v1 = vand.u32 4294901760, %v685_v44 }
  0x42   : > { %961 = vmatprep.mubr.f32.mxu0 %v960_v63  ;;  %8133 = vmatpush3.msra.mxu1 %v1158_v7  ;;  %v965_v37 = vsub.f32 %v11089_v18, %v15837_v12  ;;  %v1283_v63 = vsub.f32 %v11093_v43, %v15840_v51  ;;  %v1171_v30 = vsub.f32 %v11099_v33, %v15843_v39  ;;  %v686_v51 = vld [vmem:[%s10913_s24 + $0x40] sm:$0xff]  ;;  %v16433_v18 = vand.u32 4294901760, %v11111_v53 }
  0x43   : > { %16428 = vst [vmem:[#allocation49_spill] sm:$0xff] %v11122_v29  ;;  %8165 = vmatpush3.msra.mxu0 %v10637_v31  ;;  %16429 = vst [vmem:[#allocation50_spill] sm:$0xff] %v11136_v13  ;;  %v1277_v24 = vand.u32 4294901760, %v1276_v26  ;;  %v1165_v36 = vand.u32 4294901760, %v1164_v62  ;;  %v11141_v12 = vsub.f32 %v11102_v41, %v11122_v29  ;;  %v687_v62 = vld [vmem:[%s10913_s24 + $0x50] sm:$0xff]  ;;  %v11157_v31 = vsub.f32 %v685_v44, %v11143_v1 }
  0x44   : > { %8166 = vmatprep.subr.mxu0 %v10646_v35  ;;  %16431 = vst [vmem:[#allocation52_spill] sm:$0xff] %v11143_v1  ;;  %v966_v7 = vand.u32 4294901760, %v965_v37  ;;  %v1284_v39 = vand.u32 4294901760, %v1283_v63  ;;  %v974_v26 = vsub.f32 %v11111_v53, %v16433_v18  ;;  %v1172_v35 = vand.u32 4294901760, %v1171_v30  ;;  %v11163_v37 = vld [vmem:[%s10942_s11 + $0x50] sm:$0xff]  ;;  %v688_v30 = vld [vmem:[%s10913_s24 + $0x60] sm:$0xff] }
  0x45   : > { %16430 = vst [vmem:[#allocation51_spill] sm:$0xff] %v11141_v12  ;;  %8167 = vmatpush3.msra.mxu0 %v10667_v40  ;;  %8134 = vmatprep.subr.mxu1 %v1277_v24  ;;  %v15851_v41 = vand.u32 4294901760, %v11141_v12  ;;  %16434 = vst [vmem:[#allocation54_spill] sm:$0xff] %v11157_v31  ;;  %v11160_v54 = vand.u32 4294901760, %v11136_v13  ;;  %v11165_v18 = vand.u32 4294901760, %v686_v51  ;;  %v11168_v24 = vand.u32 4294901760, %v11147_v14 }
  0x46   : > { %8168 = vmatprep.subr.mxu0 %v10681_v45  ;;  %16436 = vst [vmem:[#allocation56_spill] sm:$0xff] %v11163_v37  ;;  %967 = vmatmul.mubr.f32.gmra.mxu0 %v966_v7  ;;  %v975_v63 = vand.u32 4294901760, %v974_v26 }
  0x47   : > { %16435 = vst [vmem:[#allocation55_spill] sm:$0xff] %v11160_v54  ;;  %8135 = vmatpush3.msra.mxu1 %v1165_v36  ;;  %16437 = vst [vmem:[#allocation57_spill] sm:$0xff] %v11165_v18  ;;  %8169 = vmatpush3.msra.mxu0 %v10716_v59  ;;  %v980_v44 = vsub.f32 %v11141_v12, %v15851_v41  ;;  %v11177_v7 = vsub.f32 %v11136_v13, %v11160_v54  ;;  %v11179_v36 = vand.u32 4294901760, %v687_v62 }
  0x48   : > { %16438 = vst [vmem:[#allocation58_spill] sm:$0xff] %v11168_v24  ;;  %8136 = vmatprep.subr.mxu1 %v1284_v39  ;;  %976 = vmatprep.mubr.f32.mxu0 %v975_v63  ;;  %v11182_v26 = vsub.f32 %v686_v51, %v11165_v18  ;;  %v11186_v39 = vsub.f32 %v11147_v14, %v11168_v24  ;;  %v11189_v41 = vand.u32 4294901760, %v11163_v37  ;;  %v16442_v63 = vand.u32 4294901760, %v11157_v31 }
  0x49   : > { %16439 = vst [vmem:[#allocation59_spill] sm:$0xff] %v11177_v7  ;;  %16440 = vst [vmem:[#allocation60_spill] sm:$0xff] %v11179_v36  ;;  %8137 = vmatpush3.msra.mxu1 %v1172_v35  ;;  %v981_v12 = vand.u32 4294901760, %v980_v44  ;;  %8170 = vmatprep.subr.mxu0 %v10732_v0  ;;  %v15861_v51 = vand.u32 4294901760, %v11177_v7  ;;  %v11199_v13 = vsub.f32 %v687_v62, %v11179_v36 }
  0x4a   : > { %16441 = vst [vmem:[#allocation61_spill] sm:$0xff] %v11189_v41  ;;  %1289 = vmatmul.mubr.f32.vlgmr.msra.gmra.mxu1 %v11005_v32  ;;  %v989_v35 = vsub.f32 %v11157_v31, %v16442_v63  ;;  %8218 = vmatprep.subr.mxu1 %v10545_v3  ;;  %v15866_v14 = vand.u32 4294901760, %v11182_v26  ;;  %v15867_v44 = vand.u32 4294901760, %v11186_v39  ;;  %v11206_v32 = vld [vmem:[%s10942_s11 + $0x60] sm:$0xff]  ;;  %v11214_v31 = vsub.f32 %v11163_v37, %v11189_v41 }
  0x4b   : > { %16443 = vst [vmem:[#allocation62_spill] sm:$0xff] %v11199_v13  ;;  %8171 = vmatpush3.msra.mxu0 %v10746_v8  ;;  %16444 = vst [vmem:[#allocation63_spill] sm:$0xff] %v11206_v32  ;;  %8219 = vmatpush3.msra.mxu1 %v10547_v4  ;;  %v995_v62 = vsub.f32 %v11177_v7, %v15861_v51  ;;  %v11216_v8 = vand.u32 4294901760, %v688_v30  ;;  %v11229_v7 = vand.u32 4294901760, %v11206_v32 }
  0x4c   : > { %982 = vmatmul.mubr.f32.gmra.mxu0 %v981_v12  ;;  %v990_v63 = vand.u32 4294901760, %v989_v35  ;;  %16445 = vst [vmem:[#allocation64_spill] sm:$0xff] %v11214_v31  ;;  %8172 = vmatprep.subr.mxu0 %v10760_v42  ;;  %v1004_v12 = vsub.f32 %v11182_v26, %v15866_v14  ;;  %v1010_v51 = vsub.f32 %v11186_v39, %v15867_v44  ;;  %v11242_v44 = vld [vmem:[%s10942_s11 + $0x70] sm:$0xff] }
  0x4d   : > { %16446 = vst [vmem:[#allocation65_spill] sm:$0xff] %v11216_v8  ;;  %8220 = vmatprep.subr.mxu1 %v10549_v5  ;;  %1294 = vmatprep.mubr.f32.mxu1 %v11036_v52  ;;  %v996_v35 = vand.u32 4294901760, %v995_v62  ;;  %16447 = vst [vmem:[#allocation66_spill] sm:$0xff] %v11229_v7  ;;  %v689_v5 = vld [vmem:[%s10913_s24 + $0x70] sm:$0xff]  ;;  %v11237_v14 = vsub.f32 %v688_v30, %v11216_v8  ;;  %v11251_v62 = vsub.f32 %v11206_v32, %v11229_v7 }
  0x4e   : > { %991 = vmatprep.mubr.f32.mxu0 %v990_v63  ;;  %8173 = vmatpush3.msra.mxu0 %v10772_v48  ;;  %v1005_v63 = vand.u32 4294901760, %v1004_v12  ;;  %16449 = vst [vmem:[#allocation68_spill] sm:$0xff] %v11242_v44  ;;  %v1011_v37 = vand.u32 4294901760, %v1010_v51  ;;  %v11253_v30 = vand.u32 4294901760, %v689_v5 }
  0x4f   : > { %8221 = vmatpush3.msra.mxu1 %v10560_v9  ;;  %16448 = vst [vmem:[#allocation67_spill] sm:$0xff] %v11237_v14  ;;  %8174 = vmatprep.subr.mxu0 %v10789_v21  ;;  %16451 = vst [vmem:[#allocation69_spill] sm:$0xff] %v11251_v62  ;;  %v15879_v52 = vand.u32 4294901760, %v11237_v14 }
  0x50   : > { %997 = vmatmul.mubr.f32.gmra.mxu0 %v996_v35  ;;  %1296 = vmatmul.mubr.f32.gmra.mxu1 %v11071_v56  ;;  %v16450_v35 = vand.u32 4294901760, %v11199_v13  ;;  %16452 = vst [vmem:[#allocation70_spill] sm:$0xff] %v11253_v30  ;;  %v16453_v56 = vand.u32 4294901760, %v11214_v31 }
  0x51   : > { %8222 = vmatprep.subr.mxu1 %v10562_v10  ;;  %8175 = vmatpush3.msra.mxu0 %v10801_v6 }
  0x52   : > { %8223 = vmatpush3.msra.mxu1 %v10564_v11  ;;  %v1019_v12 = vsub.f32 %v11199_v13, %v16450_v35  ;;  %8176 = vmatprep.subr.mxu0 %v10828_v55  ;;  %v1025_v51 = vsub.f32 %v11214_v31, %v16453_v56  ;;  %v11263_v35 = vand.u32 4294901760, %v11242_v44  ;;  %v16455_v31 = vld [vmem:[#allocation29_spill] sm:$0xff]  ;;  %v16457_v13 = vld [vmem:[#allocation31_spill] sm:$0xff] }
  0x53   : > { %8224 = vmatprep.subr.mxu1 %v10578_v15  ;;  %1006 = vmatprep.mubr.f32.mxu0 %v1005_v63  ;;  %v15887_v63 = vand.u32 4294901760, %v11251_v62 }
  0x54   : > { %1301 = vmatprep.mubr.f32.mxu1 %v11095_v27  ;;  %8177 = vmatpush3.msra.mxu0 %v10844_v28  ;;  %v1020_v32 = vand.u32 4294901760, %v1019_v12  ;;  %v11270_v27 = vsub.f32 %v689_v5, %v11253_v30  ;;  %v1026_v56 = vand.u32 4294901760, %v1025_v51  ;;  %v11281_v12 = vsub.f32 %v11242_v44, %v11263_v35  ;;  %v16454_v5 = vld [vmem:[#allocation8_spill] sm:$0xff] }
  0x55   : > { %8225 = vmatpush3.msra.mxu1 %v10580_v16  ;;  %1012 = vmatmul.mubr.f32.gmra.mxu0 %v1011_v37  ;;  %v1034_v37 = vsub.f32 %v11237_v14, %v15879_v52  ;;  %v16456_v52 = vld [vmem:[#allocation9_spill] sm:$0xff] }
  0x56   : > { %1303 = vmatmul.mubr.f32.gmra.mxu1 %v11122_v29  ;;  %8178 = vmatprep.subr.mxu0 %v10871_v34  ;;  %v1040_v29 = vsub.f32 %v11251_v62, %v15887_v63  ;;  %v15892_v51 = vand.u32 4294901760, %v11270_v27  ;;  %v15895_v14 = vand.u32 4294901760, %v11281_v12 }
  0x57   : > { %8226 = vmatprep.subr.mxu1 %v10583_v17  ;;  %8179 = vmatpush3.msra.mxu0 %v10887_v46  ;;  %v1035_v44 = vand.u32 4294901760, %v1034_v37 }
  0x58   : > { %8227 = vmatpush3.msra.mxu1 %v10605_v22  ;;  %8180 = vmatprep.subr.mxu0 %v10899_v60  ;;  %v1041_v63 = vand.u32 4294901760, %v1040_v29  ;;  %v1049_v62 = vsub.f32 %v11270_v27, %v15892_v51  ;;  %v1055_v37 = vsub.f32 %v11281_v12, %v15895_v14  ;;  %v16462_v51 = vld [vmem:[#allocation16_spill] sm:$0xff]  ;;  %v16464_v14 = vld [vmem:[#allocation19_spill] sm:$0xff] }
  0x59   : > { %8228 = vmatprep.subr.mxu1 %v16454_v5  ;;  %1021 = vmatprep.mubr.f32.mxu0 %v1020_v32  ;;  %v16458_v32 = vld [vmem:[#allocation11_spill] sm:$0xff] }
  0x5a   : > { %1308 = vmatprep.mubr.f32.mxu1 %v11143_v1  ;;  %8181 = vmatpush3.msra.mxu0 %v16455_v31  ;;  %v16459_v1 = vld [vmem:[#allocation13_spill] sm:$0xff]  ;;  %v1050_v29 = vand.u32 4294901760, %v1049_v62 }
  0x5b   : > { %8229 = vmatpush3.msra.mxu1 %v16456_v52  ;;  %1027 = vmatmul.mubr.f32.gmra.mxu0 %v1026_v56  ;;  %v16460_v56 = vld [vmem:[#allocation14_spill] sm:$0xff]  ;;  %v16466_v62 = vld [vmem:[#allocation21_spill] sm:$0xff] }
  0x5c   : > { %1310 = vmatmul.mubr.f32.gmra.mxu1 %v11160_v54  ;;  %8182 = vmatprep.subr.mxu0 %v16457_v13  ;;  %v16461_v54 = vld [vmem:[#allocation15_spill] sm:$0xff] }
  0x5d   : > { %8230 = vmatprep.subr.mxu1 %v16458_v32  ;;  %8183 = vmatpush3.msra.mxu0 %v10954_v2 }
  0x5e   : > { %8231 = vmatpush3.msra.mxu1 %v16459_v1  ;;  %8184 = vmatprep.subr.mxu0 %v10977_v58 }
  0x5f   : > { %8232 = vmatprep.subr.mxu1 %v16460_v56  ;;  %1036 = vmatprep.mubr.f32.mxu0 %v1035_v44  ;;  %v16463_v44 = vld [vmem:[#allocation17_spill] sm:$0xff] }
  0x60   : > { %1315 = vmatprep.mubr.f32.mxu1 %v11165_v18  ;;  %8185 = vmatpush3.msra.mxu0 %v10998_v47  ;;  %v1056_v18 = vand.u32 4294901760, %v1055_v37  ;;  %v16467_v37 = vld [vmem:[#allocation22_spill] sm:$0xff] }
  0x61   : > { %8233 = vmatpush3.msra.mxu1 %v16461_v54  ;;  %1042 = vmatmul.mubr.f32.gmra.mxu0 %v1041_v63  ;;  %v16465_v63 = vld [vmem:[#allocation20_spill] sm:$0xff] }
  0x62   : > { %1317 = vmatmul.mubr.f32.gmra.mxu1 %v11168_v24  ;;  %8186 = vmatprep.subr.mxu0 %v11015_v19  ;;  %v16472_v24 = vld [vmem:[#allocation7_spill] sm:$0xff] }
  0x63   : > { %8234 = vmatprep.subr.mxu1 %v16462_v51  ;;  %8187 = vmatpush3.msra.mxu0 %v11025_v20 }
  0x64   : > { %8235 = vmatpush3.msra.mxu1 %v16463_v44  ;;  %8188 = vmatprep.subr.mxu0 %v11029_v50 }
  0x65   : > { %8236 = vmatprep.subr.mxu1 %v16464_v14  ;;  %1051 = vmatprep.mubr.f32.mxu0 %v1050_v29  ;;  %v16468_v29 = vld [vmem:[#allocation23_spill] sm:$0xff] }
  0x66   : > { %1322 = vmatprep.mubr.f32.mxu1 %v11179_v36  ;;  %8189 = vmatpush3.msra.mxu0 %v11053_v49  ;;  %v16471_v36 = vld [vmem:[#allocation25_spill] sm:$0xff] }
  0x67   : > { %8237 = vmatpush3.msra.mxu1 %v16465_v63  ;;  %1057 = vmatmul.mubr.f32.gmra.mxu0 %v1056_v18  ;;  %v16469_v18 = vld [vmem:[#allocation24_spill] sm:$0xff] }
  0x68   : > { %1324 = vmatmul.mubr.f32.gmra.mxu1 %v11189_v41  ;;  %8190 = vmatprep.subr.mxu0 %v11081_v38  ;;  %v16470_v41 = vld [vmem:[#allocation38_spill] sm:$0xff] }
  0x69   : > { %8238 = vmatprep.subr.mxu1 %v16466_v62  ;;  %8191 = vmatpush3.msra.mxu0 %v11085_v57 }
  0x6a   : > { %8239 = vmatpush3.msra.mxu1 %v16467_v37  ;;  %8192 = vmatprep.subr.mxu0 %v11093_v43  ;;  %v16473_v37 = vand.u32 4294901760, %v16472_v24  ;;  %v16474_v43 = vld [vmem:[#allocation26_spill] sm:$0xff]  ;;  %v16482_v24 = vld [vmem:[#allocation44_spill] sm:$0xff] }
  0x6b   : > { %8240 = vmatprep.subr.mxu1 %v16468_v29  ;;  %1329 = vmatprep.mubr.f32.mxu1 %v11216_v8  ;;  %v16475_v29 = vand.u32 4294901760, %v10608_v23  ;;  %v16476_v8 = vld [vmem:[#allocation27_spill] sm:$0xff]  ;;  %v16483_v23 = vld [vmem:[#allocation30_spill] sm:$0xff] }
  0x6c   : > { %8193 = vmatpush3.msra.mxu0 %v11099_v33  ;;  %1473 = vmatprep.mubr.f32.mxu0 %v11002_v61  ;;  %v16477_v33 = vand.u32 4294901760, %v10614_v25  ;;  %v16486_v25 = vld [vmem:[#allocation32_spill] sm:$0xff] }
  0x6d   : > { %8241 = vmatpush3.msra.mxu1 %v16469_v18  ;;  %1476 = vmatmul.mubr.f32.vlgmr.msra.gmra.mxu0 %v16470_v41  ;;  %v16479_v18 = vld [vmem:[#allocation28_spill] sm:$0xff] }
  0x6e   : > { %1331 = vmatmul.mubr.f32.gmra.mxu1 %v11229_v7  ;;  %8242 = vmatprep.subr.mxu1 %v16471_v36  ;;  %v16478_v7 = vld [vmem:[#allocation40_spill] sm:$0xff]  ;;  %v16480_v36 = vld [vmem:[#allocation10_spill] sm:$0xff] }
  0x6f   : > { %8274 = vmatprep.subr.mxu0 %v16473_v37  ;;  %8243 = vmatpush3.msra.mxu1 %v16474_v43  ;;  %v16481_v57 = vand.u32 4294901760, %v16480_v36  ;;  %v16484_v37 = vld [vmem:[#allocation12_spill] sm:$0xff]  ;;  %v16491_v36 = vand.u32 4294901760, %v11002_v61  ;;  %v16498_v61 = vand.u32 4294901760, %v10760_v42  ;;  %v16506_v42 = vand.u32 4294901760, %v10801_v6 }
  0x70   : > { %8275 = vmatpush3.msra.mxu0 %v16475_v29  ;;  %8244 = vmatprep.subr.mxu1 %v16476_v8  ;;  %v16485_v29 = vand.u32 4294901760, %v16484_v37  ;;  %v16492_v37 = vand.u32 4294901760, %v10716_v59  ;;  %v16499_v59 = vld [vmem:[#allocation6_spill] sm:$0xff] }
  0x71   : > { %8276 = vmatprep.subr.mxu0 %v16477_v33  ;;  %1336 = vmatprep.mubr.f32.mxu1 %v11253_v30  ;;  %v16487_v33 = vand.u32 4294901760, %v10667_v40  ;;  %v16488_v30 = vld [vmem:[#allocation33_spill] sm:$0xff]  ;;  %v16494_v40 = vand.u32 4294901760, %v16470_v41  ;;  %v16501_v41 = vand.u32 4294901760, %v16478_v7 }
  0x72   : > { %1482 = vmatprep.mubr.f32.mxu0 %v16478_v7  ;;  %8245 = vmatpush3.msra.mxu1 %v16479_v18  ;;  %v16489_v18 = vand.u32 4294901760, %v10681_v45  ;;  %v16496_v45 = vld [vmem:[#allocation18_spill] sm:$0xff]  ;;  %v16531_v7 = vand.u32 4294901760, %v11053_v49 }
  0x73   : > { %8277 = vmatpush3.msra.mxu0 %v16481_v57  ;;  %1338 = vmatmul.mubr.f32.gmra.mxu1 %v11263_v35  ;;  %v16490_v57 = vld [vmem:[#allocation35_spill] sm:$0xff]  ;;  %v16536_v49 = vld [vmem:[#allocation22_spill] sm:$0xff] }
  0x74   : > { %1485 = vmatmul.mubr.f32.gmra.mxu0 %v16482_v24  ;;  %8246 = vmatprep.subr.mxu1 %v16483_v23 }
  0x75   : > { %8278 = vmatprep.subr.mxu0 %v16485_v29  ;;  %8247 = vmatpush3.msra.mxu1 %v16486_v25  ;;  %v16493_v29 = vld [vmem:[#allocation51_spill] sm:$0xff] }
  0x76   : > { %8279 = vmatpush3.msra.mxu0 %v16487_v33  ;;  %8248 = vmatprep.subr.mxu1 %v16488_v30  ;;  %v16495_v33 = vand.u32 4294901760, %v10732_v0  ;;  %v16502_v0 = vand.u32 4294901760, %v10772_v48  ;;  %v16507_v48 = vand.u32 4294901760, %v10828_v55  ;;  %v16513_v55 = vand.u32 4294901760, %v10899_v60 }
  0x77   : > { %8280 = vmatprep.subr.mxu0 %v16489_v18  ;;  %1491 = vmatprep.mubr.f32.mxu0 %v11111_v53  ;;  %v16497_v18 = vand.u32 4294901760, %v16496_v45  ;;  %v16520_v60 = vand.u32 4294901760, %v10954_v2  ;;  %v16526_v2 = vand.u32 4294901760, %v11186_v39  ;;  %v16544_v45 = vld [vmem:[#allocation24_spill] sm:$0xff] }
  0x78   : > { %8249 = vmatpush3.msra.mxu1 %v16490_v57  ;;  %1643 = vmatprep.mubr.f32.mxu1 %v16491_v36  ;;  %v16500_v36 = vld [vmem:[#allocation54_spill] sm:$0xff] }
  0x79   : > { %8281 = vmatpush3.msra.mxu0 %v16492_v37  ;;  %1647 = vmatmul.mubr.f32.vlgmr.msra.gmra.mxu1 %v16494_v40  ;;  %v16504_v37 = vand.u32 4294901760, %v16482_v24  ;;  %v16515_v6 = vand.u32 4294901760, %v16500_v36  ;;  %v16541_v24 = vld [vmem:[#allocation47_spill] sm:$0xff]  ;;  %v841_v40 = vld [vmem:[%s15759_s6 + $0x160] sm:$0xff] }
  0x7a   : > { %1494 = vmatmul.mubr.f32.gmra.mxu0 %v16493_v29  ;;  %8282 = vmatprep.subr.mxu0 %v16495_v33  ;;  %v16543_v33 = vld [vmem:[#allocation36_spill] sm:$0xff] }
  0x7b   : > { %8330 = vmatprep.subr.mxu1 %v10545_v3  ;;  %8283 = vmatpush3.msra.mxu0 %v16497_v18  ;;  %v16503_v3 = vld [vmem:[#allocation59_spill] sm:$0xff] }
  0x7c   : > { %8331 = vmatpush3.msra.mxu1 %v10547_v4  ;;  %8284 = vmatprep.subr.mxu0 %v16498_v61  ;;  %v16505_v4 = vand.u32 4294901760, %v10789_v21  ;;  %v16509_v21 = vand.u32 4294901760, %v10844_v28  ;;  %v16518_v28 = vand.u32 4294901760, %v16503_v3 }
  0x7d   : > { %8332 = vmatprep.subr.mxu1 %v16499_v59  ;;  %1500 = vmatprep.mubr.f32.mxu0 %v16500_v36  ;;  %v16546_v36 = vld [vmem:[#allocation37_spill] sm:$0xff] }
  0x7e   : > { %1654 = vmatprep.mubr.f32.mxu1 %v16501_v41  ;;  %8285 = vmatpush3.msra.mxu0 %v16502_v0  ;;  %v16547_v41 = vld [vmem:[#allocation25_spill] sm:$0xff]  ;;  %v11500_v0 = vand.u32 4294901760, %v841_v40 }
  0x7f   : > { %8333 = vmatpush3.msra.mxu1 %v10560_v9  ;;  %1503 = vmatmul.mubr.f32.gmra.mxu0 %v16503_v3  ;;  %v16508_v9 = vand.u32 4294901760, %v11111_v53  ;;  %v16525_v53 = vld [vmem:[#allocation69_spill] sm:$0xff] }
  0x80   : > { %1658 = vmatmul.mubr.f32.gmra.mxu1 %v16504_v37  ;;  %8286 = vmatprep.subr.mxu0 %v16505_v4  ;;  %v16545_v59 = vand.u32 4294901760, %v16525_v53  ;;  %v840_v37 = vld [vmem:[%s15759_s6 + $0x158] sm:$0xff] }
  0x81   : > { %8334 = vmatprep.subr.mxu1 %v10562_v10  ;;  %8287 = vmatpush3.msra.mxu0 %v16506_v42  ;;  %v16510_v10 = vand.u32 4294901760, %v16493_v29  ;;  %v16542_v29 = vand.u32 4294901760, %v16541_v24  ;;  %v16565_v24 = vld [vmem:[#allocation41_spill] sm:$0xff] }
  0x82   : > { %8335 = vmatpush3.msra.mxu1 %v10564_v11  ;;  %8288 = vmatprep.subr.mxu0 %v16507_v48  ;;  %v16511_v11 = vand.u32 4294901760, %v10871_v34  ;;  %v16516_v34 = vand.u32 4294901760, %v16455_v31  ;;  %v16521_v31 = vand.u32 4294901760, %v10977_v58  ;;  %v16528_v58 = vand.u32 4294901760, %v11025_v20  ;;  %v843_v20 = vld [vmem:[%s15759_s6 + $0x170] sm:$0xff] }
  0x83   : > { %8336 = vmatprep.subr.mxu1 %v10578_v15  ;;  %1509 = vmatprep.mubr.f32.mxu0 %v11182_v26  ;;  %v16512_v15 = vand.u32 4294901760, %v10887_v46  ;;  %v16522_v46 = vld [vmem:[#allocation67_spill] sm:$0xff]  ;;  %v16550_v48 = vand.u32 4294901760, %v11270_v27 }
  0x84   : > { %1665 = vmatprep.mubr.f32.mxu1 %v16508_v9  ;;  %8289 = vmatpush3.msra.mxu0 %v16509_v21  ;;  %v839_v9 = vld [vmem:[%s15759_s6 + $0x150] sm:$0xff] }
  0x85   : > { %8337 = vmatpush3.msra.mxu1 %v10580_v16  ;;  %1512 = vmatmul.mubr.f32.gmra.mxu0 %v11186_v39  ;;  %v16514_v16 = vld [vmem:[#allocation62_spill] sm:$0xff]  ;;  %v11467_v39 = vand.u32 4294901760, %v843_v20  ;;  %v16552_v21 = vld [vmem:[#allocation28_spill] sm:$0xff] }
  0x86   : > { %1669 = vmatmul.mubr.f32.gmra.mxu1 %v16510_v10  ;;  %8290 = vmatprep.subr.mxu0 %v16511_v11  ;;  %v11531_v11 = vsub.f32 %v841_v40, %v11500_v0 }
  0x87   : > { %8338 = vmatprep.subr.mxu1 %v10583_v17  ;;  %8291 = vmatpush3.msra.mxu0 %v16512_v15  ;;  %v16517_v17 = vld [vmem:[#allocation64_spill] sm:$0xff]  ;;  %v11493_v61 = vsub.f32 %v843_v20, %v11467_v39  ;;  %v16554_v15 = vld [vmem:[#allocation42_spill] sm:$0xff] }
  0x88   : > { %8339 = vmatpush3.msra.mxu1 %v10605_v22  ;;  %8292 = vmatprep.subr.mxu0 %v16513_v55  ;;  %v16519_v22 = vand.u32 4294901760, %v16457_v13  ;;  %v16524_v13 = vand.u32 4294901760, %v10998_v47  ;;  %v844_v47 = vld [vmem:[%s15759_s6 + $0x178] sm:$0xff]  ;;  %v11538_v55 = vand.u32 4294901760, %v839_v9 }
  0x89   : > { %8340 = vmatprep.subr.mxu1 %v16454_v5  ;;  %1518 = vmatprep.mubr.f32.mxu0 %v16514_v16  ;;  %v16534_v5 = vld [vmem:[#allocation43_spill] sm:$0xff]  ;;  %v11513_v4 = vand.u32 4294901760, %v11493_v61 }
  0x8a   : > { %1676 = vmatprep.mubr.f32.mxu1 %v16515_v6  ;;  %8293 = vmatpush3.msra.mxu0 %v16516_v34  ;;  %v11553_v34 = vand.u32 4294901760, %v11531_v11 }
  0x8b   : > { %8341 = vmatpush3.msra.mxu1 %v16456_v52  ;;  %1521 = vmatmul.mubr.f32.gmra.mxu0 %v16517_v17  ;;  %v16523_v52 = vand.u32 4294901760, %v11182_v26  ;;  %v11459_v26 = vand.u32 4294901760, %v844_v47  ;;  %16549 = vst [vmem:[#allocation29_spill] sm:$0xff] %v11513_v4 }
  0x8c   : > { %1680 = vmatmul.mubr.f32.gmra.mxu1 %v16518_v28  ;;  %8294 = vmatprep.subr.mxu0 %v16519_v22  ;;  %16556 = vst [vmem:[#allocation31_spill] sm:$0xff] %v11553_v34  ;;  %v16557_v28 = vld [vmem:[#allocation46_spill] sm:$0xff] }
  0x8d   : > { %8342 = vmatprep.subr.mxu1 %v16458_v32  ;;  %8295 = vmatpush3.msra.mxu0 %v16520_v60  ;;  %v842_v32 = vld [vmem:[%s15759_s6 + $0x168] sm:$0xff] }
  0x8e   : > { %8343 = vmatpush3.msra.mxu1 %v16459_v1  ;;  %8296 = vmatprep.subr.mxu0 %v16521_v31  ;;  %v16527_v1 = vand.u32 4294901760, %v11015_v19  ;;  %v16530_v19 = vand.u32 4294901760, %v16514_v16  ;;  %v11490_v18 = vand.u32 4294901760, %v842_v32  ;;  %v2271_v16 = vsub.f32 %v11493_v61, %v11513_v4 }
  0x8f   : > { %8344 = vmatprep.subr.mxu1 %v16460_v56  ;;  %1527 = vmatprep.mubr.f32.mxu0 %v16522_v46  ;;  %v16537_v56 = vld [vmem:[#allocation45_spill] sm:$0xff]  ;;  %v11570_v31 = vsub.f32 %v839_v9, %v11538_v55 }
  0x90   : > { %1687 = vmatprep.mubr.f32.mxu1 %v16523_v52  ;;  %8297 = vmatpush3.msra.mxu0 %v16524_v13  ;;  %v11516_v42 = vsub.f32 %v842_v32, %v11490_v18  ;;  %v2285_v52 = vsub.f32 %v11531_v11, %v11553_v34  ;;  %v836_v13 = vld [vmem:[%s15759_s6 + $0x138] sm:$0xff] }
  0x91   : > { %8345 = vmatpush3.msra.mxu1 %v16461_v54  ;;  %1530 = vmatmul.mubr.f32.gmra.mxu0 %v16525_v53  ;;  %v16529_v54 = vand.u32 4294901760, %v11029_v50  ;;  %v16533_v50 = vand.u32 4294901760, %v11081_v38  ;;  %v11479_v38 = vsub.f32 %v844_v47, %v11459_v26  ;;  %v16561_v47 = vld [vmem:[#allocation52_spill] sm:$0xff] }
  0x92   : > { %1691 = vmatmul.mubr.f32.gmra.mxu1 %v16526_v2  ;;  %8298 = vmatprep.subr.mxu0 %v16527_v1  ;;  %v11543_v6 = vand.u32 4294901760, %v11516_v42  ;;  %v11588_v1 = vand.u32 4294901760, %v11570_v31  ;;  %v2286_v20 = vand.u32 4294901760, %v2285_v52 }
  0x93   : > { %8346 = vmatprep.subr.mxu1 %v16462_v51  ;;  %8299 = vmatpush3.msra.mxu0 %v16528_v58  ;;  %v16535_v51 = vand.u32 4294901760, %v16534_v5  ;;  %v11503_v3 = vand.u32 4294901760, %v11479_v38  ;;  %v16562_v5 = vld [vmem:[#allocation55_spill] sm:$0xff] }
  0x94   : > { %8347 = vmatpush3.msra.mxu1 %v16463_v44  ;;  %8300 = vmatprep.subr.mxu0 %v16529_v54  ;;  %v16538_v44 = vand.u32 4294901760, %v16537_v56  ;;  %16555 = vst [vmem:[#allocation9_spill] sm:$0xff] %v11543_v6  ;;  %v2278_v60 = vsub.f32 %v11516_v42, %v11543_v6  ;;  %16560 = vst [vmem:[#allocation13_spill] sm:$0xff] %v11588_v1  ;;  %v11595_v54 = vand.u32 4294901760, %v836_v13  ;;  %v834_v56 = vld [vmem:[%s15759_s6 + $0x128] sm:$0xff]  ;;  %v16583_v6 = vld [vmem:[#allocation66_spill] sm:$0xff] }
  0x95   : > { %8348 = vmatprep.subr.mxu1 %v16464_v14  ;;  %1536 = vmatprep.mubr.f32.mxu0 %v11270_v27  ;;  %v16532_v14 = vand.u32 4294901760, %v16517_v17  ;;  %16548 = vst [vmem:[#allocation8_spill] sm:$0xff] %v11503_v3  ;;  %v2264_v10 = vsub.f32 %v11479_v38, %v11503_v3  ;;  %v16553_v27 = vand.u32 4294901760, %v11281_v12  ;;  %v2299_v32 = vsub.f32 %v11570_v31, %v11588_v1 }
  0x96   : > { %1698 = vmatprep.mubr.f32.mxu1 %v16530_v19  ;;  %8301 = vmatpush3.msra.mxu0 %v16531_v7  ;;  %v2279_v2 = vand.u32 4294901760, %v2278_v60  ;;  %v835_v19 = vld [vmem:[%s15759_s6 + $0x130] sm:$0xff]  ;;  %v11625_v40 = vsub.f32 %v836_v13, %v11595_v54  ;;  %v16572_v13 = vld [vmem:[#allocation50_spill] sm:$0xff] }
  0x97   : > { %8349 = vmatpush3.msra.mxu1 %v16465_v63  ;;  %1539 = vmatmul.mubr.f32.gmra.mxu0 %v11281_v12  ;;  %v16539_v63 = vld [vmem:[#allocation23_spill] sm:$0xff]  ;;  %v2300_v9 = vand.u32 4294901760, %v2299_v32 }
  0x98   : > { %1702 = vmatmul.mubr.f32.gmra.mxu1 %v16532_v14  ;;  %8302 = vmatprep.subr.mxu0 %v16533_v50  ;;  %v838_v12 = vld [vmem:[%s15759_s6 + $0x148] sm:$0xff]  ;;  %v11659_v60 = vand.u32 4294901760, %v11625_v40 }
  0x99   : > { %8350 = vmatprep.subr.mxu1 %v16466_v62  ;;  %8303 = vmatpush3.msra.mxu0 %v16535_v51  ;;  %v16540_v62 = vand.u32 4294901760, %v16522_v46  ;;  %v11565_v22 = vand.u32 4294901760, %v838_v12  ;;  %v16558_v46 = vld [vmem:[#allocation49_spill] sm:$0xff]  ;;  %v667_v50 = vld [vmem:[%s10942_s11 + $0x8] sm:$0x1] }
  0x9a   : > { %8351 = vmatpush3.msra.mxu1 %v16536_v49  ;;  %8304 = vmatprep.subr.mxu0 %v16538_v44  ;;  %v669_v51 = vld [vmem:[%s10942_s11 + $0x18] sm:$0x1]  ;;  %v11611_v49 = vand.u32 4294901760, %v835_v19  ;;  %16571 = vst [vmem:[#allocation17_spill] sm:$0xff] %v11659_v60 }
  0x9b   : > { %8352 = vmatprep.subr.mxu1 %v16539_v63  ;;  %1709 = vmatprep.mubr.f32.mxu1 %v16540_v62  ;;  %v11591_v58 = vsub.f32 %v838_v12, %v11565_v22  ;;  %v16564_v63 = vld [vmem:[#allocation34_spill] sm:$0xff] }
  0x9c   : > { %8305 = vmatpush3.msra.mxu0 %v16542_v29  ;;  %1890 = vmatprep.mubr.f32.mxu0 %v16543_v33  ;;  %v757_v62 = vrot.slane %v16564_v63, 1  ;;  %v760_v29 = vrot.slane %v16565_v24, 1  ;;  %v16574_v63 = vld [vmem:[#allocation60_spill] sm:$0xff]  ;;  %v675_v24 = vld [vmem:[%s10942_s11 + $0x48] sm:$0x1] }
  0x9d   : > { %8353 = vmatpush3.msra.mxu1 %v16544_v45  ;;  %1892 = vmatmul.mubr.f32.vlgmr.msra.gmra.mxu0 %v16546_v36  ;;  %v11619_v44 = vand.u32 4294901760, %v11591_v58 }
  0x9e   : > { %1713 = vmatmul.mubr.f32.gmra.mxu1 %v16545_v59  ;;  %8354 = vmatprep.subr.mxu1 %v16547_v41  ;;  %v833_v59 = vld [vmem:[%s15759_s6 + $0x120] sm:$0xff]  ;;  %v761_v41 = vrot.slane %v669_v51, 1 }
  0x9f   : > { %9490 = vmatprep.subr.mxu0 %v11459_v26  ;;  %8355 = vmatpush3.msra.mxu1 %v16474_v43  ;;  %v16551_v43 = vld [vmem:[#allocation39_spill] sm:$0xff]  ;;  %16563 = vst [vmem:[#allocation14_spill] sm:$0xff] %v11619_v44  ;;  %v11648_v12 = vand.u32 4294901760, %v833_v59 }
  0xa0   : > { %9491 = vmatpush3.msra.mxu0 %v11459_v26  ;;  %8356 = vmatprep.subr.mxu1 %v16476_v8  ;;  %v11526_v8 = vand.u32 4294901760, %v840_v37 }
  0xa1   : > { %9492 = vmatprep.subr.mxu0 %v11467_v39  ;;  %1720 = vmatprep.mubr.f32.mxu1 %v16550_v48  ;;  %v11636_v48 = vand.u32 4294901760, %v834_v56  ;;  %16570 = vst [vmem:[#allocation16_spill] sm:$0xff] %v11648_v12 }
  0xa2   : > { %1897 = vmatprep.mubr.f32.mxu0 %v16551_v43  ;;  %8357 = vmatpush3.msra.mxu1 %v16552_v21  ;;  %v11556_v17 = vsub.f32 %v840_v37, %v11526_v8  ;;  %v16567_v37 = vld [vmem:[#allocation57_spill] sm:$0xff]  ;;  %v2306_v21 = vsub.f32 %v11591_v58, %v11619_v44  ;;  %v679_v44 = vld [vmem:[%s10942_s11 + $0x68] sm:$0x1] }
  0xa3   : > { %9493 = vmatpush3.msra.mxu0 %v11467_v39  ;;  %1724 = vmatmul.mubr.f32.gmra.mxu1 %v16553_v27  ;;  %v16568_v27 = vld [vmem:[#allocation48_spill] sm:$0xff] }
  0xa4   : > { %1899 = vmatmul.mubr.f32.gmra.mxu0 %v16554_v15  ;;  %8358 = vmatprep.subr.mxu1 %v16483_v23  ;;  %v2265_v23 = vand.u32 4294901760, %v2264_v10  ;;  %v11583_v53 = vand.u32 4294901760, %v11556_v17  ;;  %v11643_v10 = vsub.f32 %v835_v19, %v11611_v49  ;;  %v11665_v19 = vsub.f32 %v834_v56, %v11636_v48 }
  0xa5   : > { %9494 = vmatprep.subr.mxu0 %v11490_v18  ;;  %8359 = vmatpush3.msra.mxu1 %v16486_v25  ;;  %v837_v25 = vld [vmem:[%s15759_s6 + $0x140] sm:$0xff] }
  0xa6   : > { %9495 = vmatpush3.msra.mxu0 %v11490_v18  ;;  %8360 = vmatprep.subr.mxu1 %v16488_v30  ;;  %v2272_v30 = vand.u32 4294901760, %v2271_v16  ;;  %16559 = vst [vmem:[#allocation11_spill] sm:$0xff] %v11583_v53  ;;  %v2292_v7 = vsub.f32 %v11556_v17, %v11583_v53  ;;  %v16569_v16 = vld [vmem:[#allocation58_spill] sm:$0xff]  ;;  %v16582_v53 = vld [vmem:[#allocation63_spill] sm:$0xff] }
  0xa7   : > { %9496 = vmatprep.subr.mxu0 %v11500_v0  ;;  %1904 = vmatprep.mubr.f32.mxu0 %v16557_v28  ;;  %v775_v34 = vrot.slane %v16582_v53, 1 }
  0xa8   : > { %8361 = vmatpush3.msra.mxu1 %v16490_v57  ;;  %2043 = vmatprep.mubr.f32.mxu1 %v16543_v33  ;;  %v11575_v57 = vand.u32 4294901760, %v837_v25  ;;  %v758_v33 = vrot.slane %v667_v50, 1  ;;  %v2293_v45 = vand.u32 4294901760, %v2292_v7  ;;  %v831_v7 = vld [vmem:[%s15759_s6 + $0x110] sm:$0xff]  ;;  %v11672_v50 = vand.u32 4294901760, %v11643_v10 }
  0xa9   : > { %9497 = vmatpush3.msra.mxu0 %v11500_v0  ;;  %2045 = vmatmul.mubr.f32.vlgmr.msra.gmra.mxu1 %v16546_v36 }
  0xaa   : > { %1906 = vmatmul.mubr.f32.gmra.mxu0 %v16558_v46  ;;  %9498 = vmatprep.subr.mxu0 %v11526_v8  ;;  %v11604_v14 = vsub.f32 %v837_v25, %v11575_v57  ;;  %16573 = vst [vmem:[#allocation19_spill] sm:$0xff] %v11672_v50 }
  0xab   : > { %9534 = vmatprep.subr.mxu1 %v2265_v23  ;;  %9499 = vmatpush3.msra.mxu0 %v11526_v8 }
  0xac   : > { %9535 = vmatpush3.msra.mxu1 %v2265_v23  ;;  %9500 = vmatprep.subr.mxu0 %v11538_v55  ;;  %v11632_v36 = vand.u32 4294901760, %v11604_v14  ;;  %v759_v23 = vsel %vm756_vm0, %v757_v62, %v758_v33  ;;  %v2320_v33 = vsub.f32 %v11625_v40, %v11659_v60 }
  0xad   : > { %9536 = vmatprep.subr.mxu1 %v2272_v30  ;;  %1911 = vmatprep.mubr.f32.mxu0 %v16561_v47  ;;  %v11674_v51 = vand.u32 4294901760, %v759_v23 }
  0xae   : > { %2050 = vmatprep.mubr.f32.mxu1 %v16551_v43  ;;  %9501 = vmatpush3.msra.mxu0 %v11538_v55  ;;  %16566 = vst [vmem:[#allocation15_spill] sm:$0xff] %v11632_v36  ;;  %v671_v43 = vld [vmem:[%s10942_s11 + $0x28] sm:$0x1]  ;;  %v2313_v25 = vsub.f32 %v11604_v14, %v11632_v36  ;;  %v2321_v36 = vand.u32 4294901760, %v2320_v33 }
  0xaf   : > { %9537 = vmatpush3.msra.mxu1 %v2272_v30  ;;  %1913 = vmatmul.mubr.f32.gmra.mxu0 %v16562_v5  ;;  %v832_v30 = vld [vmem:[%s15759_s6 + $0x118] sm:$0xff]  ;;  %v764_v52 = vrot.slane %v671_v43, 1 }
  0xb0   : > { %2052 = vmatmul.mubr.f32.gmra.mxu1 %v16554_v15  ;;  %9502 = vmatprep.subr.mxu0 %v11565_v22  ;;  %v763_v15 = vrot.slane %v16568_v27, 1  ;;  %v11678_v56 = vand.u32 4294901760, %v832_v30  ;;  %v16576_v43 = vld [vmem:[#allocation53_spill] sm:$0xff]  ;;  %v11693_v27 = vand.u32 4294901760, %v831_v7 }
  0xb1   : > { %9538 = vmatprep.subr.mxu1 %v2279_v2  ;;  %9503 = vmatpush3.msra.mxu0 %v11565_v22 }
  0xb2   : > { %9539 = vmatpush3.msra.mxu1 %v2279_v2  ;;  %9504 = vmatprep.subr.mxu0 %v11575_v57  ;;  %v766_v2 = vrot.slane %v16572_v13, 1  ;;  %16575 = vst [vmem:[#allocation20_spill] sm:$0xff] %v11678_v56  ;;  %v16579_v13 = vld [vmem:[#allocation56_spill] sm:$0xff] }
  0xb3   : > { %9540 = vmatprep.subr.mxu1 %v2286_v20  ;;  %1918 = vmatprep.mubr.f32.mxu0 %v16567_v37 }
  0xb4   : > { %2057 = vmatprep.mubr.f32.mxu1 %v16557_v28  ;;  %9505 = vmatpush3.msra.mxu0 %v11575_v57  ;;  %v673_v28 = vld [vmem:[%s10942_s11 + $0x38] sm:$0x1] }
  0xb5   : > { %9541 = vmatpush3.msra.mxu1 %v2286_v20  ;;  %1920 = vmatmul.mubr.f32.gmra.mxu0 %v16569_v16  ;;  %v2307_v20 = vand.u32 4294901760, %v2306_v21  ;;  %v767_v32 = vrot.slane %v673_v28, 1  ;;  %v769_v21 = vrot.slane %v16576_v43, 1  ;;  %v11696_v28 = vand.u32 4294901760, %v11665_v19 }
  0xb6   : > { %2059 = vmatmul.mubr.f32.gmra.mxu1 %v16558_v46  ;;  %9506 = vmatprep.subr.mxu0 %v11595_v54  ;;  %v762_v46 = vsel %vm756_vm0, %v760_v29, %v761_v41  ;;  %v2314_v29 = vand.u32 4294901760, %v2313_v25  ;;  %v765_v41 = vsel %vm756_vm0, %v763_v15, %v764_v52  ;;  %v830_v15 = vld [vmem:[%s15759_s6 + $0x108] sm:$0xff]  ;;  %v11706_v25 = vsub.f32 %v759_v23, %v11674_v51  ;;  %v829_v23 = vld [vmem:[%s15759_s6 + $0x100] sm:$0xff] }
  0xb7   : > { %9542 = vmatprep.subr.mxu1 %v2293_v45  ;;  %9507 = vmatpush3.msra.mxu0 %v11595_v54  ;;  %v11680_v62 = vand.u32 4294901760, %v762_v46  ;;  %16578 = vst [vmem:[#allocation21_spill] sm:$0xff] %v11696_v28  ;;  %v770_v52 = vrot.slane %v675_v24, 1  ;;  %v772_v43 = vrot.slane %v16579_v13, 1  ;;  %v16581_v24 = vld [vmem:[#allocation65_spill] sm:$0xff]  ;;  %v2334_v33 = vsub.f32 %v11665_v19, %v11696_v28 }
  0xb8   : > { %9543 = vmatpush3.msra.mxu1 %v2293_v45  ;;  %9508 = vmatprep.subr.mxu0 %v11611_v49  ;;  %v11687_v45 = vsub.f32 %v833_v59, %v11648_v12  ;;  %v2327_v59 = vsub.f32 %v11643_v10, %v11672_v50  ;;  %v11714_v50 = vand.u32 4294901760, %v765_v41  ;;  %v11744_v28 = vand.u32 4294901760, %v829_v23 }
  0xb9   : > { %9544 = vmatprep.subr.mxu1 %v2300_v9  ;;  %1925 = vmatprep.mubr.f32.mxu0 %v16574_v63  ;;  %v11712_v60 = vsub.f32 %v762_v46, %v11680_v62  ;;  %v11728_v46 = vand.u32 4294901760, %v830_v15 }
  0xba   : > { %2064 = vmatprep.mubr.f32.mxu1 %v16561_v47  ;;  %9509 = vmatpush3.msra.mxu0 %v11611_v49  ;;  %v16577_v47 = vld [vmem:[#allocation61_spill] sm:$0xff]  ;;  %v2328_v1 = vand.u32 4294901760, %v2327_v59  ;;  %16584 = vst [vmem:[#allocation7_spill] sm:$0xff] %v11744_v28 }
  0xbb   : > { %9545 = vmatpush3.msra.mxu1 %v2300_v9  ;;  %1927 = vmatmul.mubr.f32.gmra.mxu0 %v16577_v47  ;;  %v677_v9 = vld [vmem:[%s10942_s11 + $0x58] sm:$0x1] }
  0xbc   : > { %2066 = vmatmul.mubr.f32.gmra.mxu1 %v16562_v5  ;;  %9510 = vmatprep.subr.mxu0 %v11636_v48  ;;  %v768_v5 = vsel %vm756_vm0, %v766_v2, %v767_v32  ;;  %v11721_v2 = vand.u32 4294901760, %v11687_v45  ;;  %v11724_v32 = vsub.f32 %v832_v30, %v11678_v56  ;;  %v681_v59 = vld [vmem:[%s10942_s11 + $0x78] sm:$0x1] }
  0xbd   : > { %9546 = vmatprep.subr.mxu1 %v2307_v20  ;;  %9511 = vmatpush3.msra.mxu0 %v11636_v48  ;;  %v11732_v13 = vand.u32 4294901760, %v768_v5 }
  0xbe   : > { %9547 = vmatpush3.msra.mxu1 %v2307_v20  ;;  %9512 = vmatprep.subr.mxu0 %v11648_v12  ;;  %16580 = vst [vmem:[#allocation38_spill] sm:$0xff] %v11721_v2  ;;  %v773_v20 = vrot.slane %v677_v9, 1  ;;  %v11738_v9 = vsub.f32 %v831_v7, %v11693_v27  ;;  %v2341_v7 = vsub.f32 %v11687_v45, %v11721_v2  ;;  %v11755_v53 = vand.u32 4294901760, %v11724_v32 }
  0xbf   : > { %9548 = vmatprep.subr.mxu1 %v2314_v29  ;;  %1932 = vmatprep.mubr.f32.mxu0 %v16581_v24  ;;  %v11761_v4 = vsub.f32 %v768_v5, %v11732_v13  ;;  %v16587_v2 = vand.u32 4294901760, %v11706_v25  ;;  %v16590_v5 = vand.u32 4294901760, %v11712_v60 }
  0xc0   : > { %2071 = vmatprep.mubr.f32.mxu1 %v16567_v37  ;;  %9513 = vmatpush3.msra.mxu0 %v11648_v12  ;;  %v771_v37 = vsel %vm756_vm0, %v769_v21, %v770_v52  ;;  %16585 = vst [vmem:[#allocation26_spill] sm:$0xff] %v11755_v53  ;;  %v774_v21 = vsel %vm756_vm0, %v772_v43, %v773_v20  ;;  %v16586_v52 = vld [vmem:[#allocation68_spill] sm:$0xff]  ;;  %v16589_v20 = vld [vmem:[#allocation70_spill] sm:$0xff] }
  0xc1   : > { %9549 = vmatpush3.msra.mxu1 %v2314_v29  ;;  %1934 = vmatmul.mubr.f32.gmra.mxu0 %v16583_v6  ;;  %v11748_v29 = vsub.f32 %v765_v41, %v11714_v50  ;;  %v778_v30 = vrot.slane %v16586_v52, 1  ;;  %v2335_v41 = vand.u32 4294901760, %v2334_v33  ;;  %v11763_v3 = vand.u32 4294901760, %v771_v37 }
  0xc2   : > { %2073 = vmatmul.mubr.f32.gmra.mxu1 %v16569_v16  ;;  %9514 = vmatprep.subr.mxu0 %v11678_v56  ;;  %v776_v16 = vrot.slane %v679_v44, 1  ;;  %v2183_v12 = vsub.f32 %v11706_v25, %v16587_v2  ;;  %v11770_v44 = vand.u32 4294901760, %v11738_v9  ;;  %v11773_v43 = vsub.f32 %v830_v15, %v11728_v46 }
  0xc3   : > { %9550 = vmatprep.subr.mxu1 %v2321_v36  ;;  %9515 = vmatpush3.msra.mxu0 %v11678_v56  ;;  %v2193_v33 = vsub.f32 %v11712_v60, %v16590_v5  ;;  %v11781_v56 = vand.u32 4294901760, %v774_v21  ;;  %v2342_v2 = vand.u32 4294901760, %v2341_v7  ;;  %v2348_v15 = vsub.f32 %v11724_v32, %v11755_v53 }
  0xc4   : > { %9551 = vmatpush3.msra.mxu1 %v2321_v36  ;;  %9516 = vmatprep.subr.mxu0 %v11693_v27  ;;  %16588 = vst [vmem:[#allocation27_spill] sm:$0xff] %v11770_v44  ;;  %v779_v36 = vrot.slane %v681_v59, 1  ;;  %v11787_v59 = vsub.f32 %v829_v23, %v11744_v28  ;;  %v11794_v52 = vsub.f32 %v771_v37, %v11763_v3  ;;  %v11800_v23 = vand.u32 4294901760, %v11773_v43 }
  0xc5   : > { %9552 = vmatprep.subr.mxu1 %v2328_v1  ;;  %1939 = vmatprep.mubr.f32.mxu0 %v16589_v20  ;;  %v2355_v7 = vsub.f32 %v11738_v9, %v11770_v44  ;;  %v11808_v5 = vsub.f32 %v774_v21, %v11781_v56  ;;  %v2349_v44 = vand.u32 4294901760, %v2348_v15 }
  0xc6   : > { %2078 = vmatprep.mubr.f32.mxu1 %v16574_v63  ;;  %9517 = vmatpush3.msra.mxu0 %v11693_v27  ;;  %v777_v63 = vsel %vm756_vm0, %v775_v34, %v776_v16  ;;  %v780_v34 = vsel %vm756_vm0, %v778_v30, %v779_v36  ;;  %v16591_v16 = vand.u32 4294901760, %v11748_v29  ;;  %v11814_v53 = vand.u32 4294901760, %v11787_v59 }
  0xc7   : > { %9553 = vmatpush3.msra.mxu1 %v2328_v1  ;;  %1941 = vmatmul.mubr.f32.gmra.mxu0 %v11263_v35  ;;  %v2184_v1 = vand.u32 4294901760, %v2183_v12  ;;  %v11810_v12 = vand.u32 4294901760, %v777_v63  ;;  %v16592_v30 = vand.u32 4294901760, %v11761_v4  ;;  %v2222_v21 = vand.u32 4294901760, %v11794_v52 }
  0xc8   : > { %2080 = vmatmul.mubr.f32.gmra.mxu1 %v16577_v47  ;;  %9518 = vmatprep.subr.mxu0 %v11728_v46  ;;  %v2194_v47 = vand.u32 4294901760, %v2193_v33  ;;  %v2203_v37 = vsub.f32 %v11748_v29, %v16591_v16  ;;  %v11822_v36 = vand.u32 4294901760, %v780_v34  ;;  %v2356_v33 = vand.u32 4294901760, %v2355_v7 }
  0xc9   : > { %9554 = vmatprep.subr.mxu1 %v2335_v41  ;;  %9519 = vmatpush3.msra.mxu0 %v11728_v46  ;;  %v2362_v15 = vsub.f32 %v11773_v43, %v11800_v23  ;;  %v2232_v16 = vand.u32 4294901760, %v11808_v5 }
  0xca   : > { %9555 = vmatpush3.msra.mxu1 %v2335_v41  ;;  %9520 = vmatprep.subr.mxu0 %v11744_v28  ;;  %v2213_v41 = vsub.f32 %v11761_v4, %v16592_v30  ;;  %v11839_v7 = vsub.f32 %v780_v34, %v11822_v36 }
  0xcb   : > { %9556 = vmatprep.subr.mxu1 %v2342_v2  ;;  %2085 = vmatprep.mubr.f32.mxu1 %v16581_v24  ;;  %v2204_v24 = vand.u32 4294901760, %v2203_v37 }
  0xcc   : > { %9521 = vmatpush3.msra.mxu0 %v11744_v28  ;;  %9522 = vmatprep.mubr.f32.mxu0 %v2184_v1  ;;  %v11829_v28 = vsub.f32 %v777_v63, %v11810_v12  ;;  %v2369_v1 = vsub.f32 %v11787_v59, %v11814_v53  ;;  %v2363_v63 = vand.u32 4294901760, %v2362_v15  ;;  %v2252_v37 = vand.u32 4294901760, %v11839_v7 }
  0xcd   : > { %9557 = vmatpush3.msra.mxu1 %v2342_v2  ;;  %9523 = vmatmul.mubr.f32.vlgmr.msra.gmra.mxu0 %v2194_v47  ;;  %v2214_v2 = vand.u32 4294901760, %v2213_v41 }
  0xce   : > { %2087 = vmatmul.mubr.f32.gmra.mxu1 %v16583_v6  ;;  %9558 = vmatprep.subr.mxu1 %v2349_v44  ;;  %v2223_v6 = vsub.f32 %v11794_v52, %v2222_v21  ;;  %v2370_v47 = vand.u32 4294901760, %v2369_v1 }
  0xcf   : > { %9578 = vmatprep.subr.mxu0 %v11479_v38  ;;  %9559 = vmatpush3.msra.mxu1 %v2349_v44  ;;  %v2233_v44 = vsub.f32 %v11808_v5, %v2232_v16 }
  0xd0   : > { %9579 = vmatpush3.msra.mxu0 %v11479_v38  ;;  %9560 = vmatprep.subr.mxu1 %v2356_v33  ;;  %v2242_v38 = vand.u32 4294901760, %v11829_v28  ;;  %v2224_v34 = vand.u32 4294901760, %v2223_v6 }
  0xd1   : > { %9580 = vmatprep.subr.mxu0 %v11493_v61  ;;  %2092 = vmatprep.mubr.f32.mxu1 %v16589_v20  ;;  %v2234_v20 = vand.u32 4294901760, %v2233_v44 }
  0xd2   : > { %9525 = vmatprep.mubr.f32.mxu0 %v2204_v24  ;;  %9561 = vmatpush3.msra.mxu1 %v2356_v33  ;;  %v2243_v30 = vsub.f32 %v11829_v28, %v2242_v38  ;;  %v7959_v33 = vld [vmem:[%s15759_s6 + $0x1f8] sm:$0xff] }
  0xd3   : > { %9581 = vmatpush3.msra.mxu0 %v11493_v61  ;;  %2094 = vmatmul.mubr.f32.gmra.mxu1 %v11263_v35  ;;  %v2253_v35 = vsub.f32 %v11839_v7, %v2252_v37  ;;  %v11976_v6 = vand.u32 4294901760, %v7959_v33 }
  0xd4   : > { %9526 = vmatmul.mubr.f32.gmra.mxu0 %v2214_v2  ;;  %9562 = vmatprep.subr.mxu1 %v2363_v63  ;;  %v2244_v61 = vand.u32 4294901760, %v2243_v30  ;;  %v16608_v2 = vld [vmem:[#allocation15_spill] sm:$0xff] }
  0xd5   : > { %9582 = vmatprep.subr.mxu0 %v11516_v42  ;;  %9563 = vmatpush3.msra.mxu1 %v2363_v63  ;;  %16609 = vst [vmem:[#allocation10_spill] sm:$0xff] %v11976_v6 }
  0xd6   : > { %9583 = vmatpush3.msra.mxu0 %v11516_v42  ;;  %9564 = vmatprep.subr.mxu1 %v2370_v47  ;;  %v2254_v42 = vand.u32 4294901760, %v2253_v35 }
  0xd7   : > { %9584 = vmatprep.subr.mxu0 %v11531_v11  ;;  %9528 = vmatprep.mubr.f32.mxu0 %v2224_v34 }
  0xd8   : > { %9565 = vmatpush3.msra.mxu1 %v2370_v47  ;;  %9566 = vmatprep.mubr.f32.mxu1 %v11674_v51  ;;  %v16611_v47 = vld [vmem:[#allocation17_spill] sm:$0xff] }
  0xd9   : > { %9585 = vmatpush3.msra.mxu0 %v11531_v11  ;;  %9567 = vmatmul.mubr.f32.vlgmr.msra.gmra.mxu1 %v11680_v62  ;;  %v16593_v11 = vld [vmem:[#allocation16_spill] sm:$0xff] }
  0xda   : > { %9529 = vmatmul.mubr.f32.gmra.mxu0 %v2234_v20  ;;  %9586 = vmatprep.subr.mxu0 %v11556_v17  ;;  %v7973_v20 = vld [vmem:[%s15759_s6 + $0x268] sm:$0xff] }
  0xdb   : > { %9622 = vmatprep.subr.mxu1 %v11459_v26  ;;  %9587 = vmatpush3.msra.mxu0 %v11556_v17  ;;  %v16594_v17 = vld [vmem:[#allocation20_spill] sm:$0xff] }
  0xdc   : > { %9623 = vmatpush3.msra.mxu1 %v11459_v26  ;;  %9588 = vmatprep.subr.mxu0 %v11570_v31 }
  0xdd   : > { %9624 = vmatprep.subr.mxu1 %v11467_v39  ;;  %9531 = vmatprep.mubr.f32.mxu0 %v2244_v61  ;;  %v12006_v61 = vsub.f32 %v7959_v33, %v11976_v6  ;;  %v16623_v33 = vld [vmem:[#allocation38_spill] sm:$0xff] }
  0xde   : > { %9569 = vmatprep.mubr.f32.mxu1 %v11714_v50  ;;  %9589 = vmatpush3.msra.mxu0 %v11570_v31  ;;  %v16595_v31 = vld [vmem:[#allocation8_spill] sm:$0xff] }
  0xdf   : > { %9625 = vmatpush3.msra.mxu1 %v11467_v39  ;;  %9532 = vmatmul.mubr.f32.gmra.mxu0 %v2254_v42  ;;  %16614 = vst [vmem:[#allocation32_spill] sm:$0xff] %v12006_v61  ;;  %v16615_v42 = vld [vmem:[#allocation19_spill] sm:$0xff] }
  0xe0   : > { %9570 = vmatmul.mubr.f32.gmra.mxu1 %v11732_v13  ;;  %9590 = vmatprep.subr.mxu0 %v11591_v58 }
  0xe1   : > { %9626 = vmatprep.subr.mxu1 %v11490_v18  ;;  %9591 = vmatpush3.msra.mxu0 %v11591_v58  ;;  %v16596_v58 = vld [vmem:[#allocation29_spill] sm:$0xff] }
  0xe2   : > { %9627 = vmatpush3.msra.mxu1 %v11490_v18  ;;  %9592 = vmatprep.subr.mxu0 %v11604_v14 }
  0xe3   : > { %9628 = vmatprep.subr.mxu1 %v11500_v0  ;;  %9572 = vmatprep.mubr.f32.mxu1 %v11763_v3 }
  0xe4   : > { %9593 = vmatpush3.msra.mxu0 %v11604_v14  ;;  %9629 = vmatpush3.msra.mxu1 %v11500_v0  ;;  %v16597_v14 = vld [vmem:[#allocation9_spill] sm:$0xff] }
  0xe5   : > { %9594 = vmatprep.subr.mxu0 %v11625_v40  ;;  %9573 = vmatmul.mubr.f32.gmra.mxu1 %v11781_v56 }
  0xe6   : > { %9630 = vmatprep.subr.mxu1 %v11526_v8  ;;  %9595 = vmatpush3.msra.mxu0 %v11625_v40  ;;  %v16598_v40 = vld [vmem:[#allocation7_spill] sm:$0xff] }
  0xe7   : > { %9631 = vmatpush3.msra.mxu1 %v11526_v8  ;;  %9596 = vmatprep.subr.mxu0 %v11643_v10 }
  0xe8   : > { %9632 = vmatprep.subr.mxu1 %v11538_v55  ;;  %9575 = vmatprep.mubr.f32.mxu1 %v11810_v12 }
  0xe9   : > { %9597 = vmatpush3.msra.mxu0 %v11643_v10  ;;  %9633 = vmatpush3.msra.mxu1 %v11538_v55  ;;  %v16599_v10 = vld [vmem:[#allocation31_spill] sm:$0xff] }
  0xea   : > { %9598 = vmatprep.subr.mxu0 %v11665_v19  ;;  %9576 = vmatmul.mubr.f32.gmra.mxu1 %v11822_v36 }
  0xeb   : > { %9634 = vmatprep.subr.mxu1 %v11565_v22  ;;  %9599 = vmatpush3.msra.mxu0 %v11665_v19 }
  0xec   : > { %9635 = vmatpush3.msra.mxu1 %v11565_v22  ;;  %9600 = vmatprep.subr.mxu0 %v11687_v45 }
  0xed   : > { %9636 = vmatprep.subr.mxu1 %v11575_v57  ;;  %9601 = vmatpush3.msra.mxu0 %v11687_v45  ;;  %v16600_v45 = vand.u32 4294901760, %v11706_v25 }
  0xee   : > { %9637 = vmatpush3.msra.mxu1 %v11575_v57  ;;  %9602 = vmatprep.subr.mxu0 %v11724_v32 }
  0xef   : > { %9638 = vmatprep.subr.mxu1 %v11595_v54  ;;  %9603 = vmatpush3.msra.mxu0 %v11724_v32  ;;  %v16601_v32 = vand.u32 4294901760, %v11712_v60 }
  0xf0   : > { %9639 = vmatpush3.msra.mxu1 %v11595_v54  ;;  %9604 = vmatprep.subr.mxu0 %v11738_v9 }
  0xf1   : > { %9640 = vmatprep.subr.mxu1 %v11611_v49  ;;  %9605 = vmatpush3.msra.mxu0 %v11738_v9  ;;  %v16602_v9 = vld [vmem:[#allocation11_spill] sm:$0xff] }
  0xf2   : > { %9641 = vmatpush3.msra.mxu1 %v11611_v49  ;;  %9606 = vmatprep.subr.mxu0 %v11773_v43 }
  0xf3   : > { %9642 = vmatprep.subr.mxu1 %v11636_v48  ;;  %9607 = vmatpush3.msra.mxu0 %v11773_v43 }
  0xf4   : > { %9643 = vmatpush3.msra.mxu1 %v11636_v48  ;;  %9608 = vmatprep.subr.mxu0 %v11787_v59 }
  0xf5   : > { %9644 = vmatprep.subr.mxu1 %v16593_v11  ;;  %9609 = vmatpush3.msra.mxu0 %v11787_v59  ;;  %v16603_v59 = vld [vmem:[#allocation13_spill] sm:$0xff] }
  0xf6   : > { %9610 = vmatprep.mubr.f32.mxu0 %v11706_v25  ;;  %9645 = vmatpush3.msra.mxu1 %v16593_v11  ;;  %v16604_v25 = vand.u32 4294901760, %v11748_v29 }
  0xf7   : > { %9611 = vmatmul.mubr.f32.vlgmr.msra.gmra.mxu0 %v11712_v60  ;;  %9646 = vmatprep.subr.mxu1 %v16594_v17  ;;  %v7975_v60 = vld [vmem:[%s15759_s6 + $0x278] sm:$0xff] }
  0xf8   : > { %9666 = vmatprep.subr.mxu0 %v16595_v31  ;;  %9647 = vmatpush3.msra.mxu1 %v16594_v17  ;;  %v11969_v24 = vand.u32 4294901760, %v7975_v60 }
  0xf9   : > { %9667 = vmatpush3.msra.mxu0 %v16595_v31  ;;  %9648 = vmatprep.subr.mxu1 %v11693_v27  ;;  %v12015_v31 = vand.u32 4294901760, %v7973_v20 }
  0xfa   : > { %9668 = vmatprep.subr.mxu0 %v16596_v58  ;;  %9613 = vmatprep.mubr.f32.mxu0 %v11748_v29  ;;  %v16606_v29 = vld [vmem:[#allocation14_spill] sm:$0xff]  ;;  %16607 = vst [vmem:[#allocation40_spill] sm:$0xff] %v11969_v24 }
  0xfb   : > { %9649 = vmatpush3.msra.mxu1 %v11693_v27  ;;  %9669 = vmatpush3.msra.mxu0 %v16596_v58  ;;  %16616 = vst [vmem:[#allocation33_spill] sm:$0xff] %v12015_v31 }
  0xfc   : > { %9650 = vmatprep.subr.mxu1 %v11728_v46  ;;  %9614 = vmatmul.mubr.f32.gmra.mxu0 %v11761_v4 }
  0xfd   : > { %9670 = vmatprep.subr.mxu0 %v16597_v14  ;;  %9651 = vmatpush3.msra.mxu1 %v11728_v46 }
  0xfe   : > { %9671 = vmatpush3.msra.mxu0 %v16597_v14  ;;  %9652 = vmatprep.subr.mxu1 %v16598_v40 }
  0xff   : > { %9672 = vmatprep.subr.mxu0 %v16599_v10  ;;  %v8082_v19 = vpop.f32.mrf.mxu0  ;;  %9616 = vmatprep.mubr.f32.mxu0 %v11794_v52 }
 0x100   : > { %9653 = vmatpush3.msra.mxu1 %v16598_v40  ;;  %9654 = vmatprep.mubr.f32.mxu1 %v16600_v45  ;;  %v16620_v45 = vld [vmem:[#allocation21_spill] sm:$0xff] }
 0x101   : > { %9673 = vmatpush3.msra.mxu0 %v16599_v10  ;;  %9655 = vmatmul.mubr.f32.vlgmr.msra.gmra.mxu1 %v16601_v32  ;;  %v8083_v43 = vpop.f32.mrf.mxu0 }
 0x102   : > { %9617 = vmatmul.mubr.f32.gmra.mxu0 %v11808_v5  ;;  %9674 = vmatprep.subr.mxu0 %v16602_v9  ;;  %v8084_v30 = vadd.f32 %v8083_v43, %v8082_v19  ;;  %v7972_v5 = vld [vmem:[%s15759_s6 + $0x260] sm:$0xff] }
 0x103   : > { %9710 = vmatprep.subr.mxu1 %v11459_v26  ;;  %9675 = vmatpush3.msra.mxu0 %v16602_v9  ;;  %v12032_v32 = vand.u32 4294901760, %v7972_v5 }
 0x104   : > { %9711 = vmatpush3.msra.mxu1 %v11459_v26  ;;  %9676 = vmatprep.subr.mxu0 %v16603_v59  ;;  %v16605_v26 = vand.u32 4294901760, %v11761_v4  ;;  %v7958_v4 = vld [vmem:[%s15759_s6 + $0x1f0] sm:$0xff] }
 0x105   : > { %9712 = vmatprep.subr.mxu1 %v11467_v39  ;;  %9619 = vmatprep.mubr.f32.mxu0 %v11829_v28  ;;  %v11987_v34 = vand.u32 4294901760, %v7958_v4  ;;  %16621 = vst [vmem:[#allocation6_spill] sm:$0xff] %v12032_v32  ;;  %v7956_v28 = vld [vmem:[%s15759_s6 + $0x1e0] sm:$0xff] }
 0x106   : > { %9657 = vmatprep.mubr.f32.mxu1 %v16604_v25  ;;  %9677 = vmatpush3.msra.mxu0 %v16603_v59  ;;  %v8085_v41 = vpop.f32.mrf.mxu0 }
 0x107   : > { %9713 = vmatpush3.msra.mxu1 %v11467_v39  ;;  %9620 = vmatmul.mubr.f32.gmra.mxu0 %v11839_v7  ;;  %v7974_v39 = vld [vmem:[%s15759_s6 + $0x270] sm:$0xff]  ;;  %16612 = vst [vmem:[#allocation30_spill] sm:$0xff] %v11987_v34  ;;  %v12026_v10 = vsub.f32 %v7958_v4, %v11987_v34  ;;  %v7955_v7 = vld [vmem:[%s15759_s6 + $0x1d8] sm:$0xff] }
 0x108   : > { %9658 = vmatmul.mubr.f32.gmra.mxu1 %v16605_v26  ;;  %9678 = vmatprep.subr.mxu0 %v16606_v29  ;;  %v8086_v15 = vpop.f32.mrf.mxu0  ;;  %v11981_v63 = vand.u32 4294901760, %v7974_v39  ;;  %v12054_v26 = vsub.f32 %v7973_v20, %v12015_v31  ;;  %v16628_v20 = vld [vmem:[#allocation26_spill] sm:$0xff] }
 0x109   : > { %9714 = vmatprep.subr.mxu1 %v11490_v18  ;;  %9679 = vmatpush3.msra.mxu0 %v16606_v29  ;;  %16618 = vst [vmem:[#allocation51_spill] sm:$0xff] %v12026_v10  ;;  %v8087_v25 = vadd.f32 %v8086_v15, %v8085_v41  ;;  %v15946_v29 = vand.u32 4294901760, %v12026_v10  ;;  %v12069_v15 = vand.u32 4294901760, %v7956_v28 }
 0x10a   : > { %9715 = vmatpush3.msra.mxu1 %v11490_v18  ;;  %v8138_v1 = vpop.f32.mrf.mxu1  ;;  %9680 = vmatprep.subr.mxu0 %v16608_v2  ;;  %16610 = vst [vmem:[#allocation44_spill] sm:$0xff] %v11981_v63  ;;  %v12018_v58 = vsub.f32 %v7974_v39, %v11981_v63  ;;  %16622 = vst [vmem:[#allocation54_spill] sm:$0xff] %v12054_v26 }
 0x10b   : > { %9716 = vmatprep.subr.mxu1 %v11500_v0  ;;  %9660 = vmatprep.mubr.f32.mxu1 %v2222_v21  ;;  %v7957_v21 = vld [vmem:[%s15759_s6 + $0x1e8] sm:$0xff]  ;;  %16625 = vst [vmem:[#allocation62_spill] sm:$0xff] %v12069_v15 }
 0x10c   : > { %9681 = vmatpush3.msra.mxu0 %v16608_v2  ;;  %v11983_v18 = vpop.f32.mrf.mxu0  ;;  %v8139_v44 = vpop.f32.mrf.mxu1  ;;  %9717 = vmatpush3.msra.mxu1 %v11500_v0  ;;  %v11999_v0 = vsub.f32 %v7975_v60, %v11969_v24  ;;  %16617 = vst [vmem:[#allocation35_spill] sm:$0xff] %v12018_v58  ;;  %v12028_v19 = vand.u32 4294901760, %v7957_v21  ;;  %v12079_v2 = vsub.f32 %v7972_v5, %v12032_v32 }
 0x10d   : > { %9682 = vmatprep.subr.mxu0 %v16611_v47  ;;  %v8140_v52 = vadd.f32 %v8139_v44, %v8138_v1  ;;  %9661 = vmatmul.mubr.f32.gmra.mxu1 %v2232_v16 }
 0x10e   : > { %9718 = vmatprep.subr.mxu1 %v11526_v8  ;;  %16613 = vst [vmem:[#allocation12_spill] sm:$0xff] %v11999_v0  ;;  %v12001_v35 = vpop.f32.mrf.mxu0  ;;  %9683 = vmatpush3.msra.mxu0 %v16611_v47  ;;  %16619 = vst [vmem:[#allocation18_spill] sm:$0xff] %v12028_v19  ;;  %v15948_v9 = vand.u32 4294901760, %v11999_v0  ;;  %v12059_v41 = vsub.f32 %v7957_v21, %v12028_v19 }
 0x10f   : > { %9719 = vmatpush3.msra.mxu1 %v11526_v8  ;;  %v12011_v16 = vadd.f32 %v8140_v52, %v8084_v30  ;;  %9684 = vmatprep.subr.mxu0 %v16615_v42  ;;  %16627 = vst [vmem:[#allocation67_spill] sm:$0xff] %v12079_v2  ;;  %v7970_v52 = vld [vmem:[%s15759_s6 + $0x250] sm:$0xff] }
 0x110   : > { %9720 = vmatprep.subr.mxu1 %v11538_v55  ;;  %v12020_v14 = vpop.f32.mrf.mxu0  ;;  %v8141_v8 = vpop.f32.mrf.mxu1  ;;  %9663 = vmatprep.mubr.f32.mxu1 %v2242_v38  ;;  %v15947_v38 = vand.u32 4294901760, %v12006_v61  ;;  %16624 = vst [vmem:[#allocation59_spill] sm:$0xff] %v12059_v41  ;;  %v12076_v1 = vsub.f32 %v11999_v0, %v15948_v9 }
 0x111   : > { %9685 = vmatpush3.msra.mxu0 %v16615_v42  ;;  %9721 = vmatpush3.msra.mxu1 %v11538_v55  ;;  %v7971_v55 = vld [vmem:[%s15759_s6 + $0x258] sm:$0xff]  ;;  %v15949_v42 = vand.u32 4294901760, %v12054_v26 }
 0x112   : > { %9686 = vmatprep.subr.mxu0 %v16620_v45  ;;  %v12035_v43 = vpop.f32.mrf.mxu0  ;;  %v8142_v59 = vpop.f32.mrf.mxu1  ;;  %9664 = vmatmul.mubr.f32.gmra.mxu1 %v2252_v37  ;;  %v15945_v37 = vand.u32 4294901760, %v12018_v58  ;;  %v12071_v4 = vand.u32 4294901760, %v7971_v55  ;;  %v12090_v30 = vsub.f32 %v12006_v61, %v15947_v38  ;;  %v7953_v38 = vld [vmem:[%s15759_s6 + $0x1c8] sm:$0xff] }
 0x113   : > { %9722 = vmatprep.subr.mxu1 %v11565_v22  ;;  %v8143_v60 = vadd.f32 %v8142_v59, %v8141_v8  ;;  %9687 = vmatpush3.msra.mxu0 %v16620_v45  ;;  %v16631_v59 = vld [vmem:[#allocation27_spill] sm:$0xff] }
 0x114   : > { %9723 = vmatpush3.msra.mxu1 %v11565_v22  ;;  %9688 = vmatprep.subr.mxu0 %v16623_v33  ;;  %v7954_v22 = vld [vmem:[%s15759_s6 + $0x1d0] sm:$0xff]  ;;  %16626 = vst [vmem:[#allocation64_spill] sm:$0xff] %v12071_v4  ;;  %v12100_v21 = vsub.f32 %v12018_v58, %v15945_v37  ;;  %v12123_v37 = vsub.f32 %v7956_v28, %v12069_v15 }
 0x115   : > { %9724 = vmatprep.subr.mxu1 %v11575_v57  ;;  %v12065_v39 = vadd.f32 %v8143_v60, %v8087_v25  ;;  %9689 = vmatpush3.msra.mxu0 %v16623_v33  ;;  %v12081_v44 = vpop.f32.mrf.mxu0  ;;  %v12102_v5 = vand.u32 4294901760, %v7954_v22  ;;  %v7969_v25 = vld [vmem:[%s15759_s6 + $0x248] sm:$0xff]  ;;  %v15958_v60 = vand.u32 4294901760, %v12059_v41  ;;  %v8090_v33 = vadd.f32 %v12001_v35, %v11983_v18  ;;  %v7952_v18 = vld [vmem:[%s15759_s6 + $0x1c0] sm:$0xff]  ;;  %v7966_v58 = vld [vmem:[%s15759_s6 + $0x230] sm:$0xff] }
 0x116   : > { %9725 = vmatpush3.msra.mxu1 %v11575_v57  ;;  %v8144_v47 = vpop.f32.mrf.mxu1  ;;  %9690 = vmatprep.subr.mxu0 %v16628_v20  ;;  %v12085_v57 = vand.u32 4294901760, %v7955_v7  ;;  %16632 = vst [vmem:[#allocation22_spill] sm:$0xff] %v12123_v37  ;;  %v12134_v35 = vsub.f32 %v7971_v55, %v12071_v4  ;;  %v12160_v28 = vsub.f32 %v12054_v26, %v15949_v42  ;;  %v12177_v55 = vand.u32 4294901760, %v7952_v18 }
 0x117   : > { %9726 = vmatprep.subr.mxu1 %v11595_v54  ;;  %9691 = vmatpush3.msra.mxu0 %v16628_v20  ;;  %16630 = vst [vmem:[#allocation43_spill] sm:$0xff] %v12102_v5  ;;  %v12105_v8 = vpop.f32.mrf.mxu0  ;;  %v12175_v42 = vsub.f32 %v12059_v41, %v15958_v60  ;;  %v16642_v26 = vand.u32 4294901760, %v12079_v2  ;;  %v7951_v41 = vld [vmem:[%s15759_s6 + $0x1b8] sm:$0xff] }
 0x118   : > { %16629 = vst [vmem:[#allocation69_spill] sm:$0xff] %v12085_v57  ;;  %9727 = vmatpush3.msra.mxu1 %v11595_v54  ;;  %v8145_v45 = vpop.f32.mrf.mxu1  ;;  %9692 = vmatprep.subr.mxu0 %v16631_v59  ;;  %v12112_v54 = vsub.f32 %v12026_v10, %v15946_v29  ;;  %16633 = vst [vmem:[#allocation45_spill] sm:$0xff] %v12134_v35  ;;  %v12153_v29 = vsub.f32 %v7954_v22, %v12102_v5  ;;  %v12170_v22 = vand.u32 4294901760, %v7953_v38 }
 0x119   : > { %9728 = vmatprep.subr.mxu1 %v11611_v49  ;;  %v8146_v20 = vadd.f32 %v8145_v45, %v8144_v47  ;;  %9693 = vmatpush3.msra.mxu0 %v16631_v59  ;;  %v12142_v47 = vand.u32 4294901760, %v7970_v52  ;;  %v7968_v45 = vld [vmem:[%s15759_s6 + $0x240] sm:$0xff]  ;;  %16640 = vst [vmem:[#allocation39_spill] sm:$0xff] %v12177_v55  ;;  %v12186_v10 = vsub.f32 %v12079_v2, %v16642_v26 }
 0x11a   : > { %9729 = vmatpush3.msra.mxu1 %v11611_v49  ;;  %9694 = vmatprep.subr.mxu0 %v11800_v23  ;;  %v12139_v49 = vsub.f32 %v7955_v7, %v12085_v57  ;;  %16637 = vst [vmem:[#allocation24_spill] sm:$0xff] %v12153_v29  ;;  %v12155_v7 = vand.u32 4294901760, %v7969_v25  ;;  %16639 = vst [vmem:[#allocation25_spill] sm:$0xff] %v12170_v22  ;;  %v12181_v9 = vand.u32 4294901760, %v7968_v45 }
 0x11b   : > { %9730 = vmatprep.subr.mxu1 %v11636_v48  ;;  %16635 = vst [vmem:[#allocation47_spill] sm:$0xff] %v12142_v47  ;;  %v12147_v59 = vadd.f32 %v8146_v20, %v8090_v33  ;;  %9695 = vmatpush3.msra.mxu0 %v11800_v23  ;;  %v7967_v33 = vld [vmem:[%s15759_s6 + $0x238] sm:$0xff]  ;;  %v12165_v20 = vpop.f32.mrf.mxu0  ;;  %v12209_v0 = vsub.f32 %v7970_v52, %v12142_v47  ;;  %v7950_v52 = vld [vmem:[%s15759_s6 + $0x1b0] sm:$0xff] }
 0x11c   : > { %16634 = vst [vmem:[#allocation23_spill] sm:$0xff] %v12139_v49  ;;  %9731 = vmatpush3.msra.mxu1 %v11636_v48  ;;  %16638 = vst [vmem:[#allocation37_spill] sm:$0xff] %v12155_v7  ;;  %v8147_v23 = vpop.f32.mrf.mxu1  ;;  %9696 = vmatprep.subr.mxu0 %v11814_v53  ;;  %v8093_v48 = vadd.f32 %v12035_v43, %v12020_v14  ;;  %v12213_v26 = vsub.f32 %v7969_v25, %v12155_v7  ;;  %v16650_v25 = vand.u32 4294901760, %v12134_v35 }
 0x11d   : > { %16636 = vst [vmem:[#allocation36_spill] sm:$0xff] %v12147_v59  ;;  %9732 = vmatprep.subr.mxu1 %v16593_v11  ;;  %9697 = vmatpush3.msra.mxu0 %v11814_v53  ;;  %16641 = vst [vmem:[#allocation28_spill] sm:$0xff] %v12181_v9  ;;  %v12190_v61 = vpop.f32.mrf.mxu0  ;;  %v12194_v53 = vand.u32 4294901760, %v7967_v33  ;;  %v12218_v14 = vsub.f32 %v7953_v38, %v12170_v22  ;;  %v12241_v43 = vand.u32 4294901760, %v7951_v41  ;;  %v16653_v59 = vand.u32 4294901760, %v12139_v49 }
 0x11e   : > { %9698 = vmatprep.mubr.f32.mxu0 %v11674_v51  ;;  %v8148_v60 = vpop.f32.mrf.mxu1  ;;  %9733 = vmatpush3.msra.mxu1 %v16593_v11  ;;  %16644 = vst [vmem:[#allocation46_spill] sm:$0xff] %v12209_v0  ;;  %16645 = vst [vmem:[#allocation49_spill] sm:$0xff] %v12213_v26  ;;  %v12244_v11 = vsub.f32 %v7968_v45, %v12181_v9  ;;  %v7949_v45 = vld [vmem:[%s15759_s6 + $0x1a8] sm:$0xff] }
 0x11f   : > { %9699 = vmatmul.mubr.f32.vlgmr.msra.gmra.mxu0 %v11680_v62  ;;  %16643 = vst [vmem:[#allocation42_spill] sm:$0xff] %v12194_v53  ;;  %v8149_v2 = vadd.f32 %v8148_v60, %v8147_v23  ;;  %9734 = vmatprep.subr.mxu1 %v16594_v17  ;;  %16646 = vst [vmem:[#allocation52_spill] sm:$0xff] %v12218_v14  ;;  %v12222_v60 = vsub.f32 %v7952_v18, %v12177_v55 }
 0x120   : > { %8530 = vmatprep.subr.mxu0 %v11969_v24  ;;  %9735 = vmatpush3.msra.mxu1 %v16594_v17  ;;  %v16649_v17 = vand.u32 4294901760, %v12123_v37  ;;  %v12239_v18 = vsub.f32 %v12134_v35, %v16650_v25  ;;  %16651 = vst [vmem:[#allocation41_spill] sm:$0xff] %v12241_v43  ;;  %16652 = vst [vmem:[#allocation57_spill] sm:$0xff] %v12244_v11  ;;  %v12256_v25 = vand.u32 4294901760, %v7966_v58  ;;  %v12264_v24 = vand.u32 4294901760, %v7950_v52 }
 0x121   : > { %8531 = vmatpush3.msra.mxu0 %v11976_v6  ;;  %16647 = vst [vmem:[#allocation55_spill] sm:$0xff] %v12222_v60  ;;  %v12227_v23 = vadd.f32 %v8149_v2, %v8093_v48  ;;  %9736 = vmatprep.subr.mxu1 %v11693_v27  ;;  %v12246_v2 = vpop.f32.mrf.mxu0  ;;  %v12259_v6 = vsub.f32 %v7967_v33, %v12194_v53  ;;  %v7965_v33 = vld [vmem:[%s15759_s6 + $0x228] sm:$0xff] }
 0x122   : > { %8532 = vmatprep.subr.mxu0 %v11981_v63  ;;  %v12234_v38 = vsub.f32 %v12123_v37, %v16649_v17  ;;  %v8150_v48 = vpop.f32.mrf.mxu1  ;;  %9701 = vmatprep.mubr.f32.mxu0 %v11714_v50  ;;  %v12254_v63 = vsub.f32 %v12139_v49, %v16653_v59  ;;  %v12288_v37 = vsub.f32 %v7951_v41, %v12241_v43  ;;  %v7948_v41 = vld [vmem:[%s15759_s6 + $0x1a0] sm:$0xff] }
 0x123   : > { %16648 = vst [vmem:[#allocation34_spill] sm:$0xff] %v12227_v23  ;;  %9737 = vmatpush3.msra.mxu1 %v11693_v27  ;;  %16654 = vst [vmem:[#allocation48_spill] sm:$0xff] %v12259_v6  ;;  %8533 = vmatpush3.msra.mxu0 %v11987_v34  ;;  %v16655_v27 = vand.u32 4294901760, %v12153_v29  ;;  %v12272_v49 = vpop.f32.mrf.mxu0  ;;  %v12317_v59 = vsub.f32 %v7950_v52, %v12264_v24  ;;  %v12319_v34 = vand.u32 4294901760, %v7965_v33  ;;  %v16662_v52 = vand.u32 4294901760, %v12218_v14 }
 0x124   : > { %9738 = vmatprep.subr.mxu1 %v11728_v46  ;;  %v8151_v35 = vpop.f32.mrf.mxu1  ;;  %9702 = vmatmul.mubr.f32.gmra.mxu0 %v11732_v13  ;;  %16656 = vst [vmem:[#allocation58_spill] sm:$0xff] %v12288_v37  ;;  %v16680_v23 = vand.u32 4294901760, %v12175_v42 }
 0x125   : > { %v12269_v17 = vsub.f32 %v12153_v29, %v16655_v27  ;;  %8534 = vmatprep.subr.mxu0 %v12015_v31  ;;  %v8096_v27 = vadd.f32 %v12105_v8, %v12081_v44  ;;  %v8152_v29 = vadd.f32 %v8151_v35, %v8150_v48  ;;  %9739 = vmatpush3.msra.mxu1 %v11728_v46  ;;  %v7964_v44 = vld [vmem:[%s15759_s6 + $0x220] sm:$0xff]  ;;  %v16659_v46 = vand.u32 4294901760, %v12209_v0 }
 0x126   : > { %8535 = vmatpush3.msra.mxu0 %v12028_v19  ;;  %9740 = vmatprep.subr.mxu1 %v16598_v40  ;;  %v12305_v35 = vsub.f32 %v7966_v58, %v12256_v25  ;;  %16660 = vst [vmem:[#allocation53_spill] sm:$0xff] %v12317_v59  ;;  %v16661_v8 = vand.u32 4294901760, %v12213_v26  ;;  %v16663_v19 = vand.u32 4294901760, %v12222_v60 }
 0x127   : > { %8536 = vmatprep.subr.mxu0 %v12032_v32  ;;  %v12307_v48 = vadd.f32 %v8152_v29, %v8096_v27  ;;  %9704 = vmatprep.mubr.f32.mxu0 %v11763_v3  ;;  %v12314_v31 = vsub.f32 %v12209_v0, %v16659_v46  ;;  %v12326_v29 = vpop.f32.mrf.mxu0  ;;  %v12331_v46 = vand.u32 4294901760, %v7949_v45  ;;  %v12336_v32 = vsub.f32 %v12218_v14, %v16662_v52 }
 0x128   : > { %16657 = vst [vmem:[#allocation50_spill] sm:$0xff] %v12305_v35  ;;  %9741 = vmatpush3.msra.mxu1 %v16598_v40  ;;  %v12324_v58 = vsub.f32 %v12213_v26, %v16661_v8  ;;  %v8153_v27 = vpop.f32.mrf.mxu1  ;;  %9742 = vmatprep.mubr.f32.mxu1 %v11674_v51  ;;  %v12341_v8 = vsub.f32 %v12222_v60, %v16663_v19  ;;  %v12345_v51 = vand.u32 4294901760, %v7964_v44  ;;  %v16664_v40 = vand.u32 4294901760, %v12244_v11 }
 0x129   : > { %16658 = vst [vmem:[#allocation60_spill] sm:$0xff] %v12307_v48  ;;  %8537 = vmatpush3.msra.mxu0 %v12069_v15  ;;  %9743 = vmatmul.mubr.f32.vlgmr.msra.gmra.mxu1 %v11680_v62  ;;  %v12352_v26 = vand.u32 4294901760, %v7948_v41  ;;  %v12361_v19 = vpop.f32.mrf.mxu0  ;;  %v16665_v60 = vand.u32 4294901760, %v12076_v1  ;;  %v16666_v52 = vand.u32 4294901760, %v12259_v6  ;;  %v8099_v0 = vadd.f32 %v12190_v61, %v12165_v20 }
 0x12a   : > { %9705 = vmatmul.mubr.f32.gmra.mxu0 %v11781_v56  ;;  %v12350_v15 = vsub.f32 %v12244_v11, %v16664_v40  ;;  %v8154_v62 = vpop.f32.mrf.mxu1  ;;  %8538 = vmatprep.subr.mxu0 %v12071_v4  ;;  %v12369_v40 = vld [vmem:[%s15759_s6 + $0x218] sm:$0xff]  ;;  %v16667_v1 = vand.u32 4294901760, %v12090_v30  ;;  %v16668_v61 = vand.u32 4294901760, %v12100_v21  ;;  %v12401_v30 = vsub.f32 %v7949_v45, %v12331_v46  ;;  %v12457_v21 = vld [vmem:[%s15759_s6 + $0x208] sm:$0xff] }
 0x12b   : > { %8586 = vmatprep.subr.mxu1 %v16665_v60  ;;  %v12374_v11 = vsub.f32 %v12259_v6, %v16666_v52  ;;  %v8155_v4 = vadd.f32 %v8154_v62, %v8153_v27  ;;  %8539 = vmatpush3.msra.mxu0 %v12085_v57  ;;  %v7947_v52 = vld [vmem:[%s15759_s6 + $0x198] sm:$0xff]  ;;  %v12389_v6 = vsub.f32 %v7965_v33, %v12319_v34  ;;  %v7946_v33 = vld [vmem:[%s15759_s6 + $0x190] sm:$0xff]  ;;  %v706_v62 = vld [vmem:[%s12359_s22] sm:$0xff]  ;;  %v12415_v45 = vand.u32 4294901760, %v12369_v40 }
 0x12c   : > { %8587 = vmatpush3.msra.mxu1 %v16667_v1  ;;  %8540 = vmatprep.subr.mxu0 %v12142_v47  ;;  %v12423_v20 = vsub.f32 %v7964_v44, %v12345_v51  ;;  %v16673_v48 = vand.u32 4294901760, %v12112_v54  ;;  %v12432_v60 = vand.u32 4294901760, %v7947_v52  ;;  %v16675_v44 = vand.u32 4294901760, %v12305_v35 }
 0x12d   : > { %8588 = vmatprep.subr.mxu1 %v16668_v61  ;;  %v12409_v1 = vadd.f32 %v8155_v4, %v8099_v0  ;;  %9707 = vmatprep.mubr.f32.mxu0 %v11810_v12  ;;  %16670 = vst [vmem:[#allocation56_spill] sm:$0xff] %v12415_v45  ;;  %v16671_v61 = vand.u32 4294901760, %v12288_v37  ;;  %v8194_v4 = vpop.f32.mrf.mxu0  ;;  %v12447_v54 = vand.u32 4294901760, %v7946_v33  ;;  %v12460_v47 = vand.u32 4294901760, %v706_v62 }
 0x12e   : > { %9745 = vmatprep.mubr.f32.mxu1 %v11714_v50  ;;  %16672 = vst [vmem:[#allocation65_spill] sm:$0xff] %v12423_v20  ;;  %v8156_v0 = vpop.f32.mrf.mxu1  ;;  %8541 = vmatpush3.msra.mxu0 %v12102_v5  ;;  %v12429_v50 = vsub.f32 %v7948_v41, %v12352_v26  ;;  %16674 = vst [vmem:[#allocation63_spill] sm:$0xff] %v12432_v60  ;;  %v12442_v14 = vsub.f32 %v12305_v35, %v16675_v44  ;;  %v690_v5 = vld [vmem:[%s12395_s20] sm:$0xff]  ;;  %v16677_v41 = vand.u32 4294901760, %v12317_v59 }
 0x12f   : > { %16669 = vst [vmem:[#allocation61_spill] sm:$0xff] %v12409_v1  ;;  %v12420_v27 = vsub.f32 %v12288_v37, %v16671_v61  ;;  %8589 = vmatpush3.msra.mxu1 %v16673_v48  ;;  %v12437_v61 = vld [vmem:[%s15759_s6 + $0x210] sm:$0xff]  ;;  %9708 = vmatmul.mubr.f32.gmra.mxu0 %v11822_v36  ;;  %16676 = vst [vmem:[#allocation66_spill] sm:$0xff] %v12447_v54  ;;  %v8195_v57 = vpop.f32.mrf.mxu0  ;;  %v8102_v37 = vadd.f32 %v12272_v49, %v12246_v2  ;;  %v12484_v49 = vand.u32 4294901760, %v690_v5 }
 0x130   : > { %9746 = vmatmul.mubr.f32.gmra.mxu1 %v11732_v13  ;;  %v12452_v48 = vsub.f32 %v12317_v59, %v16677_v41  ;;  %16678 = vst [vmem:[#allocation68_spill] sm:$0xff] %v12460_v47  ;;  %v8157_v35 = vpop.f32.mrf.mxu1  ;;  %8542 = vmatprep.subr.mxu0 %v12155_v7  ;;  %v16679_v13 = vand.u32 4294901760, %v12160_v28  ;;  %v7945_v41 = vld [vmem:[%s15759_s6 + $0x188] sm:$0xff]  ;;  %v8196_v1 = vadd.f32 %v8195_v57, %v8194_v4  ;;  %v16023_v7 = vand.u32 4294901760, %v12423_v20  ;;  %v12482_v59 = vld [vmem:[%s15759_s6 + $0x180] sm:$0xff]  ;;  %v707_v2 = vld [vmem:[%s12359_s22 + $0x10] sm:$0xff] }
 0x131   : > { %v8158_v44 = vadd.f32 %v8157_v35, %v8156_v0  ;;  %8543 = vmatpush3.msra.mxu0 %v12170_v22  ;;  %16682 = vst [vmem:[#allocation16_spill] sm:$0xff] %v12484_v49  ;;  %v16683_v57 = vand.u32 4294901760, %v12186_v10  ;;  %v12490_v42 = vsub.f32 %v7947_v52, %v12432_v60  ;;  %9748 = vmatprep.mubr.f32.mxu1 %v11763_v3  ;;  %v12507_v52 = vand.u32 4294901760, %v7945_v41  ;;  %v12529_v28 = vld [vmem:[%s15759_s6 + $0x200] sm:$0xff] }
 0x132   : > { %8590 = vmatprep.subr.mxu1 %v16679_v13  ;;  %v12476_v13 = vand.u32 4294901760, %v12437_v61  ;;  %8544 = vmatprep.subr.mxu0 %v12181_v9  ;;  %v12499_v0 = vadd.f32 %v8196_v1, %v12011_v16  ;;  %v12505_v10 = vsub.f32 %v7946_v33, %v12447_v54  ;;  %v16686_v16 = vand.u32 4294901760, %v12234_v38 }
 0x133   : > { %8591 = vmatpush3.msra.mxu1 %v16680_v23  ;;  %v12493_v23 = vand.u32 4294901760, %v12457_v21  ;;  %v12496_v35 = vadd.f32 %v8158_v44, %v8102_v37  ;;  %8545 = vmatpush3.msra.mxu0 %v12177_v55  ;;  %16685 = vst [vmem:[#allocation8_spill] sm:$0xff] %v12507_v52  ;;  %v8159_v37 = vpop.f32.mrf.mxu1  ;;  %v16687_v1 = vand.u32 4294901760, %v12389_v6  ;;  %v16688_v4 = vand.u32 4294901760, %v12401_v30  ;;  %v692_v55 = vld [vmem:[%s12395_s20 + $0x10] sm:$0xff] }
 0x134   : > { %16681 = vst [vmem:[#allocation70_spill] sm:$0xff] %v12476_v13  ;;  %8592 = vmatprep.subr.mxu1 %v16683_v57  ;;  %v12510_v57 = vsub.f32 %v706_v62, %v12460_v47  ;;  %v8197_v44 = vpop.f32.mrf.mxu0  ;;  %8546 = vmatprep.subr.mxu0 %v12194_v53  ;;  %v12532_v38 = vand.u32 4294901760, %v12482_v59  ;;  %v12547_v3 = vsub.f32 %v12369_v40, %v12415_v45  ;;  %v12549_v53 = vand.u32 4294901760, %v707_v2 }
 0x135   : > { %16684 = vst [vmem:[#allocation20_spill] sm:$0xff] %v12493_v23  ;;  %8593 = vmatpush3.msra.mxu1 %v16686_v16  ;;  %v12519_v33 = vsub.f32 %v12389_v6, %v16687_v1  ;;  %v12524_v62 = vsub.f32 %v12401_v30, %v16688_v4  ;;  %v16690_v16 = vand.u32 4294901760, %v12239_v18  ;;  %v12540_v1 = vsub.f32 %v12423_v20, %v16023_v7  ;;  %v8160_v9 = vpop.f32.mrf.mxu1 }
 0x136   : > { %16689 = vst [vmem:[#allocation29_spill] sm:$0xff] %v12532_v38  ;;  %9749 = vmatmul.mubr.f32.gmra.mxu1 %v11781_v56  ;;  %v12543_v4 = vsub.f32 %v690_v5, %v12484_v49  ;;  %16691 = vst [vmem:[#allocation9_spill] sm:$0xff] %v12549_v53  ;;  %v8198_v56 = vpop.f32.mrf.mxu0  ;;  %8547 = vmatpush3.msra.mxu0 %v12241_v43  ;;  %v16692_v18 = vand.u32 4294901760, %v12254_v63  ;;  %v8105_v5 = vadd.f32 %v12361_v19, %v12326_v29  ;;  %v708_v29 = vld [vmem:[%s12359_s22 + $0x20] sm:$0xff] }
 0x137   : > { %8594 = vmatprep.subr.mxu1 %v16690_v16  ;;  %v16030_v16 = vand.u32 4294901760, %v12429_v50  ;;  %v8161_v7 = vadd.f32 %v8160_v9, %v8159_v37  ;;  %v8199_v20 = vadd.f32 %v8198_v56, %v8197_v44  ;;  %8548 = vmatprep.subr.mxu0 %v12256_v25  ;;  %v16693_v40 = vand.u32 4294901760, %v12314_v31 }
 0x138   : > { %8595 = vmatpush3.msra.mxu1 %v16692_v18  ;;  %v12562_v22 = vsub.f32 %v7945_v41, %v12507_v52  ;;  %v12565_v43 = vand.u32 4294901760, %v12529_v28  ;;  %v16031_v63 = vand.u32 4294901760, %v12510_v57  ;;  %v12570_v18 = vsub.f32 %v12437_v61, %v12476_v13  ;;  %9751 = vmatprep.mubr.f32.mxu1 %v11810_v12 }
 0x139   : > { %8596 = vmatprep.subr.mxu1 %v16693_v40  ;;  %8549 = vmatpush3.msra.mxu0 %v12264_v24  ;;  %v12575_v31 = vand.u32 4294901760, %v692_v55  ;;  %v12578_v19 = vadd.f32 %v8161_v7, %v8105_v5  ;;  %v12581_v41 = vadd.f32 %v8199_v20, %v12065_v39  ;;  %v16696_v37 = vand.u32 4294901760, %v12269_v17  ;;  %v8250_v5 = vpop.f32.mrf.mxu1 }
 0x13a   : > { %16694 = vst [vmem:[#allocation7_spill] sm:$0xff] %v12565_v43  ;;  %8550 = vmatprep.subr.mxu0 %v12319_v34  ;;  %v16033_v61 = vand.u32 4294901760, %v12543_v4  ;;  %v16032_v44 = vand.u32 4294901760, %v12490_v42  ;;  %v12590_v56 = vsub.f32 %v707_v2, %v12549_v53  ;;  %v8200_v7 = vpop.f32.mrf.mxu0  ;;  %9752 = vmatmul.mubr.f32.gmra.mxu1 %v11822_v36  ;;  %v16698_v39 = vand.u32 4294901760, %v12324_v58 }
 0x13b   : > { %16695 = vst [vmem:[#allocation31_spill] sm:$0xff] %v12575_v31  ;;  %8597 = vmatpush3.msra.mxu1 %v16696_v37  ;;  %v12598_v20 = vsub.f32 %v12482_v59, %v12532_v38  ;;  %v12603_v40 = vsub.f32 %v12429_v50, %v16030_v16  ;;  %v694_v37 = vld [vmem:[%s12395_s20 + $0x20] sm:$0xff]  ;;  %8551 = vmatpush3.msra.mxu0 %v12331_v46  ;;  %v16699_v36 = vand.u32 4294901760, %v12336_v32  ;;  %v12620_v16 = vand.u32 4294901760, %v708_v29  ;;  %v8251_v12 = vpop.f32.mrf.mxu1 }
 0x13c   : > { %16697 = vst [vmem:[#allocation11_spill] sm:$0xff] %v12590_v56  ;;  %8598 = vmatprep.subr.mxu1 %v16698_v39  ;;  %v12613_v58 = vsub.f32 %v12510_v57, %v16031_v63  ;;  %v12618_v39 = vsub.f32 %v12457_v21, %v12493_v23  ;;  %v8201_v17 = vpop.f32.mrf.mxu0  ;;  %8552 = vmatprep.subr.mxu0 %v12345_v51  ;;  %v16701_v32 = vand.u32 4294901760, %v12350_v15  ;;  %v16703_v21 = vand.u32 4294901760, %v12341_v8 }
 0x13d   : > { %8599 = vmatpush3.msra.mxu1 %v16699_v36  ;;  %16700 = vst [vmem:[#allocation13_spill] sm:$0xff] %v12620_v16  ;;  %v16036_v36 = vand.u32 4294901760, %v12505_v10  ;;  %v12627_v63 = vsub.f32 %v692_v55, %v12575_v31  ;;  %v8202_v9 = vadd.f32 %v8201_v17, %v8200_v7  ;;  %v8252_v59 = vadd.f32 %v8251_v12, %v8250_v5  ;;  %v709_v5 = vld [vmem:[%s12359_s22 + $0x30] sm:$0xff] }
 0x13e   : > { %8600 = vmatprep.subr.mxu1 %v16701_v32  ;;  %8553 = vmatpush3.msra.mxu0 %v12352_v26  ;;  %v3267_v2 = vsub.f32 %v12543_v4, %v16033_v61  ;;  %v12638_v15 = vsub.f32 %v12490_v42, %v16032_v44  ;;  %v12641_v55 = vand.u32 4294901760, %v694_v37  ;;  %v16705_v12 = vand.u32 4294901760, %v12374_v11  ;;  %v16706_v17 = vld [vmem:[#allocation36_spill] sm:$0xff] }
 0x13f   : > { %16702 = vst [vmem:[#allocation14_spill] sm:$0xff] %v12627_v63  ;;  %8601 = vmatpush3.msra.mxu1 %v16703_v21  ;;  %8554 = vmatprep.subr.mxu0 %v12415_v45  ;;  %v3461_v8 = vand.u32 4294901760, %v12603_v40  ;;  %v12649_v7 = vsub.f32 %v12529_v28, %v12565_v43  ;;  %v12653_v21 = vadd.f32 %v8202_v9, %v16706_v17  ;;  %v16707_v61 = vand.u32 4294901760, %v12420_v27 }
 0x140   : > { %16704 = vst [vmem:[#allocation15_spill] sm:$0xff] %v12641_v55  ;;  %8602 = vmatprep.subr.mxu1 %v16705_v12  ;;  %v12656_v44 = vadd.f32 %v8252_v59, %v12499_v0  ;;  %8555 = vmatpush3.msra.mxu0 %v12432_v60  ;;  %v16708_v11 = vand.u32 4294901760, %v12547_v3  ;;  %v16709_v28 = vand.u32 4294901760, %v12570_v18  ;;  %v12671_v17 = vsub.f32 %v708_v29, %v12620_v16  ;;  %v8203_v0 = vpop.f32.mrf.mxu0  ;;  %v8253_v59 = vpop.f32.mrf.mxu1  ;;  %v696_v29 = vld [vmem:[%s12395_s20 + $0x30] sm:$0xff] }
 0x141   : > { %8603 = vmatpush3.msra.mxu1 %v16707_v61  ;;  %8556 = vmatprep.subr.mxu0 %v12476_v13  ;;  %v16711_v27 = vand.u32 4294901760, %v12442_v14  ;;  %v3262_v61 = vand.u32 4294901760, %v12613_v58  ;;  %v16712_v32 = vand.u32 4294901760, %v12452_v48  ;;  %v3268_v13 = vand.u32 4294901760, %v3267_v2 }
 0x142   : > { %v3579_v40 = vsub.f32 %v12547_v3, %v16708_v11  ;;  %v12667_v12 = vsub.f32 %v12570_v18, %v16709_v28  ;;  %16710 = vst [vmem:[#allocation17_spill] sm:$0xff] %v12671_v17  ;;  %v12680_v11 = vsub.f32 %v12505_v10, %v16036_v36  ;;  %8557 = vmatpush3.msra.mxu0 %v12447_v54  ;;  %v16713_v14 = vand.u32 4294901760, %v12590_v56  ;;  %v8204_v60 = vpop.f32.mrf.mxu0  ;;  %v8254_v28 = vpop.f32.mrf.mxu1 }
 0x143   : > { %8604 = vmatprep.subr.mxu1 %v16711_v27  ;;  %v12692_v27 = vsub.f32 %v694_v37, %v12641_v55  ;;  %v12694_v36 = vand.u32 4294901760, %v709_v5  ;;  %8558 = vmatprep.subr.mxu0 %v12493_v23  ;;  %v16716_v9 = vand.u32 4294901760, %v12519_v33  ;;  %v16047_v48 = vand.u32 4294901760, %v12649_v7 }
 0x144   : > { %8605 = vmatpush3.msra.mxu1 %v16712_v32  ;;  %v3276_v58 = vsub.f32 %v12590_v56, %v16713_v14  ;;  %v16050_v2 = vand.u32 4294901760, %v12598_v20  ;;  %v8205_v32 = vadd.f32 %v8204_v60, %v8203_v0  ;;  %v8255_v54 = vadd.f32 %v8254_v28, %v8253_v59  ;;  %8559 = vmatpush3.msra.mxu0 %v12507_v52  ;;  %v16722_v59 = vld [vmem:[#allocation34_spill] sm:$0xff] }
 0x145   : > { %16714 = vst [vmem:[#allocation19_spill] sm:$0xff] %v12692_v27  ;;  %16715 = vst [vmem:[#allocation21_spill] sm:$0xff] %v12694_v36  ;;  %8606 = vmatprep.subr.mxu1 %v16716_v9  ;;  %v16717_v37 = vand.u32 4294901760, %v12524_v62  ;;  %v3580_v14 = vand.u32 4294901760, %v3579_v40  ;;  %v16718_v56 = vand.u32 4294901760, %v12618_v39  ;;  %v16055_v33 = vand.u32 4294901760, %v12671_v17  ;;  %8560 = vmatprep.subr.mxu0 %v12565_v43 }
 0x146   : > { %v12708_v45 = vand.u32 4294901760, %v696_v29  ;;  %v16720_v9 = vand.u32 4294901760, %v12540_v1  ;;  %v3468_v60 = vand.u32 4294901760, %v12638_v15  ;;  %v16721_v0 = vand.u32 4294901760, %v12627_v63  ;;  %v710_v40 = vld [vmem:[%s12359_s22 + $0x40] sm:$0xff]  ;;  %8561 = vmatpush3.msra.mxu0 %v12532_v38  ;;  %3263 = vmatprep.mubr.f32.mxu0 %v3262_v61  ;;  %v16728_v38 = vld [vmem:[#allocation32_spill] sm:$0xff] }
 0x147   : > { %8607 = vmatpush3.msra.mxu1 %v16717_v37  ;;  %v3593_v23 = vsub.f32 %v12618_v39, %v16718_v56  ;;  %v12719_v28 = vadd.f32 %v8205_v32, %v16722_v59  ;;  %v12722_v56 = vadd.f32 %v8255_v54, %v12581_v41  ;;  %v3587_v1 = vand.u32 4294901760, %v12667_v12  ;;  %v8206_v32 = vpop.f32.mrf.mxu0  ;;  %v8256_v59 = vpop.f32.mrf.mxu1  ;;  %3269 = vmatmul.mubr.f32.vlgmr.msra.gmra.mxu0 %v3268_v13 }
 0x148   : > { %16719 = vst [vmem:[#allocation38_spill] sm:$0xff] %v12708_v45  ;;  %8608 = vmatprep.subr.mxu1 %v16720_v9  ;;  %v3282_v62 = vsub.f32 %v12627_v63, %v16721_v0  ;;  %v16723_v37 = vand.u32 4294901760, %v12562_v22  ;;  %v12731_v0 = vsub.f32 %v709_v5, %v12694_v36  ;;  %v3277_v54 = vand.u32 4294901760, %v3276_v58  ;;  %v16725_v9 = vld [vmem:[#allocation12_spill] sm:$0xff]  ;;  %3604 = vmatprep.mubr.f32.mxu1 %v12460_v47 }
 0x149   : > { %8609 = vmatpush3.msra.mxu1 %v3461_v8  ;;  %v3475_v41 = vand.u32 4294901760, %v12680_v11  ;;  %v3600_v12 = vsub.f32 %v12649_v7, %v16047_v48  ;;  %v3488_v61 = vsub.f32 %v12598_v20, %v16050_v2  ;;  %8642 = vmatprep.subr.mxu0 %v16725_v9  ;;  %v3594_v5 = vand.u32 4294901760, %v3593_v23  ;;  %v8207_v58 = vpop.f32.mrf.mxu0  ;;  %v8257_v48 = vpop.f32.mrf.mxu1  ;;  %v16729_v23 = vld [vmem:[#allocation35_spill] sm:$0xff]  ;;  %v16747_v47 = vld [vmem:[#allocation40_spill] sm:$0xff] }
 0x14a   : > { %v3481_v15 = vsub.f32 %v12562_v22, %v16723_v37  ;;  %16724 = vst [vmem:[#allocation26_spill] sm:$0xff] %v12731_v0  ;;  %v698_v37 = vld [vmem:[%s12395_s20 + $0x40] sm:$0xff]  ;;  %8610 = vmatprep.subr.mxu1 %v3580_v14  ;;  %v3291_v13 = vsub.f32 %v12671_v17, %v16055_v33  ;;  %v12746_v8 = vsub.f32 %v696_v29, %v12708_v45  ;;  %v12748_v11 = vand.u32 4294901760, %v710_v40 }
 0x14b   : > { %8611 = vmatpush3.msra.mxu1 %v3468_v60  ;;  %8643 = vmatpush3.msra.mxu0 %v16728_v38  ;;  %v3283_v2 = vand.u32 4294901760, %v3282_v62  ;;  %v8208_v14 = vadd.f32 %v8207_v58, %v8206_v32  ;;  %v8258_v43 = vadd.f32 %v8257_v48, %v8256_v59  ;;  %v16730_v33 = vand.u32 4294901760, %v12692_v27  ;;  %v711_v38 = vld [vmem:[%s12359_s22 + $0x50] sm:$0xff] }
 0x14c   : > { %16726 = vst [vmem:[#allocation27_spill] sm:$0xff] %v12746_v8  ;;  %16727 = vst [vmem:[#allocation36_spill] sm:$0xff] %v12748_v11  ;;  %8612 = vmatprep.subr.mxu1 %v3587_v1  ;;  %8644 = vmatprep.subr.mxu0 %v16729_v23  ;;  %v3482_v52 = vand.u32 4294901760, %v3481_v15  ;;  %v16062_v17 = vand.u32 4294901760, %v12731_v0  ;;  %v12756_v63 = vand.u32 4294901760, %v698_v37  ;;  %v3601_v60 = vand.u32 4294901760, %v3600_v12 }
 0x14d   : > { %v3297_v29 = vsub.f32 %v12692_v27, %v16730_v33  ;;  %3278 = vmatprep.mubr.f32.mxu0 %v3277_v54  ;;  %8613 = vmatpush3.msra.mxu1 %v3475_v41  ;;  %v16732_v62 = vld [vmem:[#allocation60_spill] sm:$0xff]  ;;  %v12763_v48 = vadd.f32 %v8258_v43, %v12653_v21  ;;  %v16733_v1 = vld [vmem:[#allocation51_spill] sm:$0xff]  ;;  %v3292_v15 = vand.u32 4294901760, %v3291_v13  ;;  %v3489_v33 = vand.u32 4294901760, %v3488_v61  ;;  %v8209_v54 = vpop.f32.mrf.mxu0  ;;  %v8259_v41 = vpop.f32.mrf.mxu1  ;;  %v16735_v12 = vld [vmem:[#allocation54_spill] sm:$0xff] }
 0x14e   : > { %16731 = vst [vmem:[#allocation34_spill] sm:$0xff] %v12756_v63  ;;  %v12760_v32 = vadd.f32 %v8208_v14, %v16732_v62  ;;  %8645 = vmatpush3.msra.mxu0 %v16733_v1  ;;  %8614 = vmatprep.subr.mxu1 %v3594_v5  ;;  %v12768_v58 = vsub.f32 %v710_v40, %v12748_v11  ;;  %v12772_v14 = vld [vmem:[%s12395_s20 + $0x50] sm:$0xff]  ;;  %v16737_v43 = vld [vmem:[#allocation59_spill] sm:$0xff]  ;;  %v12781_v40 = vand.u32 4294901760, %v711_v38 }
 0x14f   : > { %3284 = vmatmul.mubr.f32.gmra.mxu0 %v3283_v2  ;;  %8646 = vmatprep.subr.mxu0 %v16735_v12  ;;  %16736 = vst [vmem:[#allocation35_spill] sm:$0xff] %v12772_v14  ;;  %v3298_v21 = vand.u32 4294901760, %v3297_v29  ;;  %v3306_v61 = vsub.f32 %v12731_v0, %v16062_v17  ;;  %v12779_v5 = vsub.f32 %v698_v37, %v12756_v63  ;;  %v8210_v13 = vpop.f32.mrf.mxu0  ;;  %v8260_v2 = vpop.f32.mrf.mxu1  ;;  %v16740_v62 = vld [vmem:[#allocation67_spill] sm:$0xff]  ;;  %v16741_v29 = vand.u32 4294901760, %v12746_v8  ;;  %v16743_v0 = vld [vmem:[#allocation22_spill] sm:$0xff]  ;;  %v16746_v17 = vld [vmem:[#allocation45_spill] sm:$0xff] }
 0x150   : > { %16734 = vst [vmem:[#allocation12_spill] sm:$0xff] %v12768_v58  ;;  %8615 = vmatpush3.msra.mxu1 %v3482_v52  ;;  %8647 = vmatpush3.msra.mxu0 %v16737_v43  ;;  %16739 = vst [vmem:[#allocation51_spill] sm:$0xff] %v12781_v40  ;;  %v8211_v59 = vadd.f32 %v8210_v13, %v8209_v54  ;;  %v8261_v52 = vadd.f32 %v8260_v2, %v8259_v41  ;;  %v12789_v37 = vand.u32 4294901760, %v12772_v14  ;;  %v16774_v43 = vld [vmem:[#allocation62_spill] sm:$0xff] }
 0x151   : > { %16738 = vst [vmem:[#allocation60_spill] sm:$0xff] %v12779_v5  ;;  %8616 = vmatprep.subr.mxu1 %v3601_v60  ;;  %8648 = vmatprep.subr.mxu0 %v16740_v62  ;;  %v3312_v27 = vsub.f32 %v12746_v8, %v16741_v29  ;;  %v712_v60 = vld [vmem:[%s12359_s22 + $0x60] sm:$0xff]  ;;  %v16744_v62 = vld [vmem:[#allocation61_spill] sm:$0xff]  ;;  %v12803_v13 = vsub.f32 %v711_v38, %v12781_v40  ;;  %v8212_v2 = vpop.f32.mrf.mxu0 }
 0x152   : > { %3293 = vmatprep.mubr.f32.mxu0 %v3292_v15  ;;  %8617 = vmatpush3.msra.mxu1 %v3489_v33  ;;  %16742 = vst [vmem:[#allocation54_spill] sm:$0xff] %v12789_v37  ;;  %v12795_v54 = vadd.f32 %v8211_v59, %v16744_v62  ;;  %v12798_v15 = vadd.f32 %v8261_v52, %v12719_v28  ;;  %v3307_v33 = vand.u32 4294901760, %v3306_v61  ;;  %v8262_v29 = vpop.f32.mrf.mxu1  ;;  %v12808_v59 = vld [vmem:[%s12395_s20 + $0x60] sm:$0xff]  ;;  %v16749_v62 = vld [vmem:[#allocation23_spill] sm:$0xff]  ;;  %v16751_v61 = vand.u32 4294901760, %v12768_v58 }
 0x153   : > { %8649 = vmatpush3.msra.mxu0 %v16743_v0  ;;  %3606 = vmatmul.mubr.f32.vlgmr.msra.gmra.mxu1 %v12484_v49  ;;  %16745 = vst [vmem:[#allocation61_spill] sm:$0xff] %v12803_v13  ;;  %16748 = vst [vmem:[#allocation71_spill] sm:$0xff] %v12808_v59  ;;  %v16750_v28 = vld [vmem:[#allocation10_spill] sm:$0xff]  ;;  %v12817_v38 = vsub.f32 %v12772_v14, %v12789_v37  ;;  %v12819_v41 = vand.u32 4294901760, %v712_v60  ;;  %v8213_v49 = vpop.f32.mrf.mxu0  ;;  %v16758_v0 = vld [vmem:[#allocation24_spill] sm:$0xff] }
 0x154   : > { %3299 = vmatmul.mubr.f32.gmra.mxu0 %v3298_v21  ;;  %8650 = vmatprep.subr.mxu0 %v16746_v17  ;;  %v3313_v21 = vand.u32 4294901760, %v3312_v27  ;;  %v3321_v52 = vsub.f32 %v12768_v58, %v16751_v61  ;;  %v8263_v8 = vpop.f32.mrf.mxu1  ;;  %v16755_v17 = vld [vmem:[#allocation44_spill] sm:$0xff]  ;;  %v16756_v27 = vand.u32 4294901760, %v12779_v5  ;;  %v12829_v58 = vand.u32 4294901760, %v12808_v59 }
 0x155   : > { %8698 = vmatprep.subr.mxu1 %v16747_v47  ;;  %8651 = vmatpush3.msra.mxu0 %v16749_v62  ;;  %16752 = vst [vmem:[#allocation72_spill] sm:$0xff] %v12817_v38  ;;  %16753 = vst [vmem:[#allocation73_spill] sm:$0xff] %v12819_v41  ;;  %v16754_v47 = vld [vmem:[#allocation46_spill] sm:$0xff]  ;;  %v8214_v62 = vadd.f32 %v8213_v49, %v8212_v2 }
 0x156   : > { %8699 = vmatpush3.msra.mxu1 %v16750_v28  ;;  %8652 = vmatprep.subr.mxu0 %v16754_v47  ;;  %v8264_v28 = vadd.f32 %v8263_v8, %v8262_v29  ;;  %v3327_v61 = vsub.f32 %v12779_v5, %v16756_v27  ;;  %16757 = vst [vmem:[#allocation74_spill] sm:$0xff] %v12829_v58  ;;  %v16759_v47 = vld [vmem:[#allocation30_spill] sm:$0xff]  ;;  %v16762_v5 = vld [vmem:[#allocation33_spill] sm:$0xff] }
 0x157   : > { %8700 = vmatprep.subr.mxu1 %v16755_v17  ;;  %3308 = vmatprep.mubr.f32.mxu0 %v3307_v33  ;;  %v713_v17 = vld [vmem:[%s12359_s22 + $0x70] sm:$0xff]  ;;  %v1532_v49 = vadd.f32 %v8214_v62, %v12496_v35  ;;  %v3322_v33 = vand.u32 4294901760, %v3321_v52  ;;  %v12841_v29 = vsub.f32 %v712_v60, %v12819_v41  ;;  %v8215_v27 = vpop.f32.mrf.mxu0  ;;  %v12855_v60 = vsub.f32 %v12808_v59, %v12829_v58  ;;  %s8046_s22 = sadd.s32 128, %s10852_s12  ;;  %s537_s12 = sand.u32 1, %s10414_s28  }
 0x158   : > { %3611 = vmatprep.mubr.f32.mxu1 %v12549_v53  ;;  %8653 = vmatpush3.msra.mxu0 %v16758_v0  ;;  %v12836_v8 = vadd.f32 %v8264_v28, %v12760_v32  ;;  %v8265_v14 = vpop.f32.mrf.mxu1  ;;  %v16761_v53 = vld [vmem:[#allocation49_spill] sm:$0xff]  ;;  %v16764_v35 = vld [vmem:[#allocation52_spill] sm:$0xff]  ;;  %v16765_v32 = vld [vmem:[#allocation18_spill] sm:$0xff]  ;;  %v3328_v62 = vand.u32 4294901760, %v3327_v61  ;;  %v16766_v28 = vand.u32 4294901760, %v12803_v13  ;;  %v12857_v52 = vand.u32 4294901760, %v713_v17  ;;  %s647_s19 = scalar_lea.vmem %s15758_s5, %s8046_s22  ;;  %s634_s25 = scalar_lea.vmem %s15757_s4, %s8046_s22 }
 0x159   : > { %8701 = vmatpush3.msra.mxu1 %v16759_v47  ;;  %3314 = vmatmul.mubr.f32.gmra.mxu0 %v3313_v21  ;;  %16760 = vst [vmem:[#allocation75_spill] sm:$0xff] %v12841_v29  ;;  %v12846_v47 = vld [vmem:[%s12395_s20 + $0x70] sm:$0xff]  ;;  %16767 = vst [vmem:[#allocation77_spill] sm:$0xff] %v12855_v60  ;;  %v8216_v2 = vpop.f32.mrf.mxu0  ;;  %v16771_v61 = vand.u32 4294901760, %v12817_v38  ;;  %s7915_s26 = sshll.u32 %s537_s12, 6 }
 0x15a   : > { %3613 = vmatmul.mubr.f32.gmra.mxu1 %v12575_v31  ;;  %8654 = vmatprep.subr.mxu0 %v16761_v53  ;;  %16763 = vst [vmem:[#allocation76_spill] sm:$0xff] %v12846_v47  ;;  %v3336_v21 = vsub.f32 %v12803_v13, %v16766_v28  ;;  %16768 = vst [vmem:[#allocation78_spill] sm:$0xff] %v12857_v52  ;;  %v8266_v31 = vpop.f32.mrf.mxu1  ;;  %v16770_v53 = vld [vmem:[#allocation6_spill] sm:$0xff]  ;;  %v12867_v13 = vand.u32 4294901760, %v12846_v47  ;;  %v16776_v59 = vld [vmem:[#allocation48_spill] sm:$0xff]  ;;  %s15675_s14 = scalar_lea.vmem [#allocation3], %s7915_s26 }
 0x15b   : > { %8702 = vmatprep.subr.mxu1 %v16762_v5  ;;  %8655 = vmatpush3.msra.mxu0 %v16764_v35  ;;  %v16769_v5 = vld [vmem:[#allocation57_spill] sm:$0xff]  ;;  %v8217_v35 = vadd.f32 %v8216_v2, %v8215_v27  ;;  %v8267_v0 = vadd.f32 %v8266_v31, %v8265_v14  ;;  %v3342_v28 = vsub.f32 %v12817_v38, %v16771_v61  ;;  %v16778_v38 = vld [vmem:[#allocation58_spill] sm:$0xff]  ;;  %s7723_s22 = sshll.u32 %s15675_s14, 4  ;;  %s15701_s22 = int_to_ptr.vmem [resolvable:$true] %s7723_s22 }
 0x15c   : > { %8703 = vmatpush3.msra.mxu1 %v16765_v32  ;;  %8656 = vmatprep.subr.mxu0 %v16769_v5  ;;  %16772 = vst [vmem:[#allocation57_spill] sm:$0xff] %v12867_v13  ;;  %v16773_v32 = vld [vmem:[#allocation55_spill] sm:$0xff]  ;;  %v3337_v14 = vand.u32 4294901760, %v3336_v21  ;;  %v12878_v2 = vsub.f32 %v713_v17, %v12857_v52  ;;  %s10354_s21 = scalar_lea.vmem %s15701_s22, 1024 }
 0x15d   : > { %8704 = vmatprep.subr.mxu1 %v16770_v53  ;;  %3323 = vmatprep.mubr.f32.mxu0 %v3322_v33  ;;  %v1541_v53 = vadd.f32 %v8217_v35, %v12578_v19  ;;  %v12873_v31 = vadd.f32 %v8267_v0, %v12795_v54  ;;  %v8306_v61 = vpop.f32.mrf.mxu0  ;;  %v16779_v19 = vld [vmem:[#allocation69_spill] sm:$0xff]  ;;  %v3343_v0 = vand.u32 4294901760, %v3342_v28  ;;  %v16780_v54 = vand.u32 4294901760, %v12841_v29  ;;  %v16781_v33 = vld [vmem:[#allocation50_spill] sm:$0xff]  ;;  %p10355_p12 = scmp.ne.s32.totalorder %s15701_s22, %s10354_s21 }
 0x15e   : > { %3618 = vmatprep.mubr.f32.mxu1 %v12620_v16  ;;  %8657 = vmatpush3.msra.mxu0 %v16773_v32  ;;  %16775 = vst [vmem:[#allocation55_spill] sm:$0xff] %v12878_v2  ;;  %v8268_v27 = vpop.f32.mrf.mxu1  ;;  %v16777_v16 = vld [vmem:[#allocation64_spill] sm:$0xff]  ;;  %v16783_v28 = vand.u32 4294901760, %v12855_v60 }
 0x15f   : > { %8705 = vmatpush3.msra.mxu1 %v16774_v43  ;;  %3329 = vmatmul.mubr.f32.gmra.mxu0 %v3328_v62  ;;  %v3351_v35 = vsub.f32 %v12841_v29, %v16780_v54  ;;  %v12889_v62 = vsub.f32 %v12846_v47, %v12867_v13  ;;  %v8307_v21 = vpop.f32.mrf.mxu0  ;;  %v16098_v54 = vand.u32 4294901760, %v12878_v2  ;;  %v16784_v29 = vld [vmem:[#allocation53_spill] sm:$0xff]  ;;  %v16785_v47 = vld [vmem:[#allocation43_spill] sm:$0xff]  ;;  %p10356_p13 = pnand %p10355_p12, %p10520_p4 }
 0x160   : > { %3620 = vmatmul.mubr.f32.gmra.mxu1 %v12641_v55  ;;  %8658 = vmatprep.subr.mxu0 %v16776_v59  ;;  %v8269_v17 = vpop.f32.mrf.mxu1  ;;  %v16782_v55 = vld [vmem:[#allocation47_spill] sm:$0xff]  ;;  %v8308_v59 = vadd.f32 %v8307_v21, %v8306_v61  ;;  %v16786_v21 = vld [vmem:[#allocation37_spill] sm:$0xff] }
 0x161   : > { %8706 = vmatprep.subr.mxu1 %v16777_v16  ;;  %8659 = vmatpush3.msra.mxu0 %v16778_v38  ;;  %v8270_v16 = vadd.f32 %v8269_v17, %v8268_v27  ;;  %p10357_p0 = pneg %p10356_p13 }
 0x162   : > { %8707 = vmatpush3.msra.mxu1 %v16779_v19  ;;  %8660 = vmatprep.subr.mxu0 %v16781_v33  ;;  %v3357_v19 = vsub.f32 %v12855_v60, %v16783_v28  ;;  %v1894_v33 = vadd.f32 %v8308_v59, %v12656_v44  ;;  %v16787_v28 = vld [vmem:[#allocation25_spill] sm:$0xff]  ;;  %v3366_v44 = vsub.f32 %v12878_v2, %v16098_v54 }
 0x163   : > { %8708 = vmatprep.subr.mxu1 %v16782_v55  ;;  %3338 = vmatprep.mubr.f32.mxu0 %v3337_v14  ;;  %v12900_v38 = vadd.f32 %v8270_v16, %v1532_v49  ;;  %v3352_v14 = vand.u32 4294901760, %v3351_v35  ;;  %v8271_v61 = vpop.f32.mrf.mxu1  ;;  %v16789_v35 = vld [vmem:[#allocation28_spill] sm:$0xff] }
 0x164   : > { %3625 = vmatprep.mubr.f32.mxu1 %v12694_v36  ;;  %8661 = vmatpush3.msra.mxu0 %v16784_v29  ;;  %v8309_v17 = vpop.f32.mrf.mxu0  ;;  %v3358_v16 = vand.u32 4294901760, %v3357_v19  ;;  %v16790_v36 = vand.u32 4294901760, %v12889_v62  ;;  %v16791_v19 = vld [vmem:[#allocation39_spill] sm:$0xff] }
 0x165   : > { %8709 = vmatpush3.msra.mxu1 %v16785_v47  ;;  %3344 = vmatmul.mubr.f32.gmra.mxu0 %v3343_v0  ;;  %v8272_v59 = vpop.f32.mrf.mxu1  ;;  %v16788_v0 = vld [vmem:[#allocation65_spill] sm:$0xff] }
 0x166   : > { %3627 = vmatmul.mubr.f32.gmra.mxu1 %v12708_v45  ;;  %8662 = vmatprep.subr.mxu0 %v12389_v6  ;;  %v8310_v49 = vpop.f32.mrf.mxu0  ;;  %v8273_v27 = vadd.f32 %v8272_v59, %v8271_v61  ;;  %v3372_v60 = vsub.f32 %v12889_v62, %v16790_v36  ;;  %v3367_v61 = vand.u32 4294901760, %v3366_v44  ;;  %v16792_v59 = vld [vmem:[#allocation42_spill] sm:$0xff]  ;;  %v16793_v36 = vld [vmem:[#allocation41_spill] sm:$0xff] }
 0x167   : > { %8710 = vmatprep.subr.mxu1 %v16786_v21  ;;  %8663 = vmatpush3.msra.mxu0 %v12401_v30  ;;  %v8311_v45 = vadd.f32 %v8310_v49, %v8309_v17 }
 0x168   : > { %8711 = vmatpush3.msra.mxu1 %v16787_v28  ;;  %8664 = vmatprep.subr.mxu0 %v16788_v0  ;;  %v12920_v54 = vadd.f32 %v8273_v27, %v1541_v53  ;;  %v3373_v49 = vand.u32 4294901760, %v3372_v60 }
 0x169   : > { %8712 = vmatprep.subr.mxu1 %v16789_v35  ;;  %3353 = vmatprep.mubr.f32.mxu0 %v3352_v14  ;;  %v1901_v2 = vadd.f32 %v8311_v45, %v12722_v56  ;;  %v8362_v14 = vpop.f32.mrf.mxu1 }
 0x16a   : > { %3632 = vmatprep.mubr.f32.mxu1 %v12748_v11  ;;  %8665 = vmatpush3.msra.mxu0 %v12429_v50  ;;  %v8312_v17 = vpop.f32.mrf.mxu0 }
 0x16b   : > { %8713 = vmatpush3.msra.mxu1 %v16791_v19  ;;  %3359 = vmatmul.mubr.f32.gmra.mxu0 %v3358_v16  ;;  %v8363_v53 = vpop.f32.mrf.mxu1 }
 0x16c   : > { %3634 = vmatmul.mubr.f32.gmra.mxu1 %v12756_v63  ;;  %8666 = vmatprep.subr.mxu0 %v12547_v3  ;;  %v8313_v11 = vpop.f32.mrf.mxu0  ;;  %v8364_v56 = vadd.f32 %v8363_v53, %v8362_v14  ;;  %v16820_v63 = vld [vmem:[#allocation19_spill] sm:$0xff] }
 0x16d   : > { %8714 = vmatprep.subr.mxu1 %v16792_v59  ;;  %8667 = vmatpush3.msra.mxu0 %v12490_v42  ;;  %v8314_v45 = vadd.f32 %v8313_v11, %v8312_v17 }
 0x16e   : > { %8715 = vmatpush3.msra.mxu1 %v16793_v36  ;;  %8668 = vmatprep.subr.mxu0 %v12570_v18  ;;  %v12934_v16 = vadd.f32 %v8364_v56, %v1894_v33  ;;  %v16796_v56 = vand.u32 4294901760, %v16725_v9  ;;  %v16803_v9 = vld [vmem:[#allocation66_spill] sm:$0xff] }
 0x16f   : > { %8716 = vmatprep.subr.mxu1 %v12256_v25  ;;  %3368 = vmatprep.mubr.f32.mxu0 %v3367_v61  ;;  %v1908_v27 = vadd.f32 %v8314_v45, %v12763_v48  ;;  %v8315_v60 = vpop.f32.mrf.mxu0  ;;  %v16795_v45 = vld [vmem:[#allocation56_spill] sm:$0xff] }
 0x170   : > { %3639 = vmatprep.mubr.f32.mxu1 %v12781_v40  ;;  %8669 = vmatpush3.msra.mxu0 %v12505_v10  ;;  %16794 = vst [vmem:[#allocation62_spill] sm:$0xff] %v12934_v16  ;;  %v8365_v44 = vpop.f32.mrf.mxu1 }
 0x171   : > { %8717 = vmatpush3.msra.mxu1 %v12264_v24  ;;  %3374 = vmatmul.mubr.f32.gmra.mxu0 %v3373_v49  ;;  %v8316_v11 = vpop.f32.mrf.mxu0 }
 0x172   : > { %3641 = vmatmul.mubr.f32.gmra.mxu1 %v12789_v37  ;;  %8670 = vmatprep.subr.mxu0 %v12618_v39  ;;  %v8366_v61 = vpop.f32.mrf.mxu1  ;;  %v8317_v48 = vadd.f32 %v8316_v11, %v8315_v60  ;;  %v16797_v60 = vld [vmem:[#allocation63_spill] sm:$0xff]  ;;  %v16816_v37 = vld [vmem:[#allocation29_spill] sm:$0xff] }
 0x173   : > { %8718 = vmatprep.subr.mxu1 %v12319_v34  ;;  %8671 = vmatpush3.msra.mxu0 %v12562_v22  ;;  %v8367_v33 = vadd.f32 %v8366_v61, %v8365_v44  ;;  %v16798_v44 = vld [vmem:[#allocation32_spill] sm:$0xff] }
 0x174   : > { %8719 = vmatpush3.msra.mxu1 %v12331_v46  ;;  %8672 = vmatprep.subr.mxu0 %v12649_v7  ;;  %v1915_v17 = vadd.f32 %v8317_v48, %v12798_v15  ;;  %v16799_v11 = vand.u32 4294901760, %v16798_v44  ;;  %v16801_v48 = vand.u32 4294901760, %v16729_v23 }
 0x175   : > { %8720 = vmatprep.subr.mxu1 %v12345_v51  ;;  %3646 = vmatprep.mubr.f32.mxu1 %v12819_v41  ;;  %v12948_v14 = vadd.f32 %v8367_v33, %v1901_v2  ;;  %v8318_v49 = vpop.f32.mrf.mxu0  ;;  %v16800_v2 = vld [vmem:[#allocation70_spill] sm:$0xff] }
 0x176   : > { %8673 = vmatpush3.msra.mxu0 %v12598_v20  ;;  %3790 = vmatprep.mubr.f32.mxu0 %v12510_v57  ;;  %v8368_v53 = vpop.f32.mrf.mxu1  ;;  %v16806_v41 = vld [vmem:[#allocation14_spill] sm:$0xff] }
 0x177   : > { %8721 = vmatpush3.msra.mxu1 %v12352_v26  ;;  %3793 = vmatmul.mubr.f32.vlgmr.msra.gmra.mxu0 %v12543_v4  ;;  %v8319_v61 = vpop.f32.mrf.mxu0 }
 0x178   : > { %3648 = vmatmul.mubr.f32.gmra.mxu1 %v12829_v58  ;;  %8722 = vmatprep.subr.mxu1 %v16795_v45  ;;  %v8369_v15 = vpop.f32.mrf.mxu1  ;;  %v8320_v33 = vadd.f32 %v8319_v61, %v8318_v49  ;;  %v16802_v58 = vld [vmem:[#allocation11_spill] sm:$0xff]  ;;  %v16808_v61 = vand.u32 4294901760, %v16735_v12  ;;  %v16817_v12 = vand.u32 4294901760, %v12510_v57 }
 0x179   : > { %8754 = vmatprep.subr.mxu0 %v16796_v56  ;;  %8723 = vmatpush3.msra.mxu1 %v16797_v60  ;;  %v8370_v16 = vadd.f32 %v8369_v15, %v8368_v53  ;;  %v16804_v56 = vand.u32 4294901760, %v16733_v1  ;;  %v16807_v53 = vld [vmem:[#allocation20_spill] sm:$0xff]  ;;  %v16825_v57 = vld [vmem:[#allocation23_spill] sm:$0xff] }
 0x17a   : > { %8755 = vmatpush3.msra.mxu0 %v16799_v11  ;;  %8724 = vmatprep.subr.mxu1 %v16800_v2  ;;  %v1922_v44 = vadd.f32 %v8320_v33, %v12836_v8  ;;  %v16809_v15 = vld [vmem:[#allocation8_spill] sm:$0xff] }
 0x17b   : > { %8756 = vmatprep.subr.mxu0 %v16801_v48  ;;  %3653 = vmatprep.mubr.f32.mxu1 %v12857_v52  ;;  %v12967_v11 = vadd.f32 %v8370_v16, %v1908_v27  ;;  %v8321_v23 = vpop.f32.mrf.mxu0  ;;  %v16810_v48 = vld [vmem:[#allocation59_spill] sm:$0xff]  ;;  %v16815_v52 = vld [vmem:[#allocation17_spill] sm:$0xff] }
 0x17c   : > { %3799 = vmatprep.mubr.f32.mxu0 %v16802_v58  ;;  %8725 = vmatpush3.msra.mxu1 %v16803_v9  ;;  %v8371_v49 = vpop.f32.mrf.mxu1  ;;  %v16811_v1 = vand.u32 4294901760, %v16810_v48  ;;  %v16812_v27 = vld [vmem:[#allocation7_spill] sm:$0xff] }
 0x17d   : > { %8757 = vmatpush3.msra.mxu0 %v16804_v56  ;;  %16805 = vst [vmem:[#allocation47_spill] sm:$0xff] %v12967_v11  ;;  %3655 = vmatmul.mubr.f32.gmra.mxu1 %v12867_v13  ;;  %v8322_v56 = vpop.f32.mrf.mxu0  ;;  %v16813_v16 = vld [vmem:[#allocation67_spill] sm:$0xff] }
 0x17e   : > { %3802 = vmatmul.mubr.f32.gmra.mxu0 %v16806_v41  ;;  %8726 = vmatprep.subr.mxu1 %v16807_v53  ;;  %v8372_v8 = vpop.f32.mrf.mxu1  ;;  %v16814_v33 = vand.u32 4294901760, %v16813_v16  ;;  %v8323_v11 = vadd.f32 %v8322_v56, %v8321_v23  ;;  %v16821_v16 = vand.u32 4294901760, %v12543_v4  ;;  %v16822_v56 = vld [vmem:[#allocation45_spill] sm:$0xff] }
 0x17f   : > { %8758 = vmatprep.subr.mxu0 %v16808_v61  ;;  %8727 = vmatpush3.msra.mxu1 %v16809_v15  ;;  %v8373_v13 = vadd.f32 %v8372_v8, %v8371_v49  ;;  %v16818_v61 = vld [vmem:[#allocation22_spill] sm:$0xff]  ;;  %v16823_v8 = vand.u32 4294901760, %v16822_v56  ;;  %v16832_v56 = vand.u32 4294901760, %v16802_v58  ;;  %v16841_v58 = vld [vmem:[#allocation33_spill] sm:$0xff] }
 0x180   : > { %8759 = vmatpush3.msra.mxu0 %v16811_v1  ;;  %8728 = vmatprep.subr.mxu1 %v16812_v27  ;;  %v16819_v40 = vand.u32 4294901760, %v16818_v61  ;;  %v1929_v48 = vadd.f32 %v8323_v11, %v12873_v31  ;;  %v16830_v61 = vld [vmem:[#allocation44_spill] sm:$0xff] }
 0x181   : > { %8760 = vmatprep.subr.mxu0 %v16814_v33  ;;  %3808 = vmatprep.mubr.f32.mxu0 %v16815_v52  ;;  %v12987_v1 = vadd.f32 %v8373_v13, %v1915_v17  ;;  %v8324_v23 = vpop.f32.mrf.mxu0  ;;  %v16824_v33 = vld [vmem:[#allocation40_spill] sm:$0xff]  ;;  %v16828_v17 = vld [vmem:[#allocation46_spill] sm:$0xff] }
 0x182   : > { %8729 = vmatpush3.msra.mxu1 %v16816_v37  ;;  %3960 = vmatprep.mubr.f32.mxu1 %v16817_v12  ;;  %v8374_v49 = vpop.f32.mrf.mxu1  ;;  %v16826_v12 = vand.u32 4294901760, %v16825_v57  ;;  %v16829_v11 = vand.u32 4294901760, %v16828_v17  ;;  %v16831_v37 = vld [vmem:[#allocation26_spill] sm:$0xff]  ;;  %v16837_v17 = vld [vmem:[#allocation27_spill] sm:$0xff] }
 0x183   : > { %8761 = vmatpush3.msra.mxu0 %v16819_v40  ;;  %3964 = vmatmul.mubr.f32.vlgmr.msra.gmra.mxu1 %v16821_v16  ;;  %v16827_v40 = vld [vmem:[#allocation10_spill] sm:$0xff]  ;;  %v8325_v31 = vpop.f32.mrf.mxu0 }
 0x184   : > { %3811 = vmatmul.mubr.f32.gmra.mxu0 %v16820_v63  ;;  %8762 = vmatprep.subr.mxu0 %v16823_v8  ;;  %v8375_v13 = vpop.f32.mrf.mxu1  ;;  %v8326_v4 = vadd.f32 %v8325_v31, %v8324_v23  ;;  %v16833_v8 = vld [vmem:[#allocation24_spill] sm:$0xff]  ;;  %v16835_v57 = vld [vmem:[#allocation30_spill] sm:$0xff]  ;;  %v16839_v31 = vld [vmem:[#allocation49_spill] sm:$0xff] }
 0x185   : > { %8810 = vmatprep.subr.mxu1 %v16824_v33  ;;  %8763 = vmatpush3.msra.mxu0 %v16826_v12  ;;  %v8376_v16 = vadd.f32 %v8375_v13, %v8374_v49  ;;  %v16834_v33 = vand.u32 4294901760, %v16833_v8  ;;  %v16840_v13 = vand.u32 4294901760, %v16839_v31  ;;  %v16844_v8 = vld [vmem:[#allocation18_spill] sm:$0xff]  ;;  %v16849_v31 = vand.u32 4294901760, %v16773_v32 }
 0x186   : > { %8811 = vmatpush3.msra.mxu1 %v16827_v40  ;;  %8764 = vmatprep.subr.mxu0 %v16829_v11  ;;  %v1936_v12 = vadd.f32 %v8326_v4, %v12900_v38  ;;  %v16838_v11 = vand.u32 4294901760, %v16806_v41  ;;  %v16845_v4 = vand.u32 4294901760, %v16769_v5  ;;  %v16851_v5 = vand.u32 4294901760, %v16820_v63 }
 0x187   : > { %8812 = vmatprep.subr.mxu1 %v16830_v61  ;;  %3817 = vmatprep.mubr.f32.mxu0 %v16831_v37  ;;  %v13008_v40 = vadd.f32 %v8376_v16, %v1922_v44  ;;  %v8327_v23 = vpop.f32.mrf.mxu0  ;;  %v16842_v61 = vld [vmem:[#allocation52_spill] sm:$0xff]  ;;  %v16846_v16 = vld [vmem:[#allocation6_spill] sm:$0xff] }
 0x188   : > { %3971 = vmatprep.mubr.f32.mxu1 %v16832_v56  ;;  %8765 = vmatpush3.msra.mxu0 %v16834_v33  ;;  %v8377_v49 = vpop.f32.mrf.mxu1  ;;  %v16843_v56 = vand.u32 4294901760, %v16842_v61  ;;  %v16850_v61 = vld [vmem:[#allocation60_spill] sm:$0xff] }
 0x189   : > { %8813 = vmatpush3.msra.mxu1 %v16835_v57  ;;  %16836 = vst [vmem:[#allocation53_spill] sm:$0xff] %v13008_v40  ;;  %3820 = vmatmul.mubr.f32.gmra.mxu0 %v16837_v17  ;;  %v8328_v38 = vpop.f32.mrf.mxu0  ;;  %v16847_v57 = vld [vmem:[#allocation12_spill] sm:$0xff] }
 0x18a   : > { %3975 = vmatmul.mubr.f32.gmra.mxu1 %v16838_v11  ;;  %8766 = vmatprep.subr.mxu0 %v16840_v13  ;;  %v8378_v44 = vpop.f32.mrf.mxu1  ;;  %v8329_v41 = vadd.f32 %v8328_v38, %v8327_v23  ;;  %v16848_v11 = vand.u32 4294901760, %v16815_v52  ;;  %v16854_v52 = vld [vmem:[#allocation64_spill] sm:$0xff]  ;;  %v16855_v38 = vld [vmem:[#allocation58_spill] sm:$0xff] }
 0x18b   : > { %8814 = vmatprep.subr.mxu1 %v16841_v58  ;;  %8767 = vmatpush3.msra.mxu0 %v16843_v56  ;;  %v8379_v33 = vadd.f32 %v8378_v44, %v8377_v49  ;;  %v16852_v56 = vld [vmem:[#allocation48_spill] sm:$0xff]  ;;  %v16856_v44 = vand.u32 4294901760, %v16855_v38 }
 0x18c   : > { %8815 = vmatpush3.msra.mxu1 %v16844_v8  ;;  %8768 = vmatprep.subr.mxu0 %v16845_v4  ;;  %v1943_v13 = vadd.f32 %v8329_v41, %v12920_v54  ;;  %v16853_v8 = vand.u32 4294901760, %v16852_v56  ;;  %v16859_v4 = vld [vmem:[#allocation50_spill] sm:$0xff]  ;;  %v16861_v41 = vld [vmem:[#allocation61_spill] sm:$0xff] }
 0x18d   : > { %8816 = vmatprep.subr.mxu1 %v16846_v16  ;;  %3826 = vmatprep.mubr.f32.mxu0 %v16847_v57  ;;  %v2082_v58 = vadd.f32 %v8379_v33, %v1929_v48  ;;  %v9524_v49 = vpop.f32.mrf.mxu0  ;;  %v16860_v63 = vand.u32 4294901760, %v16859_v4  ;;  %v16862_v33 = vand.u32 4294901760, %v16831_v37 }
 0x18e   : > { %3982 = vmatprep.mubr.f32.mxu1 %v16848_v11  ;;  %8769 = vmatpush3.msra.mxu0 %v16849_v31  ;;  %v8380_v23 = vpop.f32.mrf.mxu1  ;;  %v2197_v32 = vadd.f32 %v9524_v49, %v12948_v14  ;;  %v16863_v14 = vand.u32 4294901760, %v16784_v29  ;;  %v16865_v31 = vld [vmem:[#allocation72_spill] sm:$0xff]  ;;  %v16868_v29 = vand.u32 4294901760, %v12401_v30 }
 0x18f   : > { %8817 = vmatpush3.msra.mxu1 %v16774_v43  ;;  %3829 = vmatmul.mubr.f32.gmra.mxu0 %v16850_v61  ;;  %v16857_v43 = vld [vmem:[#allocation69_spill] sm:$0xff]  ;;  %v13039_v48 = vpop.f32.mrf.mxu0 }
 0x190   : > { %3986 = vmatmul.mubr.f32.gmra.mxu1 %v16851_v5  ;;  %8770 = vmatprep.subr.mxu0 %v16853_v8  ;;  %v8381_v54 = vpop.f32.mrf.mxu1  ;;  %16858 = vst [vmem:[#allocation43_spill] sm:$0xff] %v13039_v48  ;;  %v16866_v5 = vand.u32 4294901760, %v16837_v17  ;;  %v16870_v17 = vand.u32 4294901760, %v16788_v0  ;;  %v16875_v8 = vand.u32 4294901760, %v16850_v61 }
 0x191   : > { %8818 = vmatprep.subr.mxu1 %v16854_v52  ;;  %8771 = vmatpush3.msra.mxu0 %v16856_v44  ;;  %v8382_v16 = vadd.f32 %v8381_v54, %v8380_v23  ;;  %v16867_v23 = vand.u32 4294901760, %v12389_v6  ;;  %v16871_v6 = vld [vmem:[#allocation75_spill] sm:$0xff] }
 0x192   : > { %8819 = vmatpush3.msra.mxu1 %v16857_v43  ;;  %8772 = vmatprep.subr.mxu0 %v16860_v63  ;;  %v16885_v43 = vand.u32 4294901760, %v12618_v39  ;;  %v7989_v63 = vld [vmem:[%s15759_s6 + $0x2e8] sm:$0xff]  ;;  %v16888_v39 = vand.u32 4294901760, %v12649_v7 }
 0x193   : > { %8820 = vmatprep.subr.mxu1 %v16782_v55  ;;  %3835 = vmatprep.mubr.f32.mxu0 %v16861_v41  ;;  %v13050_v11 = vadd.f32 %v8382_v16, %v1936_v12  ;;  %v8383_v49 = vpop.f32.mrf.mxu1  ;;  %v13138_v7 = vand.u32 4294901760, %v7989_v63 }
 0x194   : > { %3993 = vmatprep.mubr.f32.mxu1 %v16862_v33  ;;  %8773 = vmatpush3.msra.mxu0 %v16863_v14  ;;  %v9527_v55 = vpop.f32.mrf.mxu0  ;;  %v16891_v33 = vld [vmem:[#allocation68_spill] sm:$0xff] }
 0x195   : > { %8821 = vmatpush3.msra.mxu1 %v16785_v47  ;;  %16864 = vst [vmem:[#allocation37_spill] sm:$0xff] %v13050_v11  ;;  %3838 = vmatmul.mubr.f32.gmra.mxu0 %v16865_v31  ;;  %v2217_v37 = vadd.f32 %v9527_v55, %v12987_v1  ;;  %v8384_v47 = vpop.f32.mrf.mxu1  ;;  %v16873_v1 = vand.u32 4294901760, %v12429_v50  ;;  %v16877_v50 = vand.u32 4294901760, %v12490_v42  ;;  %v16882_v42 = vand.u32 4294901760, %v16861_v41  ;;  %v7987_v55 = vld [vmem:[%s15759_s6 + $0x2d8] sm:$0xff] }
 0x196   : > { %3997 = vmatmul.mubr.f32.gmra.mxu1 %v16866_v5  ;;  %8774 = vmatprep.subr.mxu0 %v16867_v23  ;;  %v13062_v12 = vpop.f32.mrf.mxu0  ;;  %v8385_v56 = vadd.f32 %v8384_v47, %v8383_v49  ;;  %v16889_v41 = vand.u32 4294901760, %v16871_v6  ;;  %v7986_v47 = vld [vmem:[%s15759_s6 + $0x2d0] sm:$0xff] }
 0x197   : > { %8822 = vmatprep.subr.mxu1 %v16786_v21  ;;  %8775 = vmatpush3.msra.mxu0 %v16868_v29  ;;  %16869 = vst [vmem:[#allocation25_spill] sm:$0xff] %v13062_v12  ;;  %v16872_v21 = vand.u32 4294901760, %v16847_v57  ;;  %v16898_v29 = vld [vmem:[#allocation9_spill] sm:$0xff] }
 0x198   : > { %8823 = vmatpush3.msra.mxu1 %v16787_v28  ;;  %8776 = vmatprep.subr.mxu0 %v16870_v17  ;;  %v2096_v30 = vadd.f32 %v8385_v56, %v1943_v13  ;;  %v16874_v28 = vld [vmem:[#allocation77_spill] sm:$0xff] }
 0x199   : > { %8824 = vmatprep.subr.mxu1 %v16789_v35  ;;  %3844 = vmatprep.mubr.f32.mxu0 %v16871_v6  ;;  %v9568_v52 = vpop.f32.mrf.mxu1  ;;  %v16876_v35 = vand.u32 4294901760, %v12547_v3  ;;  %v16880_v3 = vand.u32 4294901760, %v12570_v18  ;;  %v16892_v14 = vand.u32 4294901760, %v16874_v28 }
 0x19a   : > { %4004 = vmatprep.mubr.f32.mxu1 %v16872_v21  ;;  %8777 = vmatpush3.msra.mxu0 %v16873_v1  ;;  %v9530_v0 = vpop.f32.mrf.mxu0  ;;  %v13079_v38 = vadd.f32 %v9568_v52, %v2197_v32  ;;  %v16899_v21 = vand.u32 4294901760, %v12889_v62  ;;  %v16900_v1 = vld [vmem:[#allocation31_spill] sm:$0xff] }
 0x19b   : > { %8825 = vmatpush3.msra.mxu1 %v16791_v19  ;;  %3847 = vmatmul.mubr.f32.gmra.mxu0 %v16874_v28  ;;  %v2237_v57 = vadd.f32 %v9530_v0, %v2082_v58  ;;  %v7991_v19 = vld [vmem:[%s15759_s6 + $0x2f8] sm:$0xff]  ;;  %v13089_v61 = vpop.f32.mrf.mxu1  ;;  %v16883_v58 = vand.u32 4294901760, %v12505_v10 }
 0x19c   : > { %4008 = vmatmul.mubr.f32.gmra.mxu1 %v16875_v8  ;;  %8778 = vmatprep.subr.mxu0 %v16876_v35  ;;  %v13087_v13 = vpop.f32.mrf.mxu0  ;;  %16879 = vst [vmem:[#allocation28_spill] sm:$0xff] %v13089_v61  ;;  %v13103_v32 = vand.u32 4294901760, %v7991_v19  ;;  %v16903_v35 = vld [vmem:[#allocation13_spill] sm:$0xff] }
 0x19d   : > { %8826 = vmatprep.subr.mxu1 %v16792_v59  ;;  %8779 = vmatpush3.msra.mxu0 %v16877_v50  ;;  %16878 = vst [vmem:[#allocation65_spill] sm:$0xff] %v13087_v13  ;;  %v16881_v59 = vld [vmem:[#allocation55_spill] sm:$0xff] }
 0x19e   : > { %8827 = vmatpush3.msra.mxu1 %v16793_v36  ;;  %8780 = vmatprep.subr.mxu0 %v16880_v3  ;;  %v7990_v36 = vld [vmem:[%s15759_s6 + $0x2f0] sm:$0xff] }
 0x19f   : > { %8828 = vmatprep.subr.mxu1 %v12256_v25  ;;  %3853 = vmatprep.mubr.f32.mxu0 %v16881_v59  ;;  %v16884_v25 = vand.u32 4294901760, %v16865_v31  ;;  %v9533_v18 = vpop.f32.mrf.mxu0  ;;  %v13111_v54 = vand.u32 4294901760, %v7990_v36  ;;  %v16893_v31 = vld [vmem:[#allocation16_spill] sm:$0xff] }
 0x1a0   : > { %4015 = vmatprep.mubr.f32.mxu1 %v16882_v42  ;;  %8781 = vmatpush3.msra.mxu0 %v16883_v58  ;;  %v9571_v44 = vpop.f32.mrf.mxu1  ;;  %v2257_v10 = vadd.f32 %v9533_v18, %v2096_v30  ;;  %v7983_v58 = vld [vmem:[%s15759_s6 + $0x2b8] sm:$0xff]  ;;  %v7982_v18 = vld [vmem:[%s15759_s6 + $0x2b0] sm:$0xff] }
 0x1a1   : > { %8829 = vmatpush3.msra.mxu1 %v12264_v24  ;;  %3856 = vmatmul.mubr.f32.gmra.mxu0 %v12889_v62  ;;  %v13113_v4 = vadd.f32 %v9571_v44, %v2217_v37  ;;  %v16886_v24 = vand.u32 4294901760, %v12562_v22  ;;  %v16890_v22 = vand.u32 4294901760, %v12598_v20  ;;  %v13168_v37 = vsub.f32 %v7989_v63, %v13138_v7  ;;  %v7985_v62 = vld [vmem:[%s15759_s6 + $0x2c8] sm:$0xff]  ;;  %v693_v63 = vld [vmem:[%s12395_s20 + $0x18] sm:$0x1] }
 0x1a2   : > { %4019 = vmatmul.mubr.f32.gmra.mxu1 %v16884_v25  ;;  %8782 = vmatprep.subr.mxu0 %v16885_v43  ;;  %v13121_v16 = vpop.f32.mrf.mxu1  ;;  %v13219_v50 = vand.u32 4294901760, %v7985_v62 }
 0x1a3   : > { %8830 = vmatprep.subr.mxu1 %v12319_v34  ;;  %8783 = vmatpush3.msra.mxu0 %v16886_v24  ;;  %16887 = vst [vmem:[#allocation39_spill] sm:$0xff] %v13121_v16  ;;  %v13127_v34 = vsub.f32 %v7991_v19, %v13103_v32  ;;  %v13197_v8 = vand.u32 4294901760, %v13168_v37  ;;  %v13250_v24 = vpop.f32.mrf.mxu0 }
 0x1a4   : > { %8831 = vmatpush3.msra.mxu1 %v12331_v46  ;;  %8784 = vmatprep.subr.mxu0 %v16888_v39  ;;  %v7988_v46 = vld [vmem:[%s15759_s6 + $0x2e0] sm:$0xff]  ;;  %16909 = vst [vmem:[#allocation14_spill] sm:$0xff] %v13250_v24  ;;  %v16910_v39 = vld [vmem:[#allocation21_spill] sm:$0xff] }
 0x1a5   : > { %8832 = vmatprep.subr.mxu1 %v12345_v51  ;;  %4026 = vmatprep.mubr.f32.mxu1 %v16889_v41  ;;  %v13141_v51 = vsub.f32 %v7990_v36, %v13111_v54  ;;  %v9574_v20 = vpop.f32.mrf.mxu1  ;;  %v13148_v5 = vand.u32 4294901760, %v7988_v46  ;;  %v13151_v49 = vand.u32 4294901760, %v13127_v34  ;;  %16901 = vst [vmem:[#allocation63_spill] sm:$0xff] %v13197_v8  ;;  %v4595_v19 = vsub.f32 %v13168_v37, %v13197_v8  ;;  %v10344_v24 = vld [vmem:[%s12395_s20 + $0x20] sm:$0xff] }
 0x1a6   : > { %8785 = vmatpush3.msra.mxu0 %v16890_v22  ;;  %4207 = vmatprep.mubr.f32.mxu0 %v16891_v33  ;;  %v13255_v41 = vand.u32 4294901760, %v7983_v58  ;;  %v13257_v22 = vand.u32 4294901760, %v7982_v18  ;;  %v3079_v11 = vrot.slane %v10344_v24, 1 }
 0x1a7   : > { %8833 = vmatpush3.msra.mxu1 %v12352_v26  ;;  %4209 = vmatmul.mubr.f32.vlgmr.msra.gmra.mxu0 %v16893_v31  ;;  %16894 = vst [vmem:[#allocation42_spill] sm:$0xff] %v13151_v49  ;;  %v13153_v26 = vadd.f32 %v9574_v20, %v2237_v57  ;;  %v13160_v23 = vpop.f32.mrf.mxu1  ;;  %v4581_v17 = vsub.f32 %v13127_v34, %v13151_v49  ;;  %v7984_v57 = vld [vmem:[%s15759_s6 + $0x2c0] sm:$0xff]  ;;  %v4596_v44 = vand.u32 4294901760, %v4595_v19 }
 0x1a8   : > { %4030 = vmatmul.mubr.f32.gmra.mxu1 %v16892_v14  ;;  %8834 = vmatprep.subr.mxu1 %v16795_v45  ;;  %16895 = vst [vmem:[#allocation41_spill] sm:$0xff] %v13160_v23  ;;  %v13165_v45 = vand.u32 4294901760, %v13141_v51  ;;  %v13183_v56 = vsub.f32 %v7988_v46, %v13148_v5  ;;  %v13229_v42 = vand.u32 4294901760, %v7984_v57  ;;  %16911 = vst [vmem:[#allocation20_spill] sm:$0xff] %v13255_v41  ;;  %v7979_v23 = vld [vmem:[%s15759_s6 + $0x298] sm:$0xff] }
 0x1a9   : > { %9754 = vmatprep.subr.mxu0 %v13103_v32  ;;  %8835 = vmatpush3.msra.mxu1 %v16797_v60  ;;  %v16897_v60 = vand.u32 4294901760, %v16881_v59  ;;  %v16905_v59 = vld [vmem:[#allocation15_spill] sm:$0xff]  ;;  %16912 = vst [vmem:[#allocation8_spill] sm:$0xff] %v13257_v22 }
 0x1aa   : > { %9755 = vmatpush3.msra.mxu0 %v13103_v32  ;;  %8836 = vmatprep.subr.mxu1 %v16800_v2  ;;  %16896 = vst [vmem:[#allocation56_spill] sm:$0xff] %v13165_v45  ;;  %v13178_v2 = vand.u32 4294901760, %v7987_v55  ;;  %v9577_v6 = vpop.f32.mrf.mxu1  ;;  %v4588_v28 = vsub.f32 %v13141_v51, %v13165_v45  ;;  %v13207_v0 = vand.u32 4294901760, %v13183_v56  ;;  %16906 = vst [vmem:[#allocation70_spill] sm:$0xff] %v13229_v42 }
 0x1ab   : > { %9756 = vmatprep.subr.mxu0 %v13111_v54  ;;  %4037 = vmatprep.mubr.f32.mxu1 %v16897_v60  ;;  %v13188_v30 = vadd.f32 %v9577_v6, %v2257_v10  ;;  %v13248_v10 = vsub.f32 %v7985_v62, %v13219_v50  ;;  %v13263_v14 = vsub.f32 %v7984_v57, %v13229_v42 }
 0x1ac   : > { %4214 = vmatprep.mubr.f32.mxu0 %v16898_v29  ;;  %8837 = vmatpush3.msra.mxu1 %v16803_v9  ;;  %v13192_v9 = vand.u32 4294901760, %v7986_v47  ;;  %16902 = vst [vmem:[#allocation32_spill] sm:$0xff] %v13207_v0  ;;  %v13210_v52 = vsub.f32 %v7987_v55, %v13178_v2  ;;  %v4602_v36 = vsub.f32 %v13183_v56, %v13207_v0  ;;  %v16913_v55 = vld [vmem:[#allocation38_spill] sm:$0xff]  ;;  %v13340_v24 = vpop.f32.mrf.mxu1 }
 0x1ad   : > { %9757 = vmatpush3.msra.mxu0 %v13111_v54  ;;  %4041 = vmatmul.mubr.f32.gmra.mxu1 %v16899_v21  ;;  %v7981_v21 = vld [vmem:[%s15759_s6 + $0x2a8] sm:$0xff]  ;;  %v13288_v62 = vsub.f32 %v7983_v58, %v13255_v41  ;;  %16924 = vst [vmem:[#allocation23_spill] sm:$0xff] %v13340_v24 }
 0x1ae   : > { %4216 = vmatmul.mubr.f32.gmra.mxu0 %v16900_v1  ;;  %8838 = vmatprep.subr.mxu1 %v16807_v53  ;;  %v4582_v53 = vand.u32 4294901760, %v4581_v17  ;;  %v13224_v3 = vsub.f32 %v7986_v47, %v13192_v9  ;;  %v13237_v25 = vand.u32 4294901760, %v13210_v52  ;;  %v4603_v46 = vand.u32 4294901760, %v4602_v36 }
 0x1af   : > { %9758 = vmatprep.subr.mxu0 %v13138_v7  ;;  %8839 = vmatpush3.msra.mxu1 %v16809_v15  ;;  %v16904_v15 = vld [vmem:[#allocation29_spill] sm:$0xff]  ;;  %v3077_v17 = vrot.slane %v693_v63, 1  ;;  %v13296_v36 = vand.u32 4294901760, %v13263_v14  ;;  %v13300_v58 = vand.u32 4294901760, %v7981_v21 }
 0x1b0   : > { %9759 = vmatpush3.msra.mxu0 %v13138_v7  ;;  %8840 = vmatprep.subr.mxu1 %v16812_v27  ;;  %v4589_v27 = vand.u32 4294901760, %v4588_v28  ;;  %16907 = vst [vmem:[#allocation11_spill] sm:$0xff] %v13237_v25  ;;  %v13245_v43 = vand.u32 4294901760, %v13224_v3  ;;  %v13279_v28 = vand.u32 4294901760, %v13248_v10 }
 0x1b1   : > { %9760 = vmatprep.subr.mxu0 %v13148_v5  ;;  %4221 = vmatprep.mubr.f32.mxu0 %v16903_v35  ;;  %16916 = vst [vmem:[#allocation67_spill] sm:$0xff] %v13296_v36  ;;  %16918 = vst [vmem:[#allocation17_spill] sm:$0xff] %v13300_v58 }
 0x1b2   : > { %8841 = vmatpush3.msra.mxu1 %v16904_v15  ;;  %4360 = vmatprep.mubr.f32.mxu1 %v16891_v33  ;;  %16908 = vst [vmem:[#allocation66_spill] sm:$0xff] %v13245_v43  ;;  %v4609_v33 = vsub.f32 %v13210_v52, %v13237_v25  ;;  %v4616_v6 = vsub.f32 %v13224_v3, %v13245_v43  ;;  %16914 = vst [vmem:[#allocation59_spill] sm:$0xff] %v13279_v28  ;;  %v10343_v15 = vld [vmem:[%s12395_s20] sm:$0xff]  ;;  %v701_v43 = vld [vmem:[%s12395_s20 + $0x58] sm:$0x1] }
 0x1b3   : > { %9761 = vmatpush3.msra.mxu0 %v13148_v5  ;;  %4362 = vmatmul.mubr.f32.vlgmr.msra.gmra.mxu1 %v16893_v31  ;;  %v691_v31 = vld [vmem:[%s12395_s20 + $0x8] sm:$0x1]  ;;  %v3073_v57 = vrot.slane %v10343_v15, 1  ;;  %v16920_v15 = vld [vmem:[#allocation34_spill] sm:$0xff] }
 0x1b4   : > { %4223 = vmatmul.mubr.f32.gmra.mxu0 %v16905_v59  ;;  %9762 = vmatprep.subr.mxu0 %v13178_v2  ;;  %v4610_v19 = vand.u32 4294901760, %v4609_v33  ;;  %v4623_v33 = vsub.f32 %v13248_v10, %v13279_v28 }
 0x1b5   : > { %9798 = vmatprep.subr.mxu1 %v4582_v53  ;;  %9763 = vmatpush3.msra.mxu0 %v13178_v2 }
 0x1b6   : > { %9799 = vmatpush3.msra.mxu1 %v4582_v53  ;;  %9764 = vmatprep.subr.mxu0 %v13192_v9  ;;  %v13291_v53 = vsub.f32 %v7982_v18, %v13257_v22  ;;  %v695_v18 = vld [vmem:[%s12395_s20 + $0x28] sm:$0x1] }
 0x1b7   : > { %9800 = vmatprep.subr.mxu1 %v4589_v27  ;;  %4228 = vmatprep.mubr.f32.mxu0 %v16910_v39  ;;  %v9612_v20 = vpop.f32.mrf.mxu0  ;;  %v3080_v13 = vrot.slane %v695_v18, 1  ;;  %v4624_v18 = vand.u32 4294901760, %v4623_v33 }
 0x1b8   : > { %4367 = vmatprep.mubr.f32.mxu1 %v16898_v29  ;;  %9765 = vmatpush3.msra.mxu0 %v13192_v9  ;;  %v13269_v60 = vadd.f32 %v9612_v20, %v13079_v38  ;;  %v10342_v29 = vld [vmem:[%s12395_s20 + $0x10] sm:$0xff]  ;;  %v7980_v38 = vld [vmem:[%s15759_s6 + $0x2a0] sm:$0xff] }
 0x1b9   : > { %9801 = vmatpush3.msra.mxu1 %v4589_v27  ;;  %4230 = vmatmul.mubr.f32.gmra.mxu0 %v16913_v55  ;;  %v3076_v47 = vrot.slane %v10342_v29, 1  ;;  %v3074_v27 = vrot.slane %v691_v31, 1  ;;  %v4617_v31 = vand.u32 4294901760, %v4616_v6  ;;  %v13309_v20 = vand.u32 4294901760, %v7980_v38 }
 0x1ba   : > { %4369 = vmatmul.mubr.f32.gmra.mxu1 %v16900_v1  ;;  %9766 = vmatprep.subr.mxu0 %v13219_v50  ;;  %v13281_v1 = vpop.f32.mrf.mxu0  ;;  %v3081_v48 = vsel %vm756_vm0, %v3079_v11, %v3080_v13  ;;  %v10346_v11 = vld [vmem:[%s12395_s20 + $0x40] sm:$0xff] }
 0x1bb   : > { %9802 = vmatprep.subr.mxu1 %v4596_v44  ;;  %16915 = vst [vmem:[#allocation7_spill] sm:$0xff] %v13281_v1  ;;  %9767 = vmatpush3.msra.mxu0 %v13219_v50  ;;  %v13304_v63 = vsel %vm756_vm0, %v3076_v47, %v3077_v17  ;;  %16919 = vst [vmem:[#allocation22_spill] sm:$0xff] %v13309_v20  ;;  %v13317_v47 = vand.u32 4294901760, %v13291_v53  ;;  %v3075_v17 = vsel %vm756_vm0, %v3073_v57, %v3074_v27  ;;  %v10345_v27 = vld [vmem:[%s12395_s20 + $0x30] sm:$0xff]  ;;  %v699_v1 = vld [vmem:[%s12395_s20 + $0x48] sm:$0x1] }
 0x1bc   : > { %9803 = vmatpush3.msra.mxu1 %v4596_v44  ;;  %9768 = vmatprep.subr.mxu0 %v13229_v42  ;;  %v16917_v44 = vld [vmem:[#allocation36_spill] sm:$0xff]  ;;  %v9615_v29 = vpop.f32.mrf.mxu0  ;;  %v13334_v57 = vand.u32 4294901760, %v13304_v63  ;;  %v13347_v16 = vand.u32 4294901760, %v3075_v17  ;;  %v13358_v24 = vsub.f32 %v7980_v38, %v13309_v20  ;;  %v3085_v13 = vrot.slane %v10346_v11, 1 }
 0x1bd   : > { %9804 = vmatprep.subr.mxu1 %v4603_v46  ;;  %4235 = vmatprep.mubr.f32.mxu0 %v16917_v44  ;;  %16922 = vst [vmem:[#allocation45_spill] sm:$0xff] %v13317_v47  ;;  %v13322_v6 = vadd.f32 %v9615_v29, %v13113_v4  ;;  %v13338_v4 = vsub.f32 %v7981_v21, %v13300_v58  ;;  %v3082_v29 = vrot.slane %v10345_v27, 1  ;;  %v13351_v21 = vand.u32 4294901760, %v7979_v23 }
 0x1be   : > { %4374 = vmatprep.mubr.f32.mxu1 %v16903_v35  ;;  %9769 = vmatpush3.msra.mxu0 %v13229_v42  ;;  %v13314_v35 = vand.u32 4294901760, %v13288_v62  ;;  %v13331_v40 = vpop.f32.mrf.mxu0  ;;  %v4644_v33 = vsub.f32 %v13291_v53, %v13317_v47  ;;  %v16927_v47 = vld [vmem:[#allocation54_spill] sm:$0xff]  ;;  %v13399_v25 = vand.u32 4294901760, %v3081_v48 }
 0x1bf   : > { %9805 = vmatpush3.msra.mxu1 %v4603_v46  ;;  %4237 = vmatmul.mubr.f32.gmra.mxu0 %v16920_v15  ;;  %v697_v46 = vld [vmem:[%s12395_s20 + $0x38] sm:$0x1]  ;;  %16923 = vst [vmem:[#allocation40_spill] sm:$0xff] %v13331_v40  ;;  %v7978_v40 = vld [vmem:[%s15759_s6 + $0x290] sm:$0xff]  ;;  %16926 = vst [vmem:[#allocation10_spill] sm:$0xff] %v13351_v21  ;;  %v13374_v28 = vand.u32 4294901760, %v13338_v4  ;;  %v13397_v11 = vsub.f32 %v7979_v23, %v13351_v21 }
 0x1c0   : > { %4376 = vmatmul.mubr.f32.gmra.mxu1 %v16905_v59  ;;  %16921 = vst [vmem:[#allocation19_spill] sm:$0xff] %v13314_v35  ;;  %9770 = vmatprep.subr.mxu0 %v13255_v41  ;;  %v4630_v59 = vsub.f32 %v13263_v14, %v13296_v36  ;;  %v3083_v12 = vrot.slane %v697_v46, 1  ;;  %v4637_v27 = vsub.f32 %v13288_v62, %v13314_v35  ;;  %v13371_v38 = vand.u32 4294901760, %v7978_v40 }
 0x1c1   : > { %9806 = vmatprep.subr.mxu1 %v4610_v19  ;;  %9771 = vmatpush3.msra.mxu0 %v13255_v41  ;;  %v9656_v46 = vpop.f32.mrf.mxu1  ;;  %16929 = vst [vmem:[#allocation44_spill] sm:$0xff] %v13374_v28  ;;  %v4651_v23 = vsub.f32 %v13338_v4, %v13374_v28 }
 0x1c2   : > { %9807 = vmatpush3.msra.mxu1 %v4610_v19  ;;  %9772 = vmatprep.subr.mxu0 %v13257_v22  ;;  %v16925_v19 = vld [vmem:[#allocation51_spill] sm:$0xff]  ;;  %v9618_v61 = vpop.f32.mrf.mxu0  ;;  %v13367_v35 = vadd.f32 %v9656_v46, %v13269_v60  ;;  %16928 = vst [vmem:[#allocation46_spill] sm:$0xff] %v13371_v38  ;;  %v3086_v60 = vrot.slane %v699_v1, 1  ;;  %v13392_v46 = vsub.f32 %v13304_v63, %v13334_v57  ;;  %v4645_v1 = vand.u32 4294901760, %v4644_v33 }
 0x1c3   : > { %9808 = vmatprep.subr.mxu1 %v4617_v31  ;;  %4242 = vmatprep.mubr.f32.mxu0 %v16925_v19  ;;  %v13364_v36 = vadd.f32 %v9618_v61, %v13153_v26  ;;  %v7977_v61 = vld [vmem:[%s15759_s6 + $0x288] sm:$0xff]  ;;  %v13387_v26 = vsub.f32 %v3075_v17, %v13347_v16  ;;  %v13403_v17 = vand.u32 4294901760, %v13358_v24  ;;  %v3089_v63 = vrot.slane %v701_v43, 1 }
 0x1c4   : > { %4381 = vmatprep.mubr.f32.mxu1 %v16910_v39  ;;  %9773 = vmatpush3.msra.mxu0 %v13257_v22  ;;  %v4631_v39 = vand.u32 4294901760, %v4630_v59  ;;  %v13379_v59 = vpop.f32.mrf.mxu1  ;;  %v703_v43 = vld [vmem:[%s12395_s20 + $0x68] sm:$0x1]  ;;  %v3087_v28 = vsel %vm756_vm0, %v3085_v13, %v3086_v60  ;;  %v16937_v22 = vld [vmem:[#allocation74_spill] sm:$0xff]  ;;  %v705_v13 = vld [vmem:[%s12395_s20 + $0x78] sm:$0x1] }
 0x1c5   : > { %9809 = vmatpush3.msra.mxu1 %v4617_v31  ;;  %4244 = vmatmul.mubr.f32.gmra.mxu0 %v16927_v47  ;;  %v13377_v31 = vpop.f32.mrf.mxu0  ;;  %16931 = vst [vmem:[#allocation24_spill] sm:$0xff] %v13379_v59  ;;  %16932 = vst [vmem:[#allocation30_spill] sm:$0xff] %v13387_v26  ;;  %v16940_v60 = vld [vmem:[#allocation76_spill] sm:$0xff]  ;;  %s8049_s20 = sshll.u32 %s10422_s30, 10  ;;  %s15708_s30 = scalar_lea.sflag [#allocation4], %s537_s12 }
 0x1c6   : > { %4383 = vmatmul.mubr.f32.gmra.mxu1 %v16913_v55  ;;  %16930 = vst [vmem:[#allocation26_spill] sm:$0xff] %v13377_v31  ;;  %9774 = vmatprep.subr.mxu0 %v13300_v58  ;;  %v3084_v55 = vsel %vm756_vm0, %v3082_v29, %v3083_v12  ;;  %v16933_v31 = vld [vmem:[#allocation35_spill] sm:$0xff]  ;;  %v4638_v12 = vand.u32 4294901760, %v4637_v27  ;;  %16934 = vst [vmem:[#allocation27_spill] sm:$0xff] %v13403_v17  ;;  %v16935_v29 = vld [vmem:[#allocation73_spill] sm:$0xff]  ;;  %v13415_v27 = vsub.f32 %v7978_v40, %v13371_v38 }
 0x1c7   : > { %9810 = vmatprep.subr.mxu1 %v4624_v18  ;;  %v3088_v59 = vrot.slane %v16933_v31, 1  ;;  %9775 = vmatpush3.msra.mxu0 %v13300_v58  ;;  %v7976_v31 = vld [vmem:[%s15759_s6 + $0x280] sm:$0xff]  ;;  %v13417_v33 = vand.u32 4294901760, %v3084_v55  ;;  %v9621_v0 = vpop.f32.mrf.mxu0  ;;  %v16936_v40 = vld [vmem:[#allocation71_spill] sm:$0xff] }
 0x1c8   : > { %9811 = vmatpush3.msra.mxu1 %v4624_v18  ;;  %9776 = vmatprep.subr.mxu0 %v13309_v20  ;;  %v13407_v18 = vand.u32 4294901760, %v7977_v61  ;;  %v9659_v8 = vpop.f32.mrf.mxu1  ;;  %v13424_v45 = vadd.f32 %v9621_v0, %v13188_v30  ;;  %v3091_v58 = vrot.slane %v16936_v40, 1  ;;  %v4658_v0 = vsub.f32 %v13358_v24, %v13403_v17 }
 0x1c9   : > { %9812 = vmatprep.subr.mxu1 %v4631_v39  ;;  %4249 = vmatprep.mubr.f32.mxu0 %v16935_v29  ;;  %v13427_v49 = vadd.f32 %v9659_v8, %v13322_v6  ;;  %v13443_v8 = vand.u32 4294901760, %v7976_v31  ;;  %v3092_v6 = vrot.slane %v703_v43, 1  ;;  %v3094_v40 = vrot.slane %v16940_v60, 1 }
 0x1ca   : > { %4388 = vmatprep.mubr.f32.mxu1 %v16917_v44  ;;  %9777 = vmatpush3.msra.mxu0 %v13309_v20  ;;  %v13437_v44 = vsub.f32 %v3081_v48, %v13399_v25  ;;  %v13440_v30 = vpop.f32.mrf.mxu1  ;;  %v4652_v48 = vand.u32 4294901760, %v4651_v23  ;;  %v13451_v41 = vsub.f32 %v3084_v55, %v13417_v33  ;;  %v16941_v20 = vand.u32 4294901760, %v13387_v26  ;;  %v16943_v23 = vld [vmem:[#allocation78_spill] sm:$0xff] }
 0x1cb   : > { %9813 = vmatpush3.msra.mxu1 %v4631_v39  ;;  %4251 = vmatmul.mubr.f32.gmra.mxu0 %v16937_v22  ;;  %v13434_v39 = vand.u32 4294901760, %v13397_v11  ;;  %16939 = vst [vmem:[#allocation33_spill] sm:$0xff] %v13440_v30  ;;  %v13453_v30 = vand.u32 4294901760, %v3087_v28  ;;  %v16944_v55 = vand.u32 4294901760, %v13392_v46 }
 0x1cc   : > { %4390 = vmatmul.mubr.f32.gmra.mxu1 %v16920_v15  ;;  %9778 = vmatprep.subr.mxu0 %v13351_v21  ;;  %v3090_v15 = vsel %vm756_vm0, %v3088_v59, %v3089_v63  ;;  %v4500_v17 = vsub.f32 %v13387_v26, %v16941_v20  ;;  %v13460_v59 = vand.u32 4294901760, %v13415_v27  ;;  %v13463_v63 = vsub.f32 %v7977_v61, %v13407_v18 }
 0x1cd   : > { %16938 = vst [vmem:[#allocation49_spill] sm:$0xff] %v13434_v39  ;;  %9814 = vmatprep.subr.mxu1 %v4638_v12  ;;  %9779 = vmatpush3.msra.mxu0 %v13351_v21  ;;  %v4510_v43 = vsub.f32 %v13392_v46, %v16944_v55  ;;  %v4665_v60 = vsub.f32 %v13397_v11, %v13434_v39  ;;  %v13473_v21 = vand.u32 4294901760, %v3090_v15  ;;  %v9662_v26 = vpop.f32.mrf.mxu1  ;;  %v4659_v61 = vand.u32 4294901760, %v4658_v0  ;;  %v16945_v55 = vld [vmem:[#allocation57_spill] sm:$0xff] }
 0x1ce   : > { %9815 = vmatpush3.msra.mxu1 %v4638_v12  ;;  %9780 = vmatprep.subr.mxu0 %v13371_v38  ;;  %16942 = vst [vmem:[#allocation52_spill] sm:$0xff] %v13460_v59  ;;  %v3095_v12 = vrot.slane %v705_v13, 1  ;;  %v13477_v13 = vsub.f32 %v7976_v31, %v13443_v8  ;;  %v13481_v42 = vadd.f32 %v9662_v26, %v13364_v36  ;;  %v13495_v36 = vand.u32 4294901760, %v13463_v63 }
 0x1cf   : > { %9816 = vmatprep.subr.mxu1 %v4645_v1  ;;  %4256 = vmatprep.mubr.f32.mxu0 %v16943_v23  ;;  %v13487_v39 = vsub.f32 %v3087_v28, %v13453_v30  ;;  %v16947_v28 = vand.u32 4294901760, %v13437_v44  ;;  %v13503_v0 = vsub.f32 %v3090_v15, %v13473_v21 }
 0x1d0   : > { %4395 = vmatprep.mubr.f32.mxu1 %v16925_v19  ;;  %9781 = vmatpush3.msra.mxu0 %v13371_v38  ;;  %v3093_v19 = vsel %vm756_vm0, %v3091_v58, %v3092_v6  ;;  %v13489_v38 = vpop.f32.mrf.mxu1  ;;  %v4672_v58 = vsub.f32 %v13415_v27, %v13460_v59  ;;  %v3096_v26 = vsel %vm756_vm0, %v3094_v40, %v3095_v12  ;;  %v4666_v6 = vand.u32 4294901760, %v4665_v60 }
 0x1d1   : > { %9817 = vmatpush3.msra.mxu1 %v4645_v1  ;;  %4258 = vmatmul.mubr.f32.gmra.mxu0 %v16945_v55  ;;  %16946 = vst [vmem:[#allocation18_spill] sm:$0xff] %v13489_v38  ;;  %v4501_v1 = vand.u32 4294901760, %v4500_v17  ;;  %v4520_v31 = vsub.f32 %v13437_v44, %v16947_v28  ;;  %v13505_v17 = vand.u32 4294901760, %v3093_v19  ;;  %v13509_v20 = vand.u32 4294901760, %v13477_v13 }
 0x1d2   : > { %4397 = vmatmul.mubr.f32.gmra.mxu1 %v16927_v47  ;;  %9782 = vmatprep.subr.mxu0 %v13407_v18  ;;  %v4511_v47 = vand.u32 4294901760, %v4510_v43  ;;  %v9665_v40 = vpop.f32.mrf.mxu1  ;;  %v4539_v15 = vand.u32 4294901760, %v13487_v39  ;;  %v13517_v43 = vand.u32 4294901760, %v3096_v26  ;;  %v4673_v60 = vand.u32 4294901760, %v4672_v58 }
 0x1d3   : > { %9818 = vmatprep.subr.mxu1 %v4652_v48  ;;  %9783 = vmatpush3.msra.mxu0 %v13407_v18  ;;  %v13520_v28 = vadd.f32 %v9665_v40, %v13424_v45  ;;  %v4679_v38 = vsub.f32 %v13463_v63, %v13495_v36  ;;  %v4549_v59 = vand.u32 4294901760, %v13503_v0  ;;  %v4686_v45 = vsub.f32 %v13477_v13, %v13509_v20 }
 0x1d4   : > { %9819 = vmatpush3.msra.mxu1 %v4652_v48  ;;  %9784 = vmatprep.subr.mxu0 %v13443_v8  ;;  %v16948_v48 = vand.u32 4294901760, %v13451_v41 }
 0x1d5   : > { %9820 = vmatprep.subr.mxu1 %v4659_v61  ;;  %4402 = vmatprep.mubr.f32.mxu1 %v16935_v29  ;;  %v4521_v29 = vand.u32 4294901760, %v4520_v31  ;;  %v4550_v58 = vsub.f32 %v13503_v0, %v4549_v59 }
 0x1d6   : > { %9785 = vmatpush3.msra.mxu0 %v13443_v8  ;;  %v4530_v12 = vsub.f32 %v13451_v41, %v16948_v48  ;;  %9786 = vmatprep.mubr.f32.mxu0 %v4501_v1  ;;  %v13527_v48 = vsub.f32 %v3093_v19, %v13505_v17  ;;  %v13537_v1 = vsub.f32 %v3096_v26, %v13517_v43  ;;  %v4680_v19 = vand.u32 4294901760, %v4679_v38  ;;  %v13549_v38 = vpop.f32.mrf.mxu0 }
 0x1d7   : > { %9821 = vmatpush3.msra.mxu1 %v4659_v61  ;;  %9787 = vmatmul.mubr.f32.vlgmr.msra.gmra.mxu0 %v4511_v47  ;;  %v4687_v47 = vand.u32 4294901760, %v4686_v45  ;;  %16949 = vst [vmem:[#allocation6_spill] sm:$0xff] %v13549_v38 }
 0x1d8   : > { %4404 = vmatmul.mubr.f32.gmra.mxu1 %v16937_v22  ;;  %9822 = vmatprep.subr.mxu1 %v4666_v6  ;;  %v4531_v61 = vand.u32 4294901760, %v4530_v12  ;;  %v4540_v22 = vsub.f32 %v13487_v39, %v4539_v15  ;;  %v16161_v31 = vand.u32 4294901760, %v13537_v1 }
 0x1d9   : > { %9842 = vmatprep.subr.mxu0 %v13127_v34  ;;  %9823 = vmatpush3.msra.mxu1 %v4666_v6 }
 0x1da   : > { %9843 = vmatpush3.msra.mxu0 %v13127_v34  ;;  %9824 = vmatprep.subr.mxu1 %v4673_v60  ;;  %v4559_v34 = vand.u32 4294901760, %v13527_v48  ;;  %v4541_v26 = vand.u32 4294901760, %v4540_v22  ;;  %v4570_v6 = vsub.f32 %v13537_v1, %v16161_v31 }
 0x1db   : > { %9844 = vmatprep.subr.mxu0 %v13141_v51  ;;  %4409 = vmatprep.mubr.f32.mxu1 %v16943_v23  ;;  %v4551_v23 = vand.u32 4294901760, %v4550_v58 }
 0x1dc   : > { %9789 = vmatprep.mubr.f32.mxu0 %v4521_v29  ;;  %9825 = vmatpush3.msra.mxu1 %v4673_v60  ;;  %v4571_v60 = vand.u32 4294901760, %v4570_v6  ;;  %v16967_v6 = vld [vmem:[#allocation10_spill] sm:$0xff] }
 0x1dd   : > { %9845 = vmatpush3.msra.mxu0 %v13141_v51  ;;  %4411 = vmatmul.mubr.f32.gmra.mxu1 %v16945_v55  ;;  %v4560_v51 = vsub.f32 %v13527_v48, %v4559_v34 }
 0x1de   : > { %9790 = vmatmul.mubr.f32.gmra.mxu0 %v4531_v61  ;;  %9826 = vmatprep.subr.mxu1 %v4680_v19 }
 0x1df   : > { %9846 = vmatprep.subr.mxu0 %v13168_v37  ;;  %9827 = vmatpush3.msra.mxu1 %v4680_v19  ;;  %v9700_v55 = vpop.f32.mrf.mxu0  ;;  %v4561_v12 = vand.u32 4294901760, %v4560_v51 }
 0x1e0   : > { %9847 = vmatpush3.msra.mxu0 %v13168_v37  ;;  %9828 = vmatprep.subr.mxu1 %v4687_v47  ;;  %v2873_v40 = vadd.f32 %v9700_v55, %v13367_v35  ;;  %v16965_v55 = vld [vmem:[#allocation22_spill] sm:$0xff] }
 0x1e1   : > { %9848 = vmatprep.subr.mxu0 %v13183_v56  ;;  %9792 = vmatprep.mubr.f32.mxu0 %v4541_v26  ;;  %v13562_v37 = vpop.f32.mrf.mxu0 }
 0x1e2   : > { %9829 = vmatpush3.msra.mxu1 %v4687_v47  ;;  %9830 = vmatprep.mubr.f32.mxu1 %v13347_v16  ;;  %16950 = vst [vmem:[#allocation12_spill] sm:$0xff] %v13562_v37  ;;  %v16959_v47 = vld [vmem:[#allocation20_spill] sm:$0xff] }
 0x1e3   : > { %9849 = vmatpush3.msra.mxu0 %v13183_v56  ;;  %9831 = vmatmul.mubr.f32.vlgmr.msra.gmra.mxu1 %v13334_v57 }
 0x1e4   : > { %9793 = vmatmul.mubr.f32.gmra.mxu0 %v4551_v23  ;;  %9850 = vmatprep.subr.mxu0 %v13210_v52  ;;  %v9703_v56 = vpop.f32.mrf.mxu0  ;;  %v16962_v23 = vld [vmem:[#allocation8_spill] sm:$0xff] }
 0x1e5   : > { %9886 = vmatprep.subr.mxu1 %v13103_v32  ;;  %9851 = vmatpush3.msra.mxu0 %v13210_v52  ;;  %v2885_v35 = vadd.f32 %v9703_v56, %v13427_v49  ;;  %v13578_v52 = vpop.f32.mrf.mxu1  ;;  %v16973_v56 = vld [vmem:[#allocation32_spill] sm:$0xff] }
 0x1e6   : > { %9887 = vmatpush3.msra.mxu1 %v13103_v32  ;;  %9852 = vmatprep.subr.mxu0 %v13224_v3  ;;  %v13575_v29 = vpop.f32.mrf.mxu0  ;;  %16952 = vst [vmem:[#allocation48_spill] sm:$0xff] %v13578_v52 }
 0x1e7   : > { %9888 = vmatprep.subr.mxu1 %v13111_v54  ;;  %9795 = vmatprep.mubr.f32.mxu0 %v4561_v12  ;;  %16951 = vst [vmem:[#allocation60_spill] sm:$0xff] %v13575_v29  ;;  %v16970_v12 = vld [vmem:[#allocation56_spill] sm:$0xff] }
 0x1e8   : > { %9833 = vmatprep.mubr.f32.mxu1 %v13399_v25  ;;  %9853 = vmatpush3.msra.mxu0 %v13224_v3 }
 0x1e9   : > { %9889 = vmatpush3.msra.mxu1 %v13111_v54  ;;  %9796 = vmatmul.mubr.f32.gmra.mxu0 %v4571_v60  ;;  %v9744_v45 = vpop.f32.mrf.mxu1 }
 0x1ea   : > { %9834 = vmatmul.mubr.f32.gmra.mxu1 %v13417_v33  ;;  %9854 = vmatprep.subr.mxu0 %v13248_v10  ;;  %v9706_v49 = vpop.f32.mrf.mxu0  ;;  %v13587_v61 = vadd.f32 %v9744_v45, %v2873_v40  ;;  %v16968_v40 = vld [vmem:[#allocation42_spill] sm:$0xff] }
 0x1eb   : > { %9890 = vmatprep.subr.mxu1 %v13138_v7  ;;  %9855 = vmatpush3.msra.mxu0 %v13248_v10  ;;  %v2897_v3 = vadd.f32 %v9706_v49, %v13481_v42  ;;  %v13593_v19 = vpop.f32.mrf.mxu1 }
 0x1ec   : > { %9891 = vmatpush3.msra.mxu1 %v13138_v7  ;;  %9856 = vmatprep.subr.mxu0 %v13263_v14  ;;  %16953 = vst [vmem:[#allocation64_spill] sm:$0xff] %v13587_v61  ;;  %v13591_v22 = vpop.f32.mrf.mxu0  ;;  %16955 = vst [vmem:[#allocation69_spill] sm:$0xff] %v13593_v19 }
 0x1ed   : > { %9892 = vmatprep.subr.mxu1 %v13148_v5  ;;  %9836 = vmatprep.mubr.f32.mxu1 %v13453_v30  ;;  %16954 = vst [vmem:[#allocation58_spill] sm:$0xff] %v13591_v22 }
 0x1ee   : > { %9857 = vmatpush3.msra.mxu0 %v13263_v14  ;;  %9893 = vmatpush3.msra.mxu1 %v13148_v5 }
 0x1ef   : > { %9858 = vmatprep.subr.mxu0 %v13288_v62  ;;  %9837 = vmatmul.mubr.f32.gmra.mxu1 %v13473_v21  ;;  %v9709_v42 = vpop.f32.mrf.mxu0 }
 0x1f0   : > { %9894 = vmatprep.subr.mxu1 %v13178_v2  ;;  %9859 = vmatpush3.msra.mxu0 %v13288_v62  ;;  %v9747_v10 = vpop.f32.mrf.mxu1  ;;  %v2909_v14 = vadd.f32 %v9709_v42, %v13520_v28  ;;  %v16976_v42 = vld [vmem:[#allocation11_spill] sm:$0xff] }
 0x1f1   : > { %9895 = vmatpush3.msra.mxu1 %v13178_v2  ;;  %9860 = vmatprep.subr.mxu0 %v13291_v53  ;;  %v13606_v58 = vadd.f32 %v9747_v10, %v2885_v35  ;;  %v13656_v60 = vpop.f32.mrf.mxu0  ;;  %v16977_v10 = vld [vmem:[#allocation66_spill] sm:$0xff] }
 0x1f2   : > { %9896 = vmatprep.subr.mxu1 %v13192_v9  ;;  %9839 = vmatprep.mubr.f32.mxu1 %v13505_v17  ;;  %v13610_v62 = vpop.f32.mrf.mxu1  ;;  %16972 = vst [vmem:[#allocation55_spill] sm:$0xff] %v13656_v60 }
 0x1f3   : > { %9861 = vmatpush3.msra.mxu0 %v13291_v53  ;;  %16956 = vst [vmem:[#allocation50_spill] sm:$0xff] %v13606_v58  ;;  %9897 = vmatpush3.msra.mxu1 %v13192_v9  ;;  %16957 = vst [vmem:[#allocation61_spill] sm:$0xff] %v13610_v62  ;;  %v16958_v53 = vld [vmem:[#allocation70_spill] sm:$0xff] }
 0x1f4   : > { %9862 = vmatprep.subr.mxu0 %v13338_v4  ;;  %9840 = vmatmul.mubr.f32.gmra.mxu1 %v13517_v43 }
 0x1f5   : > { %9898 = vmatprep.subr.mxu1 %v13219_v50  ;;  %9863 = vmatpush3.msra.mxu0 %v13338_v4 }
 0x1f6   : > { %9899 = vmatpush3.msra.mxu1 %v13219_v50  ;;  %9864 = vmatprep.subr.mxu0 %v13358_v24  ;;  %v9750_v28 = vpop.f32.mrf.mxu1 }
 0x1f7   : > { %9900 = vmatprep.subr.mxu1 %v16958_v53  ;;  %9865 = vmatpush3.msra.mxu0 %v13358_v24  ;;  %v13622_v26 = vadd.f32 %v9750_v28, %v2897_v3  ;;  %v16963_v24 = vld [vmem:[#allocation17_spill] sm:$0xff]  ;;  %v16975_v3 = vand.u32 4294901760, %v13392_v46  ;;  %v16978_v28 = vand.u32 4294901760, %v13437_v44 }
 0x1f8   : > { %9901 = vmatpush3.msra.mxu1 %v16958_v53  ;;  %9866 = vmatprep.subr.mxu0 %v13397_v11  ;;  %v13626_v4 = vpop.f32.mrf.mxu1 }
 0x1f9   : > { %9902 = vmatprep.subr.mxu1 %v16959_v47  ;;  %16960 = vst [vmem:[#allocation72_spill] sm:$0xff] %v13622_v26  ;;  %9867 = vmatpush3.msra.mxu0 %v13397_v11  ;;  %16961 = vst [vmem:[#allocation75_spill] sm:$0xff] %v13626_v4  ;;  %v17005_v26 = vld [vmem:[#allocation49_spill] sm:$0xff] }
 0x1fa   : > { %9903 = vmatpush3.msra.mxu1 %v16959_v47  ;;  %9868 = vmatprep.subr.mxu0 %v13415_v27  ;;  %v9753_v51 = vpop.f32.mrf.mxu1 }
 0x1fb   : > { %9904 = vmatprep.subr.mxu1 %v16962_v23  ;;  %9869 = vmatpush3.msra.mxu0 %v13415_v27  ;;  %v13636_v11 = vadd.f32 %v9753_v51, %v2909_v14  ;;  %v16966_v27 = vld [vmem:[#allocation30_spill] sm:$0xff]  ;;  %v16979_v51 = vand.u32 4294901760, %v13451_v41 }
 0x1fc   : > { %9905 = vmatpush3.msra.mxu1 %v16962_v23  ;;  %9870 = vmatprep.subr.mxu0 %v13463_v63  ;;  %v16974_v49 = vand.u32 4294901760, %v16966_v27 }
 0x1fd   : > { %9906 = vmatprep.subr.mxu1 %v16963_v24  ;;  %9871 = vmatpush3.msra.mxu0 %v13463_v63  ;;  %16964 = vst [vmem:[#allocation77_spill] sm:$0xff] %v13636_v11  ;;  %v16969_v63 = vld [vmem:[#allocation46_spill] sm:$0xff]  ;;  %v16995_v11 = vand.u32 4294901760, %v13537_v1 }
 0x1fe   : > { %9907 = vmatpush3.msra.mxu1 %v16963_v24  ;;  %9872 = vmatprep.subr.mxu0 %v13477_v13 }
 0x1ff   : > { %9908 = vmatprep.subr.mxu1 %v16965_v55  ;;  %9873 = vmatpush3.msra.mxu0 %v13477_v13  ;;  %v16971_v13 = vld [vmem:[#allocation63_spill] sm:$0xff] }
 0x200   : > { %9874 = vmatprep.mubr.f32.mxu0 %v16966_v27  ;;  %9909 = vmatpush3.msra.mxu1 %v16965_v55  ;;  %v13689_v27 = vpop.f32.mrf.mxu1 }
 0x201   : > { %9875 = vmatmul.mubr.f32.vlgmr.msra.gmra.mxu0 %v13392_v46  ;;  %9910 = vmatprep.subr.mxu1 %v16967_v6  ;;  %v8023_v46 = vld [vmem:[%s15759_s6 + $0x3f8] sm:$0xff]  ;;  %16980 = vst [vmem:[#allocation68_spill] sm:$0xff] %v13689_v27  ;;  %v16999_v27 = vld [vmem:[#allocation27_spill] sm:$0xff] }
 0x202   : > { %9930 = vmatprep.subr.mxu0 %v16968_v40  ;;  %9911 = vmatpush3.msra.mxu1 %v16967_v6 }
 0x203   : > { %9931 = vmatpush3.msra.mxu0 %v16968_v40  ;;  %9912 = vmatprep.subr.mxu1 %v16969_v63  ;;  %v16981_v40 = vld [vmem:[#allocation59_spill] sm:$0xff] }
 0x204   : > { %9932 = vmatprep.subr.mxu0 %v16970_v12  ;;  %9877 = vmatprep.mubr.f32.mxu0 %v13437_v44  ;;  %v13698_v44 = vand.u32 4294901760, %v8023_v46 }
 0x205   : > { %9913 = vmatpush3.msra.mxu1 %v16969_v63  ;;  %9933 = vmatpush3.msra.mxu0 %v16970_v12 }
 0x206   : > { %9914 = vmatprep.subr.mxu1 %v13407_v18  ;;  %9878 = vmatmul.mubr.f32.gmra.mxu0 %v13451_v41  ;;  %16982 = vst [vmem:[#allocation16_spill] sm:$0xff] %v13698_v44  ;;  %v8022_v41 = vld [vmem:[%s15759_s6 + $0x3f0] sm:$0xff] }
 0x207   : > { %9934 = vmatprep.subr.mxu0 %v16971_v13  ;;  %9915 = vmatpush3.msra.mxu1 %v13407_v18  ;;  %v8562_v35 = vpop.f32.mrf.mxu0 }
 0x208   : > { %9935 = vmatpush3.msra.mxu0 %v16971_v13  ;;  %9916 = vmatprep.subr.mxu1 %v13443_v8 }
 0x209   : > { %9936 = vmatprep.subr.mxu0 %v16973_v56  ;;  %9880 = vmatprep.mubr.f32.mxu0 %v13487_v39  ;;  %v8563_v45 = vpop.f32.mrf.mxu0  ;;  %v8021_v39 = vld [vmem:[%s15759_s6 + $0x3e8] sm:$0xff] }
 0x20a   : > { %9917 = vmatpush3.msra.mxu1 %v13443_v8  ;;  %9918 = vmatprep.mubr.f32.mxu1 %v16974_v49 }
 0x20b   : > { %9937 = vmatpush3.msra.mxu0 %v16973_v56  ;;  %9919 = vmatmul.mubr.f32.vlgmr.msra.gmra.mxu1 %v16975_v3  ;;  %v16983_v56 = vld [vmem:[#allocation67_spill] sm:$0xff] }
 0x20c   : > { %9881 = vmatmul.mubr.f32.gmra.mxu0 %v13503_v0  ;;  %9938 = vmatprep.subr.mxu0 %v16976_v42  ;;  %v13744_v0 = vand.u32 4294901760, %v8021_v39 }
 0x20d   : > { %9974 = vmatprep.subr.mxu1 %v13103_v32  ;;  %9939 = vmatpush3.msra.mxu0 %v16976_v42 }
 0x20e   : > { %9975 = vmatpush3.msra.mxu1 %v13103_v32  ;;  %9940 = vmatprep.subr.mxu0 %v16977_v10  ;;  %16991 = vst [vmem:[#allocation21_spill] sm:$0xff] %v13744_v0 }
 0x20f   : > { %9976 = vmatprep.subr.mxu1 %v13111_v54  ;;  %v13676_v14 = vpop.f32.mrf.mxu0  ;;  %9883 = vmatprep.mubr.f32.mxu0 %v13527_v48 }
 0x210   : > { %9921 = vmatprep.mubr.f32.mxu1 %v16978_v28  ;;  %9941 = vmatpush3.msra.mxu0 %v16977_v10  ;;  %v16985_v10 = vld [vmem:[#allocation19_spill] sm:$0xff]  ;;  %v13719_v28 = vand.u32 4294901760, %v8022_v41 }
 0x211   : > { %9977 = vmatpush3.msra.mxu1 %v13111_v54  ;;  %v8566_v32 = vpop.f32.mrf.mxu0  ;;  %9884 = vmatmul.mubr.f32.gmra.mxu0 %v13537_v1  ;;  %v8007_v54 = vld [vmem:[%s15759_s6 + $0x378] sm:$0xff] }
 0x212   : > { %9922 = vmatmul.mubr.f32.gmra.mxu1 %v16979_v51  ;;  %9942 = vmatprep.subr.mxu0 %v16981_v40  ;;  %v13710_v49 = vand.u32 4294901760, %v8007_v54  ;;  %16986 = vst [vmem:[#allocation31_spill] sm:$0xff] %v13719_v28  ;;  %v8003_v1 = vld [vmem:[%s15759_s6 + $0x358] sm:$0xff] }
 0x213   : > { %9978 = vmatprep.subr.mxu1 %v13138_v7  ;;  %9943 = vmatpush3.msra.mxu0 %v16981_v40  ;;  %v8618_v13 = vpop.f32.mrf.mxu1  ;;  %v8005_v40 = vld [vmem:[%s15759_s6 + $0x368] sm:$0xff] }
 0x214   : > { %9979 = vmatpush3.msra.mxu1 %v13138_v7  ;;  %v13703_v12 = vpop.f32.mrf.mxu0  ;;  %9944 = vmatprep.subr.mxu0 %v16983_v56  ;;  %16984 = vst [vmem:[#allocation9_spill] sm:$0xff] %v13710_v49  ;;  %v8006_v7 = vld [vmem:[%s15759_s6 + $0x370] sm:$0xff] }
 0x215   : > { %9980 = vmatprep.subr.mxu1 %v13148_v5  ;;  %9924 = vmatprep.mubr.f32.mxu1 %v4539_v15  ;;  %v8619_v42 = vpop.f32.mrf.mxu1  ;;  %v8564_v15 = vadd.f32 %v8563_v45, %v8562_v35  ;;  %v16989_v45 = vld [vmem:[#allocation45_spill] sm:$0xff] }
 0x216   : > { %9945 = vmatpush3.msra.mxu0 %v16983_v56  ;;  %v13715_v3 = vpop.f32.mrf.mxu0  ;;  %9981 = vmatpush3.msra.mxu1 %v13148_v5  ;;  %v8620_v51 = vadd.f32 %v8619_v42, %v8618_v13  ;;  %v13731_v5 = vsub.f32 %v8023_v46, %v13698_v44  ;;  %v13735_v56 = vand.u32 4294901760, %v8006_v7  ;;  %v8020_v46 = vld [vmem:[%s15759_s6 + $0x3e0] sm:$0xff]  ;;  %v13754_v42 = vand.u32 4294901760, %v8005_v40 }
 0x217   : > { %9946 = vmatprep.subr.mxu0 %v16985_v10  ;;  %9925 = vmatmul.mubr.f32.gmra.mxu1 %v4549_v59  ;;  %v13742_v59 = vsub.f32 %v8007_v54, %v13710_v49  ;;  %v16994_v54 = vld [vmem:[#allocation44_spill] sm:$0xff]  ;;  %v8570_v62 = vadd.f32 %v13715_v3, %v13703_v12  ;;  %v8000_v12 = vld [vmem:[%s15759_s6 + $0x340] sm:$0xff] }
 0x218   : > { %9982 = vmatprep.subr.mxu1 %v13178_v2  ;;  %16987 = vst [vmem:[#allocation13_spill] sm:$0xff] %v13731_v5  ;;  %9947 = vmatpush3.msra.mxu0 %v16985_v10  ;;  %16988 = vst [vmem:[#allocation29_spill] sm:$0xff] %v13735_v56  ;;  %v13737_v35 = vadd.f32 %v8620_v51, %v8564_v15  ;;  %v13757_v10 = vsub.f32 %v8022_v41, %v13719_v28  ;;  %v8019_v41 = vld [vmem:[%s15759_s6 + $0x3d8] sm:$0xff] }
 0x219   : > { %9983 = vmatpush3.msra.mxu1 %v13178_v2  ;;  %9948 = vmatprep.subr.mxu0 %v16989_v45  ;;  %16990 = vst [vmem:[#allocation15_spill] sm:$0xff] %v13742_v59  ;;  %v13749_v13 = vpop.f32.mrf.mxu0  ;;  %16992 = vst [vmem:[#allocation38_spill] sm:$0xff] %v13754_v42  ;;  %v13768_v48 = vsub.f32 %v8006_v7, %v13735_v56  ;;  %v13786_v7 = vsub.f32 %v8021_v39, %v13744_v0 }
 0x21a   : > { %9984 = vmatprep.subr.mxu1 %v13192_v9  ;;  %v8621_v2 = vpop.f32.mrf.mxu1  ;;  %9927 = vmatprep.mubr.f32.mxu1 %v4559_v34  ;;  %16993 = vst [vmem:[#allocation36_spill] sm:$0xff] %v13757_v10  ;;  %v13770_v34 = vand.u32 4294901760, %v8020_v46 }
 0x21b   : > { %9949 = vmatpush3.msra.mxu0 %v16989_v45  ;;  %9985 = vmatpush3.msra.mxu1 %v13192_v9  ;;  %v13762_v51 = vpop.f32.mrf.mxu0  ;;  %16996 = vst [vmem:[#allocation34_spill] sm:$0xff] %v13768_v48  ;;  %v8004_v9 = vld [vmem:[%s15759_s6 + $0x360] sm:$0xff]  ;;  %v8567_v45 = vadd.f32 %v8566_v32, %v13676_v14  ;;  %16998 = vst [vmem:[#allocation54_spill] sm:$0xff] %v13786_v7  ;;  %v13791_v14 = vsub.f32 %v8005_v40, %v13754_v42  ;;  %v8002_v32 = vld [vmem:[%s15759_s6 + $0x350] sm:$0xff]  ;;  %v13806_v40 = vand.u32 4294901760, %v8019_v41 }
 0x21c   : > { %9950 = vmatprep.subr.mxu0 %v16994_v54  ;;  %v8622_v31 = vpop.f32.mrf.mxu1  ;;  %9928 = vmatmul.mubr.f32.gmra.mxu1 %v16995_v11  ;;  %16997 = vst [vmem:[#allocation51_spill] sm:$0xff] %v13770_v34  ;;  %v13804_v39 = vand.u32 4294901760, %v8004_v9  ;;  %v13835_v38 = vand.u32 4294901760, %v8002_v32 }
 0x21d   : > { %9986 = vmatprep.subr.mxu1 %v13219_v50  ;;  %v8623_v15 = vadd.f32 %v8622_v31, %v8621_v2  ;;  %9951 = vmatpush3.msra.mxu0 %v16994_v54  ;;  %17000 = vst [vmem:[#allocation35_spill] sm:$0xff] %v13791_v14  ;;  %17003 = vst [vmem:[#allocation74_spill] sm:$0xff] %v13806_v40  ;;  %v17004_v54 = vand.u32 4294901760, %v13731_v5 }
 0x21e   : > { %9987 = vmatpush3.msra.mxu1 %v13219_v50  ;;  %9952 = vmatprep.subr.mxu0 %v16999_v27  ;;  %v8018_v50 = vld [vmem:[%s15759_s6 + $0x3d0] sm:$0xff]  ;;  %17002 = vst [vmem:[#allocation71_spill] sm:$0xff] %v13804_v39  ;;  %17010 = vst [vmem:[#allocation70_spill] sm:$0xff] %v13835_v38  ;;  %v13887_v61 = vsub.f32 %v8002_v32, %v13835_v38 }
 0x21f   : > { %9988 = vmatprep.subr.mxu1 %v16958_v53  ;;  %v13800_v2 = vadd.f32 %v8623_v15, %v8567_v45  ;;  %9953 = vmatpush3.msra.mxu0 %v16999_v27  ;;  %v13811_v11 = vsub.f32 %v13731_v5, %v17004_v54  ;;  %v13813_v31 = vpop.f32.mrf.mxu0  ;;  %v13817_v15 = vand.u32 4294901760, %v8003_v1  ;;  %v8017_v27 = vld [vmem:[%s15759_s6 + $0x3c8] sm:$0xff]  ;;  %v13824_v45 = vsub.f32 %v8020_v46, %v13770_v34  ;;  %v17011_v46 = vld [vmem:[#allocation52_spill] sm:$0xff] }
 0x220   : > { %9989 = vmatpush3.msra.mxu1 %v16958_v53  ;;  %v8624_v60 = vpop.f32.mrf.mxu1  ;;  %9954 = vmatprep.subr.mxu0 %v17005_v26  ;;  %v17008_v54 = vand.u32 4294901760, %v13742_v59  ;;  %v13833_v4 = vand.u32 4294901760, %v8018_v50  ;;  %v13853_v53 = vsub.f32 %v8004_v9, %v13804_v39  ;;  %v13856_v19 = vand.u32 4294901760, %v8017_v27  ;;  %v8016_v9 = vld [vmem:[%s15759_s6 + $0x3c0] sm:$0xff]  ;;  %17019 = vst [vmem:[#allocation10_spill] sm:$0xff] %v13887_v61 }
 0x221   : > { %17001 = vst [vmem:[#allocation73_spill] sm:$0xff] %v13800_v2  ;;  %9990 = vmatprep.subr.mxu1 %v16959_v47  ;;  %17006 = vst [vmem:[#allocation76_spill] sm:$0xff] %v13817_v15  ;;  %9955 = vmatpush3.msra.mxu0 %v17005_v26  ;;  %v13838_v22 = vpop.f32.mrf.mxu0 }
 0x222   : > { %17007 = vst [vmem:[#allocation78_spill] sm:$0xff] %v13824_v45  ;;  %9991 = vmatpush3.msra.mxu1 %v16959_v47  ;;  %v13831_v52 = vsub.f32 %v13742_v59, %v17008_v54  ;;  %17009 = vst [vmem:[#allocation57_spill] sm:$0xff] %v13833_v4  ;;  %v8625_v58 = vpop.f32.mrf.mxu1  ;;  %9956 = vmatprep.subr.mxu0 %v17011_v46  ;;  %v17012_v47 = vand.u32 4294901760, %v13757_v10  ;;  %v13895_v37 = vsub.f32 %v8018_v50, %v13833_v4  ;;  %v8015_v59 = vld [vmem:[%s15759_s6 + $0x3b8] sm:$0xff] }
 0x223   : > { %9992 = vmatprep.subr.mxu1 %v16962_v23  ;;  %v8626_v29 = vadd.f32 %v8625_v58, %v8624_v60  ;;  %9957 = vmatpush3.msra.mxu0 %v17011_v46  ;;  %17013 = vst [vmem:[#allocation20_spill] sm:$0xff] %v13853_v53  ;;  %17014 = vst [vmem:[#allocation8_spill] sm:$0xff] %v13856_v19  ;;  %v13865_v58 = vsub.f32 %v8019_v41, %v13806_v40  ;;  %v17017_v60 = vand.u32 4294901760, %v13768_v48 }
 0x224   : > { %v13845_v26 = vsub.f32 %v13757_v10, %v17012_v47  ;;  %9993 = vmatpush3.msra.mxu1 %v16962_v23  ;;  %v8001_v47 = vld [vmem:[%s15759_s6 + $0x348] sm:$0xff]  ;;  %9958 = vmatprep.subr.mxu0 %v13495_v36  ;;  %v13870_v23 = vsub.f32 %v8003_v1, %v13817_v15  ;;  %17021 = vst [vmem:[#allocation42_spill] sm:$0xff] %v13895_v37  ;;  %v13913_v50 = vand.u32 4294901760, %v8016_v9 }
 0x225   : > { %17015 = vst [vmem:[#allocation17_spill] sm:$0xff] %v13865_v58  ;;  %9994 = vmatprep.subr.mxu1 %v16963_v24  ;;  %v13875_v3 = vsub.f32 %v13768_v48, %v17017_v60  ;;  %v13881_v41 = vadd.f32 %v8626_v29, %v8570_v62  ;;  %9959 = vmatpush3.msra.mxu0 %v13495_v36  ;;  %v17020_v60 = vand.u32 4294901760, %v13786_v7  ;;  %v13897_v46 = vpop.f32.mrf.mxu0  ;;  %v13902_v62 = vand.u32 4294901760, %v8001_v47 }
 0x226   : > { %17016 = vst [vmem:[#allocation22_spill] sm:$0xff] %v13870_v23  ;;  %9995 = vmatpush3.msra.mxu1 %v16963_v24  ;;  %v8627_v29 = vpop.f32.mrf.mxu1  ;;  %9960 = vmatprep.subr.mxu0 %v13509_v20  ;;  %v17022_v24 = vand.u32 4294901760, %v13791_v14  ;;  %v13918_v36 = vsub.f32 %v8017_v27, %v13856_v19  ;;  %v7998_v27 = vld [vmem:[%s15759_s6 + $0x330] sm:$0xff] }
 0x227   : > { %17018 = vst [vmem:[#allocation30_spill] sm:$0xff] %v13881_v41  ;;  %v13892_v54 = vsub.f32 %v13786_v7, %v17020_v60  ;;  %9996 = vmatprep.subr.mxu1 %v16965_v55  ;;  %v13909_v60 = vand.u32 4294901760, %v8000_v12  ;;  %9961 = vmatpush3.msra.mxu0 %v13509_v20  ;;  %v13920_v48 = vpop.f32.mrf.mxu0  ;;  %v17025_v20 = vand.u32 4294901760, %v13824_v45  ;;  %v8573_v7 = vadd.f32 %v13762_v51, %v13749_v13 }
 0x228   : > { %v13907_v32 = vsub.f32 %v13791_v14, %v17022_v24  ;;  %9962 = vmatprep.mubr.f32.mxu0 %v13347_v16  ;;  %17024 = vst [vmem:[#allocation56_spill] sm:$0xff] %v13918_v36  ;;  %v8628_v10 = vpop.f32.mrf.mxu1  ;;  %9997 = vmatpush3.msra.mxu1 %v16965_v55  ;;  %v8014_v55 = vld [vmem:[%s15759_s6 + $0x3b0] sm:$0xff]  ;;  %v17037_v41 = vand.u32 4294901760, %v13918_v36 }
 0x229   : > { %17023 = vst [vmem:[#allocation46_spill] sm:$0xff] %v13909_v60  ;;  %9963 = vmatmul.mubr.f32.vlgmr.msra.gmra.mxu0 %v13334_v57  ;;  %v13927_v24 = vsub.f32 %v13824_v45, %v17025_v20  ;;  %v8629_v1 = vadd.f32 %v8628_v10, %v8627_v29  ;;  %9998 = vmatprep.subr.mxu1 %v16967_v6  ;;  %v7999_v20 = vld [vmem:[%s15759_s6 + $0x338] sm:$0xff] }
 0x22a   : > { %9010 = vmatprep.subr.mxu0 %v13698_v44  ;;  %9999 = vmatpush3.msra.mxu1 %v16967_v6  ;;  %v13947_v10 = vsub.f32 %v8001_v47, %v13902_v62  ;;  %v13951_v29 = vsub.f32 %v8000_v12, %v13909_v60  ;;  %v17029_v6 = vand.u32 4294901760, %v13853_v53  ;;  %v17030_v12 = vand.u32 4294901760, %v13865_v58 }
 0x22b   : > { %9011 = vmatpush3.msra.mxu0 %v13710_v49  ;;  %v13959_v13 = vadd.f32 %v8629_v1, %v8573_v7  ;;  %10000 = vmatprep.subr.mxu1 %v16969_v63  ;;  %v13975_v49 = vsub.f32 %v8016_v9, %v13913_v50  ;;  %v13977_v7 = vpop.f32.mrf.mxu0  ;;  %v13984_v44 = vand.u32 4294901760, %v7999_v20  ;;  %v13993_v9 = vand.u32 4294901760, %v8014_v55 }
 0x22c   : > { %17026 = vst [vmem:[#allocation63_spill] sm:$0xff] %v13947_v10  ;;  %17027 = vst [vmem:[#allocation32_spill] sm:$0xff] %v13951_v29  ;;  %9012 = vmatprep.subr.mxu0 %v13719_v28  ;;  %v13966_v47 = vsub.f32 %v13853_v53, %v17029_v6  ;;  %v13971_v51 = vsub.f32 %v13865_v58, %v17030_v12  ;;  %v8630_v1 = vpop.f32.mrf.mxu1  ;;  %9965 = vmatprep.mubr.f32.mxu0 %v13399_v25  ;;  %v13982_v28 = vand.u32 4294901760, %v8015_v59 }
 0x22d   : > { %17028 = vst [vmem:[#allocation11_spill] sm:$0xff] %v13959_v13  ;;  %17031 = vst [vmem:[#allocation66_spill] sm:$0xff] %v13975_v49  ;;  %10001 = vmatpush3.msra.mxu1 %v16969_v63  ;;  %v17034_v12 = vand.u32 4294901760, %v13870_v23  ;;  %9013 = vmatpush3.msra.mxu0 %v13735_v56  ;;  %v17035_v58 = vand.u32 4294901760, %v13895_v37  ;;  %v14000_v6 = vand.u32 4294901760, %v7998_v27  ;;  %v17036_v53 = vand.u32 4294901760, %v13887_v61 }
 0x22e   : > { %17032 = vst [vmem:[#allocation59_spill] sm:$0xff] %v13982_v28  ;;  %17033 = vst [vmem:[#allocation67_spill] sm:$0xff] %v13984_v44  ;;  %10002 = vmatprep.subr.mxu1 %v13407_v18  ;;  %9966 = vmatmul.mubr.f32.gmra.mxu0 %v13417_v33  ;;  %v8013_v56 = vld [vmem:[%s15759_s6 + $0x3a8] sm:$0xff]  ;;  %v14028_v2 = vsub.f32 %v13918_v36, %v17037_v41  ;;  %v14046_v41 = vsub.f32 %v8015_v59, %v13982_v28 }
 0x22f   : > { %v13989_v14 = vsub.f32 %v13870_v23, %v17034_v12  ;;  %v13998_v63 = vsub.f32 %v13895_v37, %v17035_v58  ;;  %v14005_v45 = vsub.f32 %v13887_v61, %v17036_v53  ;;  %v14007_v12 = vpop.f32.mrf.mxu0  ;;  %v8631_v23 = vpop.f32.mrf.mxu1  ;;  %9014 = vmatprep.subr.mxu0 %v13744_v0  ;;  %v7997_v58 = vld [vmem:[%s15759_s6 + $0x328] sm:$0xff]  ;;  %v16198_v53 = vand.u32 4294901760, %v13951_v29  ;;  %10003 = vmatpush3.msra.mxu1 %v13407_v18 }
 0x230   : > { %v8576_v61 = vadd.f32 %v13838_v22, %v13813_v31  ;;  %v8632_v5 = vadd.f32 %v8631_v23, %v8630_v1  ;;  %9015 = vmatpush3.msra.mxu0 %v13754_v42  ;;  %10004 = vmatprep.subr.mxu1 %v13443_v8  ;;  %v14034_v22 = vsub.f32 %v7999_v20, %v13984_v44  ;;  %v14040_v31 = vld [vmem:[%s15759_s6 + $0x3a0] sm:$0xff]  ;;  %v14055_v18 = vand.u32 4294901760, %v8013_v56  ;;  %v7994_v42 = vld [vmem:[%s15759_s6 + $0x310] sm:$0xff] }
 0x231   : > { %9016 = vmatprep.subr.mxu0 %v13770_v34  ;;  %v7996_v23 = vld [vmem:[%s15759_s6 + $0x320] sm:$0xff]  ;;  %17039 = vst [vmem:[#allocation45_spill] sm:$0xff] %v14046_v41  ;;  %9968 = vmatprep.mubr.f32.mxu0 %v13453_v30  ;;  %v14053_v20 = vsub.f32 %v7998_v27, %v14000_v6  ;;  %v14057_v13 = vand.u32 4294901760, %v7997_v58  ;;  %v14060_v0 = vsub.f32 %v8014_v55, %v13993_v9  ;;  %v14062_v37 = vpop.f32.mrf.mxu0 }
 0x232   : > { %17038 = vst [vmem:[#allocation19_spill] sm:$0xff] %v14034_v22  ;;  %v14048_v1 = vadd.f32 %v8632_v5, %v8576_v61  ;;  %10005 = vmatpush3.msra.mxu1 %v13443_v8  ;;  %v8633_v59 = vpop.f32.mrf.mxu1  ;;  %10006 = vmatprep.mubr.f32.mxu1 %v13347_v16  ;;  %v17043_v5 = vand.u32 4294901760, %v13947_v10  ;;  %v14076_v55 = vsub.f32 %v13951_v29, %v16198_v53  ;;  %v14082_v61 = vand.u32 4294901760, %v14040_v31  ;;  %v14094_v53 = vld [vmem:[%s15759_s6 + $0x398] sm:$0xff] }
 0x233   : > { %17041 = vst [vmem:[#allocation27_spill] sm:$0xff] %v14053_v20  ;;  %17042 = vst [vmem:[#allocation49_spill] sm:$0xff] %v14060_v0  ;;  %9017 = vmatpush3.msra.mxu0 %v13804_v39  ;;  %10007 = vmatmul.mubr.f32.vlgmr.msra.gmra.mxu1 %v13334_v57  ;;  %v17046_v8 = vand.u32 4294901760, %v13975_v49  ;;  %v14096_v29 = vpop.f32.mrf.mxu0  ;;  %v17047_v16 = vand.u32 4294901760, %v13811_v11  ;;  %v17048_v11 = vand.u32 4294901760, %v13831_v52  ;;  %v17049_v52 = vand.u32 4294901760, %v13845_v26 }
 0x234   : > { %17040 = vst [vmem:[#allocation44_spill] sm:$0xff] %v14048_v1  ;;  %v14071_v27 = vsub.f32 %v13947_v10, %v17043_v5  ;;  %17044 = vst [vmem:[#allocation52_spill] sm:$0xff] %v14076_v55  ;;  %9969 = vmatmul.mubr.f32.gmra.mxu0 %v13473_v21  ;;  %v14089_v5 = vand.u32 4294901760, %v7996_v23  ;;  %v8634_v57 = vpop.f32.mrf.mxu1  ;;  %9018 = vmatprep.subr.mxu0 %v13806_v40  ;;  %v8579_v10 = vadd.f32 %v13920_v48, %v13897_v46  ;;  %v7937_v46 = vld [vmem:[%s10913_s24 + $0x10] sm:$0xff] }
 0x235   : > { %17045 = vst [vmem:[#allocation79_spill] sm:$0xff] %v14082_v61  ;;  %v14087_v39 = vsub.f32 %v13975_v49, %v17046_v8  ;;  %9066 = vmatprep.subr.mxu1 %v17047_v16  ;;  %v7995_v8 = vld [vmem:[%s15759_s6 + $0x318] sm:$0xff]  ;;  %v8635_v40 = vadd.f32 %v8634_v57, %v8633_v59  ;;  %9019 = vmatpush3.msra.mxu0 %v13817_v15  ;;  %v14120_v49 = vld [vmem:[%s15759_s6 + $0x390] sm:$0xff]  ;;  %v14134_v57 = vand.u32 4294901760, %v14094_v53  ;;  %v17063_v55 = vand.u32 4294901760, %v13907_v32 }
 0x236   : > { %9067 = vmatpush3.msra.mxu1 %v17048_v11  ;;  %v14115_v16 = vsub.f32 %v7997_v58, %v14057_v13  ;;  %v14125_v48 = vsub.f32 %v8013_v56, %v14055_v18  ;;  %9020 = vmatprep.subr.mxu0 %v13833_v4  ;;  %v7923_v11 = vld [vmem:[%s10942_s11 + $0x10] sm:$0xff]  ;;  %v14143_v36 = vsub.f32 %v7996_v23, %v14089_v5  ;;  %v14145_v26 = vand.u32 4294901760, %v7995_v8 }
 0x237   : > { %9068 = vmatprep.subr.mxu1 %v17049_v52  ;;  %17050 = vst [vmem:[#allocation80_spill] sm:$0xff] %v14134_v57  ;;  %v14137_v34 = vadd.f32 %v8635_v40, %v8579_v10  ;;  %9971 = vmatprep.mubr.f32.mxu0 %v13505_v17  ;;  %v14147_v52 = vand.u32 4294901760, %v7994_v42  ;;  %v8674_v58 = vpop.f32.mrf.mxu0  ;;  %v17054_v40 = vand.u32 4294901760, %v13875_v3  ;;  %v17055_v10 = vand.u32 4294901760, %v14046_v41 }
 0x238   : > { %10009 = vmatprep.mubr.f32.mxu1 %v13399_v25  ;;  %17052 = vst [vmem:[#allocation82_spill] sm:$0xff] %v14145_v26  ;;  %v8636_v59 = vpop.f32.mrf.mxu1  ;;  %9021 = vmatpush3.msra.mxu0 %v13835_v38  ;;  %v17056_v56 = vand.u32 4294901760, %v14034_v22  ;;  %v14163_v4 = vand.u32 4294901760, %v14120_v49  ;;  %v14168_v38 = vld [vmem:[%s15759_s6 + $0x388] sm:$0xff]  ;;  %v14170_v3 = vand.u32 4294901760, %v7937_v46  ;;  %v17065_v32 = vand.u32 4294901760, %v13927_v24 }
 0x239   : > { %17051 = vst [vmem:[#allocation81_spill] sm:$0xff] %v14137_v34  ;;  %17053 = vst [vmem:[#allocation83_spill] sm:$0xff] %v14147_v52  ;;  %9069 = vmatpush3.msra.mxu1 %v17054_v40  ;;  %v14155_v25 = vsub.f32 %v14046_v41, %v17055_v10  ;;  %9972 = vmatmul.mubr.f32.gmra.mxu0 %v13517_v43  ;;  %v17059_v40 = vand.u32 4294901760, %v14060_v0  ;;  %v14185_v41 = vand.u32 4294901760, %v7923_v11  ;;  %v8675_v1 = vpop.f32.mrf.mxu0 }
 0x23a   : > { %v14160_v23 = vsub.f32 %v14034_v22, %v17056_v56  ;;  %17057 = vst [vmem:[#allocation84_spill] sm:$0xff] %v14163_v4  ;;  %17058 = vst [vmem:[#allocation85_spill] sm:$0xff] %v14170_v3  ;;  %10010 = vmatmul.mubr.f32.gmra.mxu1 %v13417_v33  ;;  %v17060_v56 = vand.u32 4294901760, %v14053_v20  ;;  %v8637_v34 = vpop.f32.mrf.mxu1  ;;  %9022 = vmatprep.subr.mxu0 %v13856_v19  ;;  %v17062_v33 = vand.u32 4294901760, %v13892_v54  ;;  %v14206_v19 = vand.u32 4294901760, %v14168_v38 }
 0x23b   : > { %v14177_v10 = vsub.f32 %v14060_v0, %v17059_v40  ;;  %17061 = vst [vmem:[#allocation86_spill] sm:$0xff] %v14185_v41  ;;  %v7993_v40 = vld [vmem:[%s15759_s6 + $0x308] sm:$0xff]  ;;  %v8638_v22 = vadd.f32 %v8637_v34, %v8636_v59  ;;  %9023 = vmatpush3.msra.mxu0 %v13902_v62  ;;  %v14200_v54 = vsub.f32 %v7995_v8, %v14145_v26  ;;  %v7992_v34 = vld [vmem:[%s15759_s6 + $0x300] sm:$0xff]  ;;  %v17069_v59 = vand.u32 4294901760, %v13966_v47 }
 0x23c   : > { %v14182_v15 = vsub.f32 %v14053_v20, %v17060_v56  ;;  %9070 = vmatprep.subr.mxu1 %v17062_v33  ;;  %v8582_v56 = vadd.f32 %v14007_v12, %v13977_v7  ;;  %v8676_v20 = vadd.f32 %v8675_v1, %v8674_v58  ;;  %v14203_v33 = vsub.f32 %v7994_v42, %v14147_v52  ;;  %v7938_v12 = vld [vmem:[%s10913_s24 + $0x20] sm:$0xff] }
 0x23d   : > { %9071 = vmatpush3.msra.mxu1 %v17063_v55  ;;  %17064 = vst [vmem:[#allocation87_spill] sm:$0xff] %v14206_v19  ;;  %v14210_v0 = vsub.f32 %v14040_v31, %v14082_v61  ;;  %9024 = vmatprep.subr.mxu0 %v13913_v50  ;;  %v14220_v42 = vsub.f32 %v7937_v46, %v14170_v3  ;;  %v14232_v8 = vand.u32 4294901760, %v7993_v40  ;;  %v8639_v46 = vpop.f32.mrf.mxu1  ;;  %v14256_v47 = vand.u32 4294901760, %v7992_v34  ;;  %v7925_v7 = vld [vmem:[%s10942_s11 + $0x20] sm:$0xff] }
 0x23e   : > { %9072 = vmatprep.subr.mxu1 %v17065_v32  ;;  %v14223_v1 = vadd.f32 %v8638_v22, %v8582_v56  ;;  %v14226_v31 = vadd.f32 %v8676_v20, %v13737_v35  ;;  %10012 = vmatprep.mubr.f32.mxu1 %v13453_v30  ;;  %v14235_v58 = vsub.f32 %v7923_v11, %v14185_v41  ;;  %v8677_v22 = vpop.f32.mrf.mxu0  ;;  %v17070_v35 = vand.u32 4294901760, %v14125_v48  ;;  %v14254_v32 = vld [vmem:[%s15759_s6 + $0x380] sm:$0xff] }
 0x23f   : > { %17066 = vst [vmem:[#allocation88_spill] sm:$0xff] %v14220_v42  ;;  %9025 = vmatpush3.msra.mxu0 %v13909_v60  ;;  %17067 = vst [vmem:[#allocation89_spill] sm:$0xff] %v14232_v8  ;;  %9073 = vmatpush3.msra.mxu1 %v17069_v59  ;;  %v17071_v56 = vand.u32 4294901760, %v14115_v16  ;;  %v17073_v59 = vand.u32 4294901760, %v13971_v51  ;;  %v14267_v30 = vand.u32 4294901760, %v7938_v12  ;;  %v8640_v55 = vpop.f32.mrf.mxu1  ;;  %v16236_v51 = vand.u32 4294901760, %v14220_v42 }
 0x240   : > { %17068 = vst [vmem:[#allocation90_spill] sm:$0xff] %v14235_v58  ;;  %9026 = vmatprep.subr.mxu0 %v13982_v28  ;;  %v14244_v20 = vsub.f32 %v14125_v48, %v17070_v35  ;;  %17072 = vst [vmem:[#allocation91_spill] sm:$0xff] %v14256_v47  ;;  %10013 = vmatmul.mubr.f32.gmra.mxu1 %v13473_v21  ;;  %v8678_v28 = vpop.f32.mrf.mxu0  ;;  %v17075_v21 = vand.u32 4294901760, %v13989_v14  ;;  %v8641_v24 = vadd.f32 %v8640_v55, %v8639_v46 }
 0x241   : > { %v14249_v11 = vsub.f32 %v14115_v16, %v17071_v56  ;;  %9074 = vmatprep.subr.mxu1 %v17073_v59  ;;  %v14265_v56 = vsub.f32 %v14094_v53, %v14134_v57  ;;  %17074 = vst [vmem:[#allocation92_spill] sm:$0xff] %v14267_v30  ;;  %9027 = vmatpush3.msra.mxu0 %v13984_v44  ;;  %v17076_v53 = vand.u32 4294901760, %v13998_v63  ;;  %v14283_v44 = vand.u32 4294901760, %v14254_v32 }
 0x242   : > { %9075 = vmatpush3.msra.mxu1 %v17075_v21  ;;  %v8585_v59 = vadd.f32 %v14096_v29, %v14062_v37  ;;  %v8679_v35 = vadd.f32 %v8678_v28, %v8677_v22  ;;  %9028 = vmatprep.subr.mxu0 %v13993_v9  ;;  %v14280_v60 = vsub.f32 %v7993_v40, %v14232_v8  ;;  %v16237_v14 = vand.u32 4294901760, %v14235_v58  ;;  %v7939_v29 = vld [vmem:[%s10913_s24 + $0x30] sm:$0xff]  ;;  %v17079_v40 = vld [vmem:[#allocation73_spill] sm:$0xff] }
 0x243   : > { %9076 = vmatprep.subr.mxu1 %v17076_v53  ;;  %17077 = vst [vmem:[#allocation93_spill] sm:$0xff] %v14283_v44  ;;  %v14288_v21 = vsub.f32 %v14120_v49, %v14163_v4  ;;  %10015 = vmatprep.mubr.f32.mxu1 %v13505_v17  ;;  %v14293_v28 = vand.u32 4294901760, %v7925_v7  ;;  %v17080_v46 = vand.u32 4294901760, %v14005_v45  ;;  %v17081_v17 = vand.u32 4294901760, %v14210_v0  ;;  %v8730_v53 = vpop.f32.mrf.mxu1  ;;  %v7927_v37 = vld [vmem:[%s10942_s11 + $0x30] sm:$0xff] }
 0x244   : > { %9029 = vmatpush3.msra.mxu0 %v14000_v6  ;;  %v14296_v63 = vadd.f32 %v8641_v24, %v8585_v59  ;;  %v14299_v55 = vadd.f32 %v8679_v35, %v17079_v40  ;;  %v14310_v22 = vsub.f32 %v7992_v34, %v14256_v47  ;;  %v14314_v59 = vsub.f32 %v7938_v12, %v14267_v30  ;;  %v8680_v35 = vpop.f32.mrf.mxu0 }
 0x245   : > { %17078 = vst [vmem:[#allocation94_spill] sm:$0xff] %v14293_v28  ;;  %9077 = vmatpush3.msra.mxu1 %v17080_v46  ;;  %9030 = vmatprep.subr.mxu0 %v14055_v18  ;;  %v14307_v49 = vsub.f32 %v14210_v0, %v17081_v17  ;;  %v17083_v45 = vand.u32 4294901760, %v14028_v2  ;;  %v5771_v40 = vand.u32 4294901760, %v14249_v11  ;;  %v14323_v46 = vsub.f32 %v14220_v42, %v16236_v51  ;;  %v8731_v12 = vpop.f32.mrf.mxu1 }
 0x246   : > { %17082 = vst [vmem:[#allocation73_spill] sm:$0xff] %v14314_v59  ;;  %10016 = vmatmul.mubr.f32.gmra.mxu1 %v13517_v43  ;;  %v17084_v34 = vand.u32 4294901760, %v14143_v36  ;;  %9031 = vmatpush3.msra.mxu0 %v14057_v13  ;;  %v17085_v43 = vand.u32 4294901760, %v14071_v27  ;;  %v14338_v2 = vsub.f32 %v14235_v58, %v16237_v14  ;;  %v8681_v51 = vpop.f32.mrf.mxu0  ;;  %v17087_v27 = vand.u32 4294901760, %v14087_v39 }
 0x247   : > { %9078 = vmatprep.subr.mxu1 %v17083_v45  ;;  %v14343_v45 = vsub.f32 %v14168_v38, %v14206_v19  ;;  %9032 = vmatprep.subr.mxu0 %v14082_v61  ;;  %v14352_v14 = vsub.f32 %v7925_v7, %v14293_v28  ;;  %v8682_v11 = vadd.f32 %v8681_v51, %v8680_v35  ;;  %v17089_v38 = vld [vmem:[#allocation52_spill] sm:$0xff]  ;;  %v5890_v42 = vand.u32 4294901760, %v14307_v49  ;;  %v7940_v49 = vld [vmem:[%s10913_s24 + $0x40] sm:$0xff] }
 0x248   : > { %v14328_v17 = vsub.f32 %v14143_v36, %v17084_v34  ;;  %9079 = vmatpush3.msra.mxu1 %v17085_v43  ;;  %v14345_v34 = vand.u32 4294901760, %v7939_v29  ;;  %v8732_v24 = vadd.f32 %v8731_v12, %v8730_v53  ;;  %9033 = vmatpush3.msra.mxu0 %v14089_v5  ;;  %v17090_v58 = vand.u32 4294901760, %v17089_v38  ;;  %v17094_v35 = vld [vmem:[#allocation30_spill] sm:$0xff] }
 0x249   : > { %9080 = vmatprep.subr.mxu1 %v17087_v27  ;;  %17088 = vst [vmem:[#allocation96_spill] sm:$0xff] %v14352_v14  ;;  %v17091_v61 = vand.u32 4294901760, %v14200_v54  ;;  %v14364_v43 = vand.u32 4294901760, %v7927_v37  ;;  %9034 = vmatprep.subr.mxu0 %v14134_v57  ;;  %v17093_v7 = vand.u32 4294901760, %v14155_v25  ;;  %v14376_v53 = vadd.f32 %v8682_v11, %v17094_v35  ;;  %v7929_v38 = vld [vmem:[%s10942_s11 + $0x40] sm:$0xff] }
 0x24a   : > { %17086 = vst [vmem:[#allocation95_spill] sm:$0xff] %v14345_v34  ;;  %9081 = vmatpush3.msra.mxu1 %v17090_v58  ;;  %v5778_v51 = vand.u32 4294901760, %v14328_v17  ;;  %v14372_v58 = vsub.f32 %v14254_v32, %v14283_v44  ;;  %9035 = vmatpush3.msra.mxu0 %v14145_v26  ;;  %v17095_v12 = vand.u32 4294901760, %v14160_v23  ;;  %v5579_v25 = vand.u32 4294901760, %v14323_v46  ;;  %v8733_v35 = vpop.f32.mrf.mxu1  ;;  %v7942_v57 = vld [vmem:[%s10913_s24 + $0x60] sm:$0xff] }
 0x24b   : > { %v14361_v39 = vsub.f32 %v14200_v54, %v17091_v61  ;;  %17092 = vst [vmem:[#allocation52_spill] sm:$0xff] %v14364_v43  ;;  %9082 = vmatprep.subr.mxu1 %v17093_v7  ;;  %v14379_v61 = vadd.f32 %v8732_v24, %v14226_v31  ;;  %v17096_v17 = vand.u32 4294901760, %v14265_v56  ;;  %v14390_v11 = vsub.f32 %v7939_v29, %v14345_v34  ;;  %v8683_v7 = vpop.f32.mrf.mxu0 }
 0x24c   : > { %9083 = vmatpush3.msra.mxu1 %v17095_v12  ;;  %9036 = vmatprep.subr.mxu0 %v14163_v4  ;;  %v17098_v31 = vand.u32 4294901760, %v14177_v10  ;;  %v5585_v23 = vand.u32 4294901760, %v14338_v2  ;;  %v17099_v24 = vand.u32 4294901760, %v14288_v21  ;;  %v17100_v12 = vand.u32 4294901760, %v14203_v33  ;;  %v8734_v26 = vpop.f32.mrf.mxu1 }
 0x24d   : > { %v5896_v32 = vsub.f32 %v14265_v56, %v17096_v17  ;;  %17097 = vst [vmem:[#allocation30_spill] sm:$0xff] %v14390_v11  ;;  %9037 = vmatpush3.msra.mxu0 %v14147_v52  ;;  %v17101_v27 = vand.u32 4294901760, %v14182_v15  ;;  %v17102_v10 = vand.u32 4294901760, %v14314_v59  ;;  %v14416_v4 = vand.u32 4294901760, %v7940_v49  ;;  %5580 = vmatprep.mubr.f32.mxu0 %v5579_v25 }
 0x24e   : > { %9084 = vmatprep.subr.mxu1 %v17098_v31  ;;  %v5903_v46 = vsub.f32 %v14288_v21, %v17099_v24  ;;  %v14402_v17 = vsub.f32 %v14203_v33, %v17100_v12  ;;  %v14414_v24 = vsub.f32 %v7927_v37, %v14364_v43  ;;  %v8684_v12 = vpop.f32.mrf.mxu0  ;;  %9038 = vmatprep.subr.mxu0 %v14206_v19  ;;  %v17105_v29 = vand.u32 4294901760, %v14244_v20 }
 0x24f   : > { %9085 = vmatpush3.msra.mxu1 %v17101_v27  ;;  %v5593_v2 = vsub.f32 %v14314_v59, %v17102_v10  ;;  %17104 = vst [vmem:[#allocation98_spill] sm:$0xff] %v14416_v4  ;;  %v8685_v10 = vadd.f32 %v8684_v12, %v8683_v7  ;;  %v8735_v52 = vadd.f32 %v8734_v26, %v8733_v35  ;;  %v5897_v37 = vand.u32 4294901760, %v5896_v32  ;;  %v17109_v32 = vld [vmem:[#allocation11_spill] sm:$0xff] }
 0x250   : > { %17103 = vst [vmem:[#allocation97_spill] sm:$0xff] %v14414_v24  ;;  %9086 = vmatprep.subr.mxu1 %v17105_v29  ;;  %9039 = vmatpush3.msra.mxu0 %v14232_v8  ;;  %v17106_v31 = vand.u32 4294901760, %v14343_v45  ;;  %v14428_v20 = vand.u32 4294901760, %v7929_v38  ;;  %v5785_v29 = vand.u32 4294901760, %v14361_v39  ;;  %v17108_v26 = vand.u32 4294901760, %v14352_v14  ;;  %v8686_v15 = vpop.f32.mrf.mxu0  ;;  %v17114_v39 = vld [vmem:[#allocation13_spill] sm:$0xff] }
 0x251   : > { %9087 = vmatpush3.msra.mxu1 %v5771_v40  ;;  %9040 = vmatprep.subr.mxu0 %v14283_v44  ;;  %v7941_v40 = vld [vmem:[%s10913_s24 + $0x50] sm:$0xff]  ;;  %v14437_v35 = vadd.f32 %v8685_v10, %v17109_v32  ;;  %v5904_v12 = vand.u32 4294901760, %v5903_v46  ;;  %v17110_v19 = vand.u32 4294901760, %v14280_v60  ;;  %v14448_v27 = vsub.f32 %v7940_v49, %v14416_v4  ;;  %v8736_v10 = vpop.f32.mrf.mxu1  ;;  %v17118_v44 = vld [vmem:[#allocation15_spill] sm:$0xff] }
 0x252   : > { %v5910_v59 = vsub.f32 %v14343_v45, %v17106_v31  ;;  %17107 = vst [vmem:[#allocation99_spill] sm:$0xff] %v14428_v20  ;;  %9088 = vmatprep.subr.mxu1 %v5890_v42  ;;  %v5599_v7 = vsub.f32 %v14352_v14, %v17108_v26  ;;  %v14440_v31 = vadd.f32 %v8735_v52, %v14299_v55  ;;  %v7931_v26 = vld [vmem:[%s10942_s11 + $0x50] sm:$0xff]  ;;  %v5594_v52 = vand.u32 4294901760, %v5593_v2  ;;  %v8687_v2 = vpop.f32.mrf.mxu0 }
 0x253   : > { %9041 = vmatpush3.msra.mxu0 %v14256_v47  ;;  %v5798_v42 = vsub.f32 %v14280_v60, %v17110_v19  ;;  %17111 = vst [vmem:[#allocation11_spill] sm:$0xff] %v14448_v27  ;;  %9089 = vmatpush3.msra.mxu1 %v5778_v51  ;;  %v5792_v55 = vand.u32 4294901760, %v14402_v17  ;;  %v17112_v25 = vand.u32 4294901760, %v14372_v58  ;;  %v17113_v32 = vand.u32 4294901760, %v14310_v22  ;;  %v17120_v14 = vld [vmem:[#allocation36_spill] sm:$0xff] }
 0x254   : > { %5586 = vmatmul.mubr.f32.vlgmr.msra.gmra.mxu0 %v5585_v23  ;;  %9090 = vmatprep.subr.mxu1 %v5897_v37  ;;  %v5911_v49 = vand.u32 4294901760, %v5910_v59  ;;  %v17115_v47 = vand.u32 4294901760, %v14390_v11  ;;  %v14463_v23 = vsub.f32 %v7929_v38, %v14428_v20  ;;  %v14465_v17 = vand.u32 4294901760, %v7941_v40 }
 0x255   : > { %v5917_v46 = vsub.f32 %v14372_v58, %v17112_v25  ;;  %v5805_v19 = vsub.f32 %v14310_v22, %v17113_v32  ;;  %9122 = vmatprep.subr.mxu0 %v17114_v39  ;;  %v8737_v25 = vpop.f32.mrf.mxu1  ;;  %9091 = vmatpush3.msra.mxu1 %v5785_v29  ;;  %v5600_v32 = vand.u32 4294901760, %v5599_v7  ;;  %v14468_v37 = vand.u32 4294901760, %v7931_v26  ;;  %v17122_v7 = vld [vmem:[#allocation44_spill] sm:$0xff] }
 0x256   : > { %v5608_v51 = vsub.f32 %v14390_v11, %v17115_v47  ;;  %17116 = vst [vmem:[#allocation100_spill] sm:$0xff] %v14463_v23  ;;  %17117 = vst [vmem:[#allocation101_spill] sm:$0xff] %v14465_v17  ;;  %9123 = vmatpush3.msra.mxu0 %v17118_v44  ;;  %v8688_v8 = vadd.f32 %v8687_v2, %v8686_v15  ;;  %v8738_v59 = vadd.f32 %v8737_v25, %v8736_v10  ;;  %v7933_v25 = vld [vmem:[%s10942_s11 + $0x60] sm:$0xff] }
 0x257   : > { %17119 = vst [vmem:[#allocation102_spill] sm:$0xff] %v14468_v37  ;;  %9092 = vmatprep.subr.mxu1 %v5904_v12  ;;  %9124 = vmatprep.subr.mxu0 %v17120_v14  ;;  %v5799_v47 = vand.u32 4294901760, %v5798_v42  ;;  %v17121_v11 = vand.u32 4294901760, %v14414_v24  ;;  %v16268_v39 = vand.u32 4294901760, %v14448_v27  ;;  %v5918_v29 = vand.u32 4294901760, %v5917_v46  ;;  %v17123_v12 = vld [vmem:[#allocation34_spill] sm:$0xff] }
 0x258   : > { %5595 = vmatprep.mubr.f32.mxu0 %v5594_v52  ;;  %9093 = vmatpush3.msra.mxu1 %v5792_v55  ;;  %v14477_v44 = vadd.f32 %v8688_v8, %v17122_v7  ;;  %v14480_v15 = vadd.f32 %v8738_v59, %v14376_v53  ;;  %v5609_v42 = vand.u32 4294901760, %v5608_v51  ;;  %v5806_v10 = vand.u32 4294901760, %v5805_v19  ;;  %v8689_v52 = vpop.f32.mrf.mxu0  ;;  %v8739_v55 = vpop.f32.mrf.mxu1  ;;  %v17125_v46 = vld [vmem:[#allocation54_spill] sm:$0xff] }
 0x259   : > { %v5614_v38 = vsub.f32 %v14414_v24, %v17121_v11  ;;  %9125 = vmatpush3.msra.mxu0 %v17123_v12  ;;  %9094 = vmatprep.subr.mxu1 %v5911_v49  ;;  %v16269_v11 = vand.u32 4294901760, %v14463_v23  ;;  %v14485_v2 = vsub.f32 %v7941_v40, %v14465_v17  ;;  %v14489_v8 = vsub.f32 %v7931_v26, %v14468_v37  ;;  %v17128_v49 = vld [vmem:[#allocation35_spill] sm:$0xff]  ;;  %v17129_v59 = vld [vmem:[#allocation78_spill] sm:$0xff] }
 0x25a   : > { %5601 = vmatmul.mubr.f32.gmra.mxu0 %v5600_v32  ;;  %9126 = vmatprep.subr.mxu0 %v17125_v46  ;;  %v14491_v53 = vand.u32 4294901760, %v7942_v57  ;;  %v5623_v40 = vsub.f32 %v14448_v27, %v16268_v39  ;;  %v8690_v51 = vpop.f32.mrf.mxu0  ;;  %v8740_v32 = vpop.f32.mrf.mxu1  ;;  %v14503_v24 = vand.u32 4294901760, %v7933_v25  ;;  %v17131_v39 = vld [vmem:[#allocation20_spill] sm:$0xff]  ;;  %v17137_v27 = vld [vmem:[#allocation9_spill] sm:$0xff]  ;;  %v17159_v46 = vld [vmem:[#allocation71_spill] sm:$0xff] }
 0x25b   : > { %17124 = vst [vmem:[#allocation36_spill] sm:$0xff] %v14485_v2  ;;  %17126 = vst [vmem:[#allocation44_spill] sm:$0xff] %v14489_v8  ;;  %9095 = vmatpush3.msra.mxu1 %v5799_v47  ;;  %9127 = vmatpush3.msra.mxu0 %v17128_v49  ;;  %v5615_v19 = vand.u32 4294901760, %v5614_v38  ;;  %v8691_v26 = vadd.f32 %v8690_v51, %v8689_v52  ;;  %v8741_v7 = vadd.f32 %v8740_v32, %v8739_v55 }
 0x25c   : > { %17127 = vst [vmem:[#allocation34_spill] sm:$0xff] %v14491_v53  ;;  %9096 = vmatprep.subr.mxu1 %v5918_v29  ;;  %9128 = vmatprep.subr.mxu0 %v17129_v59  ;;  %v5629_v47 = vsub.f32 %v14463_v23, %v16269_v11  ;;  %17130 = vst [vmem:[#allocation103_spill] sm:$0xff] %v14503_v24  ;;  %v14509_v52 = vsub.f32 %v7942_v57, %v14491_v53  ;;  %v5624_v32 = vand.u32 4294901760, %v5623_v40  ;;  %v8692_v11 = vpop.f32.mrf.mxu0  ;;  %v8742_v38 = vpop.f32.mrf.mxu1  ;;  %v17135_v29 = vld [vmem:[#allocation16_spill] sm:$0xff]  ;;  %v17136_v23 = vld [vmem:[#allocation22_spill] sm:$0xff] }
 0x25d   : > { %5610 = vmatprep.mubr.f32.mxu0 %v5609_v42  ;;  %9097 = vmatpush3.msra.mxu1 %v5806_v10  ;;  %v7943_v42 = vld [vmem:[%s10913_s24 + $0x70] sm:$0xff]  ;;  %v17133_v10 = vld [vmem:[#allocation81_spill] sm:$0xff]  ;;  %v14517_v51 = vadd.f32 %v8741_v7, %v14437_v35 }
 0x25e   : > { %5921 = vmatprep.mubr.f32.mxu1 %v14170_v3  ;;  %9129 = vmatpush3.msra.mxu0 %v17131_v39  ;;  %17132 = vst [vmem:[#allocation104_spill] sm:$0xff] %v14509_v52  ;;  %v14514_v55 = vadd.f32 %v8691_v26, %v17133_v10  ;;  %v17134_v3 = vld [vmem:[#allocation17_spill] sm:$0xff]  ;;  %v7935_v57 = vld [vmem:[%s10942_s11 + $0x70] sm:$0xff]  ;;  %v5630_v26 = vand.u32 4294901760, %v5629_v47  ;;  %v17138_v10 = vand.u32 4294901760, %v14485_v2  ;;  %v14531_v40 = vand.u32 4294901760, %v7943_v42  ;;  %v8693_v7 = vpop.f32.mrf.mxu0 }
 0x25f   : > { %5616 = vmatmul.mubr.f32.gmra.mxu0 %v5615_v19  ;;  %5923 = vmatmul.mubr.f32.vlgmr.msra.gmra.mxu1 %v14185_v41  ;;  %v14529_v19 = vsub.f32 %v7933_v25, %v14503_v24  ;;  %v8743_v41 = vpop.f32.mrf.mxu1  ;;  %v17142_v47 = vld [vmem:[#allocation31_spill] sm:$0xff] }
 0x260   : > { %9130 = vmatprep.subr.mxu0 %v17134_v3  ;;  %9178 = vmatprep.subr.mxu1 %v17135_v29  ;;  %v5638_v35 = vsub.f32 %v14485_v2, %v17138_v10  ;;  %17140 = vst [vmem:[#allocation105_spill] sm:$0xff] %v14531_v40  ;;  %v8694_v2 = vadd.f32 %v8693_v7, %v8692_v11  ;;  %v14545_v3 = vand.u32 4294901760, %v7935_v57  ;;  %v730_v39 = vld [vmem:[%s634_s25 + $0x8] sm:$0x1] }
 0x261   : > { %9131 = vmatpush3.msra.mxu0 %v17136_v23  ;;  %9179 = vmatpush3.msra.mxu1 %v17137_v27  ;;  %17139 = vst [vmem:[#allocation81_spill] sm:$0xff] %v14529_v19  ;;  %v17141_v23 = vld [vmem:[#allocation42_spill] sm:$0xff]  ;;  %v17143_v27 = vand.u32 4294901760, %v14489_v8  ;;  %v8744_v29 = vadd.f32 %v8743_v41, %v8742_v38  ;;  %v8695_v7 = vpop.f32.mrf.mxu0  ;;  %v5412_v38 = vrot.slane %v730_v39, 1 }
 0x262   : > { %9132 = vmatprep.subr.mxu0 %v17141_v23  ;;  %9180 = vmatprep.subr.mxu1 %v17142_v47  ;;  %17144 = vst [vmem:[#allocation106_spill] sm:$0xff] %v14545_v3  ;;  %v17145_v23 = vld [vmem:[#allocation10_spill] sm:$0xff]  ;;  %v17146_v47 = vld [vmem:[#allocation29_spill] sm:$0xff]  ;;  %v3849_v25 = vadd.f32 %v8694_v2, %v14223_v1  ;;  %v5639_v11 = vand.u32 4294901760, %v5638_v35  ;;  %v17150_v1 = vand.u32 4294901760, %v14509_v52  ;;  %v14571_v35 = vsub.f32 %v7935_v57, %v14545_v3 }
 0x263   : > { %v5644_v10 = vsub.f32 %v14489_v8, %v17143_v27  ;;  %5625 = vmatprep.mubr.f32.mxu0 %v5624_v32  ;;  %5928 = vmatprep.mubr.f32.mxu1 %v14267_v30  ;;  %v739_v27 = vld [vmem:[%s647_s19] sm:$0xff]  ;;  %v14556_v41 = vadd.f32 %v8744_v29, %v14477_v44  ;;  %v14561_v32 = vsub.f32 %v7943_v42, %v14531_v40  ;;  %v8745_v30 = vpop.f32.mrf.mxu1  ;;  %v17148_v8 = vld [vmem:[#allocation56_spill] sm:$0xff]  ;;  %v17151_v29 = vld [vmem:[#allocation63_spill] sm:$0xff]  ;;  %s15699_s19 = scalar_lea.hbm %s15761_s8, %s8049_s20 }
 0x264   : > { %9133 = vmatpush3.msra.mxu0 %v17145_v23  ;;  %9181 = vmatpush3.msra.mxu1 %v17146_v47  ;;  %v17149_v47 = vld [vmem:[#allocation21_spill] sm:$0xff]  ;;  %v5653_v44 = vsub.f32 %v14509_v52, %v17150_v1  ;;  %v729_v2 = vld [vmem:[%s634_s25] sm:$0xff]  ;;  %v17156_v52 = vand.u32 4294901760, %v14529_v19 }
 0x265   : > { %5631 = vmatmul.mubr.f32.gmra.mxu0 %v5630_v26  ;;  %5930 = vmatmul.mubr.f32.gmra.mxu1 %v14293_v28  ;;  %17147 = vst [vmem:[#allocation107_spill] sm:$0xff] %v14561_v32  ;;  %v5645_v23 = vand.u32 4294901760, %v5644_v10  ;;  %v17152_v26 = vld [vmem:[#allocation38_spill] sm:$0xff]  ;;  %v5411_v42 = vrot.slane %v729_v2, 1  ;;  %v14573_v28 = vand.u32 4294901760, %v739_v27  ;;  %v8746_v59 = vpop.f32.mrf.mxu1  ;;  %v17155_v10 = vld [vmem:[#allocation51_spill] sm:$0xff] }
 0x266   : > { %9134 = vmatprep.subr.mxu0 %v17148_v8  ;;  %9182 = vmatprep.subr.mxu1 %v17149_v47  ;;  %v8696_v8 = vpop.f32.mrf.mxu0  ;;  %v17154_v47 = vld [vmem:[#allocation66_spill] sm:$0xff]  ;;  %v8747_v1 = vadd.f32 %v8746_v59, %v8745_v30  ;;  %v5659_v57 = vsub.f32 %v14529_v19, %v17156_v52  ;;  %v14582_v39 = vand.u32 4294901760, %v729_v2  ;;  %v5654_v30 = vand.u32 4294901760, %v5653_v44 }
 0x267   : > { %9135 = vmatpush3.msra.mxu0 %v17151_v29  ;;  %9183 = vmatpush3.msra.mxu1 %v17152_v26  ;;  %17153 = vst [vmem:[#allocation108_spill] sm:$0xff] %v14573_v28  ;;  %v8697_v49 = vadd.f32 %v8696_v8, %v8695_v7  ;;  %v17158_v29 = vld [vmem:[#allocation32_spill] sm:$0xff]  ;;  %v14593_v52 = vsub.f32 %v739_v27, %v14573_v28  ;;  %v17165_v44 = vand.u32 4294901760, %v14561_v32 }
 0x268   : > { %9136 = vmatprep.subr.mxu0 %v17154_v47  ;;  %9184 = vmatprep.subr.mxu1 %v17155_v10  ;;  %17157 = vst [vmem:[#allocation51_spill] sm:$0xff] %v14582_v39  ;;  %v14588_v8 = vadd.f32 %v8747_v1, %v14514_v55  ;;  %v8786_v7 = vpop.f32.mrf.mxu0  ;;  %v14596_v26 = vsel %vm756_vm0, %v5411_v42, %v5412_v38  ;;  %v5660_v55 = vand.u32 4294901760, %v5659_v57  ;;  %v17166_v38 = vld [vmem:[#allocation49_spill] sm:$0xff]  ;;  %v17168_v57 = vand.u32 4294901760, %v14571_v35 }
 0x269   : > { %5640 = vmatprep.mubr.f32.mxu0 %v5639_v11  ;;  %5935 = vmatprep.mubr.f32.mxu1 %v14345_v34  ;;  %v3858_v47 = vadd.f32 %v8697_v49, %v14296_v63  ;;  %v8748_v11 = vpop.f32.mrf.mxu1  ;;  %17160 = vst [vmem:[#allocation32_spill] sm:$0xff] %v14596_v26  ;;  %v17161_v34 = vld [vmem:[#allocation45_spill] sm:$0xff]  ;;  %v17162_v63 = vld [vmem:[#allocation74_spill] sm:$0xff]  ;;  %v17163_v49 = vld [vmem:[#allocation19_spill] sm:$0xff]  ;;  %v5668_v1 = vsub.f32 %v14561_v32, %v17165_v44  ;;  %v16297_v44 = vand.u32 4294901760, %v14593_v52 }
 0x26a   : > { %9137 = vmatpush3.msra.mxu0 %v17158_v29  ;;  %9185 = vmatpush3.msra.mxu1 %v17159_v46  ;;  %v14606_v27 = vsub.f32 %v729_v2, %v14582_v39  ;;  %v17167_v42 = vld [vmem:[#allocation57_spill] sm:$0xff]  ;;  %v17169_v32 = vld [vmem:[#allocation27_spill] sm:$0xff]  ;;  %v17170_v2 = vld [vmem:[#allocation70_spill] sm:$0xff] }
 0x26b   : > { %5646 = vmatmul.mubr.f32.gmra.mxu0 %v5645_v23  ;;  %5937 = vmatmul.mubr.f32.gmra.mxu1 %v14364_v43  ;;  %v17164_v23 = vld [vmem:[#allocation76_spill] sm:$0xff]  ;;  %v8749_v59 = vpop.f32.mrf.mxu1  ;;  %v8787_v43 = vpop.f32.mrf.mxu0 }
 0x26c   : > { %9138 = vmatprep.subr.mxu0 %v17161_v34  ;;  %9186 = vmatprep.subr.mxu1 %v17162_v63  ;;  %v8750_v26 = vadd.f32 %v8749_v59, %v8748_v11  ;;  %v8788_v19 = vadd.f32 %v8787_v43, %v8786_v7  ;;  %v5669_v43 = vand.u32 4294901760, %v5668_v1  ;;  %v17171_v7 = vld [vmem:[#allocation8_spill] sm:$0xff] }
 0x26d   : > { %9139 = vmatpush3.msra.mxu0 %v17163_v49  ;;  %9187 = vmatpush3.msra.mxu1 %v17164_v23  ;;  %v5674_v23 = vsub.f32 %v14571_v35, %v17168_v57  ;;  %v8751_v59 = vpop.f32.mrf.mxu1 }
 0x26e   : > { %9140 = vmatprep.subr.mxu0 %v17166_v38  ;;  %9188 = vmatprep.subr.mxu1 %v17167_v42  ;;  %v14617_v49 = vadd.f32 %v8750_v26, %v3849_v25  ;;  %v4211_v38 = vadd.f32 %v8788_v19, %v14379_v61  ;;  %v8789_v11 = vpop.f32.mrf.mxu0  ;;  %v5683_v61 = vsub.f32 %v14593_v52, %v16297_v44 }
 0x26f   : > { %5655 = vmatprep.mubr.f32.mxu0 %v5654_v30  ;;  %5942 = vmatprep.mubr.f32.mxu1 %v14416_v4  ;;  %v16300_v30 = vand.u32 4294901760, %v14606_v27  ;;  %v5675_v25 = vand.u32 4294901760, %v5674_v23  ;;  %v8752_v19 = vpop.f32.mrf.mxu1  ;;  %v17172_v23 = vld [vmem:[#allocation46_spill] sm:$0xff]  ;;  %v17186_v4 = vld [vmem:[#allocation73_spill] sm:$0xff] }
 0x270   : > { %9141 = vmatpush3.msra.mxu0 %v17169_v32  ;;  %9189 = vmatpush3.msra.mxu1 %v17170_v2  ;;  %v8790_v26 = vpop.f32.mrf.mxu0 }
 0x271   : > { %5661 = vmatmul.mubr.f32.gmra.mxu0 %v5660_v55  ;;  %5944 = vmatmul.mubr.f32.gmra.mxu1 %v14428_v20  ;;  %v8753_v55 = vadd.f32 %v8752_v19, %v8751_v59  ;;  %v8791_v1 = vadd.f32 %v8790_v26, %v8789_v11  ;;  %v5689_v57 = vsub.f32 %v14606_v27, %v16300_v30  ;;  %v5684_v59 = vand.u32 4294901760, %v5683_v61  ;;  %v17173_v19 = vld [vmem:[#allocation59_spill] sm:$0xff] }
 0x272   : > { %9142 = vmatprep.subr.mxu0 %v14125_v48  ;;  %9190 = vmatprep.subr.mxu1 %v17171_v7  ;;  %v17174_v26 = vld [vmem:[#allocation67_spill] sm:$0xff] }
 0x273   : > { %9143 = vmatpush3.msra.mxu0 %v14115_v16  ;;  %9191 = vmatpush3.msra.mxu1 %v13902_v62  ;;  %v14637_v44 = vadd.f32 %v8753_v55, %v3858_v47  ;;  %v4218_v20 = vadd.f32 %v8791_v1, %v14440_v31  ;;  %v5690_v30 = vand.u32 4294901760, %v5689_v57 }
 0x274   : > { %9144 = vmatprep.subr.mxu0 %v14210_v0  ;;  %9192 = vmatprep.subr.mxu1 %v13913_v50  ;;  %v8792_v11 = vpop.f32.mrf.mxu0 }
 0x275   : > { %5670 = vmatprep.mubr.f32.mxu0 %v5669_v43  ;;  %5949 = vmatprep.mubr.f32.mxu1 %v14465_v17  ;;  %v8842_v43 = vpop.f32.mrf.mxu1 }
 0x276   : > { %9145 = vmatpush3.msra.mxu0 %v14143_v36  ;;  %9193 = vmatpush3.msra.mxu1 %v17172_v23  ;;  %v8793_v17 = vpop.f32.mrf.mxu0 }
 0x277   : > { %5676 = vmatmul.mubr.f32.gmra.mxu0 %v5675_v25  ;;  %5951 = vmatmul.mubr.f32.gmra.mxu1 %v14468_v37  ;;  %v8843_v47 = vpop.f32.mrf.mxu1  ;;  %v8794_v31 = vadd.f32 %v8793_v17, %v8792_v11  ;;  %v17176_v11 = vld [vmem:[#allocation88_spill] sm:$0xff] }
 0x278   : > { %9146 = vmatprep.subr.mxu0 %v14265_v56  ;;  %9194 = vmatprep.subr.mxu1 %v17173_v19  ;;  %v8844_v25 = vadd.f32 %v8843_v47, %v8842_v43 }
 0x279   : > { %9147 = vmatpush3.msra.mxu0 %v14200_v54  ;;  %9195 = vmatpush3.msra.mxu1 %v17174_v26  ;;  %v4225_v61 = vadd.f32 %v8794_v31, %v14480_v15  ;;  %v8795_v1 = vpop.f32.mrf.mxu0  ;;  %v17175_v15 = vld [vmem:[#allocation79_spill] sm:$0xff]  ;;  %v17177_v31 = vld [vmem:[#allocation90_spill] sm:$0xff] }
 0x27a   : > { %9148 = vmatprep.subr.mxu0 %v14288_v21  ;;  %9196 = vmatprep.subr.mxu1 %v13993_v9  ;;  %v14651_v55 = vadd.f32 %v8844_v25, %v4211_v38  ;;  %v8845_v57 = vpop.f32.mrf.mxu1 }
 0x27b   : > { %5685 = vmatprep.mubr.f32.mxu0 %v5684_v59  ;;  %5956 = vmatprep.mubr.f32.mxu1 %v14491_v53  ;;  %v8796_v17 = vpop.f32.mrf.mxu0 }
 0x27c   : > { %9149 = vmatpush3.msra.mxu0 %v14203_v33  ;;  %9197 = vmatpush3.msra.mxu1 %v14000_v6  ;;  %v8846_v59 = vpop.f32.mrf.mxu1  ;;  %v8797_v38 = vadd.f32 %v8796_v17, %v8795_v1  ;;  %v17178_v1 = vld [vmem:[#allocation80_spill] sm:$0xff] }
 0x27d   : > { %5691 = vmatmul.mubr.f32.gmra.mxu0 %v5690_v30  ;;  %5958 = vmatmul.mubr.f32.gmra.mxu1 %v14503_v24  ;;  %v8847_v30 = vadd.f32 %v8846_v59, %v8845_v57  ;;  %v17179_v57 = vld [vmem:[#allocation13_spill] sm:$0xff]  ;;  %v17181_v59 = vld [vmem:[#allocation82_spill] sm:$0xff] }
 0x27e   : > { %9150 = vmatprep.subr.mxu0 %v14343_v45  ;;  %9198 = vmatprep.subr.mxu1 %v14055_v18  ;;  %v4232_v43 = vadd.f32 %v8797_v38, %v14517_v51  ;;  %v17180_v17 = vand.u32 4294901760, %v17179_v57  ;;  %v17185_v38 = vand.u32 4294901760, %v17120_v14  ;;  %v17187_v57 = vld [vmem:[#allocation83_spill] sm:$0xff] }
 0x27f   : > { %9151 = vmatpush3.msra.mxu0 %v14280_v60  ;;  %9199 = vmatpush3.msra.mxu1 %v14057_v13  ;;  %v14665_v47 = vadd.f32 %v8847_v30, %v4218_v20  ;;  %v8798_v25 = vpop.f32.mrf.mxu0  ;;  %v17184_v20 = vld [vmem:[#allocation84_spill] sm:$0xff] }
 0x280   : > { %9152 = vmatprep.subr.mxu0 %v14372_v58  ;;  %9200 = vmatprep.subr.mxu1 %v17175_v15  ;;  %v8848_v24 = vpop.f32.mrf.mxu1 }
 0x281   : > { %5963 = vmatprep.mubr.f32.mxu1 %v14531_v40  ;;  %9153 = vmatpush3.msra.mxu0 %v14310_v22  ;;  %v17182_v40 = vld [vmem:[#allocation15_spill] sm:$0xff]  ;;  %v8799_v37 = vpop.f32.mrf.mxu0 }
 0x282   : > { %6107 = vmatprep.mubr.f32.mxu0 %v17176_v11  ;;  %9201 = vmatpush3.msra.mxu1 %v14089_v5  ;;  %v17183_v53 = vand.u32 4294901760, %v17182_v40  ;;  %v8849_v51 = vpop.f32.mrf.mxu1  ;;  %v8800_v30 = vadd.f32 %v8799_v37, %v8798_v25  ;;  %v17191_v25 = vld [vmem:[#allocation54_spill] sm:$0xff] }
 0x283   : > { %5965 = vmatmul.mubr.f32.gmra.mxu1 %v14545_v3  ;;  %6110 = vmatmul.mubr.f32.vlgmr.msra.gmra.mxu0 %v17177_v31  ;;  %v8850_v3 = vadd.f32 %v8849_v51, %v8848_v24  ;;  %v17190_v24 = vld [vmem:[#allocation87_spill] sm:$0xff]  ;;  %v17192_v51 = vand.u32 4294901760, %v17191_v25  ;;  %v17201_v25 = vand.u32 4294901760, %v17176_v11  ;;  %v17209_v11 = vld [vmem:[#allocation22_spill] sm:$0xff] }
 0x284   : > { %9202 = vmatprep.subr.mxu1 %v17178_v1  ;;  %9234 = vmatprep.subr.mxu0 %v17180_v17  ;;  %v17188_v17 = vand.u32 4294901760, %v17123_v12 }
 0x285   : > { %9203 = vmatpush3.msra.mxu1 %v17181_v59  ;;  %9235 = vmatpush3.msra.mxu0 %v17183_v53  ;;  %v4239_v53 = vadd.f32 %v8800_v30, %v14556_v41  ;;  %v14684_v40 = vadd.f32 %v8850_v3, %v4225_v61  ;;  %v8801_v14 = vpop.f32.mrf.mxu0  ;;  %v17196_v3 = vld [vmem:[#allocation93_spill] sm:$0xff]  ;;  %v17197_v61 = vld [vmem:[#allocation78_spill] sm:$0xff] }
 0x286   : > { %9204 = vmatprep.subr.mxu1 %v17184_v20  ;;  %9236 = vmatprep.subr.mxu0 %v17185_v38  ;;  %v17189_v20 = vld [vmem:[#allocation96_spill] sm:$0xff]  ;;  %v8851_v37 = vpop.f32.mrf.mxu1  ;;  %v17193_v38 = vld [vmem:[#allocation89_spill] sm:$0xff]  ;;  %v17198_v30 = vand.u32 4294901760, %v17197_v61  ;;  %v17199_v59 = vld [vmem:[#allocation30_spill] sm:$0xff]  ;;  %v17205_v61 = vand.u32 4294901760, %v17177_v31 }
 0x287   : > { %5970 = vmatprep.mubr.f32.mxu1 %v14573_v28  ;;  %6116 = vmatprep.mubr.f32.mxu0 %v17186_v4  ;;  %v17194_v28 = vld [vmem:[#allocation35_spill] sm:$0xff] }
 0x288   : > { %9205 = vmatpush3.msra.mxu1 %v17187_v57  ;;  %9237 = vmatpush3.msra.mxu0 %v17188_v17  ;;  %v17195_v12 = vand.u32 4294901760, %v17194_v28  ;;  %v8802_v17 = vpop.f32.mrf.mxu0  ;;  %v8852_v41 = vpop.f32.mrf.mxu1 }
 0x289   : > { %5972 = vmatmul.mubr.f32.gmra.mxu1 %v14582_v39  ;;  %6119 = vmatmul.mubr.f32.gmra.mxu0 %v17189_v20  ;;  %v8803_v39 = vadd.f32 %v8802_v17, %v8801_v14  ;;  %v8853_v57 = vadd.f32 %v8852_v41, %v8851_v37  ;;  %v17206_v17 = vld [vmem:[#allocation17_spill] sm:$0xff] }
 0x28a   : > { %9206 = vmatprep.subr.mxu1 %v17190_v24  ;;  %9238 = vmatprep.subr.mxu0 %v17192_v51  ;;  %v17200_v24 = vld [vmem:[#allocation91_spill] sm:$0xff]  ;;  %v17202_v51 = vld [vmem:[#allocation20_spill] sm:$0xff]  ;;  %v17207_v41 = vand.u32 4294901760, %v17206_v17  ;;  %v17216_v17 = vand.u32 4294901760, %v17186_v4  ;;  %v17224_v4 = vld [vmem:[#allocation21_spill] sm:$0xff] }
 0x28b   : > { %9207 = vmatpush3.msra.mxu1 %v17193_v38  ;;  %9239 = vmatpush3.msra.mxu0 %v17195_v12  ;;  %v17203_v38 = vand.u32 4294901760, %v17202_v51  ;;  %v4246_v28 = vadd.f32 %v8803_v39, %v14588_v8  ;;  %v14704_v12 = vadd.f32 %v8853_v57, %v4232_v43  ;;  %v8804_v14 = vpop.f32.mrf.mxu0  ;;  %v17212_v43 = vld [vmem:[#allocation42_spill] sm:$0xff]  ;;  %v17214_v51 = vld [vmem:[#allocation31_spill] sm:$0xff] }
 0x28c   : > { %9208 = vmatprep.subr.mxu1 %v17196_v3  ;;  %9240 = vmatprep.subr.mxu0 %v17198_v30  ;;  %v17204_v3 = vld [vmem:[#allocation97_spill] sm:$0xff]  ;;  %v8854_v37 = vpop.f32.mrf.mxu1  ;;  %v17208_v30 = vld [vmem:[#allocation16_spill] sm:$0xff]  ;;  %v17213_v57 = vand.u32 4294901760, %v17212_v43 }
 0x28d   : > { %6125 = vmatprep.mubr.f32.mxu0 %v17199_v59  ;;  %9209 = vmatpush3.msra.mxu1 %v17200_v24  ;;  %v8805_v39 = vpop.f32.mrf.mxu0  ;;  %v17215_v24 = vld [vmem:[#allocation11_spill] sm:$0xff]  ;;  %v17220_v43 = vld [vmem:[#allocation100_spill] sm:$0xff] }
 0x28e   : > { %6277 = vmatprep.mubr.f32.mxu1 %v17201_v25  ;;  %9241 = vmatpush3.msra.mxu0 %v17203_v38  ;;  %v17210_v25 = vand.u32 4294901760, %v17209_v11  ;;  %v17211_v38 = vld [vmem:[#allocation9_spill] sm:$0xff]  ;;  %v8855_v8 = vpop.f32.mrf.mxu1  ;;  %v8806_v31 = vadd.f32 %v8805_v39, %v8804_v14  ;;  %v17222_v39 = vld [vmem:[#allocation56_spill] sm:$0xff] }
 0x28f   : > { %6128 = vmatmul.mubr.f32.gmra.mxu0 %v17204_v3  ;;  %6281 = vmatmul.mubr.f32.vlgmr.msra.gmra.mxu1 %v17205_v61  ;;  %v8856_v61 = vadd.f32 %v8855_v8, %v8854_v37  ;;  %v17219_v11 = vld [vmem:[#allocation29_spill] sm:$0xff]  ;;  %v17223_v8 = vand.u32 4294901760, %v17222_v39  ;;  %v17232_v39 = vand.u32 4294901760, %v17158_v29 }
 0x290   : > { %9242 = vmatprep.subr.mxu0 %v17207_v41  ;;  %9290 = vmatprep.subr.mxu1 %v17208_v30  ;;  %v17217_v41 = vld [vmem:[#allocation10_spill] sm:$0xff] }
 0x291   : > { %9243 = vmatpush3.msra.mxu0 %v17210_v25  ;;  %9291 = vmatpush3.msra.mxu1 %v17211_v38  ;;  %v17218_v30 = vand.u32 4294901760, %v17217_v41  ;;  %v4253_v25 = vadd.f32 %v8806_v31, %v14617_v49  ;;  %v14725_v38 = vadd.f32 %v8856_v61, %v4239_v53  ;;  %v8807_v14 = vpop.f32.mrf.mxu0  ;;  %v17227_v41 = vld [vmem:[#allocation38_spill] sm:$0xff] }
 0x292   : > { %9244 = vmatprep.subr.mxu0 %v17213_v57  ;;  %9292 = vmatprep.subr.mxu1 %v17214_v51  ;;  %v17221_v57 = vand.u32 4294901760, %v17189_v20  ;;  %v8857_v37 = vpop.f32.mrf.mxu1  ;;  %v17225_v51 = vld [vmem:[#allocation63_spill] sm:$0xff]  ;;  %v17228_v31 = vld [vmem:[#allocation66_spill] sm:$0xff] }
 0x293   : > { %6134 = vmatprep.mubr.f32.mxu0 %v17215_v24  ;;  %6288 = vmatprep.mubr.f32.mxu1 %v17216_v17  ;;  %v17226_v17 = vand.u32 4294901760, %v17225_v51  ;;  %v8808_v49 = vpop.f32.mrf.mxu0  ;;  %v17229_v61 = vand.u32 4294901760, %v17228_v31  ;;  %v17233_v51 = vld [vmem:[#allocation44_spill] sm:$0xff] }
 0x294   : > { %9245 = vmatpush3.msra.mxu0 %v17218_v30  ;;  %9293 = vmatpush3.msra.mxu1 %v17219_v11  ;;  %v8858_v53 = vpop.f32.mrf.mxu1  ;;  %v8809_v20 = vadd.f32 %v8808_v49, %v8807_v14  ;;  %v17230_v11 = vld [vmem:[#allocation36_spill] sm:$0xff]  ;;  %v17239_v49 = vld [vmem:[#allocation49_spill] sm:$0xff] }
 0x295   : > { %6137 = vmatmul.mubr.f32.gmra.mxu0 %v17220_v43  ;;  %6292 = vmatmul.mubr.f32.gmra.mxu1 %v17221_v57  ;;  %v8859_v30 = vadd.f32 %v8858_v53, %v8857_v37  ;;  %v17231_v57 = vand.u32 4294901760, %v17199_v59  ;;  %v17235_v37 = vand.u32 4294901760, %v17161_v34  ;;  %v17236_v59 = vld [vmem:[#allocation19_spill] sm:$0xff]  ;;  %v17240_v53 = vand.u32 4294901760, %v17239_v49  ;;  %v17241_v31 = vld [vmem:[#allocation104_spill] sm:$0xff] }
 0x296   : > { %9246 = vmatprep.subr.mxu0 %v17223_v8  ;;  %9294 = vmatprep.subr.mxu1 %v17224_v4  ;;  %v4260_v8 = vadd.f32 %v8809_v20, %v14637_v44  ;;  %v17244_v20 = vld [vmem:[#allocation81_spill] sm:$0xff] }
 0x297   : > { %9247 = vmatpush3.msra.mxu0 %v17226_v17  ;;  %9295 = vmatpush3.msra.mxu1 %v17227_v41  ;;  %v4399_v4 = vadd.f32 %v8859_v30, %v4246_v28  ;;  %v17234_v17 = vand.u32 4294901760, %v17204_v3  ;;  %v9788_v14 = vpop.f32.mrf.mxu0  ;;  %v17237_v41 = vand.u32 4294901760, %v17236_v59  ;;  %v17245_v30 = vand.u32 4294901760, %v17220_v43 }
 0x298   : > { %9248 = vmatprep.subr.mxu0 %v17229_v61  ;;  %9296 = vmatprep.subr.mxu1 %v17155_v10  ;;  %v8860_v10 = vpop.f32.mrf.mxu1  ;;  %v4514_v29 = vadd.f32 %v9788_v14, %v14665_v47  ;;  %v17243_v47 = vand.u32 4294901760, %v17169_v32  ;;  %v17247_v32 = vand.u32 4294901760, %v14115_v16  ;;  %v17251_v16 = vand.u32 4294901760, %v14143_v36 }
 0x299   : > { %6143 = vmatprep.mubr.f32.mxu0 %v17230_v11  ;;  %6299 = vmatprep.mubr.f32.mxu1 %v17231_v57  ;;  %v4503_v28 = vpop.f32.mrf.mxu0  ;;  %v17254_v36 = vand.u32 4294901760, %v14200_v54  ;;  %v17255_v14 = vand.u32 4294901760, %v14288_v21  ;;  %v17256_v54 = vand.u32 4294901760, %v17241_v31 }
 0x29a   : > { %9249 = vmatpush3.msra.mxu0 %v17232_v39  ;;  %9297 = vmatpush3.msra.mxu1 %v17159_v46  ;;  %v17238_v46 = vld [vmem:[#allocation76_spill] sm:$0xff]  ;;  %v8861_v44 = vpop.f32.mrf.mxu1  ;;  %v4504_v34 = vadd.f32 %v4503_v28, %v14651_v55  ;;  %v17246_v55 = vand.u32 4294901760, %v14125_v48  ;;  %v17248_v39 = vand.u32 4294901760, %v14210_v0  ;;  %v17252_v0 = vand.u32 4294901760, %v17233_v51 }
 0x29b   : > { %6146 = vmatmul.mubr.f32.gmra.mxu0 %v17233_v51  ;;  %6303 = vmatmul.mubr.f32.gmra.mxu1 %v17234_v17  ;;  %v8862_v3 = vadd.f32 %v8861_v44, %v8860_v10  ;;  %v17249_v17 = vld [vmem:[#allocation107_spill] sm:$0xff] }
 0x29c   : > { %9250 = vmatprep.subr.mxu0 %v17235_v37  ;;  %9298 = vmatprep.subr.mxu1 %v17162_v63  ;;  %v17242_v63 = vand.u32 4294901760, %v17215_v24 }
 0x29d   : > { %9251 = vmatpush3.msra.mxu0 %v17237_v41  ;;  %9299 = vmatpush3.msra.mxu1 %v17238_v46  ;;  %v4406_v61 = vadd.f32 %v8862_v3, %v4253_v25  ;;  %v8037_v46 = vld [vmem:[%s15759_s6 + $0x468] sm:$0xff]  ;;  %v8036_v3 = vld [vmem:[%s15759_s6 + $0x460] sm:$0xff] }
 0x29e   : > { %9252 = vmatprep.subr.mxu0 %v17240_v53  ;;  %9300 = vmatprep.subr.mxu1 %v17167_v42  ;;  %v8863_v42 = vpop.f32.mrf.mxu1  ;;  %v9791_v57 = vpop.f32.mrf.mxu0 }
 0x29f   : > { %6152 = vmatprep.mubr.f32.mxu0 %v17241_v31  ;;  %6310 = vmatprep.mubr.f32.mxu1 %v17242_v63  ;;  %v4534_v24 = vadd.f32 %v9791_v57, %v14704_v12  ;;  %v17265_v31 = vand.u32 4294901760, %v14571_v35  ;;  %v17266_v63 = vld [vmem:[#allocation86_spill] sm:$0xff] }
 0x2a0   : > { %9253 = vmatpush3.msra.mxu0 %v17243_v47  ;;  %9301 = vmatpush3.msra.mxu1 %v17170_v2  ;;  %v8864_v2 = vpop.f32.mrf.mxu1  ;;  %v4523_v25 = vpop.f32.mrf.mxu0  ;;  %v14860_v47 = vand.u32 4294901760, %v8036_v3 }
 0x2a1   : > { %6155 = vmatmul.mubr.f32.gmra.mxu0 %v17244_v20  ;;  %6314 = vmatmul.mubr.f32.gmra.mxu1 %v17245_v30  ;;  %v8865_v43 = vadd.f32 %v8864_v2, %v8863_v42  ;;  %v4524_v48 = vadd.f32 %v4523_v25, %v14684_v40  ;;  %v17253_v40 = vand.u32 4294901760, %v14265_v56  ;;  %v17269_v42 = vld [vmem:[#allocation84_spill] sm:$0xff]  ;;  %v17273_v25 = vld [vmem:[#allocation83_spill] sm:$0xff] }
 0x2a2   : > { %9254 = vmatprep.subr.mxu0 %v17246_v55  ;;  %9302 = vmatprep.subr.mxu1 %v17171_v7  ;;  %v17250_v7 = vand.u32 4294901760, %v17230_v11  ;;  %v17272_v2 = vld [vmem:[#allocation92_spill] sm:$0xff] }
 0x2a3   : > { %9255 = vmatpush3.msra.mxu0 %v17247_v32  ;;  %9303 = vmatpush3.msra.mxu1 %v13902_v62  ;;  %v4413_v62 = vadd.f32 %v8865_v43, %v4260_v8  ;;  %v9832_v12 = vpop.f32.mrf.mxu1  ;;  %v17271_v32 = vand.u32 4294901760, %v14593_v52 }
 0x2a4   : > { %9256 = vmatprep.subr.mxu0 %v17248_v39  ;;  %9304 = vmatprep.subr.mxu1 %v13913_v50  ;;  %v9794_v50 = vpop.f32.mrf.mxu0  ;;  %v14792_v10 = vadd.f32 %v9832_v12, %v4514_v29  ;;  %v17259_v29 = vand.u32 4294901760, %v14343_v45  ;;  %v17261_v45 = vand.u32 4294901760, %v14372_v58  ;;  %v17264_v58 = vld [vmem:[#allocation85_spill] sm:$0xff] }
 0x2a5   : > { %6161 = vmatprep.mubr.f32.mxu0 %v17249_v17  ;;  %6321 = vmatprep.mubr.f32.mxu1 %v17250_v7  ;;  %v4554_v11 = vadd.f32 %v9794_v50, %v4399_v4  ;;  %v4724_v51 = vpop.f32.mrf.mxu1  ;;  %v17257_v4 = vand.u32 4294901760, %v14203_v33  ;;  %v17274_v7 = vand.u32 4294901760, %v14606_v27 }
 0x2a6   : > { %9257 = vmatpush3.msra.mxu0 %v17251_v16  ;;  %9305 = vmatpush3.msra.mxu1 %v17172_v23  ;;  %v8039_v23 = vld [vmem:[%s15759_s6 + $0x478] sm:$0xff]  ;;  %v4543_v8 = vpop.f32.mrf.mxu0 }
 0x2a7   : > { %6164 = vmatmul.mubr.f32.gmra.mxu0 %v14571_v35  ;;  %6325 = vmatmul.mubr.f32.gmra.mxu1 %v17252_v0  ;;  %v4544_v56 = vadd.f32 %v4543_v8, %v14725_v38  ;;  %v14815_v21 = vand.u32 4294901760, %v8039_v23  ;;  %v8035_v35 = vld [vmem:[%s15759_s6 + $0x458] sm:$0xff]  ;;  %v17276_v0 = vld [vmem:[#allocation87_spill] sm:$0xff] }
 0x2a8   : > { %9258 = vmatprep.subr.mxu0 %v17253_v40  ;;  %9306 = vmatprep.subr.mxu1 %v17173_v19  ;;  %v14804_v19 = vadd.f32 %v4724_v51, %v4504_v34  ;;  %v14890_v39 = vand.u32 4294901760, %v8035_v35  ;;  %v17279_v8 = vld [vmem:[#allocation93_spill] sm:$0xff] }
 0x2a9   : > { %9259 = vmatpush3.msra.mxu0 %v17254_v36  ;;  %9307 = vmatpush3.msra.mxu1 %v17174_v26  ;;  %v8038_v26 = vld [vmem:[%s15759_s6 + $0x470] sm:$0xff]  ;;  %v9797_v38 = vpop.f32.mrf.mxu0  ;;  %v8032_v36 = vld [vmem:[%s15759_s6 + $0x440] sm:$0xff] }
 0x2aa   : > { %9260 = vmatprep.subr.mxu0 %v17255_v14  ;;  %9308 = vmatprep.subr.mxu1 %v13993_v9  ;;  %v17258_v9 = vand.u32 4294901760, %v17244_v20  ;;  %v9835_v37 = vpop.f32.mrf.mxu1  ;;  %v14823_v59 = vand.u32 4294901760, %v8038_v26  ;;  %v4574_v33 = vadd.f32 %v9797_v38, %v4413_v62  ;;  %v17268_v20 = vld [vmem:[#allocation82_spill] sm:$0xff] }
 0x2ab   : > { %6170 = vmatprep.mubr.f32.mxu0 %v14593_v52  ;;  %6332 = vmatprep.mubr.f32.mxu1 %v17256_v54  ;;  %v14825_v41 = vadd.f32 %v9835_v37, %v4534_v24  ;;  %v4563_v44 = vpop.f32.mrf.mxu0  ;;  %v17275_v52 = vld [vmem:[#allocation94_spill] sm:$0xff]  ;;  %v17281_v54 = vld [vmem:[#allocation95_spill] sm:$0xff] }
 0x2ac   : > { %9261 = vmatpush3.msra.mxu0 %v17257_v4  ;;  %9309 = vmatpush3.msra.mxu1 %v14000_v6  ;;  %v17260_v6 = vand.u32 4294901760, %v14280_v60  ;;  %v4736_v28 = vpop.f32.mrf.mxu1  ;;  %v4564_v49 = vadd.f32 %v4563_v44, %v4406_v61  ;;  %v17262_v60 = vand.u32 4294901760, %v17249_v17  ;;  %v14853_v34 = vsub.f32 %v8038_v26, %v14823_v59  ;;  %v17282_v26 = vld [vmem:[#allocation91_spill] sm:$0xff] }
 0x2ad   : > { %6173 = vmatmul.mubr.f32.gmra.mxu0 %v14606_v27  ;;  %6336 = vmatmul.mubr.f32.gmra.mxu1 %v17258_v9  ;;  %v14839_v53 = vadd.f32 %v4736_v28, %v4524_v48  ;;  %v14895_v48 = vsub.f32 %v8036_v3, %v14860_v47  ;;  %v8033_v27 = vld [vmem:[%s15759_s6 + $0x448] sm:$0xff]  ;;  %v8030_v28 = vld [vmem:[%s15759_s6 + $0x430] sm:$0xff] }
 0x2ae   : > { %9262 = vmatprep.subr.mxu0 %v17259_v29  ;;  %9310 = vmatprep.subr.mxu1 %v14055_v18  ;;  %v14837_v18 = vsub.f32 %v8039_v23, %v14815_v21  ;;  %v14878_v57 = vand.u32 4294901760, %v14853_v34  ;;  %v14936_v38 = vand.u32 4294901760, %v8033_v27  ;;  %v14940_v29 = vand.u32 4294901760, %v8032_v36 }
 0x2af   : > { %9263 = vmatpush3.msra.mxu0 %v17260_v6  ;;  %9311 = vmatpush3.msra.mxu1 %v14057_v13  ;;  %v17263_v13 = vand.u32 4294901760, %v14310_v22  ;;  %v9838_v22 = vpop.f32.mrf.mxu1  ;;  %v14924_v14 = vand.u32 4294901760, %v14895_v48 }
 0x2b0   : > { %9264 = vmatprep.subr.mxu0 %v17261_v45  ;;  %9312 = vmatprep.subr.mxu1 %v17175_v15  ;;  %v14850_v15 = vand.u32 4294901760, %v8037_v46  ;;  %v14863_v61 = vand.u32 4294901760, %v14837_v18  ;;  %17270 = vst [vmem:[#allocation45_spill] sm:$0xff] %v14878_v57  ;;  %v6905_v50 = vsub.f32 %v14853_v34, %v14878_v57  ;;  %17283 = vst [vmem:[#allocation27_spill] sm:$0xff] %v14936_v38 }
 0x2b1   : > { %6343 = vmatprep.mubr.f32.mxu1 %v17262_v60  ;;  %9265 = vmatpush3.msra.mxu0 %v17263_v13  ;;  %v4748_v30 = vpop.f32.mrf.mxu1  ;;  %17280 = vst [vmem:[#allocation57_spill] sm:$0xff] %v14924_v14  ;;  %17284 = vst [vmem:[#allocation70_spill] sm:$0xff] %v14940_v29  ;;  %v6919_v6 = vsub.f32 %v14895_v48, %v14924_v14  ;;  %v14963_v13 = vsub.f32 %v8033_v27, %v14936_v38 }
 0x2b2   : > { %6524 = vmatprep.mubr.f32.mxu0 %v17264_v58  ;;  %9313 = vmatpush3.msra.mxu1 %v14089_v5  ;;  %17267 = vst [vmem:[#allocation71_spill] sm:$0xff] %v14863_v61  ;;  %v14865_v5 = vadd.f32 %v9838_v22, %v4554_v11  ;;  %v14881_v55 = vsub.f32 %v8037_v46, %v14850_v15  ;;  %v17278_v11 = vld [vmem:[#allocation89_spill] sm:$0xff]  ;;  %v6906_v9 = vand.u32 4294901760, %v6905_v50  ;;  %v10348_v50 = vld [vmem:[%s10942_s11 + $0x10] sm:$0xff] }
 0x2b3   : > { %6347 = vmatmul.mubr.f32.gmra.mxu1 %v17265_v31  ;;  %6526 = vmatmul.mubr.f32.vlgmr.msra.gmra.mxu0 %v17266_v63  ;;  %v14883_v24 = vadd.f32 %v4748_v30, %v4544_v56  ;;  %v6898_v43 = vsub.f32 %v14837_v18, %v14863_v61  ;;  %v14927_v56 = vsub.f32 %v8035_v35, %v14890_v39  ;;  %v8031_v46 = vld [vmem:[%s15759_s6 + $0x438] sm:$0xff] }
 0x2b4   : > { %9314 = vmatprep.subr.mxu1 %v17178_v1  ;;  %10018 = vmatprep.subr.mxu0 %v14815_v21  ;;  %v8034_v1 = vld [vmem:[%s15759_s6 + $0x450] sm:$0xff]  ;;  %v9841_v17 = vpop.f32.mrf.mxu1  ;;  %v14909_v12 = vand.u32 4294901760, %v14881_v55  ;;  %v14966_v3 = vsub.f32 %v8032_v36, %v14940_v29  ;;  %v14970_v31 = vand.u32 4294901760, %v8031_v46  ;;  %v7924_v22 = vld [vmem:[%s10942_s11 + $0x18] sm:$0x1] }
 0x2b5   : > { %9315 = vmatpush3.msra.mxu1 %v17268_v20  ;;  %10019 = vmatpush3.msra.mxu0 %v14815_v21  ;;  %v14900_v16 = vand.u32 4294901760, %v8034_v1  ;;  %v14902_v62 = vadd.f32 %v9841_v17, %v4574_v33  ;;  %v6899_v51 = vand.u32 4294901760, %v6898_v43  ;;  %v17285_v33 = vld [vmem:[#allocation52_spill] sm:$0xff]  ;;  %v14951_v44 = vand.u32 4294901760, %v14927_v56  ;;  %v8029_v43 = vld [vmem:[%s15759_s6 + $0x428] sm:$0xff] }
 0x2b6   : > { %9316 = vmatprep.subr.mxu1 %v17269_v42  ;;  %10020 = vmatprep.subr.mxu0 %v14823_v59  ;;  %17277 = vst [vmem:[#allocation74_spill] sm:$0xff] %v14909_v12  ;;  %v4760_v40 = vpop.f32.mrf.mxu1  ;;  %v6912_v37 = vsub.f32 %v14881_v55, %v14909_v12  ;;  %17289 = vst [vmem:[#allocation59_spill] sm:$0xff] %v14970_v31  ;;  %v6920_v20 = vand.u32 4294901760, %v6919_v6  ;;  %v10347_v42 = vld [vmem:[%s10942_s11 + $0x20] sm:$0xff] }
 0x2b7   : > { %6354 = vmatprep.mubr.f32.mxu1 %v17271_v32  ;;  %6531 = vmatprep.mubr.f32.mxu0 %v17272_v2  ;;  %v14919_v23 = vadd.f32 %v4760_v40, %v4564_v49  ;;  %v14932_v4 = vsub.f32 %v8034_v1, %v14900_v16  ;;  %17286 = vst [vmem:[#allocation8_spill] sm:$0xff] %v14951_v44  ;;  %v7926_v49 = vld [vmem:[%s10942_s11 + $0x28] sm:$0x1]  ;;  %v5393_v1 = vrot.slane %v10347_v42, 1  ;;  %v5390_v40 = vrot.slane %v10348_v50, 1 }
 0x2b8   : > { %9317 = vmatpush3.msra.mxu1 %v17273_v25  ;;  %10021 = vmatpush3.msra.mxu0 %v14823_v59  ;;  %v6913_v60 = vand.u32 4294901760, %v6912_v37  ;;  %v6926_v35 = vsub.f32 %v14927_v56, %v14951_v44  ;;  %v5394_v32 = vrot.slane %v7926_v49, 1  ;;  %v17291_v25 = vld [vmem:[#allocation99_spill] sm:$0xff]  ;;  %v17295_v37 = vld [vmem:[#allocation101_spill] sm:$0xff]  ;;  %v17301_v44 = vld [vmem:[#allocation34_spill] sm:$0xff] }
 0x2b9   : > { %6358 = vmatmul.mubr.f32.gmra.mxu1 %v17274_v7  ;;  %6533 = vmatmul.mubr.f32.gmra.mxu0 %v17275_v52  ;;  %v14958_v45 = vand.u32 4294901760, %v14932_v4  ;;  %v14991_v7 = vand.u32 4294901760, %v14963_v13 }
 0x2ba   : > { %9318 = vmatprep.subr.mxu1 %v17276_v0  ;;  %10022 = vmatprep.subr.mxu0 %v14850_v15  ;;  %v14997_v0 = vand.u32 4294901760, %v14966_v3 }
 0x2bb   : > { %9319 = vmatpush3.msra.mxu1 %v17278_v11  ;;  %10023 = vmatpush3.msra.mxu0 %v14850_v15  ;;  %17287 = vst [vmem:[#allocation46_spill] sm:$0xff] %v14958_v45  ;;  %17292 = vst [vmem:[#allocation79_spill] sm:$0xff] %v14991_v7  ;;  %v5391_v11 = vrot.slane %v7924_v22, 1 }
 0x2bc   : > { %9320 = vmatprep.subr.mxu1 %v17279_v8  ;;  %10024 = vmatprep.subr.mxu0 %v14860_v47  ;;  %17293 = vst [vmem:[#allocation88_spill] sm:$0xff] %v14997_v0  ;;  %v6947_v49 = vsub.f32 %v14966_v3, %v14997_v0 }
 0x2bd   : > { %6538 = vmatprep.mubr.f32.mxu0 %v17281_v54  ;;  %9321 = vmatpush3.msra.mxu1 %v17282_v26  ;;  %v15011_v26 = vand.u32 4294901760, %v8029_v43 }
 0x2be   : > { %6677 = vmatprep.mubr.f32.mxu1 %v17264_v58  ;;  %10025 = vmatpush3.msra.mxu0 %v14860_v47  ;;  %v17288_v58 = vld [vmem:[#allocation98_spill] sm:$0xff] }
 0x2bf   : > { %6540 = vmatmul.mubr.f32.gmra.mxu0 %v17285_v33  ;;  %6679 = vmatmul.mubr.f32.vlgmr.msra.gmra.mxu1 %v17266_v63  ;;  %v14972_v63 = vand.u32 4294901760, %v8030_v28  ;;  %17294 = vst [vmem:[#allocation90_spill] sm:$0xff] %v15011_v26 }
 0x2c0   : > { %10026 = vmatprep.subr.mxu0 %v14890_v39  ;;  %10062 = vmatprep.subr.mxu1 %v6899_v51 }
 0x2c1   : > { %10027 = vmatpush3.msra.mxu0 %v14890_v39  ;;  %10063 = vmatpush3.msra.mxu1 %v6899_v51  ;;  %17290 = vst [vmem:[#allocation67_spill] sm:$0xff] %v14972_v63  ;;  %v9876_v30 = vpop.f32.mrf.mxu0  ;;  %v15005_v36 = vsub.f32 %v8030_v28, %v14972_v63  ;;  %v6927_v51 = vand.u32 4294901760, %v6926_v35  ;;  %v6940_v28 = vsub.f32 %v14963_v13, %v14991_v7  ;;  %v17297_v35 = vld [vmem:[#allocation102_spill] sm:$0xff] }
 0x2c2   : > { %10028 = vmatprep.subr.mxu0 %v14900_v16  ;;  %10064 = vmatprep.subr.mxu1 %v6906_v9  ;;  %v14987_v17 = vadd.f32 %v9876_v30, %v14792_v10  ;;  %v15002_v10 = vsub.f32 %v8031_v46, %v14970_v31  ;;  %v7928_v46 = vld [vmem:[%s10942_s11 + $0x38] sm:$0x1]  ;;  %v7930_v30 = vld [vmem:[%s10942_s11 + $0x48] sm:$0x1] }
 0x2c3   : > { %6545 = vmatprep.mubr.f32.mxu0 %v17288_v58  ;;  %6684 = vmatprep.mubr.f32.mxu1 %v17272_v2  ;;  %v6933_v2 = vsub.f32 %v14932_v4, %v14958_v45  ;;  %v4870_v27 = vpop.f32.mrf.mxu0  ;;  %v5400_v45 = vrot.slane %v7930_v30, 1 }
 0x2c4   : > { %10029 = vmatpush3.msra.mxu0 %v14900_v16  ;;  %10065 = vmatpush3.msra.mxu1 %v6906_v9  ;;  %v15008_v8 = vadd.f32 %v4870_v27, %v14804_v19  ;;  %v5395_v9 = vsel %vm756_vm0, %v5393_v1, %v5394_v32  ;;  %v8027_v1 = vld [vmem:[%s15759_s6 + $0x418] sm:$0xff]  ;;  %v15047_v32 = vsub.f32 %v8029_v43, %v15011_v26  ;;  %v10350_v43 = vld [vmem:[%s10942_s11 + $0x40] sm:$0xff] }
 0x2c5   : > { %6547 = vmatmul.mubr.f32.gmra.mxu0 %v17291_v25  ;;  %6686 = vmatmul.mubr.f32.gmra.mxu1 %v17275_v52  ;;  %v8028_v52 = vld [vmem:[%s15759_s6 + $0x420] sm:$0xff]  ;;  %v6934_v19 = vand.u32 4294901760, %v6933_v2  ;;  %v10349_v2 = vld [vmem:[%s10942_s11 + $0x30] sm:$0xff]  ;;  %v5399_v7 = vrot.slane %v10350_v43, 1  ;;  %v7932_v43 = vld [vmem:[%s10942_s11 + $0x58] sm:$0x1] }
 0x2c6   : > { %10030 = vmatprep.subr.mxu0 %v14936_v38  ;;  %10066 = vmatprep.subr.mxu1 %v6913_v60  ;;  %v15016_v6 = vand.u32 4294901760, %v8028_v52  ;;  %v9879_v22 = vpop.f32.mrf.mxu0  ;;  %v5396_v50 = vrot.slane %v10349_v2, 1  ;;  %v6948_v2 = vand.u32 4294901760, %v6947_v49  ;;  %v5403_v61 = vrot.slane %v7932_v43, 1 }
 0x2c7   : > { %10031 = vmatpush3.msra.mxu0 %v14936_v38  ;;  %10067 = vmatpush3.msra.mxu1 %v6913_v60  ;;  %v5392_v60 = vsel %vm756_vm0, %v5390_v40, %v5391_v11  ;;  %v15035_v42 = vadd.f32 %v9879_v22, %v14825_v41  ;;  %v5397_v41 = vrot.slane %v7928_v46, 1  ;;  %v15050_v11 = vand.u32 4294901760, %v5395_v9 }
 0x2c8   : > { %10032 = vmatprep.subr.mxu0 %v14940_v29  ;;  %10068 = vmatprep.subr.mxu1 %v6920_v20  ;;  %17296 = vst [vmem:[#allocation80_spill] sm:$0xff] %v15016_v6  ;;  %v4884_v40 = vpop.f32.mrf.mxu0  ;;  %v15054_v27 = vsub.f32 %v8028_v52, %v15016_v6  ;;  %v15056_v22 = vand.u32 4294901760, %v5392_v60  ;;  %v6941_v46 = vand.u32 4294901760, %v6940_v28  ;;  %v15065_v52 = vand.u32 4294901760, %v8027_v1 }
 0x2c9   : > { %6552 = vmatprep.mubr.f32.mxu0 %v17295_v37  ;;  %6691 = vmatprep.mubr.f32.mxu1 %v17281_v54  ;;  %v15028_v54 = vand.u32 4294901760, %v15002_v10  ;;  %v15059_v0 = vadd.f32 %v4884_v40, %v14839_v53  ;;  %v5398_v30 = vsel %vm756_vm0, %v5396_v50, %v5397_v41  ;;  %v5401_v57 = vsel %vm756_vm0, %v5399_v7, %v5400_v45  ;;  %v8024_v7 = vld [vmem:[%s15759_s6 + $0x400] sm:$0xff] }
 0x2ca   : > { %10033 = vmatpush3.msra.mxu0 %v14940_v29  ;;  %10069 = vmatpush3.msra.mxu1 %v6920_v20  ;;  %v15031_v20 = vand.u32 4294901760, %v15005_v36  ;;  %17300 = vst [vmem:[#allocation73_spill] sm:$0xff] %v15054_v27  ;;  %17302 = vst [vmem:[#allocation96_spill] sm:$0xff] %v15065_v52  ;;  %v15094_v12 = vand.u32 4294901760, %v15054_v27  ;;  %v15097_v50 = vsub.f32 %v5392_v60, %v15056_v22  ;;  %v15117_v38 = vand.u32 4294901760, %v5398_v30 }
 0x2cb   : > { %6554 = vmatmul.mubr.f32.gmra.mxu0 %v17297_v35  ;;  %6693 = vmatmul.mubr.f32.gmra.mxu1 %v17285_v33  ;;  %17298 = vst [vmem:[#allocation13_spill] sm:$0xff] %v15028_v54  ;;  %v15044_v33 = vld [vmem:[%s15759_s6 + $0x410] sm:$0xff]  ;;  %v9920_v49 = vpop.f32.mrf.mxu1  ;;  %v15115_v29 = vsub.f32 %v8027_v1, %v15065_v52  ;;  %v15137_v43 = vand.u32 4294901760, %v5401_v57 }
 0x2cc   : > { %17299 = vst [vmem:[#allocation15_spill] sm:$0xff] %v15031_v20  ;;  %10034 = vmatprep.subr.mxu0 %v14970_v31  ;;  %10070 = vmatprep.subr.mxu1 %v6927_v51  ;;  %v15070_v53 = vand.u32 4294901760, %v15044_v33  ;;  %v6961_v40 = vsub.f32 %v15005_v36, %v15031_v20  ;;  %v9882_v28 = vpop.f32.mrf.mxu0  ;;  %v15084_v14 = vadd.f32 %v9920_v49, %v14987_v17  ;;  %v17305_v20 = vld [vmem:[#allocation103_spill] sm:$0xff]  ;;  %17306 = vst [vmem:[#allocation78_spill] sm:$0xff] %v15094_v12  ;;  %v10351_v17 = vld [vmem:[%s10942_s11 + $0x50] sm:$0xff] }
 0x2cd   : > { %10035 = vmatpush3.msra.mxu0 %v14970_v31  ;;  %10071 = vmatpush3.msra.mxu1 %v6927_v51  ;;  %v6954_v51 = vsub.f32 %v15002_v10, %v15028_v54  ;;  %v15081_v54 = vadd.f32 %v9882_v28, %v14865_v5  ;;  %17307 = vst [vmem:[#allocation30_spill] sm:$0xff] %v15097_v50  ;;  %v5402_v41 = vrot.slane %v10351_v17, 1  ;;  %v7934_v28 = vld [vmem:[%s10942_s11 + $0x68] sm:$0x1]  ;;  %v10352_v31 = vld [vmem:[%s10942_s11 + $0x60] sm:$0xff] }
 0x2ce   : > { %10036 = vmatprep.subr.mxu0 %v14972_v63  ;;  %10072 = vmatprep.subr.mxu1 %v6934_v19  ;;  %17303 = vst [vmem:[#allocation54_spill] sm:$0xff] %v15070_v53  ;;  %v15100_v5 = vsub.f32 %v5395_v9, %v15050_v11  ;;  %v4898_v49 = vpop.f32.mrf.mxu0  ;;  %v5405_v9 = vrot.slane %v10352_v31, 1  ;;  %v6975_v1 = vsub.f32 %v15054_v27, %v15094_v12  ;;  %v15154_v27 = vand.u32 4294901760, %v15115_v29 }
 0x2cf   : > { %6559 = vmatprep.mubr.f32.mxu0 %v17301_v44  ;;  %6698 = vmatprep.mubr.f32.mxu1 %v17288_v58  ;;  %v15077_v58 = vand.u32 4294901760, %v15047_v32  ;;  %v6955_v17 = vand.u32 4294901760, %v6954_v51 }
 0x2d0   : > { %10037 = vmatpush3.msra.mxu0 %v14972_v63  ;;  %10073 = vmatpush3.msra.mxu1 %v6934_v19  ;;  %v15091_v19 = vld [vmem:[%s15759_s6 + $0x408] sm:$0xff]  ;;  %v15107_v63 = vadd.f32 %v4898_v49, %v14883_v24  ;;  %v6962_v24 = vand.u32 4294901760, %v6961_v40  ;;  %v15135_v40 = vsub.f32 %v15044_v33, %v15070_v53  ;;  %v7936_v49 = vld [vmem:[%s10942_s11 + $0x78] sm:$0x1]  ;;  %v17310_v33 = vld [vmem:[#allocation106_spill] sm:$0xff]  ;;  %17312 = vst [vmem:[#allocation17_spill] sm:$0xff] %v15154_v27 }
 0x2d1   : > { %17304 = vst [vmem:[#allocation35_spill] sm:$0xff] %v15077_v58  ;;  %6561 = vmatmul.mubr.f32.gmra.mxu0 %v17305_v20  ;;  %6700 = vmatmul.mubr.f32.gmra.mxu1 %v17291_v25  ;;  %v5008_v25 = vpop.f32.mrf.mxu1  ;;  %v15121_v45 = vand.u32 4294901760, %v15091_v19  ;;  %v6968_v31 = vsub.f32 %v15047_v32, %v15077_v58 }
 0x2d2   : > { %10038 = vmatprep.subr.mxu0 %v15011_v26  ;;  %10074 = vmatprep.subr.mxu1 %v6941_v46  ;;  %v15110_v60 = vadd.f32 %v5008_v25, %v15008_v8  ;;  %v5406_v8 = vrot.slane %v7934_v28, 1  ;;  %v9885_v25 = vpop.f32.mrf.mxu0  ;;  %v5404_v28 = vsel %vm756_vm0, %v5402_v41, %v5403_v61 }
 0x2d3   : > { %10039 = vmatpush3.msra.mxu0 %v15011_v26  ;;  %10075 = vmatpush3.msra.mxu1 %v6941_v46  ;;  %17308 = vst [vmem:[#allocation20_spill] sm:$0xff] %v15121_v45  ;;  %v17309_v46 = vld [vmem:[#allocation105_spill] sm:$0xff]  ;;  %v9923_v58 = vpop.f32.mrf.mxu1  ;;  %v15144_v12 = vadd.f32 %v9885_v25, %v14902_v62  ;;  %v15151_v26 = vand.u32 4294901760, %v8024_v7 }
 0x2d4   : > { %10040 = vmatprep.subr.mxu0 %v15016_v6  ;;  %10076 = vmatprep.subr.mxu1 %v6948_v2  ;;  %v15147_v51 = vadd.f32 %v9923_v58, %v15035_v42  ;;  %v4912_v41 = vpop.f32.mrf.mxu0  ;;  %v5407_v42 = vsel %vm756_vm0, %v5405_v9, %v5406_v8  ;;  %v5409_v58 = vrot.slane %v7936_v49, 1  ;;  %v17314_v9 = vand.u32 4294901760, %v15097_v50 }
 0x2d5   : > { %6566 = vmatprep.mubr.f32.mxu0 %v17309_v46  ;;  %6705 = vmatprep.mubr.f32.mxu1 %v17295_v37  ;;  %17311 = vst [vmem:[#allocation97_spill] sm:$0xff] %v15151_v26  ;;  %v10353_v37 = vld [vmem:[%s10942_s11 + $0x70] sm:$0xff]  ;;  %v5024_v62 = vpop.f32.mrf.mxu1  ;;  %v15179_v8 = vand.u32 4294901760, %v15135_v40  ;;  %s10358_s11 = sshll.u32 %s10432_s23, 4  ;;  %s10359_s11 = int_to_ptr.vmem [resolvable:$false] %s10358_s11 }
 0x2d6   : > { %10041 = vmatpush3.msra.mxu0 %v15016_v6  ;;  %10077 = vmatpush3.msra.mxu1 %v6948_v2  ;;  %v15157_v2 = vsub.f32 %v5398_v30, %v15117_v38  ;;  %v5408_v61 = vrot.slane %v10353_v37, 1  ;;  %v15166_v25 = vadd.f32 %v5024_v62, %v15059_v0  ;;  %v15170_v30 = vsub.f32 %v5401_v57, %v15137_v43  ;;  %s10360_s25 = scalar_lea.vmem %s10359_s11, 2048  ;;  %p10361_p1 = scmp.lt.s32.totalorder %s15701_s22, %s10359_s11 }
 0x2d7   : > { %6568 = vmatmul.mubr.f32.gmra.mxu0 %v17310_v33  ;;  %6707 = vmatmul.mubr.f32.gmra.mxu1 %v17297_v35  ;;  %v15163_v35 = vadd.f32 %v4912_v41, %v14919_v23  ;;  %v15172_v37 = vand.u32 4294901760, %v5404_v28  ;;  %v6969_v6 = vand.u32 4294901760, %v6968_v31  ;;  %v6817_v23 = vsub.f32 %v15097_v50, %v17314_v9  ;;  %17315 = vst [vmem:[#allocation22_spill] sm:$0xff] %v15179_v8  ;;  %v9926_v9 = vpop.f32.mrf.mxu1  ;;  %p10362_p2 = scmp.lt.s32.totalorder %s10360_s25, %s10354_s21 }
 0x2d8   : > { %10042 = vmatprep.subr.mxu0 %v15065_v52  ;;  %10078 = vmatprep.subr.mxu1 %v6955_v17  ;;  %17313 = vst [vmem:[#allocation16_spill] sm:$0xff] %v15170_v30  ;;  %v15183_v0 = vsub.f32 %v15091_v19, %v15121_v45  ;;  %v17317_v57 = vand.u32 4294901760, %v15100_v5  ;;  %v6982_v31 = vsub.f32 %v15115_v29, %v15154_v27  ;;  %v15193_v62 = vand.u32 4294901760, %v5407_v42 }
 0x2d9   : > { %10043 = vmatpush3.msra.mxu0 %v15065_v52  ;;  %10079 = vmatpush3.msra.mxu1 %v6955_v17  ;;  %v17316_v17 = vld [vmem:[#allocation108_spill] sm:$0xff]  ;;  %v6976_v19 = vand.u32 4294901760, %v6975_v1  ;;  %v15197_v52 = vsub.f32 %v8024_v7, %v15151_v26  ;;  %v15201_v50 = vadd.f32 %v9926_v9, %v15081_v54  ;;  %v16371_v41 = vand.u32 4294901760, %v15170_v30  ;;  %p10363_p3 = por %p10362_p2, %p10361_p1 }
 0x2da   : > { %10044 = vmatprep.subr.mxu0 %v15070_v53  ;;  %10080 = vmatprep.subr.mxu1 %v6962_v24  ;;  %v6827_v49 = vsub.f32 %v15100_v5, %v17317_v57  ;;  %v17318_v57 = vld [vmem:[#allocation51_spill] sm:$0xff]  ;;  %v15207_v27 = vsub.f32 %v5404_v28, %v15172_v37  ;;  %v6989_v7 = vsub.f32 %v15135_v40, %v15179_v8  ;;  %v15213_v54 = vand.u32 4294901760, %v15183_v0 }
 0x2db   : > { %6573 = vmatprep.mubr.f32.mxu0 %v17316_v17  ;;  %6712 = vmatprep.mubr.f32.mxu1 %v17301_v44  ;;  %v5410_v44 = vsel %vm756_vm0, %v5408_v61, %v5409_v58  ;;  %v17319_v28 = vand.u32 4294901760, %v15157_v2  ;;  %v15223_v58 = vsub.f32 %v5407_v42, %v15193_v62  ;;  %v6983_v9 = vand.u32 4294901760, %v6982_v31  ;;  %p10364_p5 = pnand %p10363_p3, %p10357_p0 }
 0x2dc   : > { %10045 = vmatpush3.msra.mxu0 %v15070_v53  ;;  %10081 = vmatpush3.msra.mxu1 %v6962_v24  ;;  %v5040_v53 = vpop.f32.mrf.mxu1  ;;  %v6818_v24 = vand.u32 4294901760, %v6817_v23  ;;  %v15225_v23 = vand.u32 4294901760, %v5410_v44  ;;  %v6990_v31 = vand.u32 4294901760, %v6989_v7 }
 0x2dd   : > { %6575 = vmatmul.mubr.f32.gmra.mxu0 %v17318_v57  ;;  %6714 = vmatmul.mubr.f32.gmra.mxu1 %v17305_v20  ;;  %v15216_v1 = vadd.f32 %v5040_v53, %v15107_v63  ;;  %v6828_v20 = vand.u32 4294901760, %v6827_v49  ;;  %v6837_v61 = vsub.f32 %v15157_v2, %v17319_v28  ;;  %v15229_v63 = vand.u32 4294901760, %v15197_v52  ;;  %v17320_v49 = vld [vmem:[#allocation32_spill] sm:$0xff] }
 0x2de   : > { %10046 = vmatprep.subr.mxu0 %v15121_v45  ;;  %10082 = vmatprep.subr.mxu1 %v6969_v6  ;;  %v9929_v53 = vpop.f32.mrf.mxu1  ;;  %v15238_v28 = vand.u32 4294901760, %v17320_v49  ;;  %v15248_v42 = vsub.f32 %v5410_v44, %v15225_v23 }
 0x2df   : > { %10047 = vmatpush3.msra.mxu0 %v15121_v45  ;;  %10083 = vmatpush3.msra.mxu1 %v6969_v6  ;;  %v6847_v6 = vsub.f32 %v15170_v30, %v16371_v41  ;;  %v15241_v8 = vadd.f32 %v9929_v53, %v15144_v12  ;;  %v6866_v41 = vand.u32 4294901760, %v15223_v58  ;;  %v7003_v12 = vsub.f32 %v15197_v52, %v15229_v63 }
 0x2e0   : > { %10048 = vmatprep.subr.mxu0 %v15151_v26  ;;  %10084 = vmatprep.subr.mxu1 %v6976_v19  ;;  %v5056_v45 = vpop.f32.mrf.mxu1  ;;  %v15262_v44 = vsub.f32 %v17320_v49, %v15238_v28 }
 0x2e1   : > { %6719 = vmatprep.mubr.f32.mxu1 %v17309_v46  ;;  %10049 = vmatpush3.msra.mxu0 %v15151_v26  ;;  %v6996_v46 = vsub.f32 %v15183_v0, %v15213_v54  ;;  %v6838_v26 = vand.u32 4294901760, %v6837_v61  ;;  %v15251_v30 = vadd.f32 %v5056_v45, %v15163_v35  ;;  %v6876_v35 = vand.u32 4294901760, %v15248_v42 }
 0x2e2   : > { %10050 = vmatprep.mubr.f32.mxu0 %v6818_v24  ;;  %10085 = vmatpush3.msra.mxu1 %v6976_v19  ;;  %v17321_v19 = vand.u32 4294901760, %v15207_v27  ;;  %v7004_v7 = vand.u32 4294901760, %v7003_v12  ;;  %v6886_v61 = vand.u32 4294901760, %v15262_v44  ;;  %v17325_v12 = vld [vmem:[#allocation7_spill] sm:$0xff] }
 0x2e3   : > { %6721 = vmatmul.mubr.f32.gmra.mxu1 %v17310_v33  ;;  %10051 = vmatmul.mubr.f32.vlgmr.msra.gmra.mxu0 %v6828_v20  ;;  %v6848_v33 = vand.u32 4294901760, %v6847_v6  ;;  %v6997_v45 = vand.u32 4294901760, %v6996_v46  ;;  %v17324_v6 = vld [vmem:[#allocation28_spill] sm:$0xff] }
 0x2e4   : > { %10086 = vmatprep.subr.mxu1 %v6983_v9  ;;  %10106 = vmatprep.subr.mxu0 %v14837_v18  ;;  %v6857_v24 = vsub.f32 %v15207_v27, %v17321_v19 }
 0x2e5   : > { %10087 = vmatpush3.msra.mxu1 %v6983_v9  ;;  %10107 = vmatpush3.msra.mxu0 %v14837_v18  ;;  %v6867_v18 = vsub.f32 %v15223_v58, %v6866_v41 }
 0x2e6   : > { %10088 = vmatprep.subr.mxu1 %v6990_v31  ;;  %10108 = vmatprep.subr.mxu0 %v14853_v34  ;;  %v6858_v20 = vand.u32 4294901760, %v6857_v24 }
 0x2e7   : > { %6726 = vmatprep.mubr.f32.mxu1 %v17316_v17  ;;  %10053 = vmatprep.mubr.f32.mxu0 %v6838_v26  ;;  %v17322_v26 = vld [vmem:[#allocation62_spill] sm:$0xff]  ;;  %v17323_v17 = vld [vmem:[#allocation43_spill] sm:$0xff]  ;;  %v6868_v53 = vand.u32 4294901760, %v6867_v18  ;;  %v17327_v18 = vld [vmem:[#allocation25_spill] sm:$0xff] }
 0x2e8   : > { %10089 = vmatpush3.msra.mxu1 %v6990_v31  ;;  %10109 = vmatpush3.msra.mxu0 %v14853_v34  ;;  %v2187_v9 = vadd.f32 %v17323_v17, %v17322_v26  ;;  %v6877_v34 = vsub.f32 %v15248_v42, %v6876_v35  ;;  %v6887_v31 = vsub.f32 %v15262_v44, %v6886_v61 }
 0x2e9   : > { %6728 = vmatmul.mubr.f32.gmra.mxu1 %v17318_v57  ;;  %10054 = vmatmul.mubr.f32.gmra.mxu0 %v6848_v33  ;;  %v9964_v57 = vpop.f32.mrf.mxu0 }
 0x2ea   : > { %10090 = vmatprep.subr.mxu1 %v6997_v45  ;;  %10110 = vmatprep.subr.mxu0 %v14881_v55  ;;  %v2408_v49 = vadd.f32 %v17324_v6, %v2187_v9  ;;  %v5190_v46 = vadd.f32 %v9964_v57, %v15084_v14  ;;  %v6878_v19 = vand.u32 4294901760, %v6877_v34  ;;  %v17330_v9 = vld [vmem:[#allocation12_spill] sm:$0xff] }
 0x2eb   : > { %10091 = vmatpush3.msra.mxu1 %v6997_v45  ;;  %10111 = vmatpush3.msra.mxu0 %v14881_v55  ;;  %v5183_v55 = vpop.f32.mrf.mxu0  ;;  %v17326_v45 = vld [vmem:[#allocation47_spill] sm:$0xff]  ;;  %v17331_v57 = vld [vmem:[#allocation40_spill] sm:$0xff] }
 0x2ec   : > { %10092 = vmatprep.subr.mxu1 %v7004_v7  ;;  %10112 = vmatprep.subr.mxu0 %v14895_v48  ;;  %v2554_v33 = vadd.f32 %v17325_v12, %v2408_v49  ;;  %v5184_v24 = vadd.f32 %v5183_v55, %v15110_v60  ;;  %v2207_v14 = vadd.f32 %v17327_v18, %v17326_v45  ;;  %v17329_v60 = vld [vmem:[#allocation39_spill] sm:$0xff]  ;;  %v15310_v49 = vld [vmem:[%s15760_s7] ss:$0 sm:$0xff] }
 0x2ed   : > { %10056 = vmatprep.mubr.f32.mxu0 %v6858_v20  ;;  %10093 = vmatpush3.msra.mxu1 %v7004_v7  ;;  %v17328_v7 = vld [vmem:[#allocation24_spill] sm:$0xff] }
 0x2ee   : > { %10094 = vmatprep.mubr.f32.mxu1 %v15056_v22  ;;  %10113 = vmatpush3.msra.mxu0 %v14895_v48  ;;  %v2692_v20 = vadd.f32 %v17328_v7, %v2554_v33  ;;  %v6888_v48 = vand.u32 4294901760, %v6887_v31  ;;  %v9967_v26 = vpop.f32.mrf.mxu0  ;;  %v2420_v17 = vadd.f32 %v17329_v60, %v2207_v14  ;;  %v17332_v31 = vld [vmem:[#allocation69_spill] sm:$0xff]  ;;  %v17336_v7 = vld [vmem:[#allocation64_spill] sm:$0xff] }
 0x2ef   : > { %10057 = vmatmul.mubr.f32.gmra.mxu0 %v6868_v53  ;;  %10095 = vmatmul.mubr.f32.vlgmr.msra.gmra.mxu1 %v15050_v11  ;;  %v5202_v34 = vadd.f32 %v9967_v26, %v15147_v51  ;;  %v17334_v51 = vld [vmem:[#allocation65_spill] sm:$0xff] }
 0x2f0   : > { %10114 = vmatprep.subr.mxu0 %v14927_v56  ;;  %10150 = vmatprep.subr.mxu1 %v14815_v21  ;;  %v2867_v53 = vadd.f32 %v17330_v9, %v2692_v20  ;;  %v2568_v6 = vadd.f32 %v17331_v57, %v2420_v17  ;;  %v3042_v20 = vadd.f32 %v15310_v49, %v17336_v7  ;;  %v17337_v26 = vld [vmem:[#allocation41_spill] sm:$0xff]  ;;  %v17338_v17 = vld [vmem:[#allocation60_spill] sm:$0xff] }
 0x2f1   : > { %10115 = vmatpush3.msra.mxu0 %v14927_v56  ;;  %10151 = vmatpush3.msra.mxu1 %v14815_v21  ;;  %v5195_v56 = vpop.f32.mrf.mxu0 }
 0x2f2   : > { %10116 = vmatprep.subr.mxu0 %v14932_v4  ;;  %10152 = vmatprep.subr.mxu1 %v14823_v59  ;;  %v2996_v55 = vadd.f32 %v17332_v31, %v2867_v53  ;;  %v5196_v12 = vadd.f32 %v5195_v56, %v15166_v25 }
 0x2f3   : > { %10059 = vmatprep.mubr.f32.mxu0 %v6878_v19  ;;  %10097 = vmatprep.mubr.f32.mxu1 %v15117_v38  ;;  %v17335_v19 = vld [vmem:[#allocation33_spill] sm:$0xff]  ;;  %v10008_v14 = vpop.f32.mrf.mxu1 }
 0x2f4   : > { %10117 = vmatpush3.msra.mxu0 %v14932_v4  ;;  %10153 = vmatpush3.msra.mxu1 %v14823_v59  ;;  %v17333_v4 = vld [vmem:[#allocation53_spill] sm:$0xff]  ;;  %v2708_v45 = vadd.f32 %v17335_v19, %v2568_v6  ;;  %v9970_v18 = vpop.f32.mrf.mxu0  ;;  %v17340_v6 = vld [vmem:[#allocation26_spill] sm:$0xff] }
 0x2f5   : > { %10060 = vmatmul.mubr.f32.gmra.mxu0 %v6888_v48  ;;  %10098 = vmatmul.mubr.f32.gmra.mxu1 %v15137_v43  ;;  %v2227_v33 = vadd.f32 %v17334_v51, %v17333_v4  ;;  %v5214_v25 = vadd.f32 %v9970_v18, %v15201_v50  ;;  %v5319_v48 = vadd.f32 %v10008_v14, %v5190_v46  ;;  %v5312_v56 = vpop.f32.mrf.mxu1  ;;  %v17341_v4 = vld [vmem:[#allocation61_spill] sm:$0xff]  ;;  %v17346_v14 = vld [vmem:[#allocation50_spill] sm:$0xff] }
 0x2f6   : > { %10118 = vmatprep.subr.mxu0 %v14963_v13  ;;  %10154 = vmatprep.subr.mxu1 %v14850_v15  ;;  %v2879_v9 = vadd.f32 %v17338_v17, %v2708_v45  ;;  %v5207_v53 = vpop.f32.mrf.mxu0  ;;  %v5313_v46 = vadd.f32 %v5312_v56, %v5184_v24  ;;  %v17345_v45 = vld [vmem:[#allocation18_spill] sm:$0xff]  ;;  %v3044_v7 = vadd.f32 %v15310_v49, %v17346_v14  ;;  %v17349_v56 = vld [vmem:[#allocation27_spill] sm:$0xff] }
 0x2f7   : > { %10119 = vmatpush3.msra.mxu0 %v14963_v13  ;;  %10155 = vmatpush3.msra.mxu1 %v14850_v15  ;;  %v2432_v60 = vadd.f32 %v17337_v26, %v2227_v33  ;;  %v3041_v13 = vadd.f32 %v15310_v49, %v2996_v55  ;;  %v15334_v57 = vadd.f32 %v5319_v48, %v3042_v20  ;;  %v17343_v55 = vld [vmem:[#allocation37_spill] sm:$0xff]  ;;  %v17344_v33 = vld [vmem:[#allocation14_spill] sm:$0xff]  ;;  %v17347_v48 = vld [vmem:[#allocation23_spill] sm:$0xff] }
 0x2f8   : > { %10120 = vmatprep.subr.mxu0 %v14966_v3  ;;  %10156 = vmatprep.subr.mxu1 %v14860_v47  ;;  %v5208_v50 = vadd.f32 %v5207_v53, %v15216_v1  ;;  %v3008_v51 = vadd.f32 %v17341_v4, %v2879_v9  ;;  %v2247_v19 = vadd.f32 %v17344_v33, %v17343_v55  ;;  %v17354_v55 = vld [vmem:[#allocation70_spill] sm:$0xff] }
 0x2f9   : > { %10100 = vmatprep.mubr.f32.mxu1 %v15172_v37  ;;  %10121 = vmatpush3.msra.mxu0 %v14966_v3  ;;  %17339 = vst [vmem:[#allocation9_spill] sm:$0xff] %v15334_v57  ;;  %v2582_v31 = vadd.f32 %v17340_v6, %v2432_v60  ;;  %v15343_v3 = vadd.f32 %v5313_v46, %v3041_v13  ;;  %v9973_v24 = vpop.f32.mrf.mxu0  ;;  %v17348_v60 = vld [vmem:[#allocation58_spill] sm:$0xff] }
 0x2fa   : > { %10157 = vmatpush3.msra.mxu1 %v14860_v47  ;;  %10122 = vmatprep.subr.mxu0 %v15002_v10  ;;  %v10011_v18 = vpop.f32.mrf.mxu1  ;;  %v2444_v26 = vadd.f32 %v17347_v48, %v2247_v19  ;;  %v3043_v9 = vadd.f32 %v15310_v49, %v3008_v51  ;;  %v17351_v46 = vld [vmem:[#allocation6_spill] sm:$0xff]  ;;  %v17353_v51 = vld [vmem:[#allocation73_spill] sm:$0xff]  ;;  %v17356_v19 = vld [vmem:[#allocation48_spill] sm:$0xff] }
 0x2fb   : > { %10101 = vmatmul.mubr.f32.gmra.mxu1 %v15193_v62  ;;  %10158 = vmatprep.subr.mxu1 %v14890_v39  ;;  %17342 = vst [vmem:[#allocation42_spill] sm:$0xff] %v15343_v3  ;;  %v2724_v1 = vadd.f32 %v17345_v45, %v2582_v31  ;;  %v5331_v20 = vadd.f32 %v10011_v18, %v5202_v34  ;;  %v5219_v13 = vpop.f32.mrf.mxu0  ;;  %v17352_v31 = vld [vmem:[#allocation75_spill] sm:$0xff] }
 0x2fc   : > { %10123 = vmatpush3.msra.mxu0 %v15002_v10  ;;  %10159 = vmatpush3.msra.mxu1 %v14890_v39  ;;  %v5226_v10 = vadd.f32 %v9973_v24, %v15241_v8  ;;  %v5324_v53 = vpop.f32.mrf.mxu1  ;;  %v5220_v8 = vadd.f32 %v5219_v13, %v15251_v30  ;;  %v2596_v6 = vadd.f32 %v17351_v46, %v2444_v26  ;;  %v17359_v18 = vld [vmem:[#allocation55_spill] sm:$0xff] }
 0x2fd   : > { %10124 = vmatprep.subr.mxu0 %v15005_v36  ;;  %10160 = vmatprep.subr.mxu1 %v14900_v16  ;;  %v2891_v17 = vadd.f32 %v17348_v60, %v2724_v1  ;;  %v5325_v34 = vadd.f32 %v5324_v53, %v5196_v12  ;;  %v17357_v12 = vld [vmem:[#allocation72_spill] sm:$0xff]  ;;  %v17358_v1 = vld [vmem:[#allocation59_spill] sm:$0xff]  ;;  %v17365_v53 = vld [vmem:[#allocation77_spill] sm:$0xff] }
 0x2fe   : > { %10103 = vmatprep.mubr.f32.mxu1 %v15225_v23  ;;  %10125 = vmatpush3.msra.mxu0 %v15005_v36  ;;  %v15362_v36 = vadd.f32 %v5331_v20, %v3044_v7  ;;  %v2740_v45 = vadd.f32 %v17356_v19, %v2596_v6  ;;  %v17360_v48 = vld [vmem:[#allocation67_spill] sm:$0xff] }
 0x2ff   : > { %10161 = vmatpush3.msra.mxu1 %v14900_v16  ;;  %10126 = vmatprep.subr.mxu0 %v15047_v32  ;;  %v3020_v4 = vadd.f32 %v17352_v31, %v2891_v17  ;;  %v15371_v33 = vadd.f32 %v5325_v34, %v3043_v9  ;;  %v17362_v17 = vld [vmem:[#allocation68_spill] sm:$0xff]  ;;  %v3048_v34 = vadd.f32 %v15310_v49, %v17365_v53  ;;  %v17367_v31 = vld [vmem:[#allocation30_spill] sm:$0xff] }
 0x300   : > { %10104 = vmatmul.mubr.f32.gmra.mxu1 %v15238_v28  ;;  %10162 = vmatprep.subr.mxu1 %v17349_v56  ;;  %17350 = vst [vmem:[#allocation31_spill] sm:$0xff] %v15362_v36  ;;  %v10014_v30 = vpop.f32.mrf.mxu1  ;;  %v2903_v14 = vadd.f32 %v17359_v18, %v2740_v45  ;;  %v17375_v45 = vld [vmem:[#allocation16_spill] sm:$0xff]  ;;  %v17379_v18 = vand.u32 4294901760, %v17367_v31 }
 0x301   : > { %10127 = vmatpush3.msra.mxu0 %v15047_v32  ;;  %10163 = vmatpush3.msra.mxu1 %v17349_v56  ;;  %17355 = vst [vmem:[#allocation11_spill] sm:$0xff] %v15371_v33  ;;  %v3046_v32 = vadd.f32 %v15310_v49, %v17357_v12  ;;  %v5343_v24 = vadd.f32 %v10014_v30, %v5214_v25  ;;  %v17376_v30 = vld [vmem:[#allocation74_spill] sm:$0xff]  ;;  %v17377_v12 = vld [vmem:[#allocation97_spill] sm:$0xff]  ;;  %v17384_v53 = vand.u32 4294901760, %v17375_v45 }
 0x302   : > { %10128 = vmatprep.subr.mxu0 %v17353_v51  ;;  %10164 = vmatprep.subr.mxu1 %v17354_v55  ;;  %v5336_v7 = vpop.f32.mrf.mxu1  ;;  %v3045_v20 = vadd.f32 %v15310_v49, %v3020_v4  ;;  %v3032_v9 = vadd.f32 %v17362_v17, %v2903_v14  ;;  %v17382_v17 = vld [vmem:[#allocation46_spill] sm:$0xff] }
 0x303   : > { %10129 = vmatpush3.msra.mxu0 %v17353_v51  ;;  %10165 = vmatpush3.msra.mxu1 %v17354_v55  ;;  %v15386_v26 = vadd.f32 %v5343_v24, %v3046_v32  ;;  %v5337_v60 = vadd.f32 %v5336_v7, %v5208_v50  ;;  %v17378_v32 = vld [vmem:[#allocation57_spill] sm:$0xff]  ;;  %v17380_v7 = vand.u32 4294901760, %v15100_v5 }
 0x304   : > { %10130 = vmatprep.subr.mxu0 %v15115_v29  ;;  %10166 = vmatprep.subr.mxu1 %v17358_v1  ;;  %v3047_v6 = vadd.f32 %v15310_v49, %v3032_v9  ;;  %v17373_v49 = vld [vmem:[#allocation45_spill] sm:$0xff] }
 0x305   : > { %10131 = vmatpush3.msra.mxu0 %v15115_v29  ;;  %10167 = vmatpush3.msra.mxu1 %v17358_v1  ;;  %17361 = vst [vmem:[#allocation10_spill] sm:$0xff] %v15386_v26  ;;  %v17363_v29 = vld [vmem:[#allocation90_spill] sm:$0xff]  ;;  %v15393_v25 = vadd.f32 %v5337_v60, %v3045_v20  ;;  %v17381_v60 = vld [vmem:[#allocation8_spill] sm:$0xff] }
 0x306   : > { %10132 = vmatprep.subr.mxu0 %v15135_v40  ;;  %10168 = vmatprep.subr.mxu1 %v17360_v48  ;;  %v10017_v13 = vpop.f32.mrf.mxu1 }
 0x307   : > { %10133 = vmatpush3.msra.mxu0 %v15135_v40  ;;  %10169 = vmatpush3.msra.mxu1 %v17360_v48  ;;  %17364 = vst [vmem:[#allocation29_spill] sm:$0xff] %v15393_v25  ;;  %v5355_v50 = vadd.f32 %v10017_v13, %v5226_v10  ;;  %v17366_v40 = vld [vmem:[#allocation80_spill] sm:$0xff]  ;;  %v17370_v10 = vld [vmem:[#allocation71_spill] sm:$0xff]  ;;  %v17383_v13 = vand.u32 4294901760, %v15157_v2 }
 0x308   : > { %10134 = vmatprep.subr.mxu0 %v15183_v0  ;;  %10170 = vmatprep.subr.mxu1 %v17363_v29  ;;  %v5348_v46 = vpop.f32.mrf.mxu1 }
 0x309   : > { %10135 = vmatpush3.msra.mxu0 %v15183_v0  ;;  %10171 = vmatpush3.msra.mxu1 %v17363_v29  ;;  %v15404_v4 = vadd.f32 %v5355_v50, %v3048_v34  ;;  %v5349_v51 = vadd.f32 %v5348_v46, %v5220_v8  ;;  %v17369_v0 = vld [vmem:[#allocation96_spill] sm:$0xff]  ;;  %v17385_v34 = vld [vmem:[#allocation79_spill] sm:$0xff] }
 0x30a   : > { %10136 = vmatprep.subr.mxu0 %v15197_v52  ;;  %10172 = vmatprep.subr.mxu1 %v17366_v40  ;;  %v17374_v8 = vld [vmem:[#allocation20_spill] sm:$0xff] }
 0x30b   : > { %10137 = vmatpush3.msra.mxu0 %v15197_v52  ;;  %10138 = vmatprep.mubr.f32.mxu0 %v17367_v31  ;;  %17368 = vst [vmem:[#allocation100_spill] sm:$0xff] %v15404_v4  ;;  %v15410_v19 = vadd.f32 %v5349_v51, %v3047_v6  ;;  %v17372_v52 = vld [vmem:[#allocation54_spill] sm:$0xff]  ;;  %v17386_v46 = vld [vmem:[#allocation88_spill] sm:$0xff]  ;;  %v17388_v51 = vld [vmem:[#allocation13_spill] sm:$0xff] }
 0x30c   : > { %10173 = vmatpush3.msra.mxu1 %v17366_v40  ;;  %10139 = vmatmul.mubr.f32.vlgmr.msra.gmra.mxu0 %v15100_v5 }
 0x30d   : > { %10174 = vmatprep.subr.mxu1 %v17369_v0  ;;  %10194 = vmatprep.subr.mxu0 %v17370_v10  ;;  %17371 = vst [vmem:[#allocation56_spill] sm:$0xff] %v15410_v19 }
 0x30e   : > { %10175 = vmatpush3.msra.mxu1 %v17369_v0  ;;  %10195 = vmatpush3.msra.mxu0 %v17370_v10 }
 0x30f   : > { %10176 = vmatprep.subr.mxu1 %v17372_v52  ;;  %10196 = vmatprep.subr.mxu0 %v17373_v49 }
 0x310   : > { %10141 = vmatprep.mubr.f32.mxu0 %v15157_v2  ;;  %10177 = vmatpush3.msra.mxu1 %v17372_v52 }
 0x311   : > { %10197 = vmatpush3.msra.mxu0 %v17373_v49  ;;  %10178 = vmatprep.subr.mxu1 %v17374_v8 }
 0x312   : > { %10142 = vmatmul.mubr.f32.gmra.mxu0 %v17375_v45  ;;  %10198 = vmatprep.subr.mxu0 %v17376_v30 }
 0x313   : > { %10179 = vmatpush3.msra.mxu1 %v17374_v8  ;;  %10199 = vmatpush3.msra.mxu0 %v17376_v30 }
 0x314   : > { %10180 = vmatprep.subr.mxu1 %v17377_v12  ;;  %10200 = vmatprep.subr.mxu0 %v17378_v32  ;;  %v9042_v24 = vpop.f32.mrf.mxu0 }
 0x315   : > { %10144 = vmatprep.mubr.f32.mxu0 %v15207_v27  ;;  %10181 = vmatpush3.msra.mxu1 %v17377_v12 }
 0x316   : > { %10182 = vmatprep.mubr.f32.mxu1 %v17379_v18  ;;  %10201 = vmatpush3.msra.mxu0 %v17378_v32  ;;  %v9043_v14 = vpop.f32.mrf.mxu0  ;;  %v17393_v18 = vld [vmem:[#allocation22_spill] sm:$0xff] }
 0x317   : > { %10145 = vmatmul.mubr.f32.gmra.mxu0 %v15223_v58  ;;  %10183 = vmatmul.mubr.f32.vlgmr.msra.gmra.mxu1 %v17380_v7  ;;  %v9044_v20 = vadd.f32 %v9043_v14, %v9042_v24 }
 0x318   : > { %10202 = vmatprep.subr.mxu0 %v17381_v60  ;;  %10238 = vmatprep.subr.mxu1 %v14815_v21 }
 0x319   : > { %10203 = vmatpush3.msra.mxu0 %v17381_v60  ;;  %10239 = vmatpush3.msra.mxu1 %v14815_v21 }
 0x31a   : > { %10204 = vmatprep.subr.mxu0 %v17382_v17  ;;  %10240 = vmatprep.subr.mxu1 %v14823_v59  ;;  %v9045_v9 = vpop.f32.mrf.mxu0 }
 0x31b   : > { %10147 = vmatprep.mubr.f32.mxu0 %v15248_v42  ;;  %10185 = vmatprep.mubr.f32.mxu1 %v17383_v13  ;;  %v17391_v42 = vld [vmem:[#allocation78_spill] sm:$0xff] }
 0x31c   : > { %10205 = vmatpush3.msra.mxu0 %v17382_v17  ;;  %10241 = vmatpush3.msra.mxu1 %v14823_v59  ;;  %v9046_v5 = vpop.f32.mrf.mxu0  ;;  %v17387_v59 = vand.u32 4294901760, %v15207_v27  ;;  %v17389_v27 = vld [vmem:[#allocation15_spill] sm:$0xff] }
 0x31d   : > { %10148 = vmatmul.mubr.f32.gmra.mxu0 %v15262_v44  ;;  %10186 = vmatmul.mubr.f32.gmra.mxu1 %v17384_v53  ;;  %v9047_v21 = vadd.f32 %v9046_v5, %v9045_v9 }
 0x31e   : > { %10206 = vmatprep.subr.mxu0 %v17385_v34  ;;  %10242 = vmatprep.subr.mxu1 %v14850_v15 }
 0x31f   : > { %10207 = vmatpush3.msra.mxu0 %v17385_v34  ;;  %10243 = vmatpush3.msra.mxu1 %v14850_v15  ;;  %v9048_v2 = vpop.f32.mrf.mxu0  ;;  %v9098_v50 = vpop.f32.mrf.mxu1 }
 0x320   : > { %10208 = vmatprep.subr.mxu0 %v17386_v46  ;;  %10244 = vmatprep.subr.mxu1 %v14860_v47 }
 0x321   : > { %10188 = vmatprep.mubr.f32.mxu1 %v17387_v59  ;;  %10209 = vmatpush3.msra.mxu0 %v17386_v46  ;;  %v9049_v6 = vpop.f32.mrf.mxu0  ;;  %v9099_v31 = vpop.f32.mrf.mxu1 }
 0x322   : > { %10245 = vmatpush3.msra.mxu1 %v14860_v47  ;;  %10210 = vmatprep.subr.mxu0 %v17388_v51  ;;  %v9050_v10 = vadd.f32 %v9049_v6, %v9048_v2  ;;  %v9100_v49 = vadd.f32 %v9099_v31, %v9098_v50 }
 0x323   : > { %10189 = vmatmul.mubr.f32.gmra.mxu1 %v6866_v41  ;;  %10246 = vmatprep.subr.mxu1 %v14890_v39  ;;  %v17390_v41 = vld [vmem:[#allocation35_spill] sm:$0xff] }
 0x324   : > { %10211 = vmatpush3.msra.mxu0 %v17388_v51  ;;  %10247 = vmatpush3.msra.mxu1 %v14890_v39  ;;  %v15464_v15 = vadd.f32 %v9100_v49, %v9044_v20 }
 0x325   : > { %10212 = vmatprep.subr.mxu0 %v17389_v27  ;;  %10248 = vmatprep.subr.mxu1 %v14900_v16  ;;  %v9051_v47 = vpop.f32.mrf.mxu0  ;;  %v9101_v45 = vpop.f32.mrf.mxu1 }
 0x326   : > { %10191 = vmatprep.mubr.f32.mxu1 %v6876_v35  ;;  %10213 = vmatpush3.msra.mxu0 %v17389_v27 }
 0x327   : > { %10249 = vmatpush3.msra.mxu1 %v14900_v16  ;;  %10214 = vmatprep.subr.mxu0 %v17390_v41  ;;  %v9052_v58 = vpop.f32.mrf.mxu0  ;;  %v9102_v30 = vpop.f32.mrf.mxu1 }
 0x328   : > { %10192 = vmatmul.mubr.f32.gmra.mxu1 %v6886_v61  ;;  %10250 = vmatprep.subr.mxu1 %v17349_v56  ;;  %v9053_v39 = vadd.f32 %v9052_v58, %v9051_v47  ;;  %v9103_v32 = vadd.f32 %v9102_v30, %v9101_v45  ;;  %v17392_v61 = vld [vmem:[#allocation17_spill] sm:$0xff] }
 0x329   : > { %10215 = vmatpush3.msra.mxu0 %v17390_v41  ;;  %10251 = vmatpush3.msra.mxu1 %v17349_v56 }
 0x32a   : > { %10216 = vmatprep.subr.mxu0 %v17391_v42  ;;  %10252 = vmatprep.subr.mxu1 %v17354_v55  ;;  %v15480_v16 = vadd.f32 %v9103_v32, %v9047_v21 }
 0x32b   : > { %10217 = vmatpush3.msra.mxu0 %v17391_v42  ;;  %10253 = vmatpush3.msra.mxu1 %v17354_v55  ;;  %v9054_v44 = vpop.f32.mrf.mxu0  ;;  %v9104_v35 = vpop.f32.mrf.mxu1 }
 0x32c   : > { %10218 = vmatprep.subr.mxu0 %v17392_v61  ;;  %10254 = vmatprep.subr.mxu1 %v17358_v1 }
 0x32d   : > { %10219 = vmatpush3.msra.mxu0 %v17392_v61  ;;  %10255 = vmatpush3.msra.mxu1 %v17358_v1  ;;  %v9055_v56 = vpop.f32.mrf.mxu0  ;;  %v9105_v24 = vpop.f32.mrf.mxu1 }
 0x32e   : > { %10220 = vmatprep.subr.mxu0 %v17393_v18  ;;  %10256 = vmatprep.subr.mxu1 %v17360_v48  ;;  %v9056_v14 = vadd.f32 %v9055_v56, %v9054_v44  ;;  %v9106_v7 = vadd.f32 %v9105_v24, %v9104_v35 }
 0x32f   : > { %10221 = vmatpush3.msra.mxu0 %v17393_v18  ;;  %10257 = vmatpush3.msra.mxu1 %v17360_v48 }
 0x330   : > { %10222 = vmatprep.subr.mxu0 %v15213_v54  ;;  %10258 = vmatprep.subr.mxu1 %v17363_v29  ;;  %v15494_v55 = vadd.f32 %v9106_v7, %v9050_v10 }
 0x331   : > { %10223 = vmatpush3.msra.mxu0 %v15213_v54  ;;  %10259 = vmatpush3.msra.mxu1 %v17363_v29  ;;  %v9057_v1 = vpop.f32.mrf.mxu0  ;;  %v9107_v20 = vpop.f32.mrf.mxu1 }
 0x332   : > { %10224 = vmatprep.subr.mxu0 %v15229_v63  ;;  %10260 = vmatprep.subr.mxu1 %v17366_v40 }
 0x333   : > { %10225 = vmatpush3.msra.mxu0 %v15229_v63  ;;  %10226 = vmatprep.mubr.f32.mxu0 %v15056_v22  ;;  %v9058_v48 = vpop.f32.mrf.mxu0  ;;  %v9108_v60 = vpop.f32.mrf.mxu1 }
 0x334   : > { %10261 = vmatpush3.msra.mxu1 %v17366_v40  ;;  %10227 = vmatmul.mubr.f32.vlgmr.msra.gmra.mxu0 %v15050_v11  ;;  %v9059_v17 = vadd.f32 %v9058_v48, %v9057_v1  ;;  %v9109_v54 = vadd.f32 %v9108_v60, %v9107_v20 }
 0x335   : > { %10262 = vmatprep.subr.mxu1 %v17369_v0  ;;  %10229 = vmatprep.mubr.f32.mxu0 %v15117_v38 }
 0x336   : > { %10263 = vmatpush3.msra.mxu1 %v17369_v0  ;;  %10270 = vmatprep.mubr.f32.mxu1 %v15056_v22  ;;  %v15508_v29 = vadd.f32 %v9109_v54, %v9053_v39 }
 0x337   : > { %10264 = vmatprep.subr.mxu1 %v17372_v52  ;;  %v9060_v63 = vpop.f32.mrf.mxu0  ;;  %v9110_v9 = vpop.f32.mrf.mxu1 }
 0x338   : > { %10265 = vmatpush3.msra.mxu1 %v17372_v52  ;;  %10230 = vmatmul.mubr.f32.gmra.mxu0 %v15137_v43 }
 0x339   : > { %10266 = vmatprep.subr.mxu1 %v17374_v8  ;;  %10232 = vmatprep.mubr.f32.mxu0 %v15172_v37  ;;  %v9061_v40 = vpop.f32.mrf.mxu0  ;;  %v9111_v13 = vpop.f32.mrf.mxu1 }
 0x33a   : > { %10267 = vmatpush3.msra.mxu1 %v17374_v8  ;;  %v9062_v0 = vadd.f32 %v9061_v40, %v9060_v63  ;;  %v9112_v22 = vadd.f32 %v9111_v13, %v9110_v9 }
 0x33b   : > { %10268 = vmatprep.subr.mxu1 %v17377_v12 }
 0x33c   : > { %10269 = vmatpush3.msra.mxu1 %v17377_v12  ;;  %10233 = vmatmul.mubr.f32.gmra.mxu0 %v15193_v62  ;;  %v5953_v5 = vadd.f32 %v9112_v22, %v9056_v14 }
 0x33d   : > { %10271 = vmatmul.mubr.f32.vlgmr.msra.gmra.mxu1 %v15050_v11  ;;  %10235 = vmatprep.mubr.f32.mxu0 %v15225_v23  ;;  %v9063_v52 = vpop.f32.mrf.mxu0  ;;  %v9113_v53 = vpop.f32.mrf.mxu1 }
 0x33e   : > { %10273 = vmatprep.mubr.f32.mxu1 %v15117_v38 }
 0x33f   : > { %v9064_v21 = vpop.f32.mrf.mxu0  ;;  %v9114_v34 = vpop.f32.mrf.mxu1 }
 0x340   : > { %10236 = vmatmul.mubr.f32.gmra.mxu0 %v15238_v28  ;;  %v9065_v8 = vadd.f32 %v9064_v21, %v9063_v52  ;;  %v9115_v2 = vadd.f32 %v9114_v34, %v9113_v53 }
 0x341   : > { %10274 = vmatmul.mubr.f32.gmra.mxu1 %v15137_v43 }
 0x342   : > { %10276 = vmatprep.mubr.f32.mxu1 %v15172_v37  ;;  %v5960_v12 = vadd.f32 %v9115_v2, %v9059_v17 }
 0x343   : > { %v9116_v50 = vpop.f32.mrf.mxu1  ;;  %v9154_v46 = vpop.f32.mrf.mxu0 }
 0x345   : > { %10277 = vmatmul.mubr.f32.gmra.mxu1 %v15193_v62  ;;  %v9117_v11 = vpop.f32.mrf.mxu1  ;;  %v9155_v59 = vpop.f32.mrf.mxu0 }
 0x346   : > { %10279 = vmatprep.mubr.f32.mxu1 %v15225_v23  ;;  %v9118_v38 = vadd.f32 %v9117_v11, %v9116_v50  ;;  %v9156_v6 = vadd.f32 %v9155_v59, %v9154_v46 }
 0x348   : > { %v5967_v31 = vadd.f32 %v9118_v38, %v9062_v0  ;;  %v6112_v51 = vadd.f32 %v9156_v6, %v15464_v15 }
 0x349   : > { %10280 = vmatmul.mubr.f32.gmra.mxu1 %v15238_v28  ;;  %v9119_v10 = vpop.f32.mrf.mxu1  ;;  %v9157_v43 = vpop.f32.mrf.mxu0 }
 0x34b   : > { %v9120_v49 = vpop.f32.mrf.mxu1  ;;  %v9158_v37 = vpop.f32.mrf.mxu0 }
 0x34c   : > { %v9121_v27 = vadd.f32 %v9120_v49, %v9119_v10  ;;  %v9159_v47 = vadd.f32 %v9158_v37, %v9157_v43 }
 0x34e   : > { %v15529_v45 = vadd.f32 %v9121_v27, %v9065_v8  ;;  %v6121_v62 = vadd.f32 %v9159_v47, %v15480_v16 }
 0x34f   : > { %v9160_v41 = vpop.f32.mrf.mxu0  ;;  %v9210_v58 = vpop.f32.mrf.mxu1 }
 0x351   : > { %v9161_v23 = vpop.f32.mrf.mxu0  ;;  %v9211_v30 = vpop.f32.mrf.mxu1 }
 0x352   : > { %v9162_v39 = vadd.f32 %v9161_v23, %v9160_v41  ;;  %v9212_v32 = vadd.f32 %v9211_v30, %v9210_v58 }
 0x354   : > { %v6130_v15 = vadd.f32 %v9162_v39, %v15494_v55  ;;  %v15533_v42 = vadd.f32 %v9212_v32, %v6112_v51 }
 0x355   : > { %v9163_v28 = vpop.f32.mrf.mxu0  ;;  %v9213_v44 = vpop.f32.mrf.mxu1 }
 0x357   : > { %v9164_v35 = vpop.f32.mrf.mxu0  ;;  %v9214_v61 = vpop.f32.mrf.mxu1 }
 0x358   : > { %v9165_v56 = vadd.f32 %v9164_v35, %v9163_v28  ;;  %v9215_v24 = vadd.f32 %v9214_v61, %v9213_v44 }
 0x35a   : > { %v6139_v18 = vadd.f32 %v9165_v56, %v15508_v29  ;;  %v15536_v14 = vadd.f32 %v9215_v24, %v6121_v62 }
 0x35b   : > { %v9166_v16 = vpop.f32.mrf.mxu0  ;;  %v9216_v7 = vpop.f32.mrf.mxu1 }
 0x35d   : > { %v9167_v1 = vpop.f32.mrf.mxu0  ;;  %v9217_v20 = vpop.f32.mrf.mxu1 }
 0x35e   : > { %v9168_v48 = vadd.f32 %v9167_v1, %v9166_v16  ;;  %v9218_v60 = vadd.f32 %v9217_v20, %v9216_v7 }
 0x360   : > { %v6148_v17 = vadd.f32 %v9168_v48, %v5953_v5  ;;  %v15538_v55 = vadd.f32 %v9218_v60, %v6130_v15 }
 0x361   : > { %v9169_v54 = vpop.f32.mrf.mxu0  ;;  %v9219_v63 = vpop.f32.mrf.mxu1 }
 0x363   : > { %v9170_v9 = vpop.f32.mrf.mxu0  ;;  %v9220_v40 = vpop.f32.mrf.mxu1 }
 0x364   : > { %v9171_v13 = vadd.f32 %v9170_v9, %v9169_v54  ;;  %v9221_v0 = vadd.f32 %v9220_v40, %v9219_v63 }
 0x366   : > { %v6157_v22 = vadd.f32 %v9171_v13, %v5960_v12  ;;  %v15540_v52 = vadd.f32 %v9221_v0, %v6139_v18 }
 0x367   : > { %v9172_v29 = vpop.f32.mrf.mxu0  ;;  %v9222_v53 = vpop.f32.mrf.mxu1 }
 0x369   : > { %v9173_v21 = vpop.f32.mrf.mxu0  ;;  %v9223_v34 = vpop.f32.mrf.mxu1 }
 0x36a   : > { %v9174_v8 = vadd.f32 %v9173_v21, %v9172_v29  ;;  %v9224_v2 = vadd.f32 %v9223_v34, %v9222_v53 }
 0x36c   : > { %v6166_v50 = vadd.f32 %v9174_v8, %v5967_v31  ;;  %v15542_v46 = vadd.f32 %v9224_v2, %v6148_v17 }
 0x36d   : > { %v9225_v5 = vpop.f32.mrf.mxu1  ;;  %v15544_v59 = vpop.f32.mrf.mxu0 }
 0x36f   : > { %v9226_v11 = vpop.f32.mrf.mxu1  ;;  %v15548_v12 = vpop.f32.mrf.mxu0 }
 0x370   : > { %v9227_v38 = vadd.f32 %v9226_v11, %v9225_v5 }
 0x372   : > { %v15546_v6 = vadd.f32 %v9227_v38, %v6157_v22 }
 0x373   : > { %v9228_v51 = vpop.f32.mrf.mxu1  ;;  %v9266_v49 = vpop.f32.mrf.mxu0 }
 0x375   : > { %v9229_v10 = vpop.f32.mrf.mxu1  ;;  %v9267_v31 = vpop.f32.mrf.mxu0 }
 0x376   : > { %v9230_v43 = vadd.f32 %v9229_v10, %v9228_v51 }
 0x378   : > { %v15550_v37 = vadd.f32 %v9230_v43, %v6166_v50 }
 0x379   : > { %v15552_v27 = vpop.f32.mrf.mxu1  ;;  %v9269_v62 = vpop.f32.mrf.mxu0 }
 0x37a   : > { %17394 = vst [vmem:[#allocation21_spill] sm:$0xff] %v15550_v37 }
 0x37b   : > { %v15554_v47 = vpop.f32.mrf.mxu1  ;;  %v9270_v58 = vpop.f32.mrf.mxu0 }
 0x37f   : > { %v9322_v41 = vpop.f32.mrf.mxu1  ;;  %v9272_v30 = vpop.f32.mrf.mxu0 }
 0x381   : > { %v9323_v23 = vpop.f32.mrf.mxu1  ;;  %v9273_v32 = vpop.f32.mrf.mxu0 }
 0x385   : > { %v9325_v39 = vpop.f32.mrf.mxu1  ;;  %v9275_v28 = vpop.f32.mrf.mxu0 }
 0x387   : > { %v9326_v15 = vpop.f32.mrf.mxu1  ;;  %v9276_v35 = vpop.f32.mrf.mxu0 }
 0x38b   : > { %v15556_v44 = vpop.f32.mrf.mxu1  ;;  %v15560_v56 = vpop.f32.mrf.mxu0 }
 0x38d   : > { %v15558_v61 = vpop.f32.mrf.mxu1  ;;  %v15562_v18 = vpop.f32.mrf.mxu0 }
 0x391   : > { %v9331_v24 = vpop.f32.mrf.mxu1  ;;  %v9281_v7 = vpop.f32.mrf.mxu0 }
 0x393   : > { %v9332_v16 = vpop.f32.mrf.mxu1  ;;  %v9282_v20 = vpop.f32.mrf.mxu0 }
 0x397   : > { %v15564_v1 = vpop.f32.mrf.mxu1  ;;  %v15568_v60 = vpop.f32.mrf.mxu0 }
 0x399   : > { %v15566_v48 = vpop.f32.mrf.mxu1  ;;  %v15570_v54 = vpop.f32.mrf.mxu0 }
 0x39d   : > { %v9337_v17 = vpop.f32.mrf.mxu1  ;;  %v15572_v9 = vpop.f32.mrf.mxu0 }
 0x39f   : > { %v9338_v63 = vpop.f32.mrf.mxu1  ;;  %v15576_v13 = vpop.f32.mrf.mxu0 }
 0x3a3   : > { %v15574_v40 = vpop.f32.mrf.mxu1  ;;  %v10052_v22 = vpop.f32.mrf.mxu0 }
 0x3a4   : > { %17395 = vst [vmem:[#allocation63_spill] sm:$0xff] %v15574_v40  ;;  %v9324_v40 = vadd.f32 %v9323_v23, %v9322_v41 }
 0x3a5   : > { %v15578_v0 = vpop.f32.mrf.mxu1  ;;  %v6820_v53 = vpop.f32.mrf.mxu0 }
 0x3a6   : > { %17396 = vst [vmem:[#allocation38_spill] sm:$0xff] %v15578_v0 }
 0x3a9   : > { %v15580_v29 = vpop.f32.mrf.mxu1  ;;  %v10055_v34 = vpop.f32.mrf.mxu0 }
 0x3ab   : > { %v15582_v21 = vpop.f32.mrf.mxu1  ;;  %v15584_v2 = vpop.f32.mrf.mxu0 }
 0x3ac   : > { %17397 = vst [vmem:[#allocation66_spill] sm:$0xff] %v15584_v2 }
 0x3af   : > { %v10096_v8 = vpop.f32.mrf.mxu1  ;;  %v15586_v5 = vpop.f32.mrf.mxu0 }
 0x3b0   : > { %17398 = vst [vmem:[#allocation36_spill] sm:$0xff] %v15586_v5  ;;  %v9268_v5 = vadd.f32 %v9267_v31, %v9266_v49  ;;  %v9233_v49 = vadd.f32 %v15554_v47, %v15552_v27  ;;  %v9283_v31 = vadd.f32 %v9282_v20, %v9281_v7 }
 0x3b1   : > { %v7041_v50 = vpop.f32.mrf.mxu1  ;;  %v15590_v38 = vpop.f32.mrf.mxu0 }
 0x3b2   : > { %17400 = vst [vmem:[#allocation19_spill] sm:$0xff] %v15590_v38 }
 0x3b5   : > { %v15588_v11 = vpop.f32.mrf.mxu1  ;;  %v15594_v10 = vpop.f32.mrf.mxu0 }
 0x3b6   : > { %17399 = vst [vmem:[#allocation44_spill] sm:$0xff] %v15588_v11  ;;  %17402 = vst [vmem:[#allocation49_spill] sm:$0xff] %v15594_v10  ;;  %v9274_v11 = vadd.f32 %v9273_v32, %v9272_v30  ;;  %v9336_v32 = vadd.f32 %v15566_v48, %v15564_v1 }
 0x3b7   : > { %v15592_v51 = vpop.f32.mrf.mxu1  ;;  %v15598_v19 = vpop.f32.mrf.mxu0 }
 0x3b8   : > { %17401 = vst [vmem:[#allocation76_spill] sm:$0xff] %v15592_v51  ;;  %17404 = vst [vmem:[#allocation81_spill] sm:$0xff] %v15598_v19 }
 0x3bb   : > { %v15596_v43 = vpop.f32.mrf.mxu1 }
 0x3bc   : > { %17403 = vst [vmem:[#allocation104_spill] sm:$0xff] %v15596_v43 }
 0x3bd   : > { %v15600_v4 = vpop.f32.mrf.mxu1  ;;  %v17415_v1 = vld [vmem:[#allocation44_spill] sm:$0xff] }
 0x3be   : > { %17405 = vst [vmem:[#allocation107_spill] sm:$0xff] %v15600_v4  ;;  %v9271_v4 = vadd.f32 %v9270_v58, %v9269_v62  ;;  %v6542_v58 = vadd.f32 %v9274_v11, %v15538_v55 }
 0x3c0   : > { %v15602_v26 = vpop.f32.mrf.mxu1 }
 0x3c1   : > { %17406 = vst [vmem:[#allocation85_spill] sm:$0xff] %v15602_v26  ;;  %v9327_v26 = vadd.f32 %v9326_v15, %v9325_v39  ;;  %v6563_v39 = vadd.f32 %v9283_v31, %v15546_v6  ;;  %v9345_v6 = vadd.f32 %v15582_v21, %v15580_v29 }
 0x3c2   : > { %v15604_v36 = vpop.f32.mrf.mxu1 }
 0x3c3   : > { %17407 = vst [vmem:[#allocation86_spill] sm:$0xff] %v15604_v36 }
 0x3cc   : > { %v10140_v25 = vpop.f32.mrf.mxu0 }
 0x3ce   : > { %v7187_v33 = vpop.f32.mrf.mxu0 }
 0x3d2   : > { %v15606_v3 = vpop.f32.mrf.mxu0 }
 0x3d3   : > { %17408 = vst [vmem:[#allocation82_spill] sm:$0xff] %v15606_v3  ;;  %v6535_v3 = vadd.f32 %v9271_v4, %v15536_v14  ;;  %v9330_v14 = vadd.f32 %v15558_v61, %v15556_v44 }
 0x3d4   : > { %v15608_v38 = vpop.f32.mrf.mxu0 }
 0x3d5   : > { %17409 = vst [vmem:[#allocation84_spill] sm:$0xff] %v15608_v38  ;;  %v9277_v38 = vadd.f32 %v9276_v35, %v9275_v28  ;;  %v6688_v2 = vadd.f32 %v9327_v26, %v6535_v3  ;;  %v9280_v3 = vadd.f32 %v15562_v18, %v15560_v56  ;;  %v9339_v26 = vadd.f32 %v9338_v63, %v9337_v17 }
 0x3d6   : > { %v6695_v44 = vadd.f32 %v9330_v14, %v6542_v58 }
 0x3d7   : > { %v10184_v57 = vpop.f32.mrf.mxu1  ;;  %v15610_v51 = vpop.f32.mrf.mxu0  ;;  %v6549_v4 = vadd.f32 %v9277_v38, %v15540_v52  ;;  %v6831_v41 = vadd.f32 %v10052_v22, %v6688_v2  ;;  %v6556_v56 = vadd.f32 %v9280_v3, %v15542_v46  ;;  %v6716_v18 = vadd.f32 %v9339_v26, %v6563_v39  ;;  %v17427_v3 = vld [vmem:[#allocation107_spill] sm:$0xff] }
 0x3d8   : > { %17410 = vst [vmem:[#allocation92_spill] sm:$0xff] %v15610_v51  ;;  %v9177_v51 = vadd.f32 %v15548_v12, %v15544_v59 }
 0x3d9   : > { %v7325_v37 = vpop.f32.mrf.mxu1  ;;  %v15614_v43 = vpop.f32.mrf.mxu0  ;;  %v7048_v23 = vadd.f32 %v10096_v8, %v6831_v41 }
 0x3da   : > { %17412 = vst [vmem:[#allocation94_spill] sm:$0xff] %v15614_v43  ;;  %v9333_v43 = vadd.f32 %v9332_v16, %v9331_v24  ;;  %v9286_v24 = vadd.f32 %v15570_v54, %v15568_v60  ;;  %v17414_v16 = vld [vmem:[#allocation66_spill] sm:$0xff]  ;;  %v6709_v60 = vadd.f32 %v9336_v32, %v6556_v56  ;;  %v17432_v56 = vld [vmem:[#allocation85_spill] sm:$0xff] }
 0x3db   : > { %v7195_v55 = vadd.f32 %v10140_v25, %v7048_v23  ;;  %v6841_v7 = vadd.f32 %v17414_v16, %v6695_v44  ;;  %v17420_v21 = vld [vmem:[#allocation82_spill] sm:$0xff] }
 0x3dc   : > { %v6702_v47 = vadd.f32 %v9333_v43, %v6549_v4 }
 0x3dd   : > { %v15612_v10 = vpop.f32.mrf.mxu1  ;;  %v15618_v0 = vpop.f32.mrf.mxu0  ;;  %v7334_v17 = vadd.f32 %v10184_v57, %v7195_v55 }
 0x3de   : > { %17411 = vst [vmem:[#allocation83_spill] sm:$0xff] %v15612_v10  ;;  %v6528_v10 = vadd.f32 %v9268_v5, %v15533_v42  ;;  %v6175_v42 = vadd.f32 %v9177_v51, %v15529_v45  ;;  %v9289_v45 = vadd.f32 %v15576_v13, %v15572_v9  ;;  %v6851_v28 = vadd.f32 %v10055_v34, %v6702_v47  ;;  %v17416_v9 = vld [vmem:[#allocation63_spill] sm:$0xff]  ;;  %v17418_v13 = vld [vmem:[#allocation36_spill] sm:$0xff] }
 0x3df   : > { %v15616_v19 = vpop.f32.mrf.mxu1  ;;  %v6871_v22 = vadd.f32 %v17418_v13, %v6716_v18  ;;  %v17422_v5 = vld [vmem:[#allocation19_spill] sm:$0xff]  ;;  %v17423_v51 = vld [vmem:[#allocation104_spill] sm:$0xff] }
 0x3e0   : > { %17413 = vst [vmem:[#allocation87_spill] sm:$0xff] %v15616_v19  ;;  %v15626_v19 = vpop.f32.mrf.mxu0  ;;  %v6681_v59 = vadd.f32 %v9324_v40, %v6528_v10  ;;  %v6360_v52 = vadd.f32 %v9233_v49, %v6175_v42  ;;  %v7060_v20 = vadd.f32 %v17415_v1, %v6851_v28  ;;  %v17417_v40 = vld [vmem:[#allocation38_spill] sm:$0xff]  ;;  %v6861_v11 = vadd.f32 %v17422_v5, %v6709_v60  ;;  %v17424_v49 = vld [vmem:[#allocation84_spill] sm:$0xff]  ;;  %v17426_v42 = vld [vmem:[#allocation49_spill] sm:$0xff] }
 0x3e1   : > { %v9342_v46 = vadd.f32 %v17417_v40, %v17416_v9  ;;  %v7072_v10 = vadd.f32 %v17423_v51, %v6871_v22  ;;  %v17428_v58 = vld [vmem:[#allocation92_spill] sm:$0xff]  ;;  %v17434_v1 = vld [vmem:[#allocation42_spill] sm:$0xff] }
 0x3e2   : > { %v6821_v27 = vadd.f32 %v6820_v53, %v6681_v59  ;;  %v6577_v25 = vadd.f32 %v9289_v45, %v6360_v52  ;;  %v17419_v53 = vld [vmem:[#allocation76_spill] sm:$0xff]  ;;  %v7209_v34 = vadd.f32 %v17420_v21, %v7060_v20  ;;  %v7066_v26 = vadd.f32 %v17427_v3, %v6861_v11  ;;  %v17430_v45 = vld [vmem:[#allocation9_spill] sm:$0xff] }
 0x3e3   : > { %v15620_v36 = vpop.f32.mrf.mxu1  ;;  %v7054_v29 = vadd.f32 %v17419_v53, %v6841_v7 }
 0x3e4   : > { %v7042_v35 = vadd.f32 %v7041_v50, %v6821_v27  ;;  %v6730_v38 = vadd.f32 %v9345_v6, %v6577_v25  ;;  %v7223_v27 = vadd.f32 %v17428_v58, %v7072_v10 }
 0x3e5   : > { %v15630_v62 = vpop.f32.mrf.mxu1  ;;  %v7202_v31 = vadd.f32 %v17424_v49, %v7054_v29  ;;  %v17425_v4 = vld [vmem:[#allocation83_spill] sm:$0xff] }
 0x3e6   : > { %v7188_v48 = vadd.f32 %v7187_v33, %v7042_v35  ;;  %v17421_v33 = vld [vmem:[#allocation21_spill] sm:$0xff]  ;;  %v7350_v14 = vadd.f32 %v17425_v4, %v7209_v34  ;;  %v7366_v16 = vadd.f32 %v15620_v36, %v7223_v27  ;;  %v17441_v4 = vld [vmem:[#allocation56_spill] sm:$0xff] }
 0x3e7   : > { %v6570_v57 = vadd.f32 %v9286_v24, %v17421_v33  ;;  %v17429_v52 = vld [vmem:[#allocation87_spill] sm:$0xff]  ;;  %v17431_v35 = vld [vmem:[#allocation81_spill] sm:$0xff]  ;;  %v17433_v24 = vld [vmem:[#allocation94_spill] sm:$0xff] }
 0x3e8   : > { %v15644_v15 = vpop.f32.mrf.mxu1  ;;  %v7326_v8 = vadd.f32 %v7325_v37, %v7188_v48  ;;  %v6891_v37 = vadd.f32 %v17426_v42, %v6730_v38  ;;  %v7342_v39 = vadd.f32 %v17429_v52, %v7202_v31  ;;  %v7216_v6 = vadd.f32 %v17433_v24, %v7066_v26  ;;  %v17435_v48 = vld [vmem:[#allocation86_spill] sm:$0xff]  ;;  %v17439_v38 = vld [vmem:[#allocation29_spill] sm:$0xff] }
 0x3ea   : > { %v7373_v54 = vpop.f32.mrf.mxu1 }
 0x3f4   : > { %v10228_v12 = vpop.f32.mrf.mxu0 }
 0x3f5   : > { %v7507_v2 = vadd.f32 %v10228_v12, %v7334_v17  ;;  %v6723_v12 = vadd.f32 %v9342_v46, %v6570_v57  ;;  %v7358_v46 = vadd.f32 %v15630_v62, %v7216_v6  ;;  %v17438_v57 = vld [vmem:[#allocation10_spill] sm:$0xff] }
 0x3f6   : > { %v7500_v30 = vpop.f32.mrf.mxu0 }
 0x3f7   : > { %v7501_v41 = vadd.f32 %v7500_v30, %v7326_v8  ;;  %v6881_v55 = vadd.f32 %v17431_v35, %v6723_v12  ;;  %v7084_v30 = vadd.f32 %v17432_v56, %v6891_v37 }
 0x3f8   : > { %v10231_v61 = vpop.f32.mrf.mxu0 }
 0x3f9   : > { %v7519_v32 = vadd.f32 %v10231_v61, %v7350_v14  ;;  %v7078_v17 = vadd.f32 %v17435_v48, %v6881_v55  ;;  %v7237_v25 = vadd.f32 %v15618_v0, %v7084_v30  ;;  %v17437_v0 = vld [vmem:[#allocation11_spill] sm:$0xff] }
 0x3fa   : > { %v7512_v63 = vpop.f32.mrf.mxu0 }
 0x3fb   : > { %v7513_v7 = vadd.f32 %v7512_v63, %v7342_v39  ;;  %v17436_v63 = vld [vmem:[#allocation31_spill] sm:$0xff]  ;;  %v7230_v60 = vadd.f32 %v15626_v19, %v7078_v17  ;;  %v7382_v29 = vadd.f32 %v15644_v15, %v7237_v25 }
 0x3fc   : > { %v10234_v50 = vpop.f32.mrf.mxu0 }
 0x3fd   : > { %v10272_v43 = vpop.f32.mrf.mxu1  ;;  %v7531_v36 = vadd.f32 %v10234_v50, %v7366_v16  ;;  %v7374_v50 = vadd.f32 %v7373_v54, %v7230_v60  ;;  %v17440_v54 = vld [vmem:[#allocation100_spill] sm:$0xff] }
 0x3fe   : > { %v7636_v59 = vadd.f32 %v10272_v43, %v7507_v2  ;;  %v7524_v47 = vpop.f32.mrf.mxu0 }
 0x3ff   : > { %v7629_v23 = vpop.f32.mrf.mxu1  ;;  %v7525_v21 = vadd.f32 %v7524_v47, %v7358_v46 }
 0x400   : > { %v7676_v28 = vadd.f32 %v7636_v59, %v17430_v45  ;;  %v7630_v44 = vadd.f32 %v7629_v23, %v7501_v41  ;;  %v10237_v9 = vpop.f32.mrf.mxu0 }
 0x401   : > { %v10275_v18 = vpop.f32.mrf.mxu1  ;;  %v7543_v33 = vadd.f32 %v10237_v9, %v7382_v29 }
 0x402   : > { %7700 = vst [vmem:[%s15675_s14 + $0x8] sm:$0xff] %v7676_v28  ;;  %v7675_v61 = vadd.f32 %v7630_v44, %v17434_v1  ;;  %v7648_v20 = vadd.f32 %v10275_v18, %v7519_v32  ;;  %v7536_v62 = vpop.f32.mrf.mxu0 }
 0x403   : > { %v7641_v40 = vpop.f32.mrf.mxu1  ;;  %v7537_v15 = vadd.f32 %v7536_v62, %v7374_v50 }
 0x404   : > { %7699 = vst [vmem:[%s15675_s14] sm:$0xff] %v7675_v61  ;;  %v7678_v13 = vadd.f32 %v7648_v20, %v17436_v63  ;;  %v7642_v22 = vadd.f32 %v7641_v40, %v7513_v7 }
 0x405   : > { %v10278_v53 = vpop.f32.mrf.mxu1 }
 0x406   : > { %7702 = vst [vmem:[%s15675_s14 + $0x18] sm:$0xff] %v7678_v13  ;;  %v7677_v34 = vadd.f32 %v7642_v22, %v17437_v0  ;;  %v7660_v8 = vadd.f32 %v10278_v53, %v7531_v36 }
 0x407   : > { %v7653_v2 = vpop.f32.mrf.mxu1 }
 0x408   : > { %7701 = vst [vmem:[%s15675_s14 + $0x10] sm:$0xff] %v7677_v34  ;;  %v7680_v19 = vadd.f32 %v7660_v8, %v17438_v57  ;;  %v7654_v5 = vadd.f32 %v7653_v2, %v7525_v21 }
 0x409   : > { %v10281_v11 = vpop.f32.mrf.mxu1 }
 0x40a   : > { %7704 = vst [vmem:[%s15675_s14 + $0x28] sm:$0xff] %v7680_v19  ;;  %v7679_v51 = vadd.f32 %v7654_v5, %v17439_v38  ;;  %v7672_v10 = vadd.f32 %v10281_v11, %v7543_v33 }
 0x40b   : > { %v7665_v43 = vpop.f32.mrf.mxu1 }
 0x40c   : > { %7703 = vst [vmem:[%s15675_s14 + $0x20] sm:$0xff] %v7679_v51  ;;  %v7682_v49 = vadd.f32 %v7672_v10, %v17440_v54  ;;  %v7666_v31 = vadd.f32 %v7665_v43, %v7537_v15 }
 0x40e   : > { %7706 = vst [vmem:[%s15675_s14 + $0x38] sm:$0xff] %v7682_v49  ;;  %v7681_v14 = vadd.f32 %v7666_v31, %v17441_v4 }
 0x410   : > { %7705 = vst [vmem:[%s15675_s14 + $0x30] sm:$0xff] %v7681_v14 }
 0x411   : > { %10367 = shalt.err (!%p10364_p5)
}
 0x412   : > { %s10368_s12 = scalar_lea.hbm %s15699_s19, 1024  ;;  %s10372_s20 = scalar_lea.hbm %s15761_s8, 2048 }
 0x413   : > { %p10369_p6 = scmp.ne.s32.totalorder %s15699_s19, %s10368_s12  ;;  %p10373_p10 = scmp.lt.s32.totalorder %s15699_s19, %s15761_s8 }
 0x414   : > { %p10374_p11 = scmp.lt.s32.totalorder %s10372_s20, %s10368_s12 }
 0x415   : > { %p10370_p7 = pnand %p10369_p6, %p10520_p4 }
 0x416   : > { %p10375_p12 = por %p10374_p11, %p10373_p10 }
 0x417   : > { %p10371_p9 = pneg %p10370_p7 }
 0x419   : > { %p10376_p13 = pnand %p10375_p12, %p10371_p9 }
 0x41b   : > { %10379 = shalt.err (!%p10376_p13)
}
 0x41c   : > { %s10433_s21 = smov 128   ;;  %s10434_s23 = smov 8  }
 0x41d   : > { %10284 = dma.vmem_to_hbm [thread:$0]  (%p10520_p4), %s15701_s22, 1024, %s15699_s19, %s15708_s30, %s10433_s21, %s10433_s21, %s10434_s23  }
 0x41e PF: > { %p10291_p0 = scmp.ge.s32.totalorder %s10430_s10, 2  ;;  %s7738_s11 = sand.u32 1, %s10410_s27  }
 0x41f   : > { %s7739_s25 = scalar_lea.sflag [#allocation4], %s7738_s11 }
 0x420   : > { %p10287_p1 = pnand %p10291_p0, %p10527_p8 }
 0x422   : > { %p10288_p2 = pneg %p10287_p1 }
 0x424   : > { %10405 = dma.done.wait (%p10288_p2), %s7739_s25, 1024  }
 0x425   : > { %10407 = vsyncadd (%p10288_p2), %s7739_s25, 4294966272  ;;  %s21_s10 = sadd.s32 1, %s10430_s10   ;;  %s17442_s27 = smov %s10414_s28 }
 0x426   : > { %p18_p3 = scmp.ge.s32.totalorder %s21_s10, 4   ;;  %s17443_s28 = smov %s10418_s29 }
 0x427   : > { %s17444_s29 = smov %s10533_s18  ;;  %s17445_s30 = smov %s10426_s9 }
 0x428   : > { %s17446_s9 = smov %s17448_s13  ;;  %20 = sbr.rel (!%p18_p3) target bundleno = 4 (0x4), region = 106 }
 0x42d   :  { %7744 = vsyncpa [#allocation4], 1 }
 0x42e   :  { %7746 = vsyncpa [#allocation4 + $0x1], 1 }

</bundles_post_ra>
